<compile_context>
chip_gen: v7x
topology: tpu7x:2x2x1
jax: 0.10.0
libtpu: 0.0.40
codegen_flags: <defaults>
</compile_context>

<pallas_src>
import functools
import math

import jax
import jax.numpy as jnp
from jax.experimental import pallas as pl
from jax.experimental.pallas import tpu as pltpu

# ----------------------------------------------------------------------------
# Tiling / spec helpers
# ----------------------------------------------------------------------------
_LIN_TILE = 1024           # row tile for plain linear layers
_PT_TILE = 256             # max point tile for the point-transformer conv
_ROW_TILE = 512            # max row tile for neighbor_max / knn_interp / heads
_SQD_TILE = 1024           # tile (both dims) for pairwise distances
_BN_FUSE_MAX_ROWS = 2048   # fused linear+BN path when N <= this


def _pick_vmem_limit():
    # v5e/v6e: 128 MiB physical -> ~64 MiB scoped; v7x: 64 MiB -> ~32-48 MiB.
    try:
        cap = int(pltpu.get_tpu_info().vmem_capacity_bytes)
        return max(32 * 1024 * 1024, min(96 * 1024 * 1024, cap // 2))
    except Exception:
        return 48 * 1024 * 1024


_VMEM_LIMIT = _pick_vmem_limit()


def _cp(*sems):
    return pltpu.CompilerParams(dimension_semantics=tuple(sems),
                                vmem_limit_bytes=_VMEM_LIMIT)


def _full_spec(shape):
    zeros = (0,) * len(shape)
    return pl.BlockSpec(tuple(shape), lambda *_: zeros)


def _round_up(x, m):
    return ((x + m - 1) // m) * m


def _tile_rows(n, max_tile):
    """Pick a row tile (always a multiple of 8). Returns (tile, padded_n)."""
    if n <= max_tile:
        t = _round_up(n, 8)
        return t, t
    return max_tile, _round_up(n, max_tile)


def _pt_tile(n, c):
    # keep tile*C <= 8192 elems so the 3 f32 softmax accumulators stay <= 24 vregs
    t = max(8, min(_PT_TILE, (8192 // max(c, 1)) // 8 * 8))
    return _tile_rows(n, t)


def _gather_tile(n, k, c, itemsize):
    # bound the double-buffered [K, tile, C] gathered block to ~6 MiB
    t = (6 * 1024 * 1024) // max(1, k * c * itemsize)
    t = max(8, min(_ROW_TILE, (t // 8) * 8))
    return _tile_rows(n, t)


def _pad_rows(x, n_pad):
    n = x.shape[0]
    if n_pad == n:
        return x
    return jnp.pad(x, ((0, n_pad - n),) + ((0, 0),) * (x.ndim - 1))


def _pad_mid(x, n_pad):
    n = x.shape[1]
    if n_pad == n:
        return x
    return jnp.pad(x, ((0, 0), (0, n_pad - n), (0, 0)))


# ----------------------------------------------------------------------------
# Kernel 1: tiled Linear (+ optional ReLU), bf16 MXU / f32 accumulate
# ----------------------------------------------------------------------------
def _linear_kernel(x_ref, w_ref, b_ref, o_ref, *, relu):
    y = jnp.dot(x_ref[...].astype(jnp.bfloat16), w_ref[...],
                preferred_element_type=jnp.float32) + b_ref[...]
    if relu:
        y = jnp.maximum(y, 0.0)
    o_ref[...] = y.astype(o_ref.dtype)


def linear(x, w, b=None, *, relu=False, out_dtype=jnp.bfloat16):
    n, cin = x.shape
    cout = w.shape[1]
    if b is None:
        b = jnp.zeros((1, cout), jnp.float32)
    tile, n_pad = _tile_rows(n, _LIN_TILE)
    xp = _pad_rows(x, n_pad)
    out = pl.pallas_call(
        functools.partial(_linear_kernel, relu=relu),
        out_shape=jax.ShapeDtypeStruct((n_pad, cout), out_dtype),
        grid=(n_pad // tile,),
        in_specs=[pl.BlockSpec((tile, cin), lambda i: (i, 0)),
                  _full_spec((cin, cout)),
                  _full_spec((1, cout))],
        out_specs=pl.BlockSpec((tile, cout), lambda i: (i, 0)),
        compiler_params=_cp("parallel"),
    )(xp, w.astype(jnp.bfloat16), b)
    return out[:n] if n_pad != n else out


# ----------------------------------------------------------------------------
# Kernel 2: Linear + BatchNorm1d (batch statistics) + ReLU
#   small N : fully fused single-block kernel
#   large N : tiled linear emitting per-tile partial stats (parallel grid),
#             then a tiled normalize pass (bf16 intermediate)
# ----------------------------------------------------------------------------
def _linear_bn_fused_kernel(x_ref, w_ref, b_ref, o_ref):
    y = jnp.dot(x_ref[...].astype(jnp.bfloat16), w_ref[...],
                preferred_element_type=jnp.float32) + b_ref[...]
    mean = jnp.mean(y, axis=0, keepdims=True)
    var = jnp.mean(jnp.square(y - mean), axis=0, keepdims=True)
    y = (y - mean) * jax.lax.rsqrt(var + 1e-5)
    o_ref[...] = jnp.maximum(y, 0.0).astype(o_ref.dtype)


def _linear_stats_kernel(x_ref, w_ref, b_ref, y_ref, s_ref, *, tile, n_valid):
    i = pl.program_id(0)
    y = jnp.dot(x_ref[...].astype(jnp.bfloat16), w_ref[...],
                preferred_element_type=jnp.float32) + b_ref[...]
    y_ref[...] = y.astype(y_ref.dtype)
    row = jax.lax.broadcasted_iota(jnp.int32, y.shape, 0) + i * tile
    ym = jnp.where(row < n_valid, y, 0.0)
    part = jnp.concatenate([jnp.sum(ym, axis=0, keepdims=True),
                            jnp.sum(ym * ym, axis=0, keepdims=True)], axis=0)
    s_ref[...] = part[None, :, :]


def _bn_apply_kernel(y_ref, s_ref, o_ref, *, n_valid):
    s = jnp.sum(s_ref[...], axis=0)                    # [2, C]
    mean = s[0:1, :] * (1.0 / n_valid)
    var = s[1:2, :] * (1.0 / n_valid) - mean * mean
    y = (y_ref[...].astype(jnp.float32) - mean) * jax.lax.rsqrt(var + 1e-5)
    o_ref[...] = jnp.maximum(y, 0.0).astype(o_ref.dtype)


def linear_bn_relu(x, w, b):
    n, cin = x.shape
    cout = w.shape[1]
    if b is None:
        b = jnp.zeros((1, cout), jnp.float32)
    wb = w.astype(jnp.bfloat16)

    if n <= _BN_FUSE_MAX_ROWS:
        return pl.pallas_call(
            _linear_bn_fused_kernel,
            out_shape=jax.ShapeDtypeStruct((n, cout), jnp.bfloat16),
            grid=(1,),
            in_specs=[_full_spec((n, cin)), _full_spec((cin, cout)),
                      _full_spec((1, cout))],
            out_specs=_full_spec((n, cout)),
            compiler_params=_cp("arbitrary"),
        )(x, wb, b)

    # Large-N path: statistics still cover the full point cloud.
    tile, n_pad = _tile_rows(n, _LIN_TILE)
    g = n_pad // tile
    xp = _pad_rows(x, n_pad)
    y, stats = pl.pallas_call(
        functools.partial(_linear_stats_kernel, tile=tile, n_valid=n),
        out_shape=(jax.ShapeDtypeStruct((n_pad, cout), jnp.bfloat16),
                   jax.ShapeDtypeStruct((g, 2, cout), jnp.float32)),
        grid=(g,),
        in_specs=[pl.BlockSpec((tile, cin), lambda i: (i, 0)),
                  _full_spec((cin, cout)), _full_spec((1, cout))],
        out_specs=(pl.BlockSpec((tile, cout), lambda i: (i, 0)),
                   pl.BlockSpec((1, 2, cout), lambda i: (i, 0, 0))),
        compiler_params=_cp("parallel"),
    )(xp, wb, b)
    out = pl.pallas_call(
        functools.partial(_bn_apply_kernel, n_valid=float(n)),
        out_shape=jax.ShapeDtypeStruct((n_pad, cout), jnp.bfloat16),
        grid=(g,),
        in_specs=[pl.BlockSpec((tile, cout), lambda i: (i, 0)),
                  _full_spec((g, 2, cout))],
        out_specs=pl.BlockSpec((tile, cout), lambda i: (i, 0)),
        compiler_params=_cp("parallel"),
    )(y, stats)
    return out[:n] if n_pad != n else out


# ----------------------------------------------------------------------------
# Kernel 3: pairwise squared distances (tiled 2-D grid, fused self-mask)
# ----------------------------------------------------------------------------
def _sqdist_kernel(a_ref, bt_ref, o_ref, *, mask_self, tm, tn):
    a = a_ref[...]                                            # [TM, 3]
    bt = bt_ref[...]                                          # [3, TN]
    ab = jnp.dot(a, bt, preferred_element_type=jnp.float32)   # [TM, TN]
    a2 = jnp.sum(a * a, axis=1, keepdims=True)
    b2 = jnp.sum(bt * bt, axis=0, keepdims=True)
    d = a2 + b2 - 2.0 * ab
    if mask_self:
        row = jax.lax.broadcasted_iota(jnp.int32, d.shape, 0) + pl.program_id(0) * tm
        col = jax.lax.broadcasted_iota(jnp.int32, d.shape, 1) + pl.program_id(1) * tn
        d = jnp.where(row == col, jnp.inf, d)
    o_ref[...] = d


def sqdist(a, b, *, mask_self=False):
    m, n = a.shape[0], b.shape[0]
    tm, m_pad = _tile_rows(m, _SQD_TILE)
    tn, n_pad = _tile_rows(n, _SQD_TILE)
    ap = _pad_rows(a, m_pad)
    bt = b.T
    btp = bt if n_pad == n else jnp.pad(bt, ((0, 0), (0, n_pad - n)))
    out = pl.pallas_call(
        functools.partial(_sqdist_kernel, mask_self=mask_self, tm=tm, tn=tn),
        out_shape=jax.ShapeDtypeStruct((m_pad, n_pad), jnp.float32),
        grid=(m_pad // tm, n_pad // tn),
        in_specs=[pl.BlockSpec((tm, 3), lambda i, j: (i, 0)),
                  pl.BlockSpec((3, tn), lambda i, j: (0, j))],
        out_specs=pl.BlockSpec((tm, tn), lambda i, j: (i, j)),
        compiler_params=_cp("parallel", "parallel"),
    )(ap, btp)
    if m_pad != m or n_pad != n:
        out = out[:m, :n]
    return out


# ----------------------------------------------------------------------------
# Kernel 4: PointTransformerConv message + per-channel softmax + aggregation
#   Batched over TILE points; neighbors processed two at a time so shared
#   weight matmuls see 2*TILE rows; online per-channel softmax.
# ----------------------------------------------------------------------------
def _pt_conv_kernel(xj_ref, aj_ref, pj_ref, ad_ref, pi_ref,
                    pw1_ref, pb1_ref, pw2_ref, pb2_ref,
                    aw1_ref, ab1_ref, aw2_ref, ab2_ref,
                    o_ref, *, k, tile):
    f32 = jnp.float32
    pw1 = pw1_ref[...]       # [3, 64] f32 (used on the VPU)
    pb1 = pb1_ref[...]
    pw2 = pw2_ref[...]       # bf16
    pb2 = pb2_ref[...]
    aw1 = aw1_ref[...]       # bf16
    ab1 = ab1_ref[...]
    aw2 = aw2_ref[...]       # bf16
    ab2 = ab2_ref[...]

    pi = pi_ref[...]                                 # [T, 3] f32
    ad = ad_ref[...].astype(f32)                     # [T, C] (lin_dst(x_i))
    ad2 = jnp.concatenate([ad, ad], axis=0)          # [2T, C] (hoisted)

    shape = (tile, o_ref.shape[-1])
    m = jnp.full(shape, -jnp.inf, f32)
    s = jnp.zeros(shape, f32)
    acc = jnp.zeros(shape, f32)

    def pos_attn(rp, adx, aj, xj):
        # pos_nn layer 1 (3 -> 64) as VPU broadcast-MADs (avoids a K=3 matmul)
        h = (rp[:, 0:1] * pw1[0:1, :] + rp[:, 1:2] * pw1[1:2, :]
             + rp[:, 2:3] * pw1[2:3, :] + pb1)
        h = jnp.maximum(h, 0.0)
        delta = jnp.dot(h.astype(jnp.bfloat16), pw2,
                        preferred_element_type=f32) + pb2
        delta = jnp.maximum(delta, 0.0)              # MLP() in the spec has a last ReLU
        # attn_nn((lin_dst(x_i) - lin_src(x_j)) + delta)
        a_in = adx - aj + delta
        g = jnp.dot(a_in.astype(jnp.bfloat16), aw1,
                    preferred_element_type=f32) + ab1
        g = jnp.maximum(g, 0.0)
        alpha = jnp.dot(g.astype(jnp.bfloat16), aw2,
                        preferred_element_type=f32) + ab2
        alpha = jnp.maximum(alpha, 0.0)
        msg = xj + delta                             # lin(x_j) + delta
        return alpha, msg

    # pairs of neighbors: stack rows so the MXU contractions see 2*T rows
    for pair in range(k // 2):
        k0, k1 = 2 * pair, 2 * pair + 1
        rp = jnp.concatenate([pi - pj_ref[k0], pi - pj_ref[k1]], axis=0)
        aj = jnp.concatenate([aj_ref[k0], aj_ref[k1]], axis=0).astype(f32)
        xj = jnp.concatenate([xj_ref[k0], xj_ref[k1]], axis=0).astype(f32)
        alpha, msg = pos_attn(rp, ad2, aj, xj)
        a0, a1 = alpha[:tile], alpha[tile:]
        x0, x1 = msg[:tile], msg[tile:]
        m_new = jnp.maximum(m, jnp.maximum(a0, a1))
        sc = jnp.exp(m - m_new)
        p0 = jnp.exp(a0 - m_new)
        p1 = jnp.exp(a1 - m_new)
        s = s * sc + p0 + p1
        acc = acc * sc + p0 * x0 + p1 * x1
        m = m_new

    if k % 2:
        kk = k - 1
        alpha, msg = pos_attn(pi - pj_ref[kk], ad,
                              aj_ref[kk].astype(f32), xj_ref[kk].astype(f32))
        m_new = jnp.maximum(m, alpha)
        sc = jnp.exp(m - m_new)
        pp = jnp.exp(alpha - m_new)
        s = s * sc + pp
        acc = acc * sc + pp * msg
        m = m_new

    o_ref[...] = (acc / s).astype(o_ref.dtype)       # exact softmax normalization


def pt_conv(x_j, a_j, p_j, a_dst, pos_i, pos_nn, attn_nn):
    k, n, c = x_j.shape
    tile, n_pad = _pt_tile(n, c)
    x_j = _pad_mid(x_j, n_pad)
    a_j = _pad_mid(a_j, n_pad)
    p_j = _pad_mid(p_j, n_pad)
    a_dst = _pad_rows(a_dst, n_pad)
    pos_i = _pad_rows(pos_i, n_pad)

    bf = jnp.bfloat16
    args = [x_j, a_j, p_j, a_dst, pos_i,
            pos_nn[0]['w'], pos_nn[0]['b'],
            pos_nn[1]['w'].astype(bf), pos_nn[1]['b'],
            attn_nn[0]['w'].astype(bf), attn_nn[0]['b'],
            attn_nn[1]['w'].astype(bf), attn_nn[1]['b']]
    in_specs = [
        pl.BlockSpec((k, tile, c), lambda i: (0, i, 0)),
        pl.BlockSpec((k, tile, c), lambda i: (0, i, 0)),
        pl.BlockSpec((k, tile, 3), lambda i: (0, i, 0)),
        pl.BlockSpec((tile, c), lambda i: (i, 0)),
        pl.BlockSpec((tile, 3), lambda i: (i, 0)),
    ] + [_full_spec(a.shape) for a in args[5:]]

    out = pl.pallas_call(
        functools.partial(_pt_conv_kernel, k=k, tile=tile),
        out_shape=jax.ShapeDtypeStruct((n_pad, c), jnp.bfloat16),
        grid=(n_pad // tile,),
        in_specs=in_specs,
        out_specs=pl.BlockSpec((tile, c), lambda i: (i, 0)),
        compiler_params=_cp("parallel"),
    )(*args)
    return out[:n] if n_pad != n else out


# ----------------------------------------------------------------------------
# Kernel 5: neighbor max reduction (dense scatter_max for TransitionDown)
# ----------------------------------------------------------------------------
def _neighbor_max_kernel(x_ref, o_ref):
    o_ref[...] = jnp.max(x_ref[...], axis=0).astype(o_ref.dtype)


def neighbor_max(x_gathered):                     # [K, M, C]
    k, m, c = x_gathered.shape
    tile, m_pad = _gather_tile(m, k, c, x_gathered.dtype.itemsize)
    x_gathered = _pad_mid(x_gathered, m_pad)
    out = pl.pallas_call(
        _neighbor_max_kernel,
        out_shape=jax.ShapeDtypeStruct((m_pad, c), x_gathered.dtype),
        grid=(m_pad // tile,),
        in_specs=[pl.BlockSpec((k, tile, c), lambda i: (0, i, 0))],
        out_specs=pl.BlockSpec((tile, c), lambda i: (i, 0)),
        compiler_params=_cp("parallel"),
    )(x_gathered)
    return out[:m] if m_pad != m else out


# ----------------------------------------------------------------------------
# Kernel 6: knn_interpolate combine (inverse-squared-distance weighted mean)
# ----------------------------------------------------------------------------
def _knn_interp_kernel(f_ref, d_ref, o_ref):
    d = d_ref[...]                                           # [3, T, 3]
    sq = jnp.sum(d * d, axis=-1, keepdims=True)              # [3, T, 1]
    w = 1.0 / jnp.maximum(sq, 1e-16)
    num = jnp.sum(f_ref[...].astype(jnp.float32) * w, axis=0)
    den = jnp.sum(w, axis=0)
    o_ref[...] = num / den


def knn_interp(feats, diff):                      # [3, N, C], [3, N, 3]
    k, n, c = feats.shape
    tile, n_pad = _gather_tile(n, k, c, 4)
    feats = _pad_mid(feats, n_pad)
    diff = _pad_mid(diff, n_pad)
    out = pl.pallas_call(
        _knn_interp_kernel,
        out_shape=jax.ShapeDtypeStruct((n_pad, c), jnp.float32),
        grid=(n_pad // tile,),
        in_specs=[pl.BlockSpec((k, tile, c), lambda i: (0, i, 0)),
                  pl.BlockSpec((k, tile, 3), lambda i: (0, i, 0))],
        out_specs=pl.BlockSpec((tile, c), lambda i: (i, 0)),
        compiler_params=_cp("parallel"),
    )(feats, diff)
    return out[:n] if n_pad != n else out


# ----------------------------------------------------------------------------
# Kernel 7: fused segmentation head (Lin128+ReLU x3, Lin out, lane-dense)
# ----------------------------------------------------------------------------
def _head_kernel(x_ref, w1_ref, b1_ref, w2_ref, b2_ref, w3_ref, b3_ref,
                 w4_ref, b4_ref, o_ref):
    h = x_ref[...]
    for w_ref, b_ref, relu in ((w1_ref, b1_ref, True), (w2_ref, b2_ref, True),
                               (w3_ref, b3_ref, True), (w4_ref, b4_ref, False)):
        h = jnp.dot(h.astype(jnp.bfloat16), w_ref[...],
                    preferred_element_type=jnp.float32) + b_ref[...]
        if relu:
            h = jnp.maximum(h, 0.0)
    o_ref[...] = h


def head_apply(head, x):
    n, cin = x.shape
    cout = head[3]['w'].shape[1]
    cpad = _round_up(max(cout, 128), 128)      # lane-dense final store
    tile, n_pad = _tile_rows(n, _ROW_TILE)
    xp = _pad_rows(x, n_pad)
    args, in_specs = [xp], [pl.BlockSpec((tile, cin), lambda i: (i, 0))]
    for li, p in enumerate(head):
        w, b = p['w'], p['b']
        if li == 3 and cpad != cout:
            w = jnp.pad(w, ((0, 0), (0, cpad - cout)))
            b = jnp.pad(b, ((0, 0), (0, cpad - cout)))
        args += [w.astype(jnp.bfloat16), b]
        in_specs += [_full_spec(w.shape), _full_spec(b.shape)]
    out = pl.pallas_call(
        _head_kernel,
        out_shape=jax.ShapeDtypeStruct((n_pad, cpad), jnp.float32),
        grid=(n_pad // tile,),
        in_specs=in_specs,
        out_specs=pl.BlockSpec((tile, cpad), lambda i: (i, 0)),
        compiler_params=_cp("parallel"),
    )(*args)
    return out[:n, :cout]


# ----------------------------------------------------------------------------
# Kernel 8: farthest point sampling (state resident in VMEM, grid over M)
# ----------------------------------------------------------------------------
def _fps_kernel(pos_ref, sel_ref, mind_ref, idx_ref, *, n, m):
    i = pl.program_id(0)

    @pl.when(i == 0)
    def _():
        sel_ref[...] = jnp.zeros_like(sel_ref)
        idx_ref[...] = jnp.zeros_like(idx_ref)          # deterministic start at 0
        mind_ref[...] = jnp.full_like(mind_ref, jnp.inf)

    pos = pos_ref[...]                                   # [n, 3] f32
    rows = jax.lax.broadcasted_iota(jnp.int32, (n, 1), 0)
    cur = idx_ref[...]                                   # (1, 1) int32 = sel[i]

    # record sel[i] with a masked vector write (no scalar extraction needed)
    col = jax.lax.broadcasted_iota(jnp.int32, (1, m), 1)
    sel_ref[...] = jnp.where(col == i, cur, sel_ref[...])

    # expand the point selected at step i
    sel_pos = jnp.sum(jnp.where(rows == cur, pos, 0.0), axis=0, keepdims=True)
    diff = pos - sel_pos
    d = jnp.sum(diff * diff, axis=1, keepdims=True)      # [n, 1]
    mind = jnp.minimum(mind_ref[...], d)
    mind_ref[...] = mind

    # argmax(mind) -> selection for step i+1 (first index on ties)
    maxv = jnp.max(mind, axis=0, keepdims=True)
    nxt = jnp.min(jnp.where(mind == maxv, rows, n), axis=0, keepdims=True)
    idx_ref[...] = nxt


def fps(pos, ratio):
    n = pos.shape[0]
    m = int(math.ceil(ratio * n))
    sel = pl.pallas_call(
        functools.partial(_fps_kernel, n=n, m=m),
        out_shape=jax.ShapeDtypeStruct((1, m), jnp.int32),
        grid=(m,),
        in_specs=[pl.BlockSpec((n, 3), lambda i: (0, 0))],
        out_specs=pl.BlockSpec((1, m), lambda i: (0, 0)),
        scratch_shapes=[pltpu.VMEM((n, 1), jnp.float32),
                        pltpu.VMEM((1, 1), jnp.int32)],
        compiler_params=_cp("arbitrary"),
    )(pos)
    return sel[0]


# ----------------------------------------------------------------------------
# Plain-JAX glue: kNN index selection (top_k), gathers
# ----------------------------------------------------------------------------
def knn_graph_idx(pos, k):
    # k nearest neighbors excluding self (masked inside sqdist), with self
    # prepended (PointTransformerConv.add_self_loops=True) -> [N, k+1].
    n = pos.shape[0]
    d = sqdist(pos, pos, mask_self=True)
    _, nbr = jax.lax.top_k(-d, k)
    self_idx = jnp.arange(n, dtype=nbr.dtype)[:, None]
    return jnp.concatenate([self_idx, nbr], axis=1)


# ----------------------------------------------------------------------------
# Parameter construction (deterministic, PyTorch-default uniform init)
# ----------------------------------------------------------------------------
def init_lin(key, fan_in, fan_out, bias=True):
    kw, kb = jax.random.split(key)
    bound = 1.0 / math.sqrt(fan_in)
    p = {'w': jax.random.uniform(kw, (fan_in, fan_out), jnp.float32, -bound, bound),
         'b': None}
    if bias:
        p['b'] = jax.random.uniform(kb, (1, fan_out), jnp.float32, -bound, bound)
    return p


def init_mlp(key, channels):
    keys = jax.random.split(key, len(channels) - 1)
    return [init_lin(keys[i], channels[i], channels[i + 1])
            for i in range(len(channels) - 1)]


def init_transformer_block(key, in_c, out_c):
    ks = jax.random.split(key, 9)
    return {
        'lin_in': init_lin(ks[0], in_c, in_c),
        'lin_out': init_lin(ks[1], out_c, out_c),
        'pos_nn': [init_lin(ks[2], 3, 64), init_lin(ks[3], 64, out_c)],
        'attn_nn': [init_lin(ks[4], out_c, 64), init_lin(ks[5], 64, out_c)],
        'lin': init_lin(ks[6], in_c, out_c, bias=False),
        'lin_src': init_lin(ks[7], in_c, out_c, bias=False),
        'lin_dst': init_lin(ks[8], in_c, out_c, bias=False),
    }


def init_model(key, in_channels, out_channels, dim_model):
    keys = iter(jax.random.split(key, 64))
    params = {
        'mlp_input': init_mlp(next(keys), [in_channels, dim_model[0]]),
        'transformer_input': init_transformer_block(next(keys), dim_model[0], dim_model[0]),
        'transition_down': [], 'transformers_down': [],
        'transition_up': [], 'transformers_up': [],
    }
    for i in range(len(dim_model) - 1):
        params['transition_down'].append(
            {'mlp': init_mlp(next(keys), [dim_model[i], dim_model[i + 1]])})
        params['transformers_down'].append(
            init_transformer_block(next(keys), dim_model[i + 1], dim_model[i + 1]))
        params['transition_up'].append(
            {'mlp_sub': init_mlp(next(keys), [dim_model[i + 1], dim_model[i]]),
             'mlp': init_mlp(next(keys), [dim_model[i], dim_model[i]])})
        params['transformers_up'].append(
            init_transformer_block(next(keys), dim_model[i], dim_model[i]))
    params['mlp_summit'] = init_mlp(next(keys), [dim_model[-1], dim_model[-1]])
    params['transformer_summit'] = init_transformer_block(next(keys), dim_model[-1], dim_model[-1])
    out_channels = [out_channels] if not isinstance(out_channels, list) else out_channels
    params['heads'] = []
    for out_dim in out_channels:
        hk = jax.random.split(next(keys), 4)
        params['heads'].append([init_lin(hk[0], dim_model[0], 128),
                                init_lin(hk[1], 128, 128),
                                init_lin(hk[2], 128, 128),
                                init_lin(hk[3], 128, out_dim)])
    return params


# ----------------------------------------------------------------------------
# Module forward (composition of Pallas kernels + JAX glue)
# ----------------------------------------------------------------------------
def mlp_apply(layers, x, bn=True):
    for p in layers:
        if bn:
            x = linear_bn_relu(x, p['w'], p['b'])
        else:
            x = linear(x, p['w'], p['b'], relu=True)
    return x


def transformer_block(p, x, pos, nbr_idx):
    x = linear(x, p['lin_in']['w'], p['lin_in']['b'], relu=True)
    # fused projections: lin / lin_src / lin_dst read x once
    c = p['lin']['w'].shape[1]
    wcat = jnp.concatenate([p['lin']['w'], p['lin_src']['w'], p['lin_dst']['w']], axis=1)
    proj = linear(x, wcat)
    xl, a_src, a_dst = proj[:, :c], proj[:, c:2 * c], proj[:, 2 * c:]
    nbr_t = nbr_idx.T                              # [K, N]
    # TODO(synk): gathers remain XLA glue (bf16 halves their traffic); a
    # scalar-prefetch in-kernel gather would remove them entirely.
    x_j = xl[nbr_t]                                # [K, N, C] bf16
    a_j = a_src[nbr_t]                             # [K, N, C] bf16
    p_j = pos[nbr_t]                               # [K, N, 3] f32
    out = pt_conv(x_j, a_j, p_j, a_dst, pos, p['pos_nn'], p['attn_nn'])
    return linear(out, p['lin_out']['w'], p['lin_out']['b'], relu=True)


def transition_down(p, x, pos, *, k, ratio):
    idc = fps(pos, ratio)
    sub_pos = pos[idc]
    d = sqdist(sub_pos, pos)                       # [M, N]
    _, nbr = jax.lax.top_k(-d, k)                  # k nearest (self included)
    x = mlp_apply(p['mlp'], x, bn=True)
    x_out = neighbor_max(x[nbr.T])                 # dense scatter_max
    return x_out, sub_pos


def transition_up(p, x, x_sub, pos, pos_sub):
    x_sub = mlp_apply(p['mlp_sub'], x_sub, bn=True)
    d = sqdist(pos, pos_sub)                       # [N, M]
    _, nbr = jax.lax.top_k(-d, 3)
    feats = x_sub[nbr.T]                           # [3, N, C] bf16
    diff = pos_sub[nbr.T] - pos[None, :, :]        # [3, N, 3] f32
    x_interp = knn_interp(feats, diff)
    return mlp_apply(p['mlp'], x, bn=True) + x_interp


def point_transformer_segmentation(params, x, pos, *, k, ratio=0.25):
    out_x, out_pos, out_nbr = [], [], []
    x = mlp_apply(params['mlp_input'], x, bn=True)
    nbr = knn_graph_idx(pos, k)
    x = transformer_block(params['transformer_input'], x, pos, nbr)
    out_x.append(x); out_pos.append(pos); out_nbr.append(nbr)

    for i in range(len(params['transformers_down'])):
        x, pos = transition_down(params['transition_down'][i], x, pos, k=k, ratio=ratio)
        nbr = knn_graph_idx(pos, k)
        x = transformer_block(params['transformers_down'][i], x, pos, nbr)
        out_x.append(x); out_pos.append(pos); out_nbr.append(nbr)

    x = mlp_apply(params['mlp_summit'], x, bn=False)
    x = transformer_block(params['transformer_summit'], x, out_pos[-1], out_nbr[-1])

    n = len(params['transformers_down'])
    for i in range(n):
        x = transition_up(params['transition_up'][-i - 1],
                          out_x[-i - 2], x, out_pos[-i - 2], out_pos[-i - 1])
        x = transformer_block(params['transformers_up'][-i - 1], x,
                              out_pos[-i - 2], out_nbr[-i - 2])

    outs = [head_apply(head, x) for head in params['heads']]
    return jnp.concatenate(outs, axis=1)


if __name__ == "__main__":
    key = jax.random.PRNGKey(0)
    kx, kp, kw = jax.random.split(key, 3)

    N, C_IN, C_OUT, K = 64, 4, 8, 4
    DIM_MODEL = [32, 64]

    x = jax.random.normal(kx, (N, C_IN), jnp.float32)
    pos = jax.random.normal(kp, (N, 3), jnp.float32)
    params = init_model(kw, C_IN, C_OUT, DIM_MODEL)

    fwd = jax.jit(lambda x_, pos_: point_transformer_segmentation(
        params, x_, pos_, k=K, ratio=0.25))
    out = jax.block_until_ready(fwd(x, pos))

    assert out.shape == (N, C_OUT), out.shape
    assert bool(jnp.all(jnp.isfinite(out)))
    print("KERNEL_OK")
</pallas_src>

<mosaic_0001>
module attributes {stable_mosaic.version = 11 : i64} {
  func.func @_sqdist_kernel(%arg0: i32, %arg1: i32, %arg2: memref<64x3xf32, #tpu.memory_space<vmem>>, %arg3: memref<3x64xf32, #tpu.memory_space<vmem>>, %arg4: memref<64x64xf32, #tpu.memory_space<vmem>>) attributes {dimension_semantics = [#tpu.dimension_semantics<parallel>, #tpu.dimension_semantics<parallel>], iteration_bounds = array<i64: 1, 1>, scalar_prefetch = 0 : i64, scratch_operands = 0 : i64, tpu.core_type = #tpu.core_type<tc>, window_params = [{transform_indices = @transform_0, window_bounds = array<i64: 64, 3>}, {transform_indices = @transform_1, window_bounds = array<i64: 3, 64>}, {transform_indices = @transform_2, window_bounds = array<i64: 64, 64>}]} {
    %c0 = arith.constant 0 : index
    %c0_0 = arith.constant 0 : index
    %0 = vector.load %arg2[%c0, %c0_0] : memref<64x3xf32, #tpu.memory_space<vmem>>, vector<64x3xf32>
    %c0_1 = arith.constant 0 : index
    %c0_2 = arith.constant 0 : index
    %1 = vector.load %arg3[%c0_1, %c0_2] : memref<3x64xf32, #tpu.memory_space<vmem>>, vector<3x64xf32>
    %cst = arith.constant dense<0.000000e+00> : vector<64x64xf32>
    %2 = tpu.matmul %0, %1, %cst {dimension_numbers = #tpu.dot_dimension_numbers<[1], [0], [0], [1], [0, 0, 1, 1], [], []>} : vector<64x3xf32>, vector<3x64xf32>, vector<64x64xf32> -> vector<64x64xf32>
    %3 = arith.mulf %0, %0 : vector<64x3xf32>
    %cst_3 = arith.constant dense<0.000000e+00> : vector<64xf32>
    %4 = vector.multi_reduction <add>, %3, %cst_3 [1] : vector<64x3xf32> to vector<64xf32>
    %5 = vector.shape_cast %4 : vector<64xf32> to vector<64x1xf32>
    %6 = arith.mulf %1, %1 : vector<3x64xf32>
    %cst_4 = arith.constant dense<0.000000e+00> : vector<64xf32>
    %7 = vector.multi_reduction <add>, %6, %cst_4 [0] : vector<3x64xf32> to vector<64xf32>
    %8 = vector.shape_cast %7 : vector<64xf32> to vector<1x64xf32>
    %9 = vector.broadcast %5 : vector<64x1xf32> to vector<64x64xf32>
    %10 = vector.broadcast %8 : vector<1x64xf32> to vector<64x64xf32>
    %11 = arith.addf %9, %10 : vector<64x64xf32>
    %cst_5 = arith.constant 2.000000e+00 : f32
    %12 = vector.broadcast %cst_5 : f32 to vector<64x64xf32>
    %13 = arith.mulf %12, %2 : vector<64x64xf32>
    %14 = arith.subf %11, %13 : vector<64x64xf32>
    %15 = tpu.iota {dimensions = array<i32: 0>} : vector<64x64xi32>
    %c64_i32 = arith.constant 64 : i32
    %16 = arith.muli %arg0, %c64_i32 : i32
    %17 = vector.broadcast %16 : i32 to vector<64x64xi32>
    %18 = arith.addi %15, %17 : vector<64x64xi32>
    %19 = tpu.iota {dimensions = array<i32: 1>} : vector<64x64xi32>
    %c64_i32_6 = arith.constant 64 : i32
    %20 = arith.muli %arg1, %c64_i32_6 : i32
    %21 = vector.broadcast %20 : i32 to vector<64x64xi32>
    %22 = arith.addi %19, %21 : vector<64x64xi32>
    %23 = arith.cmpi eq, %18, %22 : vector<64x64xi32>
    %cst_7 = arith.constant 0x7F800000 : f32
    %24 = vector.broadcast %cst_7 : f32 to vector<64x64xf32>
    %25 = arith.select %23, %24, %14 : vector<64x64xi1>, vector<64x64xf32>
    %c0_8 = arith.constant 0 : index
    %c0_9 = arith.constant 0 : index
    %26 = vector.load %arg4[%c0_8, %c0_9] : memref<64x64xf32, #tpu.memory_space<vmem>>, vector<64x64xf32>
    tpu.vector_store %arg4[%c0_8, %c0_9], %25 {strides = array<i32>} : memref<64x64xf32, #tpu.memory_space<vmem>>, vector<64x64xf32>,
    return
  }
  func.func @transform_0(%arg0: i32, %arg1: i32) -> (i32, i32) {
    %c0_i32 = arith.constant 0 : i32
    %c0_i32_0 = arith.constant 0 : i32
    return %arg0, %c0_i32 : i32, i32
  }
  func.func @transform_1(%arg0: i32, %arg1: i32) -> (i32, i32) {
    %c0_i32 = arith.constant 0 : i32
    %c0_i32_0 = arith.constant 0 : i32
    return %c0_i32, %arg1 : i32, i32
  }
  func.func @transform_2(%arg0: i32, %arg1: i32) -> (i32, i32) {
    %c0_i32 = arith.constant 0 : i32
    return %arg0, %arg1 : i32, i32
  }
}

module attributes {stable_mosaic.version = 11 : i64} {
  func.func @_linear_bn_fused_kernel(%arg0: i32, %arg1: memref<64x4xf32, #tpu.memory_space<vmem>>, %arg2: memref<4x32xbf16, #tpu.memory_space<vmem>>, %arg3: memref<1x32xf32, #tpu.memory_space<vmem>>, %arg4: memref<64x32xbf16, #tpu.memory_space<vmem>>) attributes {dimension_semantics = [#tpu.dimension_semantics<arbitrary>], iteration_bounds = array<i64: 1>, scalar_prefetch = 0 : i64, scratch_operands = 0 : i64, tpu.core_type = #tpu.core_type<tc>, window_params = [{pipeline_mode = #tpu.pipeline_mode<synchronous>, transform_indices = @transform_0, window_bounds = array<i64: 64, 4>}, {pipeline_mode = #tpu.pipeline_mode<synchronous>, transform_indices = @transform_1, window_bounds = array<i64: 4, 32>}, {pipeline_mode = #tpu.pipeline_mode<synchronous>, transform_indices = @transform_2, window_bounds = array<i64: 1, 32>}, {pipeline_mode = #tpu.pipeline_mode<synchronous>, transform_indices = @transform_3, window_bounds = array<i64: 64, 32>}]} {
    %c0 = arith.constant 0 : index
    %c0_0 = arith.constant 0 : index
    %0 = vector.load %arg1[%c0, %c0_0] : memref<64x4xf32, #tpu.memory_space<vmem>>, vector<64x4xf32>
    %1 = arith.truncf %0 : vector<64x4xf32> to vector<64x4xbf16>
    %c0_1 = arith.constant 0 : index
    %c0_2 = arith.constant 0 : index
    %2 = vector.load %arg2[%c0_1, %c0_2] : memref<4x32xbf16, #tpu.memory_space<vmem>>, vector<4x32xbf16>
    %cst = arith.constant dense<0.000000e+00> : vector<64x32xf32>
    %3 = tpu.matmul %1, %2, %cst {dimension_numbers = #tpu.dot_dimension_numbers<[1], [0], [0], [1], [0, 0, 1, 1], [], []>} : vector<64x4xbf16>, vector<4x32xbf16>, vector<64x32xf32> -> vector<64x32xf32>
    %c0_3 = arith.constant 0 : index
    %c0_4 = arith.constant 0 : index
    %4 = vector.load %arg3[%c0_3, %c0_4] : memref<1x32xf32, #tpu.memory_space<vmem>>, vector<1x32xf32>
    %5 = vector.broadcast %4 : vector<1x32xf32> to vector<64x32xf32>
    %6 = arith.addf %3, %5 : vector<64x32xf32>
    %cst_5 = arith.constant dense<0.000000e+00> : vector<32xf32>
    %7 = vector.multi_reduction <add>, %6, %cst_5 [0] : vector<64x32xf32> to vector<32xf32>
    %8 = vector.shape_cast %7 : vector<32xf32> to vector<1x32xf32>
    %cst_6 = arith.constant 6.400000e+01 : f32
    %9 = vector.broadcast %cst_6 : f32 to vector<1x32xf32>
    %10 = arith.divf %8, %9 : vector<1x32xf32>
    %11 = vector.broadcast %10 : vector<1x32xf32> to vector<64x32xf32>
    %12 = arith.subf %6, %11 : vector<64x32xf32>
    %13 = arith.mulf %12, %12 : vector<64x32xf32>
    %cst_7 = arith.constant dense<0.000000e+00> : vector<32xf32>
    %14 = vector.multi_reduction <add>, %13, %cst_7 [0] : vector<64x32xf32> to vector<32xf32>
    %15 = vector.shape_cast %14 : vector<32xf32> to vector<1x32xf32>
    %cst_8 = arith.constant 6.400000e+01 : f32
    %16 = vector.broadcast %cst_8 : f32 to vector<1x32xf32>
    %17 = arith.divf %15, %16 : vector<1x32xf32>
    %18 = vector.broadcast %10 : vector<1x32xf32> to vector<64x32xf32>
    %19 = arith.subf %6, %18 : vector<64x32xf32>
    %cst_9 = arith.constant 9.99999974E-6 : f32
    %20 = vector.broadcast %cst_9 : f32 to vector<1x32xf32>
    %21 = arith.addf %17, %20 : vector<1x32xf32>
    %22 = math.rsqrt %21 : vector<1x32xf32>
    %23 = vector.broadcast %22 : vector<1x32xf32> to vector<64x32xf32>
    %24 = arith.mulf %19, %23 : vector<64x32xf32>
    %cst_10 = arith.constant 0.000000e+00 : f32
    %25 = vector.broadcast %cst_10 : f32 to vector<64x32xf32>
    %26 = arith.maximumf %24, %25 : vector<64x32xf32>
    %27 = arith.truncf %26 : vector<64x32xf32> to vector<64x32xbf16>
    %c0_11 = arith.constant 0 : index
    %c0_12 = arith.constant 0 : index
    %28 = vector.load %arg4[%c0_11, %c0_12] : memref<64x32xbf16, #tpu.memory_space<vmem>>, vector<64x32xbf16>
    tpu.vector_store %arg4[%c0_11, %c0_12], %27 {strides = array<i32>} : memref<64x32xbf16, #tpu.memory_space<vmem>>, vector<64x32xbf16>,
    return
  }
  func.func @transform_0(%arg0: i32) -> (i32, i32) {
    %c0_i32 = arith.constant 0 : i32
    %c0_i32_0 = arith.constant 0 : i32
    %c0_i32_1 = arith.constant 0 : i32
    return %c0_i32, %c0_i32_0 : i32, i32
  }
  func.func @transform_1(%arg0: i32) -> (i32, i32) {
    %c0_i32 = arith.constant 0 : i32
    %c0_i32_0 = arith.constant 0 : i32
    %c0_i32_1 = arith.constant 0 : i32
    return %c0_i32, %c0_i32_0 : i32, i32
  }
  func.func @transform_2(%arg0: i32) -> (i32, i32) {
    %c0_i32 = arith.constant 0 : i32
    %c0_i32_0 = arith.constant 0 : i32
    %c0_i32_1 = arith.constant 0 : i32
    return %c0_i32, %c0_i32_0 : i32, i32
  }
  func.func @transform_3(%arg0: i32) -> (i32, i32) {
    %c0_i32 = arith.constant 0 : i32
    %c0_i32_0 = arith.constant 0 : i32
    %c0_i32_1 = arith.constant 0 : i32
    return %c0_i32, %c0_i32_0 : i32, i32
  }
}

module attributes {stable_mosaic.version = 11 : i64} {
  func.func @_linear_kernel(%arg0: i32, %arg1: memref<64x32xbf16, #tpu.memory_space<vmem>>, %arg2: memref<32x32xbf16, #tpu.memory_space<vmem>>, %arg3: memref<1x32xf32, #tpu.memory_space<vmem>>, %arg4: memref<64x32xbf16, #tpu.memory_space<vmem>>) attributes {dimension_semantics = [#tpu.dimension_semantics<parallel>], iteration_bounds = array<i64: 1>, scalar_prefetch = 0 : i64, scratch_operands = 0 : i64, tpu.core_type = #tpu.core_type<tc>, window_params = [{transform_indices = @transform_0, window_bounds = array<i64: 64, 32>}, {pipeline_mode = #tpu.pipeline_mode<synchronous>, transform_indices = @transform_1, window_bounds = array<i64: 32, 32>}, {pipeline_mode = #tpu.pipeline_mode<synchronous>, transform_indices = @transform_2, window_bounds = array<i64: 1, 32>}, {transform_indices = @transform_3, window_bounds = array<i64: 64, 32>}]} {
    %c0 = arith.constant 0 : index
    %c0_0 = arith.constant 0 : index
    %0 = vector.load %arg1[%c0, %c0_0] : memref<64x32xbf16, #tpu.memory_space<vmem>>, vector<64x32xbf16>
    %c0_1 = arith.constant 0 : index
    %c0_2 = arith.constant 0 : index
    %1 = vector.load %arg2[%c0_1, %c0_2] : memref<32x32xbf16, #tpu.memory_space<vmem>>, vector<32x32xbf16>
    %cst = arith.constant dense<0.000000e+00> : vector<64x32xf32>
    %2 = tpu.matmul %0, %1, %cst {dimension_numbers = #tpu.dot_dimension_numbers<[1], [0], [0], [1], [0, 0, 1, 1], [], []>} : vector<64x32xbf16>, vector<32x32xbf16>, vector<64x32xf32> -> vector<64x32xf32>
    %c0_3 = arith.constant 0 : index
    %c0_4 = arith.constant 0 : index
    %3 = vector.load %arg3[%c0_3, %c0_4] : memref<1x32xf32, #tpu.memory_space<vmem>>, vector<1x32xf32>
    %4 = vector.broadcast %3 : vector<1x32xf32> to vector<64x32xf32>
    %5 = arith.addf %2, %4 : vector<64x32xf32>
    %cst_5 = arith.constant 0.000000e+00 : f32
    %6 = vector.broadcast %cst_5 : f32 to vector<64x32xf32>
    %7 = arith.maximumf %5, %6 : vector<64x32xf32>
    %8 = arith.truncf %7 : vector<64x32xf32> to vector<64x32xbf16>
    %c0_6 = arith.constant 0 : index
    %c0_7 = arith.constant 0 : index
    %9 = vector.load %arg4[%c0_6, %c0_7] : memref<64x32xbf16, #tpu.memory_space<vmem>>, vector<64x32xbf16>
    tpu.vector_store %arg4[%c0_6, %c0_7], %8 {strides = array<i32>} : memref<64x32xbf16, #tpu.memory_space<vmem>>, vector<64x32xbf16>,
    return
  }
  func.func @transform_0(%arg0: i32) -> (i32, i32) {
    %c0_i32 = arith.constant 0 : i32
    %c0_i32_0 = arith.constant 0 : i32
    return %arg0, %c0_i32 : i32, i32
  }
  func.func @transform_1(%arg0: i32) -> (i32, i32) {
    %c0_i32 = arith.constant 0 : i32
    %c0_i32_0 = arith.constant 0 : i32
    %c0_i32_1 = arith.constant 0 : i32
    return %c0_i32, %c0_i32_0 : i32, i32
  }
  func.func @transform_2(%arg0: i32) -> (i32, i32) {
    %c0_i32 = arith.constant 0 : i32
    %c0_i32_0 = arith.constant 0 : i32
    %c0_i32_1 = arith.constant 0 : i32
    return %c0_i32, %c0_i32_0 : i32, i32
  }
  func.func @transform_3(%arg0: i32) -> (i32, i32) {
    %c0_i32 = arith.constant 0 : i32
    %c0_i32_0 = arith.constant 0 : i32
    return %arg0, %c0_i32 : i32, i32
  }
}

module attributes {stable_mosaic.version = 11 : i64} {
  func.func @_pt_conv_kernel(%arg0: i32, %arg1: memref<5x64x32xbf16, #tpu.memory_space<vmem>>, %arg2: memref<5x64x32xbf16, #tpu.memory_space<vmem>>, %arg3: memref<5x64x3xf32, #tpu.memory_space<vmem>>, %arg4: memref<64x32xbf16, #tpu.memory_space<vmem>>, %arg5: memref<64x3xf32, #tpu.memory_space<vmem>>, %arg6: memref<3x64xf32, #tpu.memory_space<vmem>>, %arg7: memref<1x64xf32, #tpu.memory_space<vmem>>, %arg8: memref<64x32xbf16, #tpu.memory_space<vmem>>, %arg9: memref<1x32xf32, #tpu.memory_space<vmem>>, %arg10: memref<32x64xbf16, #tpu.memory_space<vmem>>, %arg11: memref<1x64xf32, #tpu.memory_space<vmem>>, %arg12: memref<64x32xbf16, #tpu.memory_space<vmem>>, %arg13: memref<1x32xf32, #tpu.memory_space<vmem>>, %arg14: memref<64x32xbf16, #tpu.memory_space<vmem>>) attributes {dimension_semantics = [#tpu.dimension_semantics<parallel>], iteration_bounds = array<i64: 1>, scalar_prefetch = 0 : i64, scratch_operands = 0 : i64, tpu.core_type = #tpu.core_type<tc>, window_params = [{transform_indices = @transform_0, window_bounds = array<i64: 5, 64, 32>}, {transform_indices = @transform_1, window_bounds = array<i64: 5, 64, 32>}, {transform_indices = @transform_2, window_bounds = array<i64: 5, 64, 3>}, {transform_indices = @transform_3, window_bounds = array<i64: 64, 32>}, {transform_indices = @transform_4, window_bounds = array<i64: 64, 3>}, {pipeline_mode = #tpu.pipeline_mode<synchronous>, transform_indices = @transform_5, window_bounds = array<i64: 3, 64>}, {pipeline_mode = #tpu.pipeline_mode<synchronous>, transform_indices = @transform_6, window_bounds = array<i64: 1, 64>}, {pipeline_mode = #tpu.pipeline_mode<synchronous>, transform_indices = @transform_7, window_bounds = array<i64: 64, 32>}, {pipeline_mode = #tpu.pipeline_mode<synchronous>, transform_indices = @transform_8, window_bounds = array<i64: 1, 32>}, {pipeline_mode = #tpu.pipeline_mode<synchronous>, transform_indices = @transform_9, window_bounds = array<i64: 32, 64>}, {pipeline_mode = #tpu.pipeline_mode<synchronous>, transform_indices = @transform_10, window_bounds = array<i64: 1, 64>}, {pipeline_mode = #tpu.pipeline_mode<synchronous>, transform_indices = @transform_11, window_bounds = array<i64: 64, 32>}, {pipeline_mode = #tpu.pipeline_mode<synchronous>, transform_indices = @transform_12, window_bounds = array<i64: 1, 32>}, {transform_indices = @transform_13, window_bounds = array<i64: 64, 32>}]} {
    %c0 = arith.constant 0 : index
    %c0_0 = arith.constant 0 : index
    %0 = vector.load %arg6[%c0, %c0_0] : memref<3x64xf32, #tpu.memory_space<vmem>>, vector<3x64xf32>
    %c0_1 = arith.constant 0 : index
    %c0_2 = arith.constant 0 : index
    %1 = vector.load %arg7[%c0_1, %c0_2] : memref<1x64xf32, #tpu.memory_space<vmem>>, vector<1x64xf32>
    %c0_3 = arith.constant 0 : index
    %c0_4 = arith.constant 0 : index
    %2 = vector.load %arg8[%c0_3, %c0_4] : memref<64x32xbf16, #tpu.memory_space<vmem>>, vector<64x32xbf16>
    %c0_5 = arith.constant 0 : index
    %c0_6 = arith.constant 0 : index
    %3 = vector.load %arg9[%c0_5, %c0_6] : memref<1x32xf32, #tpu.memory_space<vmem>>, vector<1x32xf32>
    %c0_7 = arith.constant 0 : index
    %c0_8 = arith.constant 0 : index
    %4 = vector.load %arg10[%c0_7, %c0_8] : memref<32x64xbf16, #tpu.memory_space<vmem>>, vector<32x64xbf16>
    %c0_9 = arith.constant 0 : index
    %c0_10 = arith.constant 0 : index
    %5 = vector.load %arg11[%c0_9, %c0_10] : memref<1x64xf32, #tpu.memory_space<vmem>>, vector<1x64xf32>
    %c0_11 = arith.constant 0 : index
    %c0_12 = arith.constant 0 : index
    %6 = vector.load %arg12[%c0_11, %c0_12] : memref<64x32xbf16, #tpu.memory_space<vmem>>, vector<64x32xbf16>
    %c0_13 = arith.constant 0 : index
    %c0_14 = arith.constant 0 : index
    %7 = vector.load %arg13[%c0_13, %c0_14] : memref<1x32xf32, #tpu.memory_space<vmem>>, vector<1x32xf32>
    %c0_15 = arith.constant 0 : index
    %c0_16 = arith.constant 0 : index
    %8 = vector.load %arg5[%c0_15, %c0_16] : memref<64x3xf32, #tpu.memory_space<vmem>>, vector<64x3xf32>
    %c0_17 = arith.constant 0 : index
    %c0_18 = arith.constant 0 : index
    %9 = vector.load %arg4[%c0_17, %c0_18] : memref<64x32xbf16, #tpu.memory_space<vmem>>, vector<64x32xbf16>
    %10 = arith.extf %9 : vector<64x32xbf16> to vector<64x32xf32>
    %11 = tpu.concatenate %10, %10 in 0 : vector<64x32xf32>, vector<64x32xf32> -> vector<128x32xf32>
    %cst = arith.constant 0xFF800000 : f32
    %12 = vector.broadcast %cst : f32 to vector<64x32xf32>
    %cst_19 = arith.constant 0.000000e+00 : f32
    %13 = vector.broadcast %cst_19 : f32 to vector<64x32xf32>
    %cst_20 = arith.constant 0.000000e+00 : f32
    %14 = vector.broadcast %cst_20 : f32 to vector<64x32xf32>
    %c0_21 = arith.constant 0 : index
    %c0_22 = arith.constant 0 : index
    %c0_23 = arith.constant 0 : index
    %15 = vector.load %arg3[%c0_21, %c0_22, %c0_23] : memref<5x64x3xf32, #tpu.memory_space<vmem>>, vector<1x64x3xf32>
    %16 = vector.shape_cast %15 : vector<1x64x3xf32> to vector<64x3xf32>
    %17 = arith.subf %8, %16 : vector<64x3xf32>
    %c1 = arith.constant 1 : index
    %c0_24 = arith.constant 0 : index
    %c0_25 = arith.constant 0 : index
    %18 = vector.load %arg3[%c1, %c0_24, %c0_25] : memref<5x64x3xf32, #tpu.memory_space<vmem>>, vector<1x64x3xf32>
    %19 = vector.shape_cast %18 : vector<1x64x3xf32> to vector<64x3xf32>
    %20 = arith.subf %8, %19 : vector<64x3xf32>
    %21 = tpu.concatenate %17, %20 in 0 : vector<64x3xf32>, vector<64x3xf32> -> vector<128x3xf32>
    %c0_26 = arith.constant 0 : index
    %c0_27 = arith.constant 0 : index
    %c0_28 = arith.constant 0 : index
    %22 = vector.load %arg2[%c0_26, %c0_27, %c0_28] : memref<5x64x32xbf16, #tpu.memory_space<vmem>>, vector<1x64x32xbf16>
    %23 = vector.shape_cast %22 : vector<1x64x32xbf16> to vector<64x32xbf16>
    %c1_29 = arith.constant 1 : index
    %c0_30 = arith.constant 0 : index
    %c0_31 = arith.constant 0 : index
    %24 = vector.load %arg2[%c1_29, %c0_30, %c0_31] : memref<5x64x32xbf16, #tpu.memory_space<vmem>>, vector<1x64x32xbf16>
    %25 = vector.shape_cast %24 : vector<1x64x32xbf16> to vector<64x32xbf16>
    %26 = tpu.concatenate %23, %25 in 0 : vector<64x32xbf16>, vector<64x32xbf16> -> vector<128x32xbf16>
    %27 = arith.extf %26 : vector<128x32xbf16> to vector<128x32xf32>
    %c0_32 = arith.constant 0 : index
    %c0_33 = arith.constant 0 : index
    %c0_34 = arith.constant 0 : index
    %28 = vector.load %arg1[%c0_32, %c0_33, %c0_34] : memref<5x64x32xbf16, #tpu.memory_space<vmem>>, vector<1x64x32xbf16>
    %29 = vector.shape_cast %28 : vector<1x64x32xbf16> to vector<64x32xbf16>
    %c1_35 = arith.constant 1 : index
    %c0_36 = arith.constant 0 : index
    %c0_37 = arith.constant 0 : index
    %30 = vector.load %arg1[%c1_35, %c0_36, %c0_37] : memref<5x64x32xbf16, #tpu.memory_space<vmem>>, vector<1x64x32xbf16>
    %31 = vector.shape_cast %30 : vector<1x64x32xbf16> to vector<64x32xbf16>
    %32 = tpu.concatenate %29, %31 in 0 : vector<64x32xbf16>, vector<64x32xbf16> -> vector<128x32xbf16>
    %33 = arith.extf %32 : vector<128x32xbf16> to vector<128x32xf32>
    %34 = vector.extract_strided_slice %21 {offsets = [0, 0], sizes = [128, 1], strides = [1, 1]} : vector<128x3xf32> to vector<128x1xf32>
    %35 = vector.extract_strided_slice %0 {offsets = [0, 0], sizes = [1, 64], strides = [1, 1]} : vector<3x64xf32> to vector<1x64xf32>
    %36 = vector.broadcast %34 : vector<128x1xf32> to vector<128x64xf32>
    %37 = vector.broadcast %35 : vector<1x64xf32> to vector<128x64xf32>
    %38 = arith.mulf %36, %37 : vector<128x64xf32>
    %39 = vector.extract_strided_slice %21 {offsets = [0, 1], sizes = [128, 1], strides = [1, 1]} : vector<128x3xf32> to vector<128x1xf32>
    %40 = vector.extract_strided_slice %0 {offsets = [1, 0], sizes = [1, 64], strides = [1, 1]} : vector<3x64xf32> to vector<1x64xf32>
    %41 = vector.broadcast %39 : vector<128x1xf32> to vector<128x64xf32>
    %42 = vector.broadcast %40 : vector<1x64xf32> to vector<128x64xf32>
    %43 = arith.mulf %41, %42 : vector<128x64xf32>
    %44 = arith.addf %38, %43 : vector<128x64xf32>
    %45 = vector.extract_strided_slice %21 {offsets = [0, 2], sizes = [128, 1], strides = [1, 1]} : vector<128x3xf32> to vector<128x1xf32>
    %46 = vector.extract_strided_slice %0 {offsets = [2, 0], sizes = [1, 64], strides = [1, 1]} : vector<3x64xf32> to vector<1x64xf32>
    %47 = vector.broadcast %45 : vector<128x1xf32> to vector<128x64xf32>
    %48 = vector.broadcast %46 : vector<1x64xf32> to vector<128x64xf32>
    %49 = arith.mulf %47, %48 : vector<128x64xf32>
    %50 = arith.addf %44, %49 : vector<128x64xf32>
    %51 = vector.broadcast %1 : vector<1x64xf32> to vector<128x64xf32>
    %52 = arith.addf %50, %51 : vector<128x64xf32>
    %cst_38 = arith.constant 0.000000e+00 : f32
    %53 = vector.broadcast %cst_38 : f32 to vector<128x64xf32>
    %54 = arith.maximumf %52, %53 : vector<128x64xf32>
    %55 = arith.truncf %54 : vector<128x64xf32> to vector<128x64xbf16>
    %cst_39 = arith.constant dense<0.000000e+00> : vector<128x32xf32>
    %56 = tpu.matmul %55, %2, %cst_39 {dimension_numbers = #tpu.dot_dimension_numbers<[1], [0], [0], [1], [0, 0, 1, 1], [], []>} : vector<128x64xbf16>, vector<64x32xbf16>, vector<128x32xf32> -> vector<128x32xf32>
    %57 = vector.broadcast %3 : vector<1x32xf32> to vector<128x32xf32>
    %58 = arith.addf %56, %57 : vector<128x32xf32>
    %cst_40 = arith.constant 0.000000e+00 : f32
    %59 = vector.broadcast %cst_40 : f32 to vector<128x32xf32>
    %60 = arith.maximumf %58, %59 : vector<128x32xf32>
    %61 = arith.subf %11, %27 : vector<128x32xf32>
    %62 = arith.addf %61, %60 : vector<128x32xf32>
    %63 = arith.truncf %62 : vector<128x32xf32> to vector<128x32xbf16>
    %cst_41 = arith.constant dense<0.000000e+00> : vector<128x64xf32>
    %64 = tpu.matmul %63, %4, %cst_41 {dimension_numbers = #tpu.dot_dimension_numbers<[1], [0], [0], [1], [0, 0, 1, 1], [], []>} : vector<128x32xbf16>, vector<32x64xbf16>, vector<128x64xf32> -> vector<128x64xf32>
    %65 = vector.broadcast %5 : vector<1x64xf32> to vector<128x64xf32>
    %66 = arith.addf %64, %65 : vector<128x64xf32>
    %cst_42 = arith.constant 0.000000e+00 : f32
    %67 = vector.broadcast %cst_42 : f32 to vector<128x64xf32>
    %68 = arith.maximumf %66, %67 : vector<128x64xf32>
    %69 = arith.truncf %68 : vector<128x64xf32> to vector<128x64xbf16>
    %cst_43 = arith.constant dense<0.000000e+00> : vector<128x32xf32>
    %70 = tpu.matmul %69, %6, %cst_43 {dimension_numbers = #tpu.dot_dimension_numbers<[1], [0], [0], [1], [0, 0, 1, 1], [], []>} : vector<128x64xbf16>, vector<64x32xbf16>, vector<128x32xf32> -> vector<128x32xf32>
    %71 = vector.broadcast %7 : vector<1x32xf32> to vector<128x32xf32>
    %72 = arith.addf %70, %71 : vector<128x32xf32>
    %cst_44 = arith.constant 0.000000e+00 : f32
    %73 = vector.broadcast %cst_44 : f32 to vector<128x32xf32>
    %74 = arith.maximumf %72, %73 : vector<128x32xf32>
    %75 = arith.addf %33, %60 : vector<128x32xf32>
    %76 = vector.extract_strided_slice %74 {offsets = [0, 0], sizes = [64, 32], strides = [1, 1]} : vector<128x32xf32> to vector<64x32xf32>
    %77 = vector.extract_strided_slice %74 {offsets = [64, 0], sizes = [64, 32], strides = [1, 1]} : vector<128x32xf32> to vector<64x32xf32>
    %78 = vector.extract_strided_slice %75 {offsets = [0, 0], sizes = [64, 32], strides = [1, 1]} : vector<128x32xf32> to vector<64x32xf32>
    %79 = vector.extract_strided_slice %75 {offsets = [64, 0], sizes = [64, 32], strides = [1, 1]} : vector<128x32xf32> to vector<64x32xf32>
    %80 = arith.maximumf %76, %77 : vector<64x32xf32>
    %81 = arith.maximumf %12, %80 : vector<64x32xf32>
    %82 = arith.subf %12, %81 : vector<64x32xf32>
    %83 = math.exp %82 : vector<64x32xf32>
    %84 = arith.subf %76, %81 : vector<64x32xf32>
    %85 = math.exp %84 : vector<64x32xf32>
    %86 = arith.subf %77, %81 : vector<64x32xf32>
    %87 = math.exp %86 : vector<64x32xf32>
    %88 = arith.mulf %13, %83 : vector<64x32xf32>
    %89 = arith.addf %88, %85 : vector<64x32xf32>
    %90 = arith.addf %89, %87 : vector<64x32xf32>
    %91 = arith.mulf %14, %83 : vector<64x32xf32>
    %92 = arith.mulf %85, %78 : vector<64x32xf32>
    %93 = arith.addf %91, %92 : vector<64x32xf32>
    %94 = arith.mulf %87, %79 : vector<64x32xf32>
    %95 = arith.addf %93, %94 : vector<64x32xf32>
    %c2 = arith.constant 2 : index
    %c0_45 = arith.constant 0 : index
    %c0_46 = arith.constant 0 : index
    %96 = vector.load %arg3[%c2, %c0_45, %c0_46] : memref<5x64x3xf32, #tpu.memory_space<vmem>>, vector<1x64x3xf32>
    %97 = vector.shape_cast %96 : vector<1x64x3xf32> to vector<64x3xf32>
    %98 = arith.subf %8, %97 : vector<64x3xf32>
    %c3 = arith.constant 3 : index
    %c0_47 = arith.constant 0 : index
    %c0_48 = arith.constant 0 : index
    %99 = vector.load %arg3[%c3, %c0_47, %c0_48] : memref<5x64x3xf32, #tpu.memory_space<vmem>>, vector<1x64x3xf32>
    %100 = vector.shape_cast %99 : vector<1x64x3xf32> to vector<64x3xf32>
    %101 = arith.subf %8, %100 : vector<64x3xf32>
    %102 = tpu.concatenate %98, %101 in 0 : vector<64x3xf32>, vector<64x3xf32> -> vector<128x3xf32>
    %c2_49 = arith.constant 2 : index
    %c0_50 = arith.constant 0 : index
    %c0_51 = arith.constant 0 : index
    %103 = vector.load %arg2[%c2_49, %c0_50, %c0_51] : memref<5x64x32xbf16, #tpu.memory_space<vmem>>, vector<1x64x32xbf16>
    %104 = vector.shape_cast %103 : vector<1x64x32xbf16> to vector<64x32xbf16>
    %c3_52 = arith.constant 3 : index
    %c0_53 = arith.constant 0 : index
    %c0_54 = arith.constant 0 : index
    %105 = vector.load %arg2[%c3_52, %c0_53, %c0_54] : memref<5x64x32xbf16, #tpu.memory_space<vmem>>, vector<1x64x32xbf16>
    %106 = vector.shape_cast %105 : vector<1x64x32xbf16> to vector<64x32xbf16>
    %107 = tpu.concatenate %104, %106 in 0 : vector<64x32xbf16>, vector<64x32xbf16> -> vector<128x32xbf16>
    %108 = arith.extf %107 : vector<128x32xbf16> to vector<128x32xf32>
    %c2_55 = arith.constant 2 : index
    %c0_56 = arith.constant 0 : index
    %c0_57 = arith.constant 0 : index
    %109 = vector.load %arg1[%c2_55, %c0_56, %c0_57] : memref<5x64x32xbf16, #tpu.memory_space<vmem>>, vector<1x64x32xbf16>
    %110 = vector.shape_cast %109 : vector<1x64x32xbf16> to vector<64x32xbf16>
    %c3_58 = arith.constant 3 : index
    %c0_59 = arith.constant 0 : index
    %c0_60 = arith.constant 0 : index
    %111 = vector.load %arg1[%c3_58, %c0_59, %c0_60] : memref<5x64x32xbf16, #tpu.memory_space<vmem>>, vector<1x64x32xbf16>
    %112 = vector.shape_cast %111 : vector<1x64x32xbf16> to vector<64x32xbf16>
    %113 = tpu.concatenate %110, %112 in 0 : vector<64x32xbf16>, vector<64x32xbf16> -> vector<128x32xbf16>
    %114 = arith.extf %113 : vector<128x32xbf16> to vector<128x32xf32>
    %115 = vector.extract_strided_slice %102 {offsets = [0, 0], sizes = [128, 1], strides = [1, 1]} : vector<128x3xf32> to vector<128x1xf32>
    %116 = vector.extract_strided_slice %0 {offsets = [0, 0], sizes = [1, 64], strides = [1, 1]} : vector<3x64xf32> to vector<1x64xf32>
    %117 = vector.broadcast %115 : vector<128x1xf32> to vector<128x64xf32>
    %118 = vector.broadcast %116 : vector<1x64xf32> to vector<128x64xf32>
    %119 = arith.mulf %117, %118 : vector<128x64xf32>
    %120 = vector.extract_strided_slice %102 {offsets = [0, 1], sizes = [128, 1], strides = [1, 1]} : vector<128x3xf32> to vector<128x1xf32>
    %121 = vector.extract_strided_slice %0 {offsets = [1, 0], sizes = [1, 64], strides = [1, 1]} : vector<3x64xf32> to vector<1x64xf32>
    %122 = vector.broadcast %120 : vector<128x1xf32> to vector<128x64xf32>
    %123 = vector.broadcast %121 : vector<1x64xf32> to vector<128x64xf32>
    %124 = arith.mulf %122, %123 : vector<128x64xf32>
    %125 = arith.addf %119, %124 : vector<128x64xf32>
    %126 = vector.extract_strided_slice %102 {offsets = [0, 2], sizes = [128, 1], strides = [1, 1]} : vector<128x3xf32> to vector<128x1xf32>
    %127 = vector.extract_strided_slice %0 {offsets = [2, 0], sizes = [1, 64], strides = [1, 1]} : vector<3x64xf32> to vector<1x64xf32>
    %128 = vector.broadcast %126 : vector<128x1xf32> to vector<128x64xf32>
    %129 = vector.broadcast %127 : vector<1x64xf32> to vector<128x64xf32>
    %130 = arith.mulf %128, %129 : vector<128x64xf32>
    %131 = arith.addf %125, %130 : vector<128x64xf32>
    %132 = vector.broadcast %1 : vector<1x64xf32> to vector<128x64xf32>
    %133 = arith.addf %131, %132 : vector<128x64xf32>
    %cst_61 = arith.constant 0.000000e+00 : f32
    %134 = vector.broadcast %cst_61 : f32 to vector<128x64xf32>
    %135 = arith.maximumf %133, %134 : vector<128x64xf32>
    %136 = arith.truncf %135 : vector<128x64xf32> to vector<128x64xbf16>
    %cst_62 = arith.constant dense<0.000000e+00> : vector<128x32xf32>
    %137 = tpu.matmul %136, %2, %cst_62 {dimension_numbers = #tpu.dot_dimension_numbers<[1], [0], [0], [1], [0, 0, 1, 1], [], []>} : vector<128x64xbf16>, vector<64x32xbf16>, vector<128x32xf32> -> vector<128x32xf32>
    %138 = vector.broadcast %3 : vector<1x32xf32> to vector<128x32xf32>
    %139 = arith.addf %137, %138 : vector<128x32xf32>
    %cst_63 = arith.constant 0.000000e+00 : f32
    %140 = vector.broadcast %cst_63 : f32 to vector<128x32xf32>
    %141 = arith.maximumf %139, %140 : vector<128x32xf32>
    %142 = arith.subf %11, %108 : vector<128x32xf32>
    %143 = arith.addf %142, %141 : vector<128x32xf32>
    %144 = arith.truncf %143 : vector<128x32xf32> to vector<128x32xbf16>
    %cst_64 = arith.constant dense<0.000000e+00> : vector<128x64xf32>
    %145 = tpu.matmul %144, %4, %cst_64 {dimension_numbers = #tpu.dot_dimension_numbers<[1], [0], [0], [1], [0, 0, 1, 1], [], []>} : vector<128x32xbf16>, vector<32x64xbf16>, vector<128x64xf32> -> vector<128x64xf32>
    %146 = vector.broadcast %5 : vector<1x64xf32> to vector<128x64xf32>
    %147 = arith.addf %145, %146 : vector<128x64xf32>
    %cst_65 = arith.constant 0.000000e+00 : f32
    %148 = vector.broadcast %cst_65 : f32 to vector<128x64xf32>
    %149 = arith.maximumf %147, %148 : vector<128x64xf32>
    %150 = arith.truncf %149 : vector<128x64xf32> to vector<128x64xbf16>
    %cst_66 = arith.constant dense<0.000000e+00> : vector<128x32xf32>
    %151 = tpu.matmul %150, %6, %cst_66 {dimension_numbers = #tpu.dot_dimension_numbers<[1], [0], [0], [1], [0, 0, 1, 1], [], []>} : vector<128x64xbf16>, vector<64x32xbf16>, vector<128x32xf32> -> vector<128x32xf32>
    %152 = vector.broadcast %7 : vector<1x32xf32> to vector<128x32xf32>
    %153 = arith.addf %151, %152 : vector<128x32xf32>
    %cst_67 = arith.constant 0.000000e+00 : f32
    %154 = vector.broadcast %cst_67 : f32 to vector<128x32xf32>
    %155 = arith.maximumf %153, %154 : vector<128x32xf32>
    %156 = arith.addf %114, %141 : vector<128x32xf32>
    %157 = vector.extract_strided_slice %155 {offsets = [0, 0], sizes = [64, 32], strides = [1, 1]} : vector<128x32xf32> to vector<64x32xf32>
    %158 = vector.extract_strided_slice %155 {offsets = [64, 0], sizes = [64, 32], strides = [1, 1]} : vector<128x32xf32> to vector<64x32xf32>
    %159 = vector.extract_strided_slice %156 {offsets = [0, 0], sizes = [64, 32], strides = [1, 1]} : vector<128x32xf32> to vector<64x32xf32>
    %160 = vector.extract_strided_slice %156 {offsets = [64, 0], sizes = [64, 32], strides = [1, 1]} : vector<128x32xf32> to vector<64x32xf32>
    %161 = arith.maximumf %157, %158 : vector<64x32xf32>
    %162 = arith.maximumf %81, %161 : vector<64x32xf32>
    %163 = arith.subf %81, %162 : vector<64x32xf32>
    %164 = math.exp %163 : vector<64x32xf32>
    %165 = arith.subf %157, %162 : vector<64x32xf32>
    %166 = math.exp %165 : vector<64x32xf32>
    %167 = arith.subf %158, %162 : vector<64x32xf32>
    %168 = math.exp %167 : vector<64x32xf32>
    %169 = arith.mulf %90, %164 : vector<64x32xf32>
    %170 = arith.addf %169, %166 : vector<64x32xf32>
    %171 = arith.addf %170, %168 : vector<64x32xf32>
    %172 = arith.mulf %95, %164 : vector<64x32xf32>
    %173 = arith.mulf %166, %159 : vector<64x32xf32>
    %174 = arith.addf %172, %173 : vector<64x32xf32>
    %175 = arith.mulf %168, %160 : vector<64x32xf32>
    %176 = arith.addf %174, %175 : vector<64x32xf32>
    %c4 = arith.constant 4 : index
    %c0_68 = arith.constant 0 : index
    %c0_69 = arith.constant 0 : index
    %177 = vector.load %arg3[%c4, %c0_68, %c0_69] : memref<5x64x3xf32, #tpu.memory_space<vmem>>, vector<1x64x3xf32>
    %178 = vector.shape_cast %177 : vector<1x64x3xf32> to vector<64x3xf32>
    %179 = arith.subf %8, %178 : vector<64x3xf32>
    %c4_70 = arith.constant 4 : index
    %c0_71 = arith.constant 0 : index
    %c0_72 = arith.constant 0 : index
    %180 = vector.load %arg2[%c4_70, %c0_71, %c0_72] : memref<5x64x32xbf16, #tpu.memory_space<vmem>>, vector<1x64x32xbf16>
    %181 = vector.shape_cast %180 : vector<1x64x32xbf16> to vector<64x32xbf16>
    %182 = arith.extf %181 : vector<64x32xbf16> to vector<64x32xf32>
    %c4_73 = arith.constant 4 : index
    %c0_74 = arith.constant 0 : index
    %c0_75 = arith.constant 0 : index
    %183 = vector.load %arg1[%c4_73, %c0_74, %c0_75] : memref<5x64x32xbf16, #tpu.memory_space<vmem>>, vector<1x64x32xbf16>
    %184 = vector.shape_cast %183 : vector<1x64x32xbf16> to vector<64x32xbf16>
    %185 = arith.extf %184 : vector<64x32xbf16> to vector<64x32xf32>
    %186 = vector.extract_strided_slice %179 {offsets = [0, 0], sizes = [64, 1], strides = [1, 1]} : vector<64x3xf32> to vector<64x1xf32>
    %187 = vector.extract_strided_slice %0 {offsets = [0, 0], sizes = [1, 64], strides = [1, 1]} : vector<3x64xf32> to vector<1x64xf32>
    %188 = vector.broadcast %186 : vector<64x1xf32> to vector<64x64xf32>
    %189 = vector.broadcast %187 : vector<1x64xf32> to vector<64x64xf32>
    %190 = arith.mulf %188, %189 : vector<64x64xf32>
    %191 = vector.extract_strided_slice %179 {offsets = [0, 1], sizes = [64, 1], strides = [1, 1]} : vector<64x3xf32> to vector<64x1xf32>
    %192 = vector.extract_strided_slice %0 {offsets = [1, 0], sizes = [1, 64], strides = [1, 1]} : vector<3x64xf32> to vector<1x64xf32>
    %193 = vector.broadcast %191 : vector<64x1xf32> to vector<64x64xf32>
    %194 = vector.broadcast %192 : vector<1x64xf32> to vector<64x64xf32>
    %195 = arith.mulf %193, %194 : vector<64x64xf32>
    %196 = arith.addf %190, %195 : vector<64x64xf32>
    %197 = vector.extract_strided_slice %179 {offsets = [0, 2], sizes = [64, 1], strides = [1, 1]} : vector<64x3xf32> to vector<64x1xf32>
    %198 = vector.extract_strided_slice %0 {offsets = [2, 0], sizes = [1, 64], strides = [1, 1]} : vector<3x64xf32> to vector<1x64xf32>
    %199 = vector.broadcast %197 : vector<64x1xf32> to vector<64x64xf32>
    %200 = vector.broadcast %198 : vector<1x64xf32> to vector<64x64xf32>
    %201 = arith.mulf %199, %200 : vector<64x64xf32>
    %202 = arith.addf %196, %201 : vector<64x64xf32>
    %203 = vector.broadcast %1 : vector<1x64xf32> to vector<64x64xf32>
    %204 = arith.addf %202, %203 : vector<64x64xf32>
    %cst_76 = arith.constant 0.000000e+00 : f32
    %205 = vector.broadcast %cst_76 : f32 to vector<64x64xf32>
    %206 = arith.maximumf %204, %205 : vector<64x64xf32>
    %207 = arith.truncf %206 : vector<64x64xf32> to vector<64x64xbf16>
    %cst_77 = arith.constant dense<0.000000e+00> : vector<64x32xf32>
    %208 = tpu.matmul %207, %2, %cst_77 {dimension_numbers = #tpu.dot_dimension_numbers<[1], [0], [0], [1], [0, 0, 1, 1], [], []>} : vector<64x64xbf16>, vector<64x32xbf16>, vector<64x32xf32> -> vector<64x32xf32>
    %209 = vector.broadcast %3 : vector<1x32xf32> to vector<64x32xf32>
    %210 = arith.addf %208, %209 : vector<64x32xf32>
    %cst_78 = arith.constant 0.000000e+00 : f32
    %211 = vector.broadcast %cst_78 : f32 to vector<64x32xf32>
    %212 = arith.maximumf %210, %211 : vector<64x32xf32>
    %213 = arith.subf %10, %182 : vector<64x32xf32>
    %214 = arith.addf %213, %212 : vector<64x32xf32>
    %215 = arith.truncf %214 : vector<64x32xf32> to vector<64x32xbf16>
    %cst_79 = arith.constant dense<0.000000e+00> : vector<64x64xf32>
    %216 = tpu.matmul %215, %4, %cst_79 {dimension_numbers = #tpu.dot_dimension_numbers<[1], [0], [0], [1], [0, 0, 1, 1], [], []>} : vector<64x32xbf16>, vector<32x64xbf16>, vector<64x64xf32> -> vector<64x64xf32>
    %217 = vector.broadcast %5 : vector<1x64xf32> to vector<64x64xf32>
    %218 = arith.addf %216, %217 : vector<64x64xf32>
    %cst_80 = arith.constant 0.000000e+00 : f32
    %219 = vector.broadcast %cst_80 : f32 to vector<64x64xf32>
    %220 = arith.maximumf %218, %219 : vector<64x64xf32>
    %221 = arith.truncf %220 : vector<64x64xf32> to vector<64x64xbf16>
    %cst_81 = arith.constant dense<0.000000e+00> : vector<64x32xf32>
    %222 = tpu.matmul %221, %6, %cst_81 {dimension_numbers = #tpu.dot_dimension_numbers<[1], [0], [0], [1], [0, 0, 1, 1], [], []>} : vector<64x64xbf16>, vector<64x32xbf16>, vector<64x32xf32> -> vector<64x32xf32>
    %223 = vector.broadcast %7 : vector<1x32xf32> to vector<64x32xf32>
    %224 = arith.addf %222, %223 : vector<64x32xf32>
    %cst_82 = arith.constant 0.000000e+00 : f32
    %225 = vector.broadcast %cst_82 : f32 to vector<64x32xf32>
    %226 = arith.maximumf %224, %225 : vector<64x32xf32>
    %227 = arith.addf %185, %212 : vector<64x32xf32>
    %228 = arith.maximumf %162, %226 : vector<64x32xf32>
    %229 = arith.subf %162, %228 : vector<64x32xf32>
    %230 = math.exp %229 : vector<64x32xf32>
    %231 = arith.subf %226, %228 : vector<64x32xf32>
    %232 = math.exp %231 : vector<64x32xf32>
    %233 = arith.mulf %171, %230 : vector<64x32xf32>
    %234 = arith.addf %233, %232 : vector<64x32xf32>
    %235 = arith.mulf %176, %230 : vector<64x32xf32>
    %236 = arith.mulf %232, %227 : vector<64x32xf32>
    %237 = arith.addf %235, %236 : vector<64x32xf32>
    %238 = arith.divf %237, %234 : vector<64x32xf32>
    %239 = arith.truncf %238 : vector<64x32xf32> to vector<64x32xbf16>
    %c0_83 = arith.constant 0 : index
    %c0_84 = arith.constant 0 : index
    %240 = vector.load %arg14[%c0_83, %c0_84] : memref<64x32xbf16, #tpu.memory_space<vmem>>, vector<64x32xbf16>
    tpu.vector_store %arg14[%c0_83, %c0_84], %239 {strides = array<i32>} : memref<64x32xbf16, #tpu.memory_space<vmem>>, vector<64x32xbf16>,
    return
  }
  func.func @transform_0(%arg0: i32) -> (i32, i32, i32) {
    %c0_i32 = arith.constant 0 : i32
    %c0_i32_0 = arith.constant 0 : i32
    %c0_i32_1 = arith.constant 0 : i32
    return %c0_i32, %arg0, %c0_i32_0 : i32, i32, i32
  }
  func.func @transform_1(%arg0: i32) -> (i32, i32, i32) {
    %c0_i32 = arith.constant 0 : i32
    %c0_i32_0 = arith.constant 0 : i32
    %c0_i32_1 = arith.constant 0 : i32
    return %c0_i32, %arg0, %c0_i32_0 : i32, i32, i32
  }
  func.func @transform_2(%arg0: i32) -> (i32, i32, i32) {
    %c0_i32 = arith.constant 0 : i32
    %c0_i32_0 = arith.constant 0 : i32
    %c0_i32_1 = arith.constant 0 : i32
    return %c0_i32, %arg0, %c0_i32_0 : i32, i32, i32
  }
  func.func @transform_3(%arg0: i32) -> (i32, i32) {
    %c0_i32 = arith.constant 0 : i32
    %c0_i32_0 = arith.constant 0 : i32
    return %arg0, %c0_i32 : i32, i32
  }
  func.func @transform_4(%arg0: i32) -> (i32, i32) {
    %c0_i32 = arith.constant 0 : i32
    %c0_i32_0 = arith.constant 0 : i32
    return %arg0, %c0_i32 : i32, i32
  }
  func.func @transform_5(%arg0: i32) -> (i32, i32) {
    %c0_i32 = arith.constant 0 : i32
    %c0_i32_0 = arith.constant 0 : i32
    %c0_i32_1 = arith.constant 0 : i32
    return %c0_i32, %c0_i32_0 : i32, i32
  }
  func.func @transform_6(%arg0: i32) -> (i32, i32) {
    %c0_i32 = arith.constant 0 : i32
    %c0_i32_0 = arith.constant 0 : i32
    %c0_i32_1 = arith.constant 0 : i32
    return %c0_i32, %c0_i32_0 : i32, i32
  }
  func.func @transform_7(%arg0: i32) -> (i32, i32) {
    %c0_i32 = arith.constant 0 : i32
    %c0_i32_0 = arith.constant 0 : i32
    %c0_i32_1 = arith.constant 0 : i32
    return %c0_i32, %c0_i32_0 : i32, i32
  }
  func.func @transform_8(%arg0: i32) -> (i32, i32) {
    %c0_i32 = arith.constant 0 : i32
    %c0_i32_0 = arith.constant 0 : i32
    %c0_i32_1 = arith.constant 0 : i32
    return %c0_i32, %c0_i32_0 : i32, i32
  }
  func.func @transform_9(%arg0: i32) -> (i32, i32) {
    %c0_i32 = arith.constant 0 : i32
    %c0_i32_0 = arith.constant 0 : i32
    %c0_i32_1 = arith.constant 0 : i32
    return %c0_i32, %c0_i32_0 : i32, i32
  }
  func.func @transform_10(%arg0: i32) -> (i32, i32) {
    %c0_i32 = arith.constant 0 : i32
    %c0_i32_0 = arith.constant 0 : i32
    %c0_i32_1 = arith.constant 0 : i32
    return %c0_i32, %c0_i32_0 : i32, i32
  }
  func.func @transform_11(%arg0: i32) -> (i32, i32) {
    %c0_i32 = arith.constant 0 : i32
    %c0_i32_0 = arith.constant 0 : i32
    %c0_i32_1 = arith.constant 0 : i32
    return %c0_i32, %c0_i32_0 : i32, i32
  }
  func.func @transform_12(%arg0: i32) -> (i32, i32) {
    %c0_i32 = arith.constant 0 : i32
    %c0_i32_0 = arith.constant 0 : i32
    %c0_i32_1 = arith.constant 0 : i32
    return %c0_i32, %c0_i32_0 : i32, i32
  }
  func.func @transform_13(%arg0: i32) -> (i32, i32) {
    %c0_i32 = arith.constant 0 : i32
    %c0_i32_0 = arith.constant 0 : i32
    return %arg0, %c0_i32 : i32, i32
  }
}

module attributes {stable_mosaic.version = 11 : i64} {
  func.func @_linear_kernel(%arg0: i32, %arg1: memref<64x32xbf16, #tpu.memory_space<vmem>>, %arg2: memref<32x96xbf16, #tpu.memory_space<vmem>>, %arg3: memref<1x96xf32, #tpu.memory_space<vmem>>, %arg4: memref<64x96xbf16, #tpu.memory_space<vmem>>) attributes {dimension_semantics = [#tpu.dimension_semantics<parallel>], iteration_bounds = array<i64: 1>, scalar_prefetch = 0 : i64, scratch_operands = 0 : i64, tpu.core_type = #tpu.core_type<tc>, window_params = [{transform_indices = @transform_0, window_bounds = array<i64: 64, 32>}, {pipeline_mode = #tpu.pipeline_mode<synchronous>, transform_indices = @transform_1, window_bounds = array<i64: 32, 96>}, {pipeline_mode = #tpu.pipeline_mode<synchronous>, transform_indices = @transform_2, window_bounds = array<i64: 1, 96>}, {transform_indices = @transform_3, window_bounds = array<i64: 64, 96>}]} {
    %c0 = arith.constant 0 : index
    %c0_0 = arith.constant 0 : index
    %0 = vector.load %arg1[%c0, %c0_0] : memref<64x32xbf16, #tpu.memory_space<vmem>>, vector<64x32xbf16>
    %c0_1 = arith.constant 0 : index
    %c0_2 = arith.constant 0 : index
    %1 = vector.load %arg2[%c0_1, %c0_2] : memref<32x96xbf16, #tpu.memory_space<vmem>>, vector<32x96xbf16>
    %cst = arith.constant dense<0.000000e+00> : vector<64x96xf32>
    %2 = tpu.matmul %0, %1, %cst {dimension_numbers = #tpu.dot_dimension_numbers<[1], [0], [0], [1], [0, 0, 1, 1], [], []>} : vector<64x32xbf16>, vector<32x96xbf16>, vector<64x96xf32> -> vector<64x96xf32>
    %c0_3 = arith.constant 0 : index
    %c0_4 = arith.constant 0 : index
    %3 = vector.load %arg3[%c0_3, %c0_4] : memref<1x96xf32, #tpu.memory_space<vmem>>, vector<1x96xf32>
    %4 = vector.broadcast %3 : vector<1x96xf32> to vector<64x96xf32>
    %5 = arith.addf %2, %4 : vector<64x96xf32>
    %6 = arith.truncf %5 : vector<64x96xf32> to vector<64x96xbf16>
    %c0_5 = arith.constant 0 : index
    %c0_6 = arith.constant 0 : index
    %7 = vector.load %arg4[%c0_5, %c0_6] : memref<64x96xbf16, #tpu.memory_space<vmem>>, vector<64x96xbf16>
    tpu.vector_store %arg4[%c0_5, %c0_6], %6 {strides = array<i32>} : memref<64x96xbf16, #tpu.memory_space<vmem>>, vector<64x96xbf16>,
    return
  }
  func.func @transform_0(%arg0: i32) -> (i32, i32) {
    %c0_i32 = arith.constant 0 : i32
    %c0_i32_0 = arith.constant 0 : i32
    return %arg0, %c0_i32 : i32, i32
  }
  func.func @transform_1(%arg0: i32) -> (i32, i32) {
    %c0_i32 = arith.constant 0 : i32
    %c0_i32_0 = arith.constant 0 : i32
    %c0_i32_1 = arith.constant 0 : i32
    return %c0_i32, %c0_i32_0 : i32, i32
  }
  func.func @transform_2(%arg0: i32) -> (i32, i32) {
    %c0_i32 = arith.constant 0 : i32
    %c0_i32_0 = arith.constant 0 : i32
    %c0_i32_1 = arith.constant 0 : i32
    return %c0_i32, %c0_i32_0 : i32, i32
  }
  func.func @transform_3(%arg0: i32) -> (i32, i32) {
    %c0_i32 = arith.constant 0 : i32
    %c0_i32_0 = arith.constant 0 : i32
    return %arg0, %c0_i32 : i32, i32
  }
}

module attributes {stable_mosaic.version = 11 : i64} {
  func.func @_linear_bn_fused_kernel(%arg0: i32, %arg1: memref<64x32xbf16, #tpu.memory_space<vmem>>, %arg2: memref<32x64xbf16, #tpu.memory_space<vmem>>, %arg3: memref<1x64xf32, #tpu.memory_space<vmem>>, %arg4: memref<64x64xbf16, #tpu.memory_space<vmem>>) attributes {dimension_semantics = [#tpu.dimension_semantics<arbitrary>], iteration_bounds = array<i64: 1>, scalar_prefetch = 0 : i64, scratch_operands = 0 : i64, tpu.core_type = #tpu.core_type<tc>, window_params = [{pipeline_mode = #tpu.pipeline_mode<synchronous>, transform_indices = @transform_0, window_bounds = array<i64: 64, 32>}, {pipeline_mode = #tpu.pipeline_mode<synchronous>, transform_indices = @transform_1, window_bounds = array<i64: 32, 64>}, {pipeline_mode = #tpu.pipeline_mode<synchronous>, transform_indices = @transform_2, window_bounds = array<i64: 1, 64>}, {pipeline_mode = #tpu.pipeline_mode<synchronous>, transform_indices = @transform_3, window_bounds = array<i64: 64, 64>}]} {
    %c0 = arith.constant 0 : index
    %c0_0 = arith.constant 0 : index
    %0 = vector.load %arg1[%c0, %c0_0] : memref<64x32xbf16, #tpu.memory_space<vmem>>, vector<64x32xbf16>
    %c0_1 = arith.constant 0 : index
    %c0_2 = arith.constant 0 : index
    %1 = vector.load %arg2[%c0_1, %c0_2] : memref<32x64xbf16, #tpu.memory_space<vmem>>, vector<32x64xbf16>
    %cst = arith.constant dense<0.000000e+00> : vector<64x64xf32>
    %2 = tpu.matmul %0, %1, %cst {dimension_numbers = #tpu.dot_dimension_numbers<[1], [0], [0], [1], [0, 0, 1, 1], [], []>} : vector<64x32xbf16>, vector<32x64xbf16>, vector<64x64xf32> -> vector<64x64xf32>
    %c0_3 = arith.constant 0 : index
    %c0_4 = arith.constant 0 : index
    %3 = vector.load %arg3[%c0_3, %c0_4] : memref<1x64xf32, #tpu.memory_space<vmem>>, vector<1x64xf32>
    %4 = vector.broadcast %3 : vector<1x64xf32> to vector<64x64xf32>
    %5 = arith.addf %2, %4 : vector<64x64xf32>
    %cst_5 = arith.constant dense<0.000000e+00> : vector<64xf32>
    %6 = vector.multi_reduction <add>, %5, %cst_5 [0] : vector<64x64xf32> to vector<64xf32>
    %7 = vector.shape_cast %6 : vector<64xf32> to vector<1x64xf32>
    %cst_6 = arith.constant 6.400000e+01 : f32
    %8 = vector.broadcast %cst_6 : f32 to vector<1x64xf32>
    %9 = arith.divf %7, %8 : vector<1x64xf32>
    %10 = vector.broadcast %9 : vector<1x64xf32> to vector<64x64xf32>
    %11 = arith.subf %5, %10 : vector<64x64xf32>
    %12 = arith.mulf %11, %11 : vector<64x64xf32>
    %cst_7 = arith.constant dense<0.000000e+00> : vector<64xf32>
    %13 = vector.multi_reduction <add>, %12, %cst_7 [0] : vector<64x64xf32> to vector<64xf32>
    %14 = vector.shape_cast %13 : vector<64xf32> to vector<1x64xf32>
    %cst_8 = arith.constant 6.400000e+01 : f32
    %15 = vector.broadcast %cst_8 : f32 to vector<1x64xf32>
    %16 = arith.divf %14, %15 : vector<1x64xf32>
    %17 = vector.broadcast %9 : vector<1x64xf32> to vector<64x64xf32>
    %18 = arith.subf %5, %17 : vector<64x64xf32>
    %cst_9 = arith.constant 9.99999974E-6 : f32
    %19 = vector.broadcast %cst_9 : f32 to vector<1x64xf32>
    %20 = arith.addf %16, %19 : vector<1x64xf32>
    %21 = math.rsqrt %20 : vector<1x64xf32>
    %22 = vector.broadcast %21 : vector<1x64xf32> to vector<64x64xf32>
    %23 = arith.mulf %18, %22 : vector<64x64xf32>
    %cst_10 = arith.constant 0.000000e+00 : f32
    %24 = vector.broadcast %cst_10 : f32 to vector<64x64xf32>
    %25 = arith.maximumf %23, %24 : vector<64x64xf32>
    %26 = arith.truncf %25 : vector<64x64xf32> to vector<64x64xbf16>
    %c0_11 = arith.constant 0 : index
    %c0_12 = arith.constant 0 : index
    %27 = vector.load %arg4[%c0_11, %c0_12] : memref<64x64xbf16, #tpu.memory_space<vmem>>, vector<64x64xbf16>
    tpu.vector_store %arg4[%c0_11, %c0_12], %26 {strides = array<i32>} : memref<64x64xbf16, #tpu.memory_space<vmem>>, vector<64x64xbf16>,
    return
  }
  func.func @transform_0(%arg0: i32) -> (i32, i32) {
    %c0_i32 = arith.constant 0 : i32
    %c0_i32_0 = arith.constant 0 : i32
    %c0_i32_1 = arith.constant 0 : i32
    return %c0_i32, %c0_i32_0 : i32, i32
  }
  func.func @transform_1(%arg0: i32) -> (i32, i32) {
    %c0_i32 = arith.constant 0 : i32
    %c0_i32_0 = arith.constant 0 : i32
    %c0_i32_1 = arith.constant 0 : i32
    return %c0_i32, %c0_i32_0 : i32, i32
  }
  func.func @transform_2(%arg0: i32) -> (i32, i32) {
    %c0_i32 = arith.constant 0 : i32
    %c0_i32_0 = arith.constant 0 : i32
    %c0_i32_1 = arith.constant 0 : i32
    return %c0_i32, %c0_i32_0 : i32, i32
  }
  func.func @transform_3(%arg0: i32) -> (i32, i32) {
    %c0_i32 = arith.constant 0 : i32
    %c0_i32_0 = arith.constant 0 : i32
    %c0_i32_1 = arith.constant 0 : i32
    return %c0_i32, %c0_i32_0 : i32, i32
  }
}

module attributes {stable_mosaic.version = 11 : i64} {
  func.func @_fps_kernel(%arg0: i32, %arg1: memref<64x3xf32, #tpu.memory_space<vmem>>, %arg2: memref<1x16xi32, #tpu.memory_space<vmem>>, %arg3: memref<64x1xf32, #tpu.memory_space<vmem>>, %arg4: memref<1x1xi32, #tpu.memory_space<vmem>>) attributes {dimension_semantics = [#tpu.dimension_semantics<arbitrary>], iteration_bounds = array<i64: 16>, scalar_prefetch = 0 : i64, scratch_operands = 2 : i64, tpu.core_type = #tpu.core_type<tc>, window_params = [{pipeline_mode = #tpu.pipeline_mode<synchronous>, transform_indices = @transform_0, window_bounds = array<i64: 64, 3>}, {pipeline_mode = #tpu.pipeline_mode<synchronous>, transform_indices = @transform_1, window_bounds = array<i64: 1, 16>}]} {
    %c0_i32 = arith.constant 0 : i32
    %0 = arith.cmpi eq, %arg0, %c0_i32 : i32
    %1 = arith.extui %0 : i1 to i32
    %c0_i32_0 = arith.constant 0 : i32
    %2 = arith.cmpi ne, %1, %c0_i32_0 : i32
    scf.if %2 {
      %c0_i32_18 = arith.constant 0 : i32
      %39 = vector.broadcast %c0_i32_18 : i32 to vector<1x16xi32>
      %c0_19 = arith.constant 0 : index
      %c0_20 = arith.constant 0 : index
      %40 = vector.load %arg2[%c0_19, %c0_20] : memref<1x16xi32, #tpu.memory_space<vmem>>, vector<1x16xi32>
      tpu.vector_store %arg2[%c0_19, %c0_20], %39 {strides = array<i32>} : memref<1x16xi32, #tpu.memory_space<vmem>>, vector<1x16xi32>,
      %c0_i32_21 = arith.constant 0 : i32
      %41 = vector.broadcast %c0_i32_21 : i32 to vector<1x1xi32>
      %c0_22 = arith.constant 0 : index
      %c0_23 = arith.constant 0 : index
      %42 = vector.load %arg4[%c0_22, %c0_23] : memref<1x1xi32, #tpu.memory_space<vmem>>, vector<1x1xi32>
      tpu.vector_store %arg4[%c0_22, %c0_23], %41 {strides = array<i32>} : memref<1x1xi32, #tpu.memory_space<vmem>>, vector<1x1xi32>,
      %cst_24 = arith.constant 0x7F800000 : f32
      %43 = vector.broadcast %cst_24 : f32 to vector<64x1xf32>
      %c0_25 = arith.constant 0 : index
      %c0_26 = arith.constant 0 : index
      %44 = vector.load %arg3[%c0_25, %c0_26] : memref<64x1xf32, #tpu.memory_space<vmem>>, vector<64x1xf32>
      tpu.vector_store %arg3[%c0_25, %c0_26], %43 {strides = array<i32>} : memref<64x1xf32, #tpu.memory_space<vmem>>, vector<64x1xf32>,
    } else {
    }
    %c0 = arith.constant 0 : index
    %c0_1 = arith.constant 0 : index
    %3 = vector.load %arg1[%c0, %c0_1] : memref<64x3xf32, #tpu.memory_space<vmem>>, vector<64x3xf32>
    %4 = tpu.iota {dimensions = array<i32: 0>} : vector<64x1xi32>
    %c0_2 = arith.constant 0 : index
    %c0_3 = arith.constant 0 : index
    %5 = vector.load %arg4[%c0_2, %c0_3] : memref<1x1xi32, #tpu.memory_space<vmem>>, vector<1x1xi32>
    %6 = tpu.iota {dimensions = array<i32: 1>} : vector<1x16xi32>
    %7 = vector.broadcast %arg0 : i32 to vector<1x16xi32>
    %8 = arith.cmpi eq, %6, %7 : vector<1x16xi32>
    %c0_4 = arith.constant 0 : index
    %c0_5 = arith.constant 0 : index
    %9 = vector.load %arg2[%c0_4, %c0_5] : memref<1x16xi32, #tpu.memory_space<vmem>>, vector<1x16xi32>
    %10 = vector.shape_cast %5 : vector<1x1xi32> to vector<1x1xi32>
    %11 = vector.broadcast %10 : vector<1x1xi32> to vector<1x16xi32>
    %12 = arith.select %8, %11, %9 : vector<1x16xi1>, vector<1x16xi32>
    %c0_6 = arith.constant 0 : index
    %c0_7 = arith.constant 0 : index
    %13 = vector.load %arg2[%c0_6, %c0_7] : memref<1x16xi32, #tpu.memory_space<vmem>>, vector<1x16xi32>
    tpu.vector_store %arg2[%c0_6, %c0_7], %12 {strides = array<i32>} : memref<1x16xi32, #tpu.memory_space<vmem>>, vector<1x16xi32>,
    %14 = vector.broadcast %5 : vector<1x1xi32> to vector<64x1xi32>
    %15 = arith.cmpi eq, %4, %14 : vector<64x1xi32>
    %cst = arith.constant 0.000000e+00 : f32
    %16 = vector.shape_cast %15 : vector<64x1xi1> to vector<64x1xi1>
    %17 = vector.broadcast %16 : vector<64x1xi1> to vector<64x3xi1>
    %18 = vector.broadcast %cst : f32 to vector<64x3xf32>
    %19 = arith.select %17, %3, %18 : vector<64x3xi1>, vector<64x3xf32>
    %cst_8 = arith.constant dense<0.000000e+00> : vector<3xf32>
    %20 = vector.multi_reduction <add>, %19, %cst_8 [0] : vector<64x3xf32> to vector<3xf32>
    %21 = vector.shape_cast %20 : vector<3xf32> to vector<1x3xf32>
    %22 = vector.broadcast %21 : vector<1x3xf32> to vector<64x3xf32>
    %23 = arith.subf %3, %22 : vector<64x3xf32>
    %24 = arith.mulf %23, %23 : vector<64x3xf32>
    %cst_9 = arith.constant dense<0.000000e+00> : vector<64xf32>
    %25 = vector.multi_reduction <add>, %24, %cst_9 [1] : vector<64x3xf32> to vector<64xf32>
    %26 = vector.shape_cast %25 : vector<64xf32> to vector<64x1xf32>
    %c0_10 = arith.constant 0 : index
    %c0_11 = arith.constant 0 : index
    %27 = vector.load %arg3[%c0_10, %c0_11] : memref<64x1xf32, #tpu.memory_space<vmem>>, vector<64x1xf32>
    %28 = arith.minimumf %27, %26 : vector<64x1xf32>
    %c0_12 = arith.constant 0 : index
    %c0_13 = arith.constant 0 : index
    %29 = vector.load %arg3[%c0_12, %c0_13] : memref<64x1xf32, #tpu.memory_space<vmem>>, vector<64x1xf32>
    tpu.vector_store %arg3[%c0_12, %c0_13], %28 {strides = array<i32>} : memref<64x1xf32, #tpu.memory_space<vmem>>, vector<64x1xf32>,
    %cst_14 = arith.constant dense<0xFF800000> : vector<1xf32>
    %30 = vector.multi_reduction <maximumf>, %28, %cst_14 [0] : vector<64x1xf32> to vector<1xf32>
    %31 = vector.shape_cast %30 : vector<1xf32> to vector<1x1xf32>
    %32 = vector.broadcast %31 : vector<1x1xf32> to vector<64x1xf32>
    %33 = arith.cmpf oeq, %28, %32 : vector<64x1xf32>
    %c64_i32 = arith.constant 64 : i32
    %34 = vector.broadcast %c64_i32 : i32 to vector<64x1xi32>
    %35 = arith.select %33, %4, %34 : vector<64x1xi1>, vector<64x1xi32>
    %cst_15 = arith.constant dense<2147483647> : vector<1xi32>
    %36 = vector.multi_reduction <minsi>, %35, %cst_15 [0] : vector<64x1xi32> to vector<1xi32>
    %37 = vector.shape_cast %36 : vector<1xi32> to vector<1x1xi32>
    %c0_16 = arith.constant 0 : index
    %c0_17 = arith.constant 0 : index
    %38 = vector.load %arg4[%c0_16, %c0_17] : memref<1x1xi32, #tpu.memory_space<vmem>>, vector<1x1xi32>
    tpu.vector_store %arg4[%c0_16, %c0_17], %37 {strides = array<i32>} : memref<1x1xi32, #tpu.memory_space<vmem>>, vector<1x1xi32>,
    return
  }
  func.func @transform_0(%arg0: i32) -> (i32, i32) {
    %c0_i32 = arith.constant 0 : i32
    %c0_i32_0 = arith.constant 0 : i32
    %c0_i32_1 = arith.constant 0 : i32
    return %c0_i32, %c0_i32_0 : i32, i32
  }
  func.func @transform_1(%arg0: i32) -> (i32, i32) {
    %c0_i32 = arith.constant 0 : i32
    %c0_i32_0 = arith.constant 0 : i32
    %c0_i32_1 = arith.constant 0 : i32
    return %c0_i32, %c0_i32_0 : i32, i32
  }
}

module attributes {stable_mosaic.version = 11 : i64} {
  func.func @_sqdist_kernel(%arg0: i32, %arg1: i32, %arg2: memref<16x3xf32, #tpu.memory_space<vmem>>, %arg3: memref<3x64xf32, #tpu.memory_space<vmem>>, %arg4: memref<16x64xf32, #tpu.memory_space<vmem>>) attributes {dimension_semantics = [#tpu.dimension_semantics<parallel>, #tpu.dimension_semantics<parallel>], iteration_bounds = array<i64: 1, 1>, scalar_prefetch = 0 : i64, scratch_operands = 0 : i64, tpu.core_type = #tpu.core_type<tc>, window_params = [{transform_indices = @transform_0, window_bounds = array<i64: 16, 3>}, {transform_indices = @transform_1, window_bounds = array<i64: 3, 64>}, {transform_indices = @transform_2, window_bounds = array<i64: 16, 64>}]} {
    %c0 = arith.constant 0 : index
    %c0_0 = arith.constant 0 : index
    %0 = vector.load %arg2[%c0, %c0_0] : memref<16x3xf32, #tpu.memory_space<vmem>>, vector<16x3xf32>
    %c0_1 = arith.constant 0 : index
    %c0_2 = arith.constant 0 : index
    %1 = vector.load %arg3[%c0_1, %c0_2] : memref<3x64xf32, #tpu.memory_space<vmem>>, vector<3x64xf32>
    %cst = arith.constant dense<0.000000e+00> : vector<16x64xf32>
    %2 = tpu.matmul %0, %1, %cst {dimension_numbers = #tpu.dot_dimension_numbers<[1], [0], [0], [1], [0, 0, 1, 1], [], []>} : vector<16x3xf32>, vector<3x64xf32>, vector<16x64xf32> -> vector<16x64xf32>
    %3 = arith.mulf %0, %0 : vector<16x3xf32>
    %cst_3 = arith.constant dense<0.000000e+00> : vector<16xf32>
    %4 = vector.multi_reduction <add>, %3, %cst_3 [1] : vector<16x3xf32> to vector<16xf32>
    %5 = vector.shape_cast %4 : vector<16xf32> to vector<16x1xf32>
    %6 = arith.mulf %1, %1 : vector<3x64xf32>
    %cst_4 = arith.constant dense<0.000000e+00> : vector<64xf32>
    %7 = vector.multi_reduction <add>, %6, %cst_4 [0] : vector<3x64xf32> to vector<64xf32>
    %8 = vector.shape_cast %7 : vector<64xf32> to vector<1x64xf32>
    %9 = vector.broadcast %5 : vector<16x1xf32> to vector<16x64xf32>
    %10 = vector.broadcast %8 : vector<1x64xf32> to vector<16x64xf32>
    %11 = arith.addf %9, %10 : vector<16x64xf32>
    %cst_5 = arith.constant 2.000000e+00 : f32
    %12 = vector.broadcast %cst_5 : f32 to vector<16x64xf32>
    %13 = arith.mulf %12, %2 : vector<16x64xf32>
    %14 = arith.subf %11, %13 : vector<16x64xf32>
    %c0_6 = arith.constant 0 : index
    %c0_7 = arith.constant 0 : index
    %15 = vector.load %arg4[%c0_6, %c0_7] : memref<16x64xf32, #tpu.memory_space<vmem>>, vector<16x64xf32>
    tpu.vector_store %arg4[%c0_6, %c0_7], %14 {strides = array<i32>} : memref<16x64xf32, #tpu.memory_space<vmem>>, vector<16x64xf32>,
    return
  }
  func.func @transform_0(%arg0: i32, %arg1: i32) -> (i32, i32) {
    %c0_i32 = arith.constant 0 : i32
    %c0_i32_0 = arith.constant 0 : i32
    return %arg0, %c0_i32 : i32, i32
  }
  func.func @transform_1(%arg0: i32, %arg1: i32) -> (i32, i32) {
    %c0_i32 = arith.constant 0 : i32
    %c0_i32_0 = arith.constant 0 : i32
    return %c0_i32, %arg1 : i32, i32
  }
  func.func @transform_2(%arg0: i32, %arg1: i32) -> (i32, i32) {
    %c0_i32 = arith.constant 0 : i32
    return %arg0, %arg1 : i32, i32
  }
}

module attributes {stable_mosaic.version = 11 : i64} {
  func.func @_linear_kernel(%arg0: i32, %arg1: memref<16x64xbf16, #tpu.memory_space<vmem>>, %arg2: memref<64x64xbf16, #tpu.memory_space<vmem>>, %arg3: memref<1x64xf32, #tpu.memory_space<vmem>>, %arg4: memref<16x64xbf16, #tpu.memory_space<vmem>>) attributes {dimension_semantics = [#tpu.dimension_semantics<parallel>], iteration_bounds = array<i64: 1>, scalar_prefetch = 0 : i64, scratch_operands = 0 : i64, tpu.core_type = #tpu.core_type<tc>, window_params = [{transform_indices = @transform_0, window_bounds = array<i64: 16, 64>}, {pipeline_mode = #tpu.pipeline_mode<synchronous>, transform_indices = @transform_1, window_bounds = array<i64: 64, 64>}, {pipeline_mode = #tpu.pipeline_mode<synchronous>, transform_indices = @transform_2, window_bounds = array<i64: 1, 64>}, {transform_indices = @transform_3, window_bounds = array<i64: 16, 64>}]} {
    %c0 = arith.constant 0 : index
    %c0_0 = arith.constant 0 : index
    %0 = vector.load %arg1[%c0, %c0_0] : memref<16x64xbf16, #tpu.memory_space<vmem>>, vector<16x64xbf16>
    %c0_1 = arith.constant 0 : index
    %c0_2 = arith.constant 0 : index
    %1 = vector.load %arg2[%c0_1, %c0_2] : memref<64x64xbf16, #tpu.memory_space<vmem>>, vector<64x64xbf16>
    %cst = arith.constant dense<0.000000e+00> : vector<16x64xf32>
    %2 = tpu.matmul %0, %1, %cst {dimension_numbers = #tpu.dot_dimension_numbers<[1], [0], [0], [1], [0, 0, 1, 1], [], []>} : vector<16x64xbf16>, vector<64x64xbf16>, vector<16x64xf32> -> vector<16x64xf32>
    %c0_3 = arith.constant 0 : index
    %c0_4 = arith.constant 0 : index
    %3 = vector.load %arg3[%c0_3, %c0_4] : memref<1x64xf32, #tpu.memory_space<vmem>>, vector<1x64xf32>
    %4 = vector.broadcast %3 : vector<1x64xf32> to vector<16x64xf32>
    %5 = arith.addf %2, %4 : vector<16x64xf32>
    %cst_5 = arith.constant 0.000000e+00 : f32
    %6 = vector.broadcast %cst_5 : f32 to vector<16x64xf32>
    %7 = arith.maximumf %5, %6 : vector<16x64xf32>
    %8 = arith.truncf %7 : vector<16x64xf32> to vector<16x64xbf16>
    %c0_6 = arith.constant 0 : index
    %c0_7 = arith.constant 0 : index
    %9 = vector.load %arg4[%c0_6, %c0_7] : memref<16x64xbf16, #tpu.memory_space<vmem>>, vector<16x64xbf16>
    tpu.vector_store %arg4[%c0_6, %c0_7], %8 {strides = array<i32>} : memref<16x64xbf16, #tpu.memory_space<vmem>>, vector<16x64xbf16>,
    return
  }
  func.func @transform_0(%arg0: i32) -> (i32, i32) {
    %c0_i32 = arith.constant 0 : i32
    %c0_i32_0 = arith.constant 0 : i32
    return %arg0, %c0_i32 : i32, i32
  }
  func.func @transform_1(%arg0: i32) -> (i32, i32) {
    %c0_i32 = arith.constant 0 : i32
    %c0_i32_0 = arith.constant 0 : i32
    %c0_i32_1 = arith.constant 0 : i32
    return %c0_i32, %c0_i32_0 : i32, i32
  }
  func.func @transform_2(%arg0: i32) -> (i32, i32) {
    %c0_i32 = arith.constant 0 : i32
    %c0_i32_0 = arith.constant 0 : i32
    %c0_i32_1 = arith.constant 0 : i32
    return %c0_i32, %c0_i32_0 : i32, i32
  }
  func.func @transform_3(%arg0: i32) -> (i32, i32) {
    %c0_i32 = arith.constant 0 : i32
    %c0_i32_0 = arith.constant 0 : i32
    return %arg0, %c0_i32 : i32, i32
  }
}

module attributes {stable_mosaic.version = 11 : i64} {
  func.func @_linear_kernel(%arg0: i32, %arg1: memref<16x64xbf16, #tpu.memory_space<vmem>>, %arg2: memref<64x192xbf16, #tpu.memory_space<vmem>>, %arg3: memref<1x192xf32, #tpu.memory_space<vmem>>, %arg4: memref<16x192xbf16, #tpu.memory_space<vmem>>) attributes {dimension_semantics = [#tpu.dimension_semantics<parallel>], iteration_bounds = array<i64: 1>, scalar_prefetch = 0 : i64, scratch_operands = 0 : i64, tpu.core_type = #tpu.core_type<tc>, window_params = [{transform_indices = @transform_0, window_bounds = array<i64: 16, 64>}, {pipeline_mode = #tpu.pipeline_mode<synchronous>, transform_indices = @transform_1, window_bounds = array<i64: 64, 192>}, {pipeline_mode = #tpu.pipeline_mode<synchronous>, transform_indices = @transform_2, window_bounds = array<i64: 1, 192>}, {transform_indices = @transform_3, window_bounds = array<i64: 16, 192>}]} {
    %c0 = arith.constant 0 : index
    %c0_0 = arith.constant 0 : index
    %0 = vector.load %arg1[%c0, %c0_0] : memref<16x64xbf16, #tpu.memory_space<vmem>>, vector<16x64xbf16>
    %c0_1 = arith.constant 0 : index
    %c0_2 = arith.constant 0 : index
    %1 = vector.load %arg2[%c0_1, %c0_2] : memref<64x192xbf16, #tpu.memory_space<vmem>>, vector<64x192xbf16>
    %cst = arith.constant dense<0.000000e+00> : vector<16x192xf32>
    %2 = tpu.matmul %0, %1, %cst {dimension_numbers = #tpu.dot_dimension_numbers<[1], [0], [0], [1], [0, 0, 1, 1], [], []>} : vector<16x64xbf16>, vector<64x192xbf16>, vector<16x192xf32> -> vector<16x192xf32>
    %c0_3 = arith.constant 0 : index
    %c0_4 = arith.constant 0 : index
    %3 = vector.load %arg3[%c0_3, %c0_4] : memref<1x192xf32, #tpu.memory_space<vmem>>, vector<1x192xf32>
    %4 = vector.broadcast %3 : vector<1x192xf32> to vector<16x192xf32>
    %5 = arith.addf %2, %4 : vector<16x192xf32>
    %6 = arith.truncf %5 : vector<16x192xf32> to vector<16x192xbf16>
    %c0_5 = arith.constant 0 : index
    %c0_6 = arith.constant 0 : index
    %7 = vector.load %arg4[%c0_5, %c0_6] : memref<16x192xbf16, #tpu.memory_space<vmem>>, vector<16x192xbf16>
    tpu.vector_store %arg4[%c0_5, %c0_6], %6 {strides = array<i32>} : memref<16x192xbf16, #tpu.memory_space<vmem>>, vector<16x192xbf16>,
    return
  }
  func.func @transform_0(%arg0: i32) -> (i32, i32) {
    %c0_i32 = arith.constant 0 : i32
    %c0_i32_0 = arith.constant 0 : i32
    return %arg0, %c0_i32 : i32, i32
  }
  func.func @transform_1(%arg0: i32) -> (i32, i32) {
    %c0_i32 = arith.constant 0 : i32
    %c0_i32_0 = arith.constant 0 : i32
    %c0_i32_1 = arith.constant 0 : i32
    return %c0_i32, %c0_i32_0 : i32, i32
  }
  func.func @transform_2(%arg0: i32) -> (i32, i32) {
    %c0_i32 = arith.constant 0 : i32
    %c0_i32_0 = arith.constant 0 : i32
    %c0_i32_1 = arith.constant 0 : i32
    return %c0_i32, %c0_i32_0 : i32, i32
  }
  func.func @transform_3(%arg0: i32) -> (i32, i32) {
    %c0_i32 = arith.constant 0 : i32
    %c0_i32_0 = arith.constant 0 : i32
    return %arg0, %c0_i32 : i32, i32
  }
}

module attributes {stable_mosaic.version = 11 : i64} {
  func.func @_neighbor_max_kernel(%arg0: i32, %arg1: memref<4x16x64xbf16, #tpu.memory_space<vmem>>, %arg2: memref<16x64xbf16, #tpu.memory_space<vmem>>) attributes {dimension_semantics = [#tpu.dimension_semantics<parallel>], iteration_bounds = array<i64: 1>, scalar_prefetch = 0 : i64, scratch_operands = 0 : i64, tpu.core_type = #tpu.core_type<tc>, window_params = [{transform_indices = @transform_0, window_bounds = array<i64: 4, 16, 64>}, {transform_indices = @transform_1, window_bounds = array<i64: 16, 64>}]} {
    %c0 = arith.constant 0 : index
    %c0_0 = arith.constant 0 : index
    %c0_1 = arith.constant 0 : index
    %0 = vector.load %arg1[%c0, %c0_0, %c0_1] : memref<4x16x64xbf16, #tpu.memory_space<vmem>>, vector<4x16x64xbf16>
    %cst = arith.constant dense<0xFF80> : vector<16x64xbf16>
    %1 = vector.multi_reduction <maximumf>, %0, %cst [0] : vector<4x16x64xbf16> to vector<16x64xbf16>
    %c0_2 = arith.constant 0 : index
    %c0_3 = arith.constant 0 : index
    %2 = vector.load %arg2[%c0_2, %c0_3] : memref<16x64xbf16, #tpu.memory_space<vmem>>, vector<16x64xbf16>
    tpu.vector_store %arg2[%c0_2, %c0_3], %1 {strides = array<i32>} : memref<16x64xbf16, #tpu.memory_space<vmem>>, vector<16x64xbf16>,
    return
  }
  func.func @transform_0(%arg0: i32) -> (i32, i32, i32) {
    %c0_i32 = arith.constant 0 : i32
    %c0_i32_0 = arith.constant 0 : i32
    %c0_i32_1 = arith.constant 0 : i32
    return %c0_i32, %arg0, %c0_i32_0 : i32, i32, i32
  }
  func.func @transform_1(%arg0: i32) -> (i32, i32) {
    %c0_i32 = arith.constant 0 : i32
    %c0_i32_0 = arith.constant 0 : i32
    return %arg0, %c0_i32 : i32, i32
  }
}

module attributes {stable_mosaic.version = 11 : i64} {
  func.func @_sqdist_kernel(%arg0: i32, %arg1: i32, %arg2: memref<16x3xf32, #tpu.memory_space<vmem>>, %arg3: memref<3x16xf32, #tpu.memory_space<vmem>>, %arg4: memref<16x16xf32, #tpu.memory_space<vmem>>) attributes {dimension_semantics = [#tpu.dimension_semantics<parallel>, #tpu.dimension_semantics<parallel>], iteration_bounds = array<i64: 1, 1>, scalar_prefetch = 0 : i64, scratch_operands = 0 : i64, tpu.core_type = #tpu.core_type<tc>, window_params = [{transform_indices = @transform_0, window_bounds = array<i64: 16, 3>}, {transform_indices = @transform_1, window_bounds = array<i64: 3, 16>}, {transform_indices = @transform_2, window_bounds = array<i64: 16, 16>}]} {
    %c0 = arith.constant 0 : index
    %c0_0 = arith.constant 0 : index
    %0 = vector.load %arg2[%c0, %c0_0] : memref<16x3xf32, #tpu.memory_space<vmem>>, vector<16x3xf32>
    %c0_1 = arith.constant 0 : index
    %c0_2 = arith.constant 0 : index
    %1 = vector.load %arg3[%c0_1, %c0_2] : memref<3x16xf32, #tpu.memory_space<vmem>>, vector<3x16xf32>
    %cst = arith.constant dense<0.000000e+00> : vector<16x16xf32>
    %2 = tpu.matmul %0, %1, %cst {dimension_numbers = #tpu.dot_dimension_numbers<[1], [0], [0], [1], [0, 0, 1, 1], [], []>} : vector<16x3xf32>, vector<3x16xf32>, vector<16x16xf32> -> vector<16x16xf32>
    %3 = arith.mulf %0, %0 : vector<16x3xf32>
    %cst_3 = arith.constant dense<0.000000e+00> : vector<16xf32>
    %4 = vector.multi_reduction <add>, %3, %cst_3 [1] : vector<16x3xf32> to vector<16xf32>
    %5 = vector.shape_cast %4 : vector<16xf32> to vector<16x1xf32>
    %6 = arith.mulf %1, %1 : vector<3x16xf32>
    %cst_4 = arith.constant dense<0.000000e+00> : vector<16xf32>
    %7 = vector.multi_reduction <add>, %6, %cst_4 [0] : vector<3x16xf32> to vector<16xf32>
    %8 = vector.shape_cast %7 : vector<16xf32> to vector<1x16xf32>
    %9 = vector.broadcast %5 : vector<16x1xf32> to vector<16x16xf32>
    %10 = vector.broadcast %8 : vector<1x16xf32> to vector<16x16xf32>
    %11 = arith.addf %9, %10 : vector<16x16xf32>
    %cst_5 = arith.constant 2.000000e+00 : f32
    %12 = vector.broadcast %cst_5 : f32 to vector<16x16xf32>
    %13 = arith.mulf %12, %2 : vector<16x16xf32>
    %14 = arith.subf %11, %13 : vector<16x16xf32>
    %15 = tpu.iota {dimensions = array<i32: 0>} : vector<16x16xi32>
    %c16_i32 = arith.constant 16 : i32
    %16 = arith.muli %arg0, %c16_i32 : i32
    %17 = vector.broadcast %16 : i32 to vector<16x16xi32>
    %18 = arith.addi %15, %17 : vector<16x16xi32>
    %19 = tpu.iota {dimensions = array<i32: 1>} : vector<16x16xi32>
    %c16_i32_6 = arith.constant 16 : i32
    %20 = arith.muli %arg1, %c16_i32_6 : i32
    %21 = vector.broadcast %20 : i32 to vector<16x16xi32>
    %22 = arith.addi %19, %21 : vector<16x16xi32>
    %23 = arith.cmpi eq, %18, %22 : vector<16x16xi32>
    %cst_7 = arith.constant 0x7F800000 : f32
    %24 = vector.broadcast %cst_7 : f32 to vector<16x16xf32>
    %25 = arith.select %23, %24, %14 : vector<16x16xi1>, vector<16x16xf32>
    %c0_8 = arith.constant 0 : index
    %c0_9 = arith.constant 0 : index
    %26 = vector.load %arg4[%c0_8, %c0_9] : memref<16x16xf32, #tpu.memory_space<vmem>>, vector<16x16xf32>
    tpu.vector_store %arg4[%c0_8, %c0_9], %25 {strides = array<i32>} : memref<16x16xf32, #tpu.memory_space<vmem>>, vector<16x16xf32>,
    return
  }
  func.func @transform_0(%arg0: i32, %arg1: i32) -> (i32, i32) {
    %c0_i32 = arith.constant 0 : i32
    %c0_i32_0 = arith.constant 0 : i32
    return %arg0, %c0_i32 : i32, i32
  }
  func.func @transform_1(%arg0: i32, %arg1: i32) -> (i32, i32) {
    %c0_i32 = arith.constant 0 : i32
    %c0_i32_0 = arith.constant 0 : i32
    return %c0_i32, %arg1 : i32, i32
  }
  func.func @transform_2(%arg0: i32, %arg1: i32) -> (i32, i32) {
    %c0_i32 = arith.constant 0 : i32
    return %arg0, %arg1 : i32, i32
  }
}

module attributes {stable_mosaic.version = 11 : i64} {
  func.func @_pt_conv_kernel(%arg0: i32, %arg1: memref<5x16x64xbf16, #tpu.memory_space<vmem>>, %arg2: memref<5x16x64xbf16, #tpu.memory_space<vmem>>, %arg3: memref<5x16x3xf32, #tpu.memory_space<vmem>>, %arg4: memref<16x64xbf16, #tpu.memory_space<vmem>>, %arg5: memref<16x3xf32, #tpu.memory_space<vmem>>, %arg6: memref<3x64xf32, #tpu.memory_space<vmem>>, %arg7: memref<1x64xf32, #tpu.memory_space<vmem>>, %arg8: memref<64x64xbf16, #tpu.memory_space<vmem>>, %arg9: memref<1x64xf32, #tpu.memory_space<vmem>>, %arg10: memref<64x64xbf16, #tpu.memory_space<vmem>>, %arg11: memref<1x64xf32, #tpu.memory_space<vmem>>, %arg12: memref<64x64xbf16, #tpu.memory_space<vmem>>, %arg13: memref<1x64xf32, #tpu.memory_space<vmem>>, %arg14: memref<16x64xbf16, #tpu.memory_space<vmem>>) attributes {dimension_semantics = [#tpu.dimension_semantics<parallel>], iteration_bounds = array<i64: 1>, scalar_prefetch = 0 : i64, scratch_operands = 0 : i64, tpu.core_type = #tpu.core_type<tc>, window_params = [{transform_indices = @transform_0, window_bounds = array<i64: 5, 16, 64>}, {transform_indices = @transform_1, window_bounds = array<i64: 5, 16, 64>}, {transform_indices = @transform_2, window_bounds = array<i64: 5, 16, 3>}, {transform_indices = @transform_3, window_bounds = array<i64: 16, 64>}, {transform_indices = @transform_4, window_bounds = array<i64: 16, 3>}, {pipeline_mode = #tpu.pipeline_mode<synchronous>, transform_indices = @transform_5, window_bounds = array<i64: 3, 64>}, {pipeline_mode = #tpu.pipeline_mode<synchronous>, transform_indices = @transform_6, window_bounds = array<i64: 1, 64>}, {pipeline_mode = #tpu.pipeline_mode<synchronous>, transform_indices = @transform_7, window_bounds = array<i64: 64, 64>}, {pipeline_mode = #tpu.pipeline_mode<synchronous>, transform_indices = @transform_8, window_bounds = array<i64: 1, 64>}, {pipeline_mode = #tpu.pipeline_mode<synchronous>, transform_indices = @transform_9, window_bounds = array<i64: 64, 64>}, {pipeline_mode = #tpu.pipeline_mode<synchronous>, transform_indices = @transform_10, window_bounds = array<i64: 1, 64>}, {pipeline_mode = #tpu.pipeline_mode<synchronous>, transform_indices = @transform_11, window_bounds = array<i64: 64, 64>}, {pipeline_mode = #tpu.pipeline_mode<synchronous>, transform_indices = @transform_12, window_bounds = array<i64: 1, 64>}, {transform_indices = @transform_13, window_bounds = array<i64: 16, 64>}]} {
    %c0 = arith.constant 0 : index
    %c0_0 = arith.constant 0 : index
    %0 = vector.load %arg6[%c0, %c0_0] : memref<3x64xf32, #tpu.memory_space<vmem>>, vector<3x64xf32>
    %c0_1 = arith.constant 0 : index
    %c0_2 = arith.constant 0 : index
    %1 = vector.load %arg7[%c0_1, %c0_2] : memref<1x64xf32, #tpu.memory_space<vmem>>, vector<1x64xf32>
    %c0_3 = arith.constant 0 : index
    %c0_4 = arith.constant 0 : index
    %2 = vector.load %arg8[%c0_3, %c0_4] : memref<64x64xbf16, #tpu.memory_space<vmem>>, vector<64x64xbf16>
    %c0_5 = arith.constant 0 : index
    %c0_6 = arith.constant 0 : index
    %3 = vector.load %arg9[%c0_5, %c0_6] : memref<1x64xf32, #tpu.memory_space<vmem>>, vector<1x64xf32>
    %c0_7 = arith.constant 0 : index
    %c0_8 = arith.constant 0 : index
    %4 = vector.load %arg10[%c0_7, %c0_8] : memref<64x64xbf16, #tpu.memory_space<vmem>>, vector<64x64xbf16>
    %c0_9 = arith.constant 0 : index
    %c0_10 = arith.constant 0 : index
    %5 = vector.load %arg11[%c0_9, %c0_10] : memref<1x64xf32, #tpu.memory_space<vmem>>, vector<1x64xf32>
    %c0_11 = arith.constant 0 : index
    %c0_12 = arith.constant 0 : index
    %6 = vector.load %arg12[%c0_11, %c0_12] : memref<64x64xbf16, #tpu.memory_space<vmem>>, vector<64x64xbf16>
    %c0_13 = arith.constant 0 : index
    %c0_14 = arith.constant 0 : index
    %7 = vector.load %arg13[%c0_13, %c0_14] : memref<1x64xf32, #tpu.memory_space<vmem>>, vector<1x64xf32>
    %c0_15 = arith.constant 0 : index
    %c0_16 = arith.constant 0 : index
    %8 = vector.load %arg5[%c0_15, %c0_16] : memref<16x3xf32, #tpu.memory_space<vmem>>, vector<16x3xf32>
    %c0_17 = arith.constant 0 : index
    %c0_18 = arith.constant 0 : index
    %9 = vector.load %arg4[%c0_17, %c0_18] : memref<16x64xbf16, #tpu.memory_space<vmem>>, vector<16x64xbf16>
    %10 = arith.extf %9 : vector<16x64xbf16> to vector<16x64xf32>
    %11 = tpu.concatenate %10, %10 in 0 : vector<16x64xf32>, vector<16x64xf32> -> vector<32x64xf32>
    %cst = arith.constant 0xFF800000 : f32
    %12 = vector.broadcast %cst : f32 to vector<16x64xf32>
    %cst_19 = arith.constant 0.000000e+00 : f32
    %13 = vector.broadcast %cst_19 : f32 to vector<16x64xf32>
    %cst_20 = arith.constant 0.000000e+00 : f32
    %14 = vector.broadcast %cst_20 : f32 to vector<16x64xf32>
    %c0_21 = arith.constant 0 : index
    %c0_22 = arith.constant 0 : index
    %c0_23 = arith.constant 0 : index
    %15 = vector.load %arg3[%c0_21, %c0_22, %c0_23] : memref<5x16x3xf32, #tpu.memory_space<vmem>>, vector<1x16x3xf32>
    %16 = vector.shape_cast %15 : vector<1x16x3xf32> to vector<16x3xf32>
    %17 = arith.subf %8, %16 : vector<16x3xf32>
    %c1 = arith.constant 1 : index
    %c0_24 = arith.constant 0 : index
    %c0_25 = arith.constant 0 : index
    %18 = vector.load %arg3[%c1, %c0_24, %c0_25] : memref<5x16x3xf32, #tpu.memory_space<vmem>>, vector<1x16x3xf32>
    %19 = vector.shape_cast %18 : vector<1x16x3xf32> to vector<16x3xf32>
    %20 = arith.subf %8, %19 : vector<16x3xf32>
    %21 = tpu.concatenate %17, %20 in 0 : vector<16x3xf32>, vector<16x3xf32> -> vector<32x3xf32>
    %c0_26 = arith.constant 0 : index
    %c0_27 = arith.constant 0 : index
    %c0_28 = arith.constant 0 : index
    %22 = vector.load %arg2[%c0_26, %c0_27, %c0_28] : memref<5x16x64xbf16, #tpu.memory_space<vmem>>, vector<1x16x64xbf16>
    %23 = vector.shape_cast %22 : vector<1x16x64xbf16> to vector<16x64xbf16>
    %c1_29 = arith.constant 1 : index
    %c0_30 = arith.constant 0 : index
    %c0_31 = arith.constant 0 : index
    %24 = vector.load %arg2[%c1_29, %c0_30, %c0_31] : memref<5x16x64xbf16, #tpu.memory_space<vmem>>, vector<1x16x64xbf16>
    %25 = vector.shape_cast %24 : vector<1x16x64xbf16> to vector<16x64xbf16>
    %26 = tpu.concatenate %23, %25 in 0 : vector<16x64xbf16>, vector<16x64xbf16> -> vector<32x64xbf16>
    %27 = arith.extf %26 : vector<32x64xbf16> to vector<32x64xf32>
    %c0_32 = arith.constant 0 : index
    %c0_33 = arith.constant 0 : index
    %c0_34 = arith.constant 0 : index
    %28 = vector.load %arg1[%c0_32, %c0_33, %c0_34] : memref<5x16x64xbf16, #tpu.memory_space<vmem>>, vector<1x16x64xbf16>
    %29 = vector.shape_cast %28 : vector<1x16x64xbf16> to vector<16x64xbf16>
    %c1_35 = arith.constant 1 : index
    %c0_36 = arith.constant 0 : index
    %c0_37 = arith.constant 0 : index
    %30 = vector.load %arg1[%c1_35, %c0_36, %c0_37] : memref<5x16x64xbf16, #tpu.memory_space<vmem>>, vector<1x16x64xbf16>
    %31 = vector.shape_cast %30 : vector<1x16x64xbf16> to vector<16x64xbf16>
    %32 = tpu.concatenate %29, %31 in 0 : vector<16x64xbf16>, vector<16x64xbf16> -> vector<32x64xbf16>
    %33 = arith.extf %32 : vector<32x64xbf16> to vector<32x64xf32>
    %34 = vector.extract_strided_slice %21 {offsets = [0, 0], sizes = [32, 1], strides = [1, 1]} : vector<32x3xf32> to vector<32x1xf32>
    %35 = vector.extract_strided_slice %0 {offsets = [0, 0], sizes = [1, 64], strides = [1, 1]} : vector<3x64xf32> to vector<1x64xf32>
    %36 = vector.broadcast %34 : vector<32x1xf32> to vector<32x64xf32>
    %37 = vector.broadcast %35 : vector<1x64xf32> to vector<32x64xf32>
    %38 = arith.mulf %36, %37 : vector<32x64xf32>
    %39 = vector.extract_strided_slice %21 {offsets = [0, 1], sizes = [32, 1], strides = [1, 1]} : vector<32x3xf32> to vector<32x1xf32>
    %40 = vector.extract_strided_slice %0 {offsets = [1, 0], sizes = [1, 64], strides = [1, 1]} : vector<3x64xf32> to vector<1x64xf32>
    %41 = vector.broadcast %39 : vector<32x1xf32> to vector<32x64xf32>
    %42 = vector.broadcast %40 : vector<1x64xf32> to vector<32x64xf32>
    %43 = arith.mulf %41, %42 : vector<32x64xf32>
    %44 = arith.addf %38, %43 : vector<32x64xf32>
    %45 = vector.extract_strided_slice %21 {offsets = [0, 2], sizes = [32, 1], strides = [1, 1]} : vector<32x3xf32> to vector<32x1xf32>
    %46 = vector.extract_strided_slice %0 {offsets = [2, 0], sizes = [1, 64], strides = [1, 1]} : vector<3x64xf32> to vector<1x64xf32>
    %47 = vector.broadcast %45 : vector<32x1xf32> to vector<32x64xf32>
    %48 = vector.broadcast %46 : vector<1x64xf32> to vector<32x64xf32>
    %49 = arith.mulf %47, %48 : vector<32x64xf32>
    %50 = arith.addf %44, %49 : vector<32x64xf32>
    %51 = vector.broadcast %1 : vector<1x64xf32> to vector<32x64xf32>
    %52 = arith.addf %50, %51 : vector<32x64xf32>
    %cst_38 = arith.constant 0.000000e+00 : f32
    %53 = vector.broadcast %cst_38 : f32 to vector<32x64xf32>
    %54 = arith.maximumf %52, %53 : vector<32x64xf32>
    %55 = arith.truncf %54 : vector<32x64xf32> to vector<32x64xbf16>
    %cst_39 = arith.constant dense<0.000000e+00> : vector<32x64xf32>
    %56 = tpu.matmul %55, %2, %cst_39 {dimension_numbers = #tpu.dot_dimension_numbers<[1], [0], [0], [1], [0, 0, 1, 1], [], []>} : vector<32x64xbf16>, vector<64x64xbf16>, vector<32x64xf32> -> vector<32x64xf32>
    %57 = vector.broadcast %3 : vector<1x64xf32> to vector<32x64xf32>
    %58 = arith.addf %56, %57 : vector<32x64xf32>
    %cst_40 = arith.constant 0.000000e+00 : f32
    %59 = vector.broadcast %cst_40 : f32 to vector<32x64xf32>
    %60 = arith.maximumf %58, %59 : vector<32x64xf32>
    %61 = arith.subf %11, %27 : vector<32x64xf32>
    %62 = arith.addf %61, %60 : vector<32x64xf32>
    %63 = arith.truncf %62 : vector<32x64xf32> to vector<32x64xbf16>
    %cst_41 = arith.constant dense<0.000000e+00> : vector<32x64xf32>
    %64 = tpu.matmul %63, %4, %cst_41 {dimension_numbers = #tpu.dot_dimension_numbers<[1], [0], [0], [1], [0, 0, 1, 1], [], []>} : vector<32x64xbf16>, vector<64x64xbf16>, vector<32x64xf32> -> vector<32x64xf32>
    %65 = vector.broadcast %5 : vector<1x64xf32> to vector<32x64xf32>
    %66 = arith.addf %64, %65 : vector<32x64xf32>
    %cst_42 = arith.constant 0.000000e+00 : f32
    %67 = vector.broadcast %cst_42 : f32 to vector<32x64xf32>
    %68 = arith.maximumf %66, %67 : vector<32x64xf32>
    %69 = arith.truncf %68 : vector<32x64xf32> to vector<32x64xbf16>
    %cst_43 = arith.constant dense<0.000000e+00> : vector<32x64xf32>
    %70 = tpu.matmul %69, %6, %cst_43 {dimension_numbers = #tpu.dot_dimension_numbers<[1], [0], [0], [1], [0, 0, 1, 1], [], []>} : vector<32x64xbf16>, vector<64x64xbf16>, vector<32x64xf32> -> vector<32x64xf32>
    %71 = vector.broadcast %7 : vector<1x64xf32> to vector<32x64xf32>
    %72 = arith.addf %70, %71 : vector<32x64xf32>
    %cst_44 = arith.constant 0.000000e+00 : f32
    %73 = vector.broadcast %cst_44 : f32 to vector<32x64xf32>
    %74 = arith.maximumf %72, %73 : vector<32x64xf32>
    %75 = arith.addf %33, %60 : vector<32x64xf32>
    %76 = vector.extract_strided_slice %74 {offsets = [0, 0], sizes = [16, 64], strides = [1, 1]} : vector<32x64xf32> to vector<16x64xf32>
    %77 = vector.extract_strided_slice %74 {offsets = [16, 0], sizes = [16, 64], strides = [1, 1]} : vector<32x64xf32> to vector<16x64xf32>
    %78 = vector.extract_strided_slice %75 {offsets = [0, 0], sizes = [16, 64], strides = [1, 1]} : vector<32x64xf32> to vector<16x64xf32>
    %79 = vector.extract_strided_slice %75 {offsets = [16, 0], sizes = [16, 64], strides = [1, 1]} : vector<32x64xf32> to vector<16x64xf32>
    %80 = arith.maximumf %76, %77 : vector<16x64xf32>
    %81 = arith.maximumf %12, %80 : vector<16x64xf32>
    %82 = arith.subf %12, %81 : vector<16x64xf32>
    %83 = math.exp %82 : vector<16x64xf32>
    %84 = arith.subf %76, %81 : vector<16x64xf32>
    %85 = math.exp %84 : vector<16x64xf32>
    %86 = arith.subf %77, %81 : vector<16x64xf32>
    %87 = math.exp %86 : vector<16x64xf32>
    %88 = arith.mulf %13, %83 : vector<16x64xf32>
    %89 = arith.addf %88, %85 : vector<16x64xf32>
    %90 = arith.addf %89, %87 : vector<16x64xf32>
    %91 = arith.mulf %14, %83 : vector<16x64xf32>
    %92 = arith.mulf %85, %78 : vector<16x64xf32>
    %93 = arith.addf %91, %92 : vector<16x64xf32>
    %94 = arith.mulf %87, %79 : vector<16x64xf32>
    %95 = arith.addf %93, %94 : vector<16x64xf32>
    %c2 = arith.constant 2 : index
    %c0_45 = arith.constant 0 : index
    %c0_46 = arith.constant 0 : index
    %96 = vector.load %arg3[%c2, %c0_45, %c0_46] : memref<5x16x3xf32, #tpu.memory_space<vmem>>, vector<1x16x3xf32>
    %97 = vector.shape_cast %96 : vector<1x16x3xf32> to vector<16x3xf32>
    %98 = arith.subf %8, %97 : vector<16x3xf32>
    %c3 = arith.constant 3 : index
    %c0_47 = arith.constant 0 : index
    %c0_48 = arith.constant 0 : index
    %99 = vector.load %arg3[%c3, %c0_47, %c0_48] : memref<5x16x3xf32, #tpu.memory_space<vmem>>, vector<1x16x3xf32>
    %100 = vector.shape_cast %99 : vector<1x16x3xf32> to vector<16x3xf32>
    %101 = arith.subf %8, %100 : vector<16x3xf32>
    %102 = tpu.concatenate %98, %101 in 0 : vector<16x3xf32>, vector<16x3xf32> -> vector<32x3xf32>
    %c2_49 = arith.constant 2 : index
    %c0_50 = arith.constant 0 : index
    %c0_51 = arith.constant 0 : index
    %103 = vector.load %arg2[%c2_49, %c0_50, %c0_51] : memref<5x16x64xbf16, #tpu.memory_space<vmem>>, vector<1x16x64xbf16>
    %104 = vector.shape_cast %103 : vector<1x16x64xbf16> to vector<16x64xbf16>
    %c3_52 = arith.constant 3 : index
    %c0_53 = arith.constant 0 : index
    %c0_54 = arith.constant 0 : index
    %105 = vector.load %arg2[%c3_52, %c0_53, %c0_54] : memref<5x16x64xbf16, #tpu.memory_space<vmem>>, vector<1x16x64xbf16>
    %106 = vector.shape_cast %105 : vector<1x16x64xbf16> to vector<16x64xbf16>
    %107 = tpu.concatenate %104, %106 in 0 : vector<16x64xbf16>, vector<16x64xbf16> -> vector<32x64xbf16>
    %108 = arith.extf %107 : vector<32x64xbf16> to vector<32x64xf32>
    %c2_55 = arith.constant 2 : index
    %c0_56 = arith.constant 0 : index
    %c0_57 = arith.constant 0 : index
    %109 = vector.load %arg1[%c2_55, %c0_56, %c0_57] : memref<5x16x64xbf16, #tpu.memory_space<vmem>>, vector<1x16x64xbf16>
    %110 = vector.shape_cast %109 : vector<1x16x64xbf16> to vector<16x64xbf16>
    %c3_58 = arith.constant 3 : index
    %c0_59 = arith.constant 0 : index
    %c0_60 = arith.constant 0 : index
    %111 = vector.load %arg1[%c3_58, %c0_59, %c0_60] : memref<5x16x64xbf16, #tpu.memory_space<vmem>>, vector<1x16x64xbf16>
    %112 = vector.shape_cast %111 : vector<1x16x64xbf16> to vector<16x64xbf16>
    %113 = tpu.concatenate %110, %112 in 0 : vector<16x64xbf16>, vector<16x64xbf16> -> vector<32x64xbf16>
    %114 = arith.extf %113 : vector<32x64xbf16> to vector<32x64xf32>
    %115 = vector.extract_strided_slice %102 {offsets = [0, 0], sizes = [32, 1], strides = [1, 1]} : vector<32x3xf32> to vector<32x1xf32>
    %116 = vector.extract_strided_slice %0 {offsets = [0, 0], sizes = [1, 64], strides = [1, 1]} : vector<3x64xf32> to vector<1x64xf32>
    %117 = vector.broadcast %115 : vector<32x1xf32> to vector<32x64xf32>
    %118 = vector.broadcast %116 : vector<1x64xf32> to vector<32x64xf32>
    %119 = arith.mulf %117, %118 : vector<32x64xf32>
    %120 = vector.extract_strided_slice %102 {offsets = [0, 1], sizes = [32, 1], strides = [1, 1]} : vector<32x3xf32> to vector<32x1xf32>
    %121 = vector.extract_strided_slice %0 {offsets = [1, 0], sizes = [1, 64], strides = [1, 1]} : vector<3x64xf32> to vector<1x64xf32>
    %122 = vector.broadcast %120 : vector<32x1xf32> to vector<32x64xf32>
    %123 = vector.broadcast %121 : vector<1x64xf32> to vector<32x64xf32>
    %124 = arith.mulf %122, %123 : vector<32x64xf32>
    %125 = arith.addf %119, %124 : vector<32x64xf32>
    %126 = vector.extract_strided_slice %102 {offsets = [0, 2], sizes = [32, 1], strides = [1, 1]} : vector<32x3xf32> to vector<32x1xf32>
    %127 = vector.extract_strided_slice %0 {offsets = [2, 0], sizes = [1, 64], strides = [1, 1]} : vector<3x64xf32> to vector<1x64xf32>
    %128 = vector.broadcast %126 : vector<32x1xf32> to vector<32x64xf32>
    %129 = vector.broadcast %127 : vector<1x64xf32> to vector<32x64xf32>
    %130 = arith.mulf %128, %129 : vector<32x64xf32>
    %131 = arith.addf %125, %130 : vector<32x64xf32>
    %132 = vector.broadcast %1 : vector<1x64xf32> to vector<32x64xf32>
    %133 = arith.addf %131, %132 : vector<32x64xf32>
    %cst_61 = arith.constant 0.000000e+00 : f32
    %134 = vector.broadcast %cst_61 : f32 to vector<32x64xf32>
    %135 = arith.maximumf %133, %134 : vector<32x64xf32>
    %136 = arith.truncf %135 : vector<32x64xf32> to vector<32x64xbf16>
    %cst_62 = arith.constant dense<0.000000e+00> : vector<32x64xf32>
    %137 = tpu.matmul %136, %2, %cst_62 {dimension_numbers = #tpu.dot_dimension_numbers<[1], [0], [0], [1], [0, 0, 1, 1], [], []>} : vector<32x64xbf16>, vector<64x64xbf16>, vector<32x64xf32> -> vector<32x64xf32>
    %138 = vector.broadcast %3 : vector<1x64xf32> to vector<32x64xf32>
    %139 = arith.addf %137, %138 : vector<32x64xf32>
    %cst_63 = arith.constant 0.000000e+00 : f32
    %140 = vector.broadcast %cst_63 : f32 to vector<32x64xf32>
    %141 = arith.maximumf %139, %140 : vector<32x64xf32>
    %142 = arith.subf %11, %108 : vector<32x64xf32>
    %143 = arith.addf %142, %141 : vector<32x64xf32>
    %144 = arith.truncf %143 : vector<32x64xf32> to vector<32x64xbf16>
    %cst_64 = arith.constant dense<0.000000e+00> : vector<32x64xf32>
    %145 = tpu.matmul %144, %4, %cst_64 {dimension_numbers = #tpu.dot_dimension_numbers<[1], [0], [0], [1], [0, 0, 1, 1], [], []>} : vector<32x64xbf16>, vector<64x64xbf16>, vector<32x64xf32> -> vector<32x64xf32>
    %146 = vector.broadcast %5 : vector<1x64xf32> to vector<32x64xf32>
    %147 = arith.addf %145, %146 : vector<32x64xf32>
    %cst_65 = arith.constant 0.000000e+00 : f32
    %148 = vector.broadcast %cst_65 : f32 to vector<32x64xf32>
    %149 = arith.maximumf %147, %148 : vector<32x64xf32>
    %150 = arith.truncf %149 : vector<32x64xf32> to vector<32x64xbf16>
    %cst_66 = arith.constant dense<0.000000e+00> : vector<32x64xf32>
    %151 = tpu.matmul %150, %6, %cst_66 {dimension_numbers = #tpu.dot_dimension_numbers<[1], [0], [0], [1], [0, 0, 1, 1], [], []>} : vector<32x64xbf16>, vector<64x64xbf16>, vector<32x64xf32> -> vector<32x64xf32>
    %152 = vector.broadcast %7 : vector<1x64xf32> to vector<32x64xf32>
    %153 = arith.addf %151, %152 : vector<32x64xf32>
    %cst_67 = arith.constant 0.000000e+00 : f32
    %154 = vector.broadcast %cst_67 : f32 to vector<32x64xf32>
    %155 = arith.maximumf %153, %154 : vector<32x64xf32>
    %156 = arith.addf %114, %141 : vector<32x64xf32>
    %157 = vector.extract_strided_slice %155 {offsets = [0, 0], sizes = [16, 64], strides = [1, 1]} : vector<32x64xf32> to vector<16x64xf32>
    %158 = vector.extract_strided_slice %155 {offsets = [16, 0], sizes = [16, 64], strides = [1, 1]} : vector<32x64xf32> to vector<16x64xf32>
    %159 = vector.extract_strided_slice %156 {offsets = [0, 0], sizes = [16, 64], strides = [1, 1]} : vector<32x64xf32> to vector<16x64xf32>
    %160 = vector.extract_strided_slice %156 {offsets = [16, 0], sizes = [16, 64], strides = [1, 1]} : vector<32x64xf32> to vector<16x64xf32>
    %161 = arith.maximumf %157, %158 : vector<16x64xf32>
    %162 = arith.maximumf %81, %161 : vector<16x64xf32>
    %163 = arith.subf %81, %162 : vector<16x64xf32>
    %164 = math.exp %163 : vector<16x64xf32>
    %165 = arith.subf %157, %162 : vector<16x64xf32>
    %166 = math.exp %165 : vector<16x64xf32>
    %167 = arith.subf %158, %162 : vector<16x64xf32>
    %168 = math.exp %167 : vector<16x64xf32>
    %169 = arith.mulf %90, %164 : vector<16x64xf32>
    %170 = arith.addf %169, %166 : vector<16x64xf32>
    %171 = arith.addf %170, %168 : vector<16x64xf32>
    %172 = arith.mulf %95, %164 : vector<16x64xf32>
    %173 = arith.mulf %166, %159 : vector<16x64xf32>
    %174 = arith.addf %172, %173 : vector<16x64xf32>
    %175 = arith.mulf %168, %160 : vector<16x64xf32>
    %176 = arith.addf %174, %175 : vector<16x64xf32>
    %c4 = arith.constant 4 : index
    %c0_68 = arith.constant 0 : index
    %c0_69 = arith.constant 0 : index
    %177 = vector.load %arg3[%c4, %c0_68, %c0_69] : memref<5x16x3xf32, #tpu.memory_space<vmem>>, vector<1x16x3xf32>
    %178 = vector.shape_cast %177 : vector<1x16x3xf32> to vector<16x3xf32>
    %179 = arith.subf %8, %178 : vector<16x3xf32>
    %c4_70 = arith.constant 4 : index
    %c0_71 = arith.constant 0 : index
    %c0_72 = arith.constant 0 : index
    %180 = vector.load %arg2[%c4_70, %c0_71, %c0_72] : memref<5x16x64xbf16, #tpu.memory_space<vmem>>, vector<1x16x64xbf16>
    %181 = vector.shape_cast %180 : vector<1x16x64xbf16> to vector<16x64xbf16>
    %182 = arith.extf %181 : vector<16x64xbf16> to vector<16x64xf32>
    %c4_73 = arith.constant 4 : index
    %c0_74 = arith.constant 0 : index
    %c0_75 = arith.constant 0 : index
    %183 = vector.load %arg1[%c4_73, %c0_74, %c0_75] : memref<5x16x64xbf16, #tpu.memory_space<vmem>>, vector<1x16x64xbf16>
    %184 = vector.shape_cast %183 : vector<1x16x64xbf16> to vector<16x64xbf16>
    %185 = arith.extf %184 : vector<16x64xbf16> to vector<16x64xf32>
    %186 = vector.extract_strided_slice %179 {offsets = [0, 0], sizes = [16, 1], strides = [1, 1]} : vector<16x3xf32> to vector<16x1xf32>
    %187 = vector.extract_strided_slice %0 {offsets = [0, 0], sizes = [1, 64], strides = [1, 1]} : vector<3x64xf32> to vector<1x64xf32>
    %188 = vector.broadcast %186 : vector<16x1xf32> to vector<16x64xf32>
    %189 = vector.broadcast %187 : vector<1x64xf32> to vector<16x64xf32>
    %190 = arith.mulf %188, %189 : vector<16x64xf32>
    %191 = vector.extract_strided_slice %179 {offsets = [0, 1], sizes = [16, 1], strides = [1, 1]} : vector<16x3xf32> to vector<16x1xf32>
    %192 = vector.extract_strided_slice %0 {offsets = [1, 0], sizes = [1, 64], strides = [1, 1]} : vector<3x64xf32> to vector<1x64xf32>
    %193 = vector.broadcast %191 : vector<16x1xf32> to vector<16x64xf32>
    %194 = vector.broadcast %192 : vector<1x64xf32> to vector<16x64xf32>
    %195 = arith.mulf %193, %194 : vector<16x64xf32>
    %196 = arith.addf %190, %195 : vector<16x64xf32>
    %197 = vector.extract_strided_slice %179 {offsets = [0, 2], sizes = [16, 1], strides = [1, 1]} : vector<16x3xf32> to vector<16x1xf32>
    %198 = vector.extract_strided_slice %0 {offsets = [2, 0], sizes = [1, 64], strides = [1, 1]} : vector<3x64xf32> to vector<1x64xf32>
    %199 = vector.broadcast %197 : vector<16x1xf32> to vector<16x64xf32>
    %200 = vector.broadcast %198 : vector<1x64xf32> to vector<16x64xf32>
    %201 = arith.mulf %199, %200 : vector<16x64xf32>
    %202 = arith.addf %196, %201 : vector<16x64xf32>
    %203 = vector.broadcast %1 : vector<1x64xf32> to vector<16x64xf32>
    %204 = arith.addf %202, %203 : vector<16x64xf32>
    %cst_76 = arith.constant 0.000000e+00 : f32
    %205 = vector.broadcast %cst_76 : f32 to vector<16x64xf32>
    %206 = arith.maximumf %204, %205 : vector<16x64xf32>
    %207 = arith.truncf %206 : vector<16x64xf32> to vector<16x64xbf16>
    %cst_77 = arith.constant dense<0.000000e+00> : vector<16x64xf32>
    %208 = tpu.matmul %207, %2, %cst_77 {dimension_numbers = #tpu.dot_dimension_numbers<[1], [0], [0], [1], [0, 0, 1, 1], [], []>} : vector<16x64xbf16>, vector<64x64xbf16>, vector<16x64xf32> -> vector<16x64xf32>
    %209 = vector.broadcast %3 : vector<1x64xf32> to vector<16x64xf32>
    %210 = arith.addf %208, %209 : vector<16x64xf32>
    %cst_78 = arith.constant 0.000000e+00 : f32
    %211 = vector.broadcast %cst_78 : f32 to vector<16x64xf32>
    %212 = arith.maximumf %210, %211 : vector<16x64xf32>
    %213 = arith.subf %10, %182 : vector<16x64xf32>
    %214 = arith.addf %213, %212 : vector<16x64xf32>
    %215 = arith.truncf %214 : vector<16x64xf32> to vector<16x64xbf16>
    %cst_79 = arith.constant dense<0.000000e+00> : vector<16x64xf32>
    %216 = tpu.matmul %215, %4, %cst_79 {dimension_numbers = #tpu.dot_dimension_numbers<[1], [0], [0], [1], [0, 0, 1, 1], [], []>} : vector<16x64xbf16>, vector<64x64xbf16>, vector<16x64xf32> -> vector<16x64xf32>
    %217 = vector.broadcast %5 : vector<1x64xf32> to vector<16x64xf32>
    %218 = arith.addf %216, %217 : vector<16x64xf32>
    %cst_80 = arith.constant 0.000000e+00 : f32
    %219 = vector.broadcast %cst_80 : f32 to vector<16x64xf32>
    %220 = arith.maximumf %218, %219 : vector<16x64xf32>
    %221 = arith.truncf %220 : vector<16x64xf32> to vector<16x64xbf16>
    %cst_81 = arith.constant dense<0.000000e+00> : vector<16x64xf32>
    %222 = tpu.matmul %221, %6, %cst_81 {dimension_numbers = #tpu.dot_dimension_numbers<[1], [0], [0], [1], [0, 0, 1, 1], [], []>} : vector<16x64xbf16>, vector<64x64xbf16>, vector<16x64xf32> -> vector<16x64xf32>
    %223 = vector.broadcast %7 : vector<1x64xf32> to vector<16x64xf32>
    %224 = arith.addf %222, %223 : vector<16x64xf32>
    %cst_82 = arith.constant 0.000000e+00 : f32
    %225 = vector.broadcast %cst_82 : f32 to vector<16x64xf32>
    %226 = arith.maximumf %224, %225 : vector<16x64xf32>
    %227 = arith.addf %185, %212 : vector<16x64xf32>
    %228 = arith.maximumf %162, %226 : vector<16x64xf32>
    %229 = arith.subf %162, %228 : vector<16x64xf32>
    %230 = math.exp %229 : vector<16x64xf32>
    %231 = arith.subf %226, %228 : vector<16x64xf32>
    %232 = math.exp %231 : vector<16x64xf32>
    %233 = arith.mulf %171, %230 : vector<16x64xf32>
    %234 = arith.addf %233, %232 : vector<16x64xf32>
    %235 = arith.mulf %176, %230 : vector<16x64xf32>
    %236 = arith.mulf %232, %227 : vector<16x64xf32>
    %237 = arith.addf %235, %236 : vector<16x64xf32>
    %238 = arith.divf %237, %234 : vector<16x64xf32>
    %239 = arith.truncf %238 : vector<16x64xf32> to vector<16x64xbf16>
    %c0_83 = arith.constant 0 : index
    %c0_84 = arith.constant 0 : index
    %240 = vector.load %arg14[%c0_83, %c0_84] : memref<16x64xbf16, #tpu.memory_space<vmem>>, vector<16x64xbf16>
    tpu.vector_store %arg14[%c0_83, %c0_84], %239 {strides = array<i32>} : memref<16x64xbf16, #tpu.memory_space<vmem>>, vector<16x64xbf16>,
    return
  }
  func.func @transform_0(%arg0: i32) -> (i32, i32, i32) {
    %c0_i32 = arith.constant 0 : i32
    %c0_i32_0 = arith.constant 0 : i32
    %c0_i32_1 = arith.constant 0 : i32
    return %c0_i32, %arg0, %c0_i32_0 : i32, i32, i32
  }
  func.func @transform_1(%arg0: i32) -> (i32, i32, i32) {
    %c0_i32 = arith.constant 0 : i32
    %c0_i32_0 = arith.constant 0 : i32
    %c0_i32_1 = arith.constant 0 : i32
    return %c0_i32, %arg0, %c0_i32_0 : i32, i32, i32
  }
  func.func @transform_2(%arg0: i32) -> (i32, i32, i32) {
    %c0_i32 = arith.constant 0 : i32
    %c0_i32_0 = arith.constant 0 : i32
    %c0_i32_1 = arith.constant 0 : i32
    return %c0_i32, %arg0, %c0_i32_0 : i32, i32, i32
  }
  func.func @transform_3(%arg0: i32) -> (i32, i32) {
    %c0_i32 = arith.constant 0 : i32
    %c0_i32_0 = arith.constant 0 : i32
    return %arg0, %c0_i32 : i32, i32
  }
  func.func @transform_4(%arg0: i32) -> (i32, i32) {
    %c0_i32 = arith.constant 0 : i32
    %c0_i32_0 = arith.constant 0 : i32
    return %arg0, %c0_i32 : i32, i32
  }
  func.func @transform_5(%arg0: i32) -> (i32, i32) {
    %c0_i32 = arith.constant 0 : i32
    %c0_i32_0 = arith.constant 0 : i32
    %c0_i32_1 = arith.constant 0 : i32
    return %c0_i32, %c0_i32_0 : i32, i32
  }
  func.func @transform_6(%arg0: i32) -> (i32, i32) {
    %c0_i32 = arith.constant 0 : i32
    %c0_i32_0 = arith.constant 0 : i32
    %c0_i32_1 = arith.constant 0 : i32
    return %c0_i32, %c0_i32_0 : i32, i32
  }
  func.func @transform_7(%arg0: i32) -> (i32, i32) {
    %c0_i32 = arith.constant 0 : i32
    %c0_i32_0 = arith.constant 0 : i32
    %c0_i32_1 = arith.constant 0 : i32
    return %c0_i32, %c0_i32_0 : i32, i32
  }
  func.func @transform_8(%arg0: i32) -> (i32, i32) {
    %c0_i32 = arith.constant 0 : i32
    %c0_i32_0 = arith.constant 0 : i32
    %c0_i32_1 = arith.constant 0 : i32
    return %c0_i32, %c0_i32_0 : i32, i32
  }
  func.func @transform_9(%arg0: i32) -> (i32, i32) {
    %c0_i32 = arith.constant 0 : i32
    %c0_i32_0 = arith.constant 0 : i32
    %c0_i32_1 = arith.constant 0 : i32
    return %c0_i32, %c0_i32_0 : i32, i32
  }
  func.func @transform_10(%arg0: i32) -> (i32, i32) {
    %c0_i32 = arith.constant 0 : i32
    %c0_i32_0 = arith.constant 0 : i32
    %c0_i32_1 = arith.constant 0 : i32
    return %c0_i32, %c0_i32_0 : i32, i32
  }
  func.func @transform_11(%arg0: i32) -> (i32, i32) {
    %c0_i32 = arith.constant 0 : i32
    %c0_i32_0 = arith.constant 0 : i32
    %c0_i32_1 = arith.constant 0 : i32
    return %c0_i32, %c0_i32_0 : i32, i32
  }
  func.func @transform_12(%arg0: i32) -> (i32, i32) {
    %c0_i32 = arith.constant 0 : i32
    %c0_i32_0 = arith.constant 0 : i32
    %c0_i32_1 = arith.constant 0 : i32
    return %c0_i32, %c0_i32_0 : i32, i32
  }
  func.func @transform_13(%arg0: i32) -> (i32, i32) {
    %c0_i32 = arith.constant 0 : i32
    %c0_i32_0 = arith.constant 0 : i32
    return %arg0, %c0_i32 : i32, i32
  }
}

module attributes {stable_mosaic.version = 11 : i64} {
  func.func @_sqdist_kernel(%arg0: i32, %arg1: i32, %arg2: memref<64x3xf32, #tpu.memory_space<vmem>>, %arg3: memref<3x16xf32, #tpu.memory_space<vmem>>, %arg4: memref<64x16xf32, #tpu.memory_space<vmem>>) attributes {dimension_semantics = [#tpu.dimension_semantics<parallel>, #tpu.dimension_semantics<parallel>], iteration_bounds = array<i64: 1, 1>, scalar_prefetch = 0 : i64, scratch_operands = 0 : i64, tpu.core_type = #tpu.core_type<tc>, window_params = [{transform_indices = @transform_0, window_bounds = array<i64: 64, 3>}, {transform_indices = @transform_1, window_bounds = array<i64: 3, 16>}, {transform_indices = @transform_2, window_bounds = array<i64: 64, 16>}]} {
    %c0 = arith.constant 0 : index
    %c0_0 = arith.constant 0 : index
    %0 = vector.load %arg2[%c0, %c0_0] : memref<64x3xf32, #tpu.memory_space<vmem>>, vector<64x3xf32>
    %c0_1 = arith.constant 0 : index
    %c0_2 = arith.constant 0 : index
    %1 = vector.load %arg3[%c0_1, %c0_2] : memref<3x16xf32, #tpu.memory_space<vmem>>, vector<3x16xf32>
    %cst = arith.constant dense<0.000000e+00> : vector<64x16xf32>
    %2 = tpu.matmul %0, %1, %cst {dimension_numbers = #tpu.dot_dimension_numbers<[1], [0], [0], [1], [0, 0, 1, 1], [], []>} : vector<64x3xf32>, vector<3x16xf32>, vector<64x16xf32> -> vector<64x16xf32>
    %3 = arith.mulf %0, %0 : vector<64x3xf32>
    %cst_3 = arith.constant dense<0.000000e+00> : vector<64xf32>
    %4 = vector.multi_reduction <add>, %3, %cst_3 [1] : vector<64x3xf32> to vector<64xf32>
    %5 = vector.shape_cast %4 : vector<64xf32> to vector<64x1xf32>
    %6 = arith.mulf %1, %1 : vector<3x16xf32>
    %cst_4 = arith.constant dense<0.000000e+00> : vector<16xf32>
    %7 = vector.multi_reduction <add>, %6, %cst_4 [0] : vector<3x16xf32> to vector<16xf32>
    %8 = vector.shape_cast %7 : vector<16xf32> to vector<1x16xf32>
    %9 = vector.broadcast %5 : vector<64x1xf32> to vector<64x16xf32>
    %10 = vector.broadcast %8 : vector<1x16xf32> to vector<64x16xf32>
    %11 = arith.addf %9, %10 : vector<64x16xf32>
    %cst_5 = arith.constant 2.000000e+00 : f32
    %12 = vector.broadcast %cst_5 : f32 to vector<64x16xf32>
    %13 = arith.mulf %12, %2 : vector<64x16xf32>
    %14 = arith.subf %11, %13 : vector<64x16xf32>
    %c0_6 = arith.constant 0 : index
    %c0_7 = arith.constant 0 : index
    %15 = vector.load %arg4[%c0_6, %c0_7] : memref<64x16xf32, #tpu.memory_space<vmem>>, vector<64x16xf32>
    tpu.vector_store %arg4[%c0_6, %c0_7], %14 {strides = array<i32>} : memref<64x16xf32, #tpu.memory_space<vmem>>, vector<64x16xf32>,
    return
  }
  func.func @transform_0(%arg0: i32, %arg1: i32) -> (i32, i32) {
    %c0_i32 = arith.constant 0 : i32
    %c0_i32_0 = arith.constant 0 : i32
    return %arg0, %c0_i32 : i32, i32
  }
  func.func @transform_1(%arg0: i32, %arg1: i32) -> (i32, i32) {
    %c0_i32 = arith.constant 0 : i32
    %c0_i32_0 = arith.constant 0 : i32
    return %c0_i32, %arg1 : i32, i32
  }
  func.func @transform_2(%arg0: i32, %arg1: i32) -> (i32, i32) {
    %c0_i32 = arith.constant 0 : i32
    return %arg0, %arg1 : i32, i32
  }
}

module attributes {stable_mosaic.version = 11 : i64} {
  func.func @_linear_bn_fused_kernel(%arg0: i32, %arg1: memref<16x64xbf16, #tpu.memory_space<vmem>>, %arg2: memref<64x32xbf16, #tpu.memory_space<vmem>>, %arg3: memref<1x32xf32, #tpu.memory_space<vmem>>, %arg4: memref<16x32xbf16, #tpu.memory_space<vmem>>) attributes {dimension_semantics = [#tpu.dimension_semantics<arbitrary>], iteration_bounds = array<i64: 1>, scalar_prefetch = 0 : i64, scratch_operands = 0 : i64, tpu.core_type = #tpu.core_type<tc>, window_params = [{pipeline_mode = #tpu.pipeline_mode<synchronous>, transform_indices = @transform_0, window_bounds = array<i64: 16, 64>}, {pipeline_mode = #tpu.pipeline_mode<synchronous>, transform_indices = @transform_1, window_bounds = array<i64: 64, 32>}, {pipeline_mode = #tpu.pipeline_mode<synchronous>, transform_indices = @transform_2, window_bounds = array<i64: 1, 32>}, {pipeline_mode = #tpu.pipeline_mode<synchronous>, transform_indices = @transform_3, window_bounds = array<i64: 16, 32>}]} {
    %c0 = arith.constant 0 : index
    %c0_0 = arith.constant 0 : index
    %0 = vector.load %arg1[%c0, %c0_0] : memref<16x64xbf16, #tpu.memory_space<vmem>>, vector<16x64xbf16>
    %c0_1 = arith.constant 0 : index
    %c0_2 = arith.constant 0 : index
    %1 = vector.load %arg2[%c0_1, %c0_2] : memref<64x32xbf16, #tpu.memory_space<vmem>>, vector<64x32xbf16>
    %cst = arith.constant dense<0.000000e+00> : vector<16x32xf32>
    %2 = tpu.matmul %0, %1, %cst {dimension_numbers = #tpu.dot_dimension_numbers<[1], [0], [0], [1], [0, 0, 1, 1], [], []>} : vector<16x64xbf16>, vector<64x32xbf16>, vector<16x32xf32> -> vector<16x32xf32>
    %c0_3 = arith.constant 0 : index
    %c0_4 = arith.constant 0 : index
    %3 = vector.load %arg3[%c0_3, %c0_4] : memref<1x32xf32, #tpu.memory_space<vmem>>, vector<1x32xf32>
    %4 = vector.broadcast %3 : vector<1x32xf32> to vector<16x32xf32>
    %5 = arith.addf %2, %4 : vector<16x32xf32>
    %cst_5 = arith.constant dense<0.000000e+00> : vector<32xf32>
    %6 = vector.multi_reduction <add>, %5, %cst_5 [0] : vector<16x32xf32> to vector<32xf32>
    %7 = vector.shape_cast %6 : vector<32xf32> to vector<1x32xf32>
    %cst_6 = arith.constant 1.600000e+01 : f32
    %8 = vector.broadcast %cst_6 : f32 to vector<1x32xf32>
    %9 = arith.divf %7, %8 : vector<1x32xf32>
    %10 = vector.broadcast %9 : vector<1x32xf32> to vector<16x32xf32>
    %11 = arith.subf %5, %10 : vector<16x32xf32>
    %12 = arith.mulf %11, %11 : vector<16x32xf32>
    %cst_7 = arith.constant dense<0.000000e+00> : vector<32xf32>
    %13 = vector.multi_reduction <add>, %12, %cst_7 [0] : vector<16x32xf32> to vector<32xf32>
    %14 = vector.shape_cast %13 : vector<32xf32> to vector<1x32xf32>
    %cst_8 = arith.constant 1.600000e+01 : f32
    %15 = vector.broadcast %cst_8 : f32 to vector<1x32xf32>
    %16 = arith.divf %14, %15 : vector<1x32xf32>
    %17 = vector.broadcast %9 : vector<1x32xf32> to vector<16x32xf32>
    %18 = arith.subf %5, %17 : vector<16x32xf32>
    %cst_9 = arith.constant 9.99999974E-6 : f32
    %19 = vector.broadcast %cst_9 : f32 to vector<1x32xf32>
    %20 = arith.addf %16, %19 : vector<1x32xf32>
    %21 = math.rsqrt %20 : vector<1x32xf32>
    %22 = vector.broadcast %21 : vector<1x32xf32> to vector<16x32xf32>
    %23 = arith.mulf %18, %22 : vector<16x32xf32>
    %cst_10 = arith.constant 0.000000e+00 : f32
    %24 = vector.broadcast %cst_10 : f32 to vector<16x32xf32>
    %25 = arith.maximumf %23, %24 : vector<16x32xf32>
    %26 = arith.truncf %25 : vector<16x32xf32> to vector<16x32xbf16>
    %c0_11 = arith.constant 0 : index
    %c0_12 = arith.constant 0 : index
    %27 = vector.load %arg4[%c0_11, %c0_12] : memref<16x32xbf16, #tpu.memory_space<vmem>>, vector<16x32xbf16>
    tpu.vector_store %arg4[%c0_11, %c0_12], %26 {strides = array<i32>} : memref<16x32xbf16, #tpu.memory_space<vmem>>, vector<16x32xbf16>,
    return
  }
  func.func @transform_0(%arg0: i32) -> (i32, i32) {
    %c0_i32 = arith.constant 0 : i32
    %c0_i32_0 = arith.constant 0 : i32
    %c0_i32_1 = arith.constant 0 : i32
    return %c0_i32, %c0_i32_0 : i32, i32
  }
  func.func @transform_1(%arg0: i32) -> (i32, i32) {
    %c0_i32 = arith.constant 0 : i32
    %c0_i32_0 = arith.constant 0 : i32
    %c0_i32_1 = arith.constant 0 : i32
    return %c0_i32, %c0_i32_0 : i32, i32
  }
  func.func @transform_2(%arg0: i32) -> (i32, i32) {
    %c0_i32 = arith.constant 0 : i32
    %c0_i32_0 = arith.constant 0 : i32
    %c0_i32_1 = arith.constant 0 : i32
    return %c0_i32, %c0_i32_0 : i32, i32
  }
  func.func @transform_3(%arg0: i32) -> (i32, i32) {
    %c0_i32 = arith.constant 0 : i32
    %c0_i32_0 = arith.constant 0 : i32
    %c0_i32_1 = arith.constant 0 : i32
    return %c0_i32, %c0_i32_0 : i32, i32
  }
}

module attributes {stable_mosaic.version = 11 : i64} {
  func.func @_knn_interp_kernel(%arg0: i32, %arg1: memref<3x64x32xbf16, #tpu.memory_space<vmem>>, %arg2: memref<3x64x3xf32, #tpu.memory_space<vmem>>, %arg3: memref<64x32xf32, #tpu.memory_space<vmem>>) attributes {dimension_semantics = [#tpu.dimension_semantics<parallel>], iteration_bounds = array<i64: 1>, scalar_prefetch = 0 : i64, scratch_operands = 0 : i64, tpu.core_type = #tpu.core_type<tc>, window_params = [{transform_indices = @transform_0, window_bounds = array<i64: 3, 64, 32>}, {transform_indices = @transform_1, window_bounds = array<i64: 3, 64, 3>}, {transform_indices = @transform_2, window_bounds = array<i64: 64, 32>}]} {
    %c0 = arith.constant 0 : index
    %c0_0 = arith.constant 0 : index
    %c0_1 = arith.constant 0 : index
    %0 = vector.load %arg2[%c0, %c0_0, %c0_1] : memref<3x64x3xf32, #tpu.memory_space<vmem>>, vector<3x64x3xf32>
    %1 = arith.mulf %0, %0 : vector<3x64x3xf32>
    %cst = arith.constant dense<0.000000e+00> : vector<3x64xf32>
    %2 = vector.multi_reduction <add>, %1, %cst [2] : vector<3x64x3xf32> to vector<3x64xf32>
    %3 = vector.shape_cast %2 : vector<3x64xf32> to vector<3x64x1xf32>
    %cst_2 = arith.constant 1.000000e-16 : f32
    %4 = vector.broadcast %cst_2 : f32 to vector<3x64x1xf32>
    %5 = arith.maximumf %3, %4 : vector<3x64x1xf32>
    %cst_3 = arith.constant 1.000000e+00 : f32
    %6 = vector.broadcast %cst_3 : f32 to vector<3x64x1xf32>
    %7 = arith.divf %6, %5 : vector<3x64x1xf32>
    %c0_4 = arith.constant 0 : index
    %c0_5 = arith.constant 0 : index
    %c0_6 = arith.constant 0 : index
    %8 = vector.load %arg1[%c0_4, %c0_5, %c0_6] : memref<3x64x32xbf16, #tpu.memory_space<vmem>>, vector<3x64x32xbf16>
    %9 = arith.extf %8 : vector<3x64x32xbf16> to vector<3x64x32xf32>
    %10 = vector.broadcast %7 : vector<3x64x1xf32> to vector<3x64x32xf32>
    %11 = arith.mulf %9, %10 : vector<3x64x32xf32>
    %cst_7 = arith.constant dense<0.000000e+00> : vector<64x32xf32>
    %12 = vector.multi_reduction <add>, %11, %cst_7 [0] : vector<3x64x32xf32> to vector<64x32xf32>
    %cst_8 = arith.constant dense<0.000000e+00> : vector<64x1xf32>
    %13 = vector.multi_reduction <add>, %7, %cst_8 [0] : vector<3x64x1xf32> to vector<64x1xf32>
    %14 = vector.broadcast %13 : vector<64x1xf32> to vector<64x32xf32>
    %15 = arith.divf %12, %14 : vector<64x32xf32>
    %c0_9 = arith.constant 0 : index
    %c0_10 = arith.constant 0 : index
    %16 = vector.load %arg3[%c0_9, %c0_10] : memref<64x32xf32, #tpu.memory_space<vmem>>, vector<64x32xf32>
    tpu.vector_store %arg3[%c0_9, %c0_10], %15 {strides = array<i32>} : memref<64x32xf32, #tpu.memory_space<vmem>>, vector<64x32xf32>,
    return
  }
  func.func @transform_0(%arg0: i32) -> (i32, i32, i32) {
    %c0_i32 = arith.constant 0 : i32
    %c0_i32_0 = arith.constant 0 : i32
    %c0_i32_1 = arith.constant 0 : i32
    return %c0_i32, %arg0, %c0_i32_0 : i32, i32, i32
  }
  func.func @transform_1(%arg0: i32) -> (i32, i32, i32) {
    %c0_i32 = arith.constant 0 : i32
    %c0_i32_0 = arith.constant 0 : i32
    %c0_i32_1 = arith.constant 0 : i32
    return %c0_i32, %arg0, %c0_i32_0 : i32, i32, i32
  }
  func.func @transform_2(%arg0: i32) -> (i32, i32) {
    %c0_i32 = arith.constant 0 : i32
    %c0_i32_0 = arith.constant 0 : i32
    return %arg0, %c0_i32 : i32, i32
  }
}

module attributes {stable_mosaic.version = 11 : i64} {
  func.func @_linear_kernel(%arg0: i32, %arg1: memref<64x32xf32, #tpu.memory_space<vmem>>, %arg2: memref<32x32xbf16, #tpu.memory_space<vmem>>, %arg3: memref<1x32xf32, #tpu.memory_space<vmem>>, %arg4: memref<64x32xbf16, #tpu.memory_space<vmem>>) attributes {dimension_semantics = [#tpu.dimension_semantics<parallel>], iteration_bounds = array<i64: 1>, scalar_prefetch = 0 : i64, scratch_operands = 0 : i64, tpu.core_type = #tpu.core_type<tc>, window_params = [{transform_indices = @transform_0, window_bounds = array<i64: 64, 32>}, {pipeline_mode = #tpu.pipeline_mode<synchronous>, transform_indices = @transform_1, window_bounds = array<i64: 32, 32>}, {pipeline_mode = #tpu.pipeline_mode<synchronous>, transform_indices = @transform_2, window_bounds = array<i64: 1, 32>}, {transform_indices = @transform_3, window_bounds = array<i64: 64, 32>}]} {
    %c0 = arith.constant 0 : index
    %c0_0 = arith.constant 0 : index
    %0 = vector.load %arg1[%c0, %c0_0] : memref<64x32xf32, #tpu.memory_space<vmem>>, vector<64x32xf32>
    %1 = arith.truncf %0 : vector<64x32xf32> to vector<64x32xbf16>
    %c0_1 = arith.constant 0 : index
    %c0_2 = arith.constant 0 : index
    %2 = vector.load %arg2[%c0_1, %c0_2] : memref<32x32xbf16, #tpu.memory_space<vmem>>, vector<32x32xbf16>
    %cst = arith.constant dense<0.000000e+00> : vector<64x32xf32>
    %3 = tpu.matmul %1, %2, %cst {dimension_numbers = #tpu.dot_dimension_numbers<[1], [0], [0], [1], [0, 0, 1, 1], [], []>} : vector<64x32xbf16>, vector<32x32xbf16>, vector<64x32xf32> -> vector<64x32xf32>
    %c0_3 = arith.constant 0 : index
    %c0_4 = arith.constant 0 : index
    %4 = vector.load %arg3[%c0_3, %c0_4] : memref<1x32xf32, #tpu.memory_space<vmem>>, vector<1x32xf32>
    %5 = vector.broadcast %4 : vector<1x32xf32> to vector<64x32xf32>
    %6 = arith.addf %3, %5 : vector<64x32xf32>
    %cst_5 = arith.constant 0.000000e+00 : f32
    %7 = vector.broadcast %cst_5 : f32 to vector<64x32xf32>
    %8 = arith.maximumf %6, %7 : vector<64x32xf32>
    %9 = arith.truncf %8 : vector<64x32xf32> to vector<64x32xbf16>
    %c0_6 = arith.constant 0 : index
    %c0_7 = arith.constant 0 : index
    %10 = vector.load %arg4[%c0_6, %c0_7] : memref<64x32xbf16, #tpu.memory_space<vmem>>, vector<64x32xbf16>
    tpu.vector_store %arg4[%c0_6, %c0_7], %9 {strides = array<i32>} : memref<64x32xbf16, #tpu.memory_space<vmem>>, vector<64x32xbf16>,
    return
  }
  func.func @transform_0(%arg0: i32) -> (i32, i32) {
    %c0_i32 = arith.constant 0 : i32
    %c0_i32_0 = arith.constant 0 : i32
    return %arg0, %c0_i32 : i32, i32
  }
  func.func @transform_1(%arg0: i32) -> (i32, i32) {
    %c0_i32 = arith.constant 0 : i32
    %c0_i32_0 = arith.constant 0 : i32
    %c0_i32_1 = arith.constant 0 : i32
    return %c0_i32, %c0_i32_0 : i32, i32
  }
  func.func @transform_2(%arg0: i32) -> (i32, i32) {
    %c0_i32 = arith.constant 0 : i32
    %c0_i32_0 = arith.constant 0 : i32
    %c0_i32_1 = arith.constant 0 : i32
    return %c0_i32, %c0_i32_0 : i32, i32
  }
  func.func @transform_3(%arg0: i32) -> (i32, i32) {
    %c0_i32 = arith.constant 0 : i32
    %c0_i32_0 = arith.constant 0 : i32
    return %arg0, %c0_i32 : i32, i32
  }
}

module attributes {stable_mosaic.version = 11 : i64} {
  func.func @_linear_bn_fused_kernel(%arg0: i32, %arg1: memref<64x32xbf16, #tpu.memory_space<vmem>>, %arg2: memref<32x32xbf16, #tpu.memory_space<vmem>>, %arg3: memref<1x32xf32, #tpu.memory_space<vmem>>, %arg4: memref<64x32xbf16, #tpu.memory_space<vmem>>) attributes {dimension_semantics = [#tpu.dimension_semantics<arbitrary>], iteration_bounds = array<i64: 1>, scalar_prefetch = 0 : i64, scratch_operands = 0 : i64, tpu.core_type = #tpu.core_type<tc>, window_params = [{pipeline_mode = #tpu.pipeline_mode<synchronous>, transform_indices = @transform_0, window_bounds = array<i64: 64, 32>}, {pipeline_mode = #tpu.pipeline_mode<synchronous>, transform_indices = @transform_1, window_bounds = array<i64: 32, 32>}, {pipeline_mode = #tpu.pipeline_mode<synchronous>, transform_indices = @transform_2, window_bounds = array<i64: 1, 32>}, {pipeline_mode = #tpu.pipeline_mode<synchronous>, transform_indices = @transform_3, window_bounds = array<i64: 64, 32>}]} {
    %c0 = arith.constant 0 : index
    %c0_0 = arith.constant 0 : index
    %0 = vector.load %arg1[%c0, %c0_0] : memref<64x32xbf16, #tpu.memory_space<vmem>>, vector<64x32xbf16>
    %c0_1 = arith.constant 0 : index
    %c0_2 = arith.constant 0 : index
    %1 = vector.load %arg2[%c0_1, %c0_2] : memref<32x32xbf16, #tpu.memory_space<vmem>>, vector<32x32xbf16>
    %cst = arith.constant dense<0.000000e+00> : vector<64x32xf32>
    %2 = tpu.matmul %0, %1, %cst {dimension_numbers = #tpu.dot_dimension_numbers<[1], [0], [0], [1], [0, 0, 1, 1], [], []>} : vector<64x32xbf16>, vector<32x32xbf16>, vector<64x32xf32> -> vector<64x32xf32>
    %c0_3 = arith.constant 0 : index
    %c0_4 = arith.constant 0 : index
    %3 = vector.load %arg3[%c0_3, %c0_4] : memref<1x32xf32, #tpu.memory_space<vmem>>, vector<1x32xf32>
    %4 = vector.broadcast %3 : vector<1x32xf32> to vector<64x32xf32>
    %5 = arith.addf %2, %4 : vector<64x32xf32>
    %cst_5 = arith.constant dense<0.000000e+00> : vector<32xf32>
    %6 = vector.multi_reduction <add>, %5, %cst_5 [0] : vector<64x32xf32> to vector<32xf32>
    %7 = vector.shape_cast %6 : vector<32xf32> to vector<1x32xf32>
    %cst_6 = arith.constant 6.400000e+01 : f32
    %8 = vector.broadcast %cst_6 : f32 to vector<1x32xf32>
    %9 = arith.divf %7, %8 : vector<1x32xf32>
    %10 = vector.broadcast %9 : vector<1x32xf32> to vector<64x32xf32>
    %11 = arith.subf %5, %10 : vector<64x32xf32>
    %12 = arith.mulf %11, %11 : vector<64x32xf32>
    %cst_7 = arith.constant dense<0.000000e+00> : vector<32xf32>
    %13 = vector.multi_reduction <add>, %12, %cst_7 [0] : vector<64x32xf32> to vector<32xf32>
    %14 = vector.shape_cast %13 : vector<32xf32> to vector<1x32xf32>
    %cst_8 = arith.constant 6.400000e+01 : f32
    %15 = vector.broadcast %cst_8 : f32 to vector<1x32xf32>
    %16 = arith.divf %14, %15 : vector<1x32xf32>
    %17 = vector.broadcast %9 : vector<1x32xf32> to vector<64x32xf32>
    %18 = arith.subf %5, %17 : vector<64x32xf32>
    %cst_9 = arith.constant 9.99999974E-6 : f32
    %19 = vector.broadcast %cst_9 : f32 to vector<1x32xf32>
    %20 = arith.addf %16, %19 : vector<1x32xf32>
    %21 = math.rsqrt %20 : vector<1x32xf32>
    %22 = vector.broadcast %21 : vector<1x32xf32> to vector<64x32xf32>
    %23 = arith.mulf %18, %22 : vector<64x32xf32>
    %cst_10 = arith.constant 0.000000e+00 : f32
    %24 = vector.broadcast %cst_10 : f32 to vector<64x32xf32>
    %25 = arith.maximumf %23, %24 : vector<64x32xf32>
    %26 = arith.truncf %25 : vector<64x32xf32> to vector<64x32xbf16>
    %c0_11 = arith.constant 0 : index
    %c0_12 = arith.constant 0 : index
    %27 = vector.load %arg4[%c0_11, %c0_12] : memref<64x32xbf16, #tpu.memory_space<vmem>>, vector<64x32xbf16>
    tpu.vector_store %arg4[%c0_11, %c0_12], %26 {strides = array<i32>} : memref<64x32xbf16, #tpu.memory_space<vmem>>, vector<64x32xbf16>,
    return
  }
  func.func @transform_0(%arg0: i32) -> (i32, i32) {
    %c0_i32 = arith.constant 0 : i32
    %c0_i32_0 = arith.constant 0 : i32
    %c0_i32_1 = arith.constant 0 : i32
    return %c0_i32, %c0_i32_0 : i32, i32
  }
  func.func @transform_1(%arg0: i32) -> (i32, i32) {
    %c0_i32 = arith.constant 0 : i32
    %c0_i32_0 = arith.constant 0 : i32
    %c0_i32_1 = arith.constant 0 : i32
    return %c0_i32, %c0_i32_0 : i32, i32
  }
  func.func @transform_2(%arg0: i32) -> (i32, i32) {
    %c0_i32 = arith.constant 0 : i32
    %c0_i32_0 = arith.constant 0 : i32
    %c0_i32_1 = arith.constant 0 : i32
    return %c0_i32, %c0_i32_0 : i32, i32
  }
  func.func @transform_3(%arg0: i32) -> (i32, i32) {
    %c0_i32 = arith.constant 0 : i32
    %c0_i32_0 = arith.constant 0 : i32
    %c0_i32_1 = arith.constant 0 : i32
    return %c0_i32, %c0_i32_0 : i32, i32
  }
}

module attributes {stable_mosaic.version = 11 : i64} {
  func.func @_head_kernel(%arg0: i32, %arg1: memref<64x32xbf16, #tpu.memory_space<vmem>>, %arg2: memref<32x128xbf16, #tpu.memory_space<vmem>>, %arg3: memref<1x128xf32, #tpu.memory_space<vmem>>, %arg4: memref<128x128xbf16, #tpu.memory_space<vmem>>, %arg5: memref<1x128xf32, #tpu.memory_space<vmem>>, %arg6: memref<128x128xbf16, #tpu.memory_space<vmem>>, %arg7: memref<1x128xf32, #tpu.memory_space<vmem>>, %arg8: memref<128x128xbf16, #tpu.memory_space<vmem>>, %arg9: memref<1x128xf32, #tpu.memory_space<vmem>>, %arg10: memref<64x128xf32, #tpu.memory_space<vmem>>) attributes {dimension_semantics = [#tpu.dimension_semantics<parallel>], iteration_bounds = array<i64: 1>, scalar_prefetch = 0 : i64, scratch_operands = 0 : i64, tpu.core_type = #tpu.core_type<tc>, window_params = [{transform_indices = @transform_0, window_bounds = array<i64: 64, 32>}, {pipeline_mode = #tpu.pipeline_mode<synchronous>, transform_indices = @transform_1, window_bounds = array<i64: 32, 128>}, {pipeline_mode = #tpu.pipeline_mode<synchronous>, transform_indices = @transform_2, window_bounds = array<i64: 1, 128>}, {pipeline_mode = #tpu.pipeline_mode<synchronous>, transform_indices = @transform_3, window_bounds = array<i64: 128, 128>}, {pipeline_mode = #tpu.pipeline_mode<synchronous>, transform_indices = @transform_4, window_bounds = array<i64: 1, 128>}, {pipeline_mode = #tpu.pipeline_mode<synchronous>, transform_indices = @transform_5, window_bounds = array<i64: 128, 128>}, {pipeline_mode = #tpu.pipeline_mode<synchronous>, transform_indices = @transform_6, window_bounds = array<i64: 1, 128>}, {pipeline_mode = #tpu.pipeline_mode<synchronous>, transform_indices = @transform_7, window_bounds = array<i64: 128, 128>}, {pipeline_mode = #tpu.pipeline_mode<synchronous>, transform_indices = @transform_8, window_bounds = array<i64: 1, 128>}, {transform_indices = @transform_9, window_bounds = array<i64: 64, 128>}]} {
    %c0 = arith.constant 0 : index
    %c0_0 = arith.constant 0 : index
    %0 = vector.load %arg1[%c0, %c0_0] : memref<64x32xbf16, #tpu.memory_space<vmem>>, vector<64x32xbf16>
    %c0_1 = arith.constant 0 : index
    %c0_2 = arith.constant 0 : index
    %1 = vector.load %arg2[%c0_1, %c0_2] : memref<32x128xbf16, #tpu.memory_space<vmem>>, vector<32x128xbf16>
    %cst = arith.constant dense<0.000000e+00> : vector<64x128xf32>
    %2 = tpu.matmul %0, %1, %cst {dimension_numbers = #tpu.dot_dimension_numbers<[1], [0], [0], [1], [0, 0, 1, 1], [], []>} : vector<64x32xbf16>, vector<32x128xbf16>, vector<64x128xf32> -> vector<64x128xf32>
    %c0_3 = arith.constant 0 : index
    %c0_4 = arith.constant 0 : index
    %3 = vector.load %arg3[%c0_3, %c0_4] : memref<1x128xf32, #tpu.memory_space<vmem>>, vector<1x128xf32>
    %4 = vector.broadcast %3 : vector<1x128xf32> to vector<64x128xf32>
    %5 = arith.addf %2, %4 : vector<64x128xf32>
    %cst_5 = arith.constant 0.000000e+00 : f32
    %6 = vector.broadcast %cst_5 : f32 to vector<64x128xf32>
    %7 = arith.maximumf %5, %6 : vector<64x128xf32>
    %8 = arith.truncf %7 : vector<64x128xf32> to vector<64x128xbf16>
    %c0_6 = arith.constant 0 : index
    %c0_7 = arith.constant 0 : index
    %9 = vector.load %arg4[%c0_6, %c0_7] : memref<128x128xbf16, #tpu.memory_space<vmem>>, vector<128x128xbf16>
    %cst_8 = arith.constant dense<0.000000e+00> : vector<64x128xf32>
    %10 = tpu.matmul %8, %9, %cst_8 {dimension_numbers = #tpu.dot_dimension_numbers<[1], [0], [0], [1], [0, 0, 1, 1], [], []>} : vector<64x128xbf16>, vector<128x128xbf16>, vector<64x128xf32> -> vector<64x128xf32>
    %c0_9 = arith.constant 0 : index
    %c0_10 = arith.constant 0 : index
    %11 = vector.load %arg5[%c0_9, %c0_10] : memref<1x128xf32, #tpu.memory_space<vmem>>, vector<1x128xf32>
    %12 = vector.broadcast %11 : vector<1x128xf32> to vector<64x128xf32>
    %13 = arith.addf %10, %12 : vector<64x128xf32>
    %cst_11 = arith.constant 0.000000e+00 : f32
    %14 = vector.broadcast %cst_11 : f32 to vector<64x128xf32>
    %15 = arith.maximumf %13, %14 : vector<64x128xf32>
    %16 = arith.truncf %15 : vector<64x128xf32> to vector<64x128xbf16>
    %c0_12 = arith.constant 0 : index
    %c0_13 = arith.constant 0 : index
    %17 = vector.load %arg6[%c0_12, %c0_13] : memref<128x128xbf16, #tpu.memory_space<vmem>>, vector<128x128xbf16>
    %cst_14 = arith.constant dense<0.000000e+00> : vector<64x128xf32>
    %18 = tpu.matmul %16, %17, %cst_14 {dimension_numbers = #tpu.dot_dimension_numbers<[1], [0], [0], [1], [0, 0, 1, 1], [], []>} : vector<64x128xbf16>, vector<128x128xbf16>, vector<64x128xf32> -> vector<64x128xf32>
    %c0_15 = arith.constant 0 : index
    %c0_16 = arith.constant 0 : index
    %19 = vector.load %arg7[%c0_15, %c0_16] : memref<1x128xf32, #tpu.memory_space<vmem>>, vector<1x128xf32>
    %20 = vector.broadcast %19 : vector<1x128xf32> to vector<64x128xf32>
    %21 = arith.addf %18, %20 : vector<64x128xf32>
    %cst_17 = arith.constant 0.000000e+00 : f32
    %22 = vector.broadcast %cst_17 : f32 to vector<64x128xf32>
    %23 = arith.maximumf %21, %22 : vector<64x128xf32>
    %24 = arith.truncf %23 : vector<64x128xf32> to vector<64x128xbf16>
    %c0_18 = arith.constant 0 : index
    %c0_19 = arith.constant 0 : index
    %25 = vector.load %arg8[%c0_18, %c0_19] : memref<128x128xbf16, #tpu.memory_space<vmem>>, vector<128x128xbf16>
    %cst_20 = arith.constant dense<0.000000e+00> : vector<64x128xf32>
    %26 = tpu.matmul %24, %25, %cst_20 {dimension_numbers = #tpu.dot_dimension_numbers<[1], [0], [0], [1], [0, 0, 1, 1], [], []>} : vector<64x128xbf16>, vector<128x128xbf16>, vector<64x128xf32> -> vector<64x128xf32>
    %c0_21 = arith.constant 0 : index
    %c0_22 = arith.constant 0 : index
    %27 = vector.load %arg9[%c0_21, %c0_22] : memref<1x128xf32, #tpu.memory_space<vmem>>, vector<1x128xf32>
    %28 = vector.broadcast %27 : vector<1x128xf32> to vector<64x128xf32>
    %29 = arith.addf %26, %28 : vector<64x128xf32>
    %c0_23 = arith.constant 0 : index
    %c0_24 = arith.constant 0 : index
    %30 = vector.load %arg10[%c0_23, %c0_24] : memref<64x128xf32, #tpu.memory_space<vmem>>, vector<64x128xf32>
    tpu.vector_store %arg10[%c0_23, %c0_24], %29 {strides = array<i32>} : memref<64x128xf32, #tpu.memory_space<vmem>>, vector<64x128xf32>,
    return
  }
  func.func @transform_0(%arg0: i32) -> (i32, i32) {
    %c0_i32 = arith.constant 0 : i32
    %c0_i32_0 = arith.constant 0 : i32
    return %arg0, %c0_i32 : i32, i32
  }
  func.func @transform_1(%arg0: i32) -> (i32, i32) {
    %c0_i32 = arith.constant 0 : i32
    %c0_i32_0 = arith.constant 0 : i32
    %c0_i32_1 = arith.constant 0 : i32
    return %c0_i32, %c0_i32_0 : i32, i32
  }
  func.func @transform_2(%arg0: i32) -> (i32, i32) {
    %c0_i32 = arith.constant 0 : i32
    %c0_i32_0 = arith.constant 0 : i32
    %c0_i32_1 = arith.constant 0 : i32
    return %c0_i32, %c0_i32_0 : i32, i32
  }
  func.func @transform_3(%arg0: i32) -> (i32, i32) {
    %c0_i32 = arith.constant 0 : i32
    %c0_i32_0 = arith.constant 0 : i32
    %c0_i32_1 = arith.constant 0 : i32
    return %c0_i32, %c0_i32_0 : i32, i32
  }
  func.func @transform_4(%arg0: i32) -> (i32, i32) {
    %c0_i32 = arith.constant 0 : i32
    %c0_i32_0 = arith.constant 0 : i32
    %c0_i32_1 = arith.constant 0 : i32
    return %c0_i32, %c0_i32_0 : i32, i32
  }
  func.func @transform_5(%arg0: i32) -> (i32, i32) {
    %c0_i32 = arith.constant 0 : i32
    %c0_i32_0 = arith.constant 0 : i32
    %c0_i32_1 = arith.constant 0 : i32
    return %c0_i32, %c0_i32_0 : i32, i32
  }
  func.func @transform_6(%arg0: i32) -> (i32, i32) {
    %c0_i32 = arith.constant 0 : i32
    %c0_i32_0 = arith.constant 0 : i32
    %c0_i32_1 = arith.constant 0 : i32
    return %c0_i32, %c0_i32_0 : i32, i32
  }
  func.func @transform_7(%arg0: i32) -> (i32, i32) {
    %c0_i32 = arith.constant 0 : i32
    %c0_i32_0 = arith.constant 0 : i32
    %c0_i32_1 = arith.constant 0 : i32
    return %c0_i32, %c0_i32_0 : i32, i32
  }
  func.func @transform_8(%arg0: i32) -> (i32, i32) {
    %c0_i32 = arith.constant 0 : i32
    %c0_i32_0 = arith.constant 0 : i32
    %c0_i32_1 = arith.constant 0 : i32
    return %c0_i32, %c0_i32_0 : i32, i32
  }
  func.func @transform_9(%arg0: i32) -> (i32, i32) {
    %c0_i32 = arith.constant 0 : i32
    %c0_i32_0 = arith.constant 0 : i32
    return %arg0, %c0_i32 : i32, i32
  }
}

</mosaic_0001>

<bundles_post_ra>
// kernel: neg.4
= control target key start
LH: loop header
LB: loop body
LE: loop exit
PB: predicated region body
PF: predicated region fallthrough
CT: control target
= control target key end

     0   :  { %s136_s0 = inlined_call_operand.vmem [shape: f32[64,64], index: 0, kind: input, shape index: {}]   ;;  %s137_s1 = inlined_call_operand.vmem [shape: f32[64,64], index: 1, kind: output, shape index: {}]  }
   0x1   :  { %v2_v0 = vld [vmem:[%s136_s0] sm:$0xff]  ;;  %v64_v1 = vld [vmem:[%s136_s0 + $0x8] sm:$0xff]  ;;  %v66_v2 = vld [vmem:[%s136_s0 + $0x10] sm:$0xff] }
   0x2   :  { %v5_v3 = vxor.u32 2147483648, %v2_v0  ;;  %v12_v4 = vxor.u32 2147483648, %v64_v1  ;;  %v20_v5 = vxor.u32 2147483648, %v66_v2  ;;  %v68_v6 = vld [vmem:[%s136_s0 + $0x18] sm:$0xff]  ;;  %v70_v7 = vld [vmem:[%s136_s0 + $0x20] sm:$0xff]  ;;  %v72_v8 = vld [vmem:[%s136_s0 + $0x28] sm:$0xff] }
   0x3   :  { %v28_v9 = vxor.u32 2147483648, %v68_v6  ;;  %v36_v10 = vxor.u32 2147483648, %v70_v7  ;;  %v44_v11 = vxor.u32 2147483648, %v72_v8  ;;  %v74_v12 = vld [vmem:[%s136_s0 + $0x30] sm:$0xff]  ;;  %v76_v13 = vld [vmem:[%s136_s0 + $0x38] sm:$0xff] }
   0x4   :  { %7 = vst [vmem:[%s137_s1] sm:$0xff] %v5_v3  ;;  %65 = vst [vmem:[%s137_s1 + $0x8] sm:$0xff] %v12_v4  ;;  %v52_v14 = vxor.u32 2147483648, %v74_v12  ;;  %v60_v15 = vxor.u32 2147483648, %v76_v13 }
   0x5   :  { %67 = vst [vmem:[%s137_s1 + $0x10] sm:$0xff] %v20_v5  ;;  %69 = vst [vmem:[%s137_s1 + $0x18] sm:$0xff] %v28_v9 }
   0x6   :  { %71 = vst [vmem:[%s137_s1 + $0x20] sm:$0xff] %v36_v10  ;;  %73 = vst [vmem:[%s137_s1 + $0x28] sm:$0xff] %v44_v11 }
   0x7   :  { %75 = vst [vmem:[%s137_s1 + $0x30] sm:$0xff] %v52_v14  ;;  %77 = vst [vmem:[%s137_s1 + $0x38] sm:$0xff] %v60_v15 }

// kernel: _lambda_.30
= control target key start
LH: loop header
LB: loop body
LE: loop exit
PB: predicated region body
PF: predicated region fallthrough
CT: control target
= control target key end

     0   :  { %vm45_vm0 = vcmask 1042432   ;;  %vm20_vm1 = vcmask 23552   ;;  %vm187_vm2 = vcmask 518144   ;;  %v219_v34 = vlaneseq  ;;  %s418_s1 = inlined_call_operand.vmem [shape: f32[3,64], index: 1, kind: input, shape index: {}]   ;;  %s419_s0 = inlined_call_operand.vmem [shape: f32[64,3], index: 0, kind: input, shape index: {}]   ;;  %s420_s2 = inlined_call_operand.vmem [shape: f32[64,64], index: 2, kind: output, shape index: {}]  }
   0x1   :  { %v19_v0 = vld [vmem:[%s418_s1] sm:$0x7]  ;;  %v12_v4 = vld [vmem:[%s419_s0 + $0x8] sm:$0xff]  ;;  %v13_v6 = vld [vmem:[%s419_s0 + $0x10] sm:$0xff]  ;;  %vm259_vm3 = vcmask 523264  }
   0x2   :  { %v11_v1 = vld [vmem:[%s419_s0] sm:$0xff]  ;;  %290 = vmatprep.subr.msk.mxu0 %vm45_vm0, %v19_v0  ;;  %304 = vmatprep.subr.msk.mxu1 %vm45_vm0, %v19_v0  ;;  %v16_v5 = vld [vmem:[%s419_s0 + $0x28] sm:$0xff]  ;;  %v17_v7 = vld [vmem:[%s419_s0 + $0x30] sm:$0xff]  ;;  %v156_v9 = vmul.f32 %v13_v6, %v13_v6  ;;  %v155_v12 = vmul.f32 %v12_v4, %v12_v4  ;;  %v186_v25 = vmul.f32 %v19_v0, %v19_v0  ;;  %v220_v36 = vshrl.u32 %v219_v34, 7 }
   0x3   :  { %v15_v2 = vld [vmem:[%s419_s0 + $0x20] sm:$0xff]  ;;  %v154_v3 = vmul.f32 %v11_v1, %v11_v1  ;;  %291 = vmatpush3.msk.msra.mxu0 %vm45_vm0, %v19_v0  ;;  %305 = vmatpush3.msk.msra.mxu1 %vm45_vm0, %v19_v0  ;;  %v14_v8 = vld [vmem:[%s419_s0 + $0x18] sm:$0xff]  ;;  %v159_v18 = vmul.f32 %v16_v5, %v16_v5  ;;  %v160_v22 = vmul.f32 %v17_v7, %v17_v7  ;;  %v364_v41 = vand.u32 127, %v219_v34 }
   0x4   :  { %292 = vmatprep.mubr.msk.f32.mxu0 %vm20_vm1, %v11_v1  ;;  %298 = vmatprep.mubr.msk.f32.mxu1 %vm20_vm1, %v15_v2  ;;  %v157_v11 = vmul.f32 %v14_v8, %v14_v8  ;;  %v168_v13 = vsel %vm20_vm1, %v156_v9, 0.0  ;;  %v18_v14 = vld [vmem:[%s419_s0 + $0x38] sm:$0xff]  ;;  %v158_v15 = vmul.f32 %v15_v2, %v15_v2  ;;  %v165_v17 = vsel %vm20_vm1, %v155_v12, 0.0 }
   0x5   :  { %v162_v10 = vsel %vm20_vm1, %v154_v3, 0.0  ;;  %293 = vmatmul.mubr.msk.f32.vlgmr.msra.gmra.mrb[0].mxu0 %vm20_vm1, %v12_v4  ;;  %299 = vmatmul.mubr.msk.f32.vlgmr.msra.gmra.mrb[0].mxu1 %vm20_vm1, %v16_v5  ;;  %v177_v19 = vsel %vm20_vm1, %v159_v18, 0.0  ;;  %v161_v21 = vmul.f32 %v18_v14, %v18_v14  ;;  %v180_v24 = vsel %vm20_vm1, %v160_v22, 0.0 }
   0x6   :  { %295 = vmatprep.mubr.msk.f32.mxu0 %vm20_vm1, %v13_v6  ;;  %301 = vmatprep.mubr.msk.f32.mxu1 %vm20_vm1, %v17_v7  ;;  %v171_v16 = vsel %vm20_vm1, %v157_v11, 0.0  ;;  %v174_v20 = vsel %vm20_vm1, %v158_v15, 0.0  ;;  %v188_v26 = vsel %vm187_vm2, %v186_v25, 0.0  ;;  %v225_v40 = vadd.s32 40, %v220_v36 }
   0x7   :  { %169 = vadd.xlane.f32.xlu1 %v168_v13  ;;  %163 = vadd.xlane.f32.xlu0 %v162_v10  ;;  %v183_v23 = vsel %vm20_vm1, %v161_v21, 0.0  ;;  %v189_v27 = vrot.slane %v188_v26, 4  ;;  %v221_v42 = vadd.s32 8, %v220_v36  ;;  %v224_v43 = vadd.s32 32, %v220_v36 }
   0x8   :  { %v227_v45 = vadd.s32 56, %v220_v36  ;;  %v223_v46 = vadd.s32 24, %v220_v36  ;;  %vm248_vm4 = vcmp.eq.s32.totalorder %v225_v40, %v364_v41  ;;  %vm243_vm7 = vcmp.eq.s32.totalorder %v220_v36, %v364_v41 }
   0x9   :  { %296 = vmatmul.mubr.msk.f32.gmra.mrb[2].mxu0 %vm20_vm1, %v14_v8  ;;  %302 = vmatmul.mubr.msk.f32.gmra.mrb[2].mxu1 %vm20_vm1, %v18_v14  ;;  %v190_v28 = vadd.f32 %v189_v27, %v188_v26  ;;  %vm244_vm5 = vcmp.eq.s32.totalorder %v221_v42, %v364_v41  ;;  %vm247_vm6 = vcmp.eq.s32.totalorder %v224_v43, %v364_v41  ;;  %v226_v53 = vadd.s32 48, %v220_v36 }
   0xa   :  { %v222_v54 = vadd.s32 16, %v220_v36  ;;  %vm250_vm8 = vcmp.eq.s32.totalorder %v227_v45, %v364_v41  ;;  %vm246_vm9 = vcmp.eq.s32.totalorder %v223_v46, %v364_v41 }
   0xb   :  { %172 = vadd.xlane.f32.xlu1 %v171_v16  ;;  %166 = vadd.xlane.f32.xlu0 %v165_v17  ;;  %v191_v31 = vrot.slane %v190_v28, 2  ;;  %vm249_vm10 = vcmp.eq.s32.totalorder %v226_v53, %v364_v41 }
   0xc   :  { %vm245_vm11 = vcmp.eq.s32.totalorder %v222_v54, %v364_v41 }
   0xd   :  { %v192_v35 = vadd.f32 %v191_v31, %v190_v28 }
   0xf   :  { %178 = vadd.xlane.f32.xlu1 %v177_v19  ;;  %175 = vadd.xlane.f32.xlu0 %v174_v20  ;;  %v193_v37 = vrot.slane %v192_v35, 1 }
  0x11   :  { %v194_v44 = vadd.f32 %v193_v37, %v192_v35 }
  0x13   :  { %184 = vadd.xlane.f32.xlu1 %v183_v23  ;;  %181 = vadd.xlane.f32.xlu0 %v180_v24 }
  0x94   :  { %v170_v29 = vpop.xlane.xlu1 %169  ;;  %v164_v30 = vpop.xlane.xlu0 %163 }
  0x95   :  { %v195_v60 = vadd.f32 %v194_v44, %v164_v30  ;;  %v197_v63 = vadd.f32 %v194_v44, %v170_v29 }
  0x98   :  { %v173_v32 = vpop.xlane.xlu1 %172  ;;  %v167_v33 = vpop.xlane.xlu0 %166 }
  0x99   :  { %v196_v55 = vadd.f32 %v194_v44, %v167_v33  ;;  %v198_v3 = vadd.f32 %v194_v44, %v173_v32 }
  0x9c   :  { %v179_v38 = vpop.xlane.xlu1 %178  ;;  %v176_v39 = vpop.xlane.xlu0 %175 }
  0x9d   :  { %v200_v47 = vadd.f32 %v194_v44, %v179_v38  ;;  %v199_v52 = vadd.f32 %v194_v44, %v176_v39 }
  0xa0   :  { %v185_v48 = vpop.xlane.xlu1 %184  ;;  %v182_v49 = vpop.xlane.xlu0 %181 }
  0xa1   :  { %v202_v2 = vadd.f32 %v194_v44, %v185_v48  ;;  %v201_v8 = vadd.f32 %v194_v44, %v182_v49 }
  0xd8   :  { %v300_v50 = vpop.f32.mrb[0].mxu1  ;;  %v294_v51 = vpop.f32.mrb[0].mxu0 }
  0xd9   :  { %v208_v56 = vmul.f32 2.0, %v300_v50  ;;  %v204_v57 = vmul.f32 2.0, %v294_v51  ;;  %v135_v58 = vpop.f32.mrb[1].mxu1  ;;  %v115_v59 = vpop.f32.mrb[1].mxu0 }
  0xda   :  { %v207_v61 = vmul.f32 2.0, %v135_v58  ;;  %v203_v62 = vmul.f32 2.0, %v115_v59 }
  0xdb   :  { %v216_v0 = vsub.f32 %v200_v47, %v208_v56  ;;  %v212_v1 = vsub.f32 %v196_v55, %v204_v57 }
  0xdc   :  { %v215_v4 = vsub.f32 %v199_v52, %v207_v61  ;;  %v211_v5 = vsub.f32 %v195_v60, %v203_v62  ;;  %v303_v6 = vpop.f32.mrb[2].mxu1  ;;  %v297_v7 = vpop.f32.mrb[2].mxu0 }
  0xdd   :  { %v256_v9 = vsel %vm248_vm4, inf, %v216_v0  ;;  %v252_v10 = vsel %vm244_vm5, inf, %v212_v1  ;;  %v210_v11 = vmul.f32 2.0, %v303_v6  ;;  %v206_v12 = vmul.f32 2.0, %v297_v7  ;;  %v145_v13 = vpop.f32.mrb[3].mxu1  ;;  %v125_v14 = vpop.f32.mrb[3].mxu0 }
  0xde   :  { %265 = vst.msk [vmem:[%s420_s2 + $0x28] sm:$0xff] %vm259_vm3, %v256_v9  ;;  %261 = vst.msk [vmem:[%s420_s2 + $0x8] sm:$0xff] %vm259_vm3, %v252_v10  ;;  %v255_v15 = vsel %vm247_vm6, inf, %v215_v4  ;;  %v251_v16 = vsel %vm243_vm7, inf, %v211_v5  ;;  %v209_v17 = vmul.f32 2.0, %v145_v13  ;;  %v205_v18 = vmul.f32 2.0, %v125_v14 }
  0xdf   :  { %264 = vst.msk [vmem:[%s420_s2 + $0x20] sm:$0xff] %vm259_vm3, %v255_v15  ;;  %260 = vst.msk [vmem:[%s420_s2] sm:$0xff] %vm259_vm3, %v251_v16  ;;  %v218_v19 = vsub.f32 %v202_v2, %v210_v11  ;;  %v214_v20 = vsub.f32 %v198_v3, %v206_v12 }
  0xe0   :  { %v217_v21 = vsub.f32 %v201_v8, %v209_v17  ;;  %v213_v22 = vsub.f32 %v197_v63, %v205_v18 }
  0xe1   :  { %v258_v23 = vsel %vm250_vm8, inf, %v218_v19  ;;  %v254_v24 = vsel %vm246_vm9, inf, %v214_v20 }
  0xe2   :  { %267 = vst.msk [vmem:[%s420_s2 + $0x38] sm:$0xff] %vm259_vm3, %v258_v23  ;;  %263 = vst.msk [vmem:[%s420_s2 + $0x18] sm:$0xff] %vm259_vm3, %v254_v24  ;;  %v257_v25 = vsel %vm249_vm10, inf, %v217_v21  ;;  %v253_v26 = vsel %vm245_vm11, inf, %v213_v22 }
  0xe3   :  { %266 = vst.msk [vmem:[%s420_s2 + $0x30] sm:$0xff] %vm259_vm3, %v257_v25  ;;  %262 = vst.msk [vmem:[%s420_s2 + $0x10] sm:$0xff] %vm259_vm3, %v253_v26 }

// kernel: _lambda_.31
= control target key start
LH: loop header
LB: loop body
LE: loop exit
PB: predicated region body
PF: predicated region fallthrough
CT: control target
= control target key end

     0   :  { %vm66_vm0 = vcmask 261120   ;;  %vm184_vm1 = vcmask 257024   ;;  %s325_s1 = inlined_call_operand.vmem [shape: bf16[32,32], index: 1, kind: input, shape index: {}]   ;;  %s326_s0 = inlined_call_operand.vmem [shape: bf16[64,32], index: 0, kind: input, shape index: {}]   ;;  %s327_s2 = inlined_call_operand.vmem [shape: f32[1,32], index: 2, kind: input, shape index: {}]   ;;  %s328_s3 = inlined_call_operand.vmem [shape: bf16[64,32], index: 3, kind: output, shape index: {}]  }
   0x1   :  { %v246_v0 = vld [vmem:[%s325_s1] sm:$0xff]   ;;  %v247_v1 = vld [vmem:[%s325_s1 + $0x8] sm:$0xff]   ;;  %v249_v3 = vld [vmem:[%s326_s0 + $0x10] sm:$0xff]  }
   0x2   :  { %230 = vmatprep.subr.bf16.mxu0 %v246_v0  ;;  %242 = vmatprep.subr.bf16.mxu1 %v246_v0  ;;  %v248_v2 = vld [vmem:[%s326_s0] sm:$0xff]   ;;  %v250_v4 = vld [vmem:[%s326_s0 + $0x8] sm:$0xff]   ;;  %v251_v5 = vld [vmem:[%s326_s0 + $0x18] sm:$0xff]  }
   0x3   :  { %231 = vmatpush3.bf16.msra.mxu0 %v246_v0  ;;  %244 = vmatpush3.bf16.msra.mxu1 %v246_v0  ;;  %v197_v6 = vld [vmem:[%s327_s2] ss:$0 sm:$0xff] }
   0x4   :  { %232 = vmatprep.subr.bf16.mxu0 %v247_v1  ;;  %243 = vmatprep.subr.bf16.mxu1 %v247_v1 }
   0x5   :  { %234 = vmatprep.mubr.msk.bf16.mxu0 %vm66_vm0, %v248_v2  ;;  %238 = vmatprep.mubr.msk.bf16.mxu1 %vm66_vm0, %v249_v3 }
   0x7   :  { %233 = vmatpush3.bf16.msra.mxu0 %v247_v1  ;;  %245 = vmatpush3.bf16.msra.mxu1 %v247_v1 }
   0xa   :  { %235 = vmatmul.mubr.msk.bf16.vlgmr.msra.gmra.mrb[0].mxu0 %vm66_vm0, %v250_v4  ;;  %239 = vmatmul.mubr.msk.bf16.vlgmr.msra.gmra.mrb[0].mxu1 %vm66_vm0, %v251_v5 }
  0xdd   :  { %v236_v7 = vpop.f32.mrb[0].mxu0  ;;  %v240_v8 = vpop.f32.mrb[0].mxu1 }
  0xde   :  { %v122_v9 = vadd.f32 %v236_v7, %v197_v6  ;;  %v138_v10 = vadd.f32 %v240_v8, %v197_v6  ;;  %v113_v11 = vpop.f32.mrb[1].mxu0  ;;  %v129_v12 = vpop.f32.mrb[1].mxu1 }
  0xdf   :  { %v114_v13 = vadd.f32 %v197_v6, %v113_v11  ;;  %v130_v14 = vadd.f32 %v197_v6, %v129_v12  ;;  %v237_v15 = vpop.f32.mrb[2].mxu0  ;;  %v241_v16 = vpop.f32.mrb[2].mxu1 }
  0xe0   :  { %v146_v17 = vmax.f32 %v122_v9, 0.0  ;;  %v150_v18 = vmax.f32 %v138_v10, 0.0  ;;  %v125_v19 = vadd.f32 %v237_v15, %v197_v6  ;;  %v141_v20 = vadd.f32 %v241_v16, %v197_v6  ;;  %v116_v21 = vpop.f32.mrb[3].mxu0  ;;  %v132_v22 = vpop.f32.mrb[3].mxu1 }
  0xe1   :  { %v144_v23 = vmax.f32 %v114_v13, 0.0  ;;  %v148_v24 = vmax.f32 %v130_v14, 0.0  ;;  %v117_v25 = vadd.f32 %v197_v6, %v116_v21  ;;  %v133_v26 = vadd.f32 %v197_v6, %v132_v22 }
  0xe2   :  { %v218_v27 = vpack.c.bf16 %v146_v17, %v146_v17  ;;  %v222_v28 = vpack.c.bf16 %v150_v18, %v150_v18  ;;  %v147_v29 = vmax.f32 %v125_v19, 0.0  ;;  %v151_v30 = vmax.f32 %v141_v20, 0.0 }
  0xe3   :  { %v216_v31 = vpack.c.bf16 %v144_v23, %v144_v23  ;;  %v220_v32 = vpack.c.bf16 %v148_v24, %v148_v24  ;;  %v145_v33 = vmax.f32 %v117_v25, 0.0  ;;  %v149_v34 = vmax.f32 %v133_v26, 0.0 }
  0xe4   :  { %187 = vst.msk [vmem:[%s328_s3 + $0x8] sm:$0xf] %vm184_vm1, %v218_v27  ;;  %191 = vst.msk [vmem:[%s328_s3 + $0x18] sm:$0xf] %vm184_vm1, %v222_v28  ;;  %v219_v35 = vpack.c.bf16 %v147_v29, %v147_v29  ;;  %v223_v36 = vpack.c.bf16 %v151_v30, %v151_v30 }
  0xe5   :  { %185 = vst.msk [vmem:[%s328_s3] sm:$0xf] %vm184_vm1, %v216_v31  ;;  %189 = vst.msk [vmem:[%s328_s3 + $0x10] sm:$0xf] %vm184_vm1, %v220_v32  ;;  %v217_v37 = vpack.c.bf16 %v145_v33, %v145_v33  ;;  %v221_v38 = vpack.c.bf16 %v149_v34, %v149_v34 }
  0xe6   :  { %188 = vst.msk [vmem:[%s328_s3 + $0xc] sm:$0xf] %vm184_vm1, %v219_v35  ;;  %192 = vst.msk [vmem:[%s328_s3 + $0x1c] sm:$0xf] %vm184_vm1, %v223_v36 }
  0xe7   :  { %186 = vst.msk [vmem:[%s328_s3 + $0x4] sm:$0xf] %vm184_vm1, %v217_v37  ;;  %190 = vst.msk [vmem:[%s328_s3 + $0x14] sm:$0xf] %vm184_vm1, %v221_v38 }

// kernel: _lambda_.29
= control target key start
LH: loop header
LB: loop body
LE: loop exit
PB: predicated region body
PF: predicated region fallthrough
CT: control target
= control target key end

     0   :  { %vm48_vm0 = vcmask 1041408   ;;  %vm35_vm1 = vcmask 31744   ;;  %vm117_vm2 = vcmask 261120   ;;  %vm229_vm3 = vcmask 257024   ;;  %s386_s1 = inlined_call_operand.vmem [shape: bf16[4,32], index: 1, kind: input, shape index: {}]   ;;  %s387_s0 = inlined_call_operand.vmem [shape: f32[64,4], index: 0, kind: input, shape index: {}]   ;;  %s388_s2 = inlined_call_operand.vmem [shape: f32[1,32], index: 2, kind: input, shape index: {}]   ;;  %s389_s3 = inlined_call_operand.vmem [shape: bf16[64,32], index: 3, kind: output, shape index: {}]  }
   0x1   :  { %v27_v0 = vld [vmem:[%s386_s1] sm:$0x3]  ;;  %v16_v2 = vld [vmem:[%s387_s0 + $0x8] sm:$0xff]  ;;  %v17_v5 = vld [vmem:[%s387_s0 + $0x10] sm:$0xff] }
   0x2   :  { %v15_v1 = vld [vmem:[%s387_s0] sm:$0xff]  ;;  %280 = vmatprep.subr.msk.bf16.mxu0 %vm48_vm0, %v27_v0  ;;  %v50_v3 = vsel %vm48_vm0, %v27_v0, 0  ;;  %v18_v6 = vld [vmem:[%s387_s0 + $0x18] sm:$0xff]  ;;  %281 = vmatprep.subr.msk.bf16.mxu1 %vm48_vm0, %v27_v0  ;;  %v20_v9 = vld [vmem:[%s387_s0 + $0x28] sm:$0xff] }
   0x3   :  { %v23_v4 = vpack.c.bf16 %v16_v2, %v15_v1  ;;  %v19_v7 = vld [vmem:[%s387_s0 + $0x20] sm:$0xff]  ;;  %269 = vmatpush3.bf16.msra.mxu0 %v50_v3  ;;  %v24_v8 = vpack.c.bf16 %v18_v6, %v17_v5  ;;  %279 = vmatpush3.bf16.msra.mxu1 %v50_v3  ;;  %v21_v10 = vld [vmem:[%s387_s0 + $0x30] sm:$0xff]  ;;  %v22_v11 = vld [vmem:[%s387_s0 + $0x38] sm:$0xff] }
   0x4   :  { %v25_v12 = vpack.c.bf16 %v20_v9, %v19_v7  ;;  %v26_v13 = vpack.c.bf16 %v22_v11, %v21_v10  ;;  %v242_v14 = vld [vmem:[%s388_s2] ss:$0 sm:$0xff] }
   0x5   :  { %270 = vmatprep.mubr.msk.bf16.mxu0 %vm35_vm1, %v23_v4 }
   0x6   :  { %271 = vmatmul.mubr.msk.bf16.vlgmr.msra.gmra.mrb[0].mxu0 %vm35_vm1, %v24_v8  ;;  %274 = vmatprep.mubr.msk.bf16.mxu1 %vm35_vm1, %v25_v12 }
   0x7   :  { %275 = vmatmul.mubr.msk.bf16.vlgmr.msra.gmra.mrb[0].mxu1 %vm35_vm1, %v26_v13 }
  0xd9   :  { %v272_v15 = vpop.f32.mrb[0].mxu0 }
  0xda   :  { %v86_v16 = vpop.f32.mrb[1].mxu0  ;;  %v276_v17 = vpop.f32.mrb[0].mxu1  ;;  %v95_v23 = vadd.f32 %v272_v15, %v242_v14 }
  0xdb   :  { %v87_v18 = vadd.f32 %v242_v14, %v86_v16  ;;  %v273_v19 = vpop.f32.mrb[2].mxu0  ;;  %v102_v20 = vpop.f32.mrb[1].mxu1  ;;  %v111_v37 = vadd.f32 %v276_v17, %v242_v14 }
  0xdc   :  { %v89_v21 = vpop.f32.mrb[3].mxu0  ;;  %v277_v22 = vpop.f32.mrb[2].mxu1  ;;  %v98_v27 = vadd.f32 %v273_v19, %v242_v14  ;;  %v103_v29 = vadd.f32 %v242_v14, %v102_v20  ;;  %v121_v31 = vsel %vm117_vm2, %v95_v23, 0.0 }
  0xdd   :  { %v90_v24 = vadd.f32 %v242_v14, %v89_v21  ;;  %v105_v25 = vpop.f32.mrb[3].mxu1  ;;  %v118_v26 = vsel %vm117_vm2, %v87_v18, 0.0  ;;  %v114_v39 = vadd.f32 %v277_v22, %v242_v14  ;;  %v129_v42 = vsel %vm117_vm2, %v111_v37, 0.0 }
  0xde   :  { %v123_v33 = vsel %vm117_vm2, %v98_v27, 0.0  ;;  %v125_v34 = vsel %vm117_vm2, %v103_v29, 0.0  ;;  %v106_v35 = vadd.f32 %v242_v14, %v105_v25 }
  0xdf   :  { %v119_v28 = vsel %vm117_vm2, %v90_v24, 0.0  ;;  %v131_v44 = vsel %vm117_vm2, %v114_v39, 0.0 }
  0xe0   :  { %v120_v30 = vadd.f32 %v119_v28, %v118_v26  ;;  %v127_v40 = vsel %vm117_vm2, %v106_v35, 0.0 }
  0xe2   :  { %v122_v32 = vadd.f32 %v121_v31, %v120_v30 }
  0xe4   :  { %v124_v36 = vadd.f32 %v123_v33, %v122_v32 }
  0xe6   :  { %v126_v38 = vadd.f32 %v125_v34, %v124_v36 }
  0xe8   :  { %v128_v41 = vadd.f32 %v127_v40, %v126_v38 }
  0xea   :  { %v130_v43 = vadd.f32 %v129_v42, %v128_v41 }
  0xec   :  { %v132_v45 = vadd.f32 %v131_v44, %v130_v43 }
  0xee   :  { %v133_v46 = vrot.slane %v132_v45, 4 }
  0xf0   :  { %v134_v47 = vadd.f32 %v133_v46, %v132_v45 }
  0xf2   :  { %v135_v48 = vrot.slane %v134_v47, 2 }
  0xf4   :  { %v136_v49 = vadd.f32 %v135_v48, %v134_v47 }
  0xf6   :  { %v137_v50 = vrot.slane %v136_v49, 1 }
  0xf8   :  { %v138_v51 = vadd.f32 %v137_v50, %v136_v49 }
  0xfa   :  { %v140_v52 = vmul.f32 0.015625, %v138_v51 }
  0xfc   :  { %v141_v53 = vsub.f32 %v87_v18, %v140_v52  ;;  %v142_v54 = vsub.f32 %v90_v24, %v140_v52  ;;  %v143_v55 = vsub.f32 %v95_v23, %v140_v52  ;;  %v144_v56 = vsub.f32 %v98_v27, %v140_v52 }
  0xfd   :  { %v145_v57 = vsub.f32 %v103_v29, %v140_v52  ;;  %v146_v58 = vsub.f32 %v106_v35, %v140_v52  ;;  %v147_v59 = vsub.f32 %v111_v37, %v140_v52  ;;  %v148_v60 = vsub.f32 %v114_v39, %v140_v52 }
  0xfe   :  { %v149_v61 = vmul.f32 %v141_v53, %v141_v53  ;;  %v150_v62 = vmul.f32 %v142_v54, %v142_v54  ;;  %v151_v63 = vmul.f32 %v143_v55, %v143_v55  ;;  %v152_v0 = vmul.f32 %v144_v56, %v144_v56 }
  0xff   :  { %v153_v4 = vmul.f32 %v145_v57, %v145_v57  ;;  %v154_v7 = vmul.f32 %v146_v58, %v146_v58  ;;  %v155_v10 = vmul.f32 %v147_v59, %v147_v59  ;;  %v156_v13 = vmul.f32 %v148_v60, %v148_v60 }
 0x100   :  { %v157_v1 = vsel %vm117_vm2, %v149_v61, 0.0  ;;  %v158_v2 = vsel %vm117_vm2, %v150_v62, 0.0  ;;  %v160_v5 = vsel %vm117_vm2, %v151_v63, 0.0  ;;  %v162_v8 = vsel %vm117_vm2, %v152_v0, 0.0 }
 0x101   :  { %v159_v3 = vadd.f32 %v158_v2, %v157_v1  ;;  %v164_v11 = vsel %vm117_vm2, %v153_v4, 0.0  ;;  %v166_v14 = vsel %vm117_vm2, %v154_v7, 0.0  ;;  %v168_v16 = vsel %vm117_vm2, %v155_v10, 0.0 }
 0x102   :  { %v170_v18 = vsel %vm117_vm2, %v156_v13, 0.0 }
 0x103   :  { %v161_v6 = vadd.f32 %v160_v5, %v159_v3 }
 0x105   :  { %v163_v9 = vadd.f32 %v162_v8, %v161_v6 }
 0x107   :  { %v165_v12 = vadd.f32 %v164_v11, %v163_v9 }
 0x109   :  { %v167_v15 = vadd.f32 %v166_v14, %v165_v12 }
 0x10b   :  { %v169_v17 = vadd.f32 %v168_v16, %v167_v15 }
 0x10d   :  { %v171_v19 = vadd.f32 %v170_v18, %v169_v17 }
 0x10f   :  { %v172_v20 = vrot.slane %v171_v19, 4 }
 0x111   :  { %v173_v21 = vadd.f32 %v172_v20, %v171_v19 }
 0x113   :  { %v174_v22 = vrot.slane %v173_v21, 2 }
 0x115   :  { %v175_v23 = vadd.f32 %v174_v22, %v173_v21 }
 0x117   :  { %v176_v24 = vrot.slane %v175_v23, 1 }
 0x119   :  { %v177_v25 = vadd.f32 %v176_v24, %v175_v23 }
 0x11b   :  { %v178_v26 = vmul.f32 0.015625, %v177_v25 }
 0x11d   :  { %v179_v27 = vadd.f32 1e-05, %v178_v26 }
 0x11f   :  { %282 = vrsqrt.f32 %v179_v27 }
 0x129   :  { %v283_v28 = vpop.eup %282 }
 0x12a   :  { %v181_v29 = vmul.f32 %v283_v28, %v141_v53  ;;  %v182_v30 = vmul.f32 %v283_v28, %v142_v54  ;;  %v183_v31 = vmul.f32 %v283_v28, %v143_v55  ;;  %v184_v32 = vmul.f32 %v283_v28, %v144_v56 }
 0x12b   :  { %v185_v33 = vmul.f32 %v283_v28, %v145_v57  ;;  %v186_v34 = vmul.f32 %v283_v28, %v146_v58  ;;  %v187_v35 = vmul.f32 %v283_v28, %v147_v59  ;;  %v188_v36 = vmul.f32 %v283_v28, %v148_v60 }
 0x12c   :  { %v189_v37 = vmax.f32 %v181_v29, 0.0  ;;  %v190_v38 = vmax.f32 %v182_v30, 0.0  ;;  %v191_v39 = vmax.f32 %v183_v31, 0.0  ;;  %v192_v40 = vmax.f32 %v184_v32, 0.0 }
 0x12d   :  { %v193_v41 = vmax.f32 %v185_v33, 0.0  ;;  %v194_v42 = vmax.f32 %v186_v34, 0.0  ;;  %v195_v43 = vmax.f32 %v187_v35, 0.0  ;;  %v196_v44 = vmax.f32 %v188_v36, 0.0 }
 0x12e   :  { %v255_v45 = vpack.c.bf16 %v189_v37, %v189_v37  ;;  %v256_v46 = vpack.c.bf16 %v190_v38, %v190_v38  ;;  %v257_v47 = vpack.c.bf16 %v191_v39, %v191_v39  ;;  %v258_v48 = vpack.c.bf16 %v192_v40, %v192_v40 }
 0x12f   :  { %v259_v49 = vpack.c.bf16 %v193_v41, %v193_v41  ;;  %v260_v50 = vpack.c.bf16 %v194_v42, %v194_v42  ;;  %v261_v51 = vpack.c.bf16 %v195_v43, %v195_v43  ;;  %v262_v52 = vpack.c.bf16 %v196_v44, %v196_v44 }
 0x130   :  { %230 = vst.msk [vmem:[%s389_s3] sm:$0xf] %vm229_vm3, %v255_v45  ;;  %231 = vst.msk [vmem:[%s389_s3 + $0x4] sm:$0xf] %vm229_vm3, %v256_v46 }
 0x131   :  { %232 = vst.msk [vmem:[%s389_s3 + $0x8] sm:$0xf] %vm229_vm3, %v257_v47  ;;  %233 = vst.msk [vmem:[%s389_s3 + $0xc] sm:$0xf] %vm229_vm3, %v258_v48 }
 0x132   :  { %234 = vst.msk [vmem:[%s389_s3 + $0x10] sm:$0xf] %vm229_vm3, %v259_v49  ;;  %235 = vst.msk [vmem:[%s389_s3 + $0x14] sm:$0xf] %vm229_vm3, %v260_v50 }
 0x133   :  { %236 = vst.msk [vmem:[%s389_s3 + $0x18] sm:$0xf] %vm229_vm3, %v261_v51  ;;  %237 = vst.msk [vmem:[%s389_s3 + $0x1c] sm:$0xf] %vm229_vm3, %v262_v52 }

// kernel: _lambda_.32
= control target key start
LH: loop header
LB: loop body
LE: loop exit
PB: predicated region body
PF: predicated region fallthrough
CT: control target
= control target key end

     0   :  { %vm66_vm0 = vcmask 261120   ;;  %vm176_vm1 = vcmask 781312   ;;  %s317_s1 = inlined_call_operand.vmem [shape: bf16[32,96], index: 1, kind: input, shape index: {}]   ;;  %s318_s0 = inlined_call_operand.vmem [shape: bf16[64,32], index: 0, kind: input, shape index: {}]   ;;  %s319_s2 = inlined_call_operand.vmem [shape: f32[1,96], index: 2, kind: input, shape index: {}]   ;;  %s320_s3 = inlined_call_operand.vmem [shape: bf16[64,96], index: 3, kind: output, shape index: {}]  }
   0x1   :  { %v238_v0 = vld [vmem:[%s317_s1] sm:$0xff]   ;;  %v239_v1 = vld [vmem:[%s317_s1 + $0x8] sm:$0xff]   ;;  %v241_v3 = vld [vmem:[%s318_s0 + $0x10] sm:$0xff]  }
   0x2   :  { %222 = vmatprep.subr.bf16.mxu0 %v238_v0  ;;  %234 = vmatprep.subr.bf16.mxu1 %v238_v0  ;;  %v240_v2 = vld [vmem:[%s318_s0] sm:$0xff]   ;;  %v242_v4 = vld [vmem:[%s318_s0 + $0x8] sm:$0xff]   ;;  %v243_v5 = vld [vmem:[%s318_s0 + $0x18] sm:$0xff]  }
   0x3   :  { %223 = vmatpush3.bf16.msra.mxu0 %v238_v0  ;;  %236 = vmatpush3.bf16.msra.mxu1 %v238_v0  ;;  %v189_v6 = vld [vmem:[%s319_s2] ss:$0 sm:$0xff] }
   0x4   :  { %224 = vmatprep.subr.bf16.mxu0 %v239_v1  ;;  %235 = vmatprep.subr.bf16.mxu1 %v239_v1 }
   0x5   :  { %226 = vmatprep.mubr.msk.bf16.mxu0 %vm66_vm0, %v240_v2  ;;  %230 = vmatprep.mubr.msk.bf16.mxu1 %vm66_vm0, %v241_v3 }
   0x7   :  { %225 = vmatpush3.bf16.msra.mxu0 %v239_v1  ;;  %237 = vmatpush3.bf16.msra.mxu1 %v239_v1 }
   0xa   :  { %227 = vmatmul.mubr.msk.bf16.vlgmr.msra.gmra.mrb[0].mxu0 %vm66_vm0, %v242_v4  ;;  %231 = vmatmul.mubr.msk.bf16.vlgmr.msra.gmra.mrb[0].mxu1 %vm66_vm0, %v243_v5 }
  0xdd   :  { %v228_v7 = vpop.f32.mrb[0].mxu0  ;;  %v232_v8 = vpop.f32.mrb[0].mxu1 }
  0xde   :  { %v122_v9 = vadd.f32 %v228_v7, %v189_v6  ;;  %v138_v10 = vadd.f32 %v232_v8, %v189_v6  ;;  %v113_v11 = vpop.f32.mrb[1].mxu0  ;;  %v129_v12 = vpop.f32.mrb[1].mxu1 }
  0xdf   :  { %v114_v13 = vadd.f32 %v189_v6, %v113_v11  ;;  %v130_v14 = vadd.f32 %v189_v6, %v129_v12  ;;  %v229_v15 = vpop.f32.mrb[2].mxu0  ;;  %v233_v16 = vpop.f32.mrb[2].mxu1 }
  0xe0   :  { %v210_v17 = vpack.c.bf16 %v122_v9, %v122_v9  ;;  %v214_v18 = vpack.c.bf16 %v138_v10, %v138_v10  ;;  %v125_v19 = vadd.f32 %v229_v15, %v189_v6  ;;  %v141_v20 = vadd.f32 %v233_v16, %v189_v6  ;;  %v116_v21 = vpop.f32.mrb[3].mxu0  ;;  %v132_v22 = vpop.f32.mrb[3].mxu1 }
  0xe1   :  { %v208_v23 = vpack.c.bf16 %v114_v13, %v114_v13  ;;  %v212_v24 = vpack.c.bf16 %v130_v14, %v130_v14  ;;  %v117_v25 = vadd.f32 %v189_v6, %v116_v21  ;;  %v133_v26 = vadd.f32 %v189_v6, %v132_v22 }
  0xe2   :  { %179 = vst.msk [vmem:[%s320_s3 + $0x8] sm:$0xf] %vm176_vm1, %v210_v17  ;;  %183 = vst.msk [vmem:[%s320_s3 + $0x18] sm:$0xf] %vm176_vm1, %v214_v18  ;;  %v211_v27 = vpack.c.bf16 %v125_v19, %v125_v19  ;;  %v215_v28 = vpack.c.bf16 %v141_v20, %v141_v20 }
  0xe3   :  { %177 = vst.msk [vmem:[%s320_s3] sm:$0xf] %vm176_vm1, %v208_v23  ;;  %181 = vst.msk [vmem:[%s320_s3 + $0x10] sm:$0xf] %vm176_vm1, %v212_v24  ;;  %v209_v29 = vpack.c.bf16 %v117_v25, %v117_v25  ;;  %v213_v30 = vpack.c.bf16 %v133_v26, %v133_v26 }
  0xe4   :  { %180 = vst.msk [vmem:[%s320_s3 + $0xc] sm:$0xf] %vm176_vm1, %v211_v27  ;;  %184 = vst.msk [vmem:[%s320_s3 + $0x1c] sm:$0xf] %vm176_vm1, %v215_v28 }
  0xe5   :  { %178 = vst.msk [vmem:[%s320_s3 + $0x4] sm:$0xf] %vm176_vm1, %v209_v29  ;;  %182 = vst.msk [vmem:[%s320_s3 + $0x14] sm:$0xf] %vm176_vm1, %v213_v30 }

// kernel: _lambda_.37
= control target key start
LH: loop header
LB: loop body
LE: loop exit
PB: predicated region body
PF: predicated region fallthrough
CT: control target
= control target key end

     0   :  { %vm66_vm0 = vcmask 261120   ;;  %vm144_vm1 = vcmask 523264   ;;  %vm256_vm2 = vcmask 519168   ;;  %s419_s1 = inlined_call_operand.vmem [shape: bf16[32,64], index: 1, kind: input, shape index: {}]   ;;  %s420_s0 = inlined_call_operand.vmem [shape: bf16[64,32], index: 0, kind: input, shape index: {}]   ;;  %s421_s2 = inlined_call_operand.vmem [shape: f32[1,64], index: 2, kind: input, shape index: {}]   ;;  %s422_s3 = inlined_call_operand.vmem [shape: bf16[64,64], index: 3, kind: output, shape index: {}]  }
   0x1   :  { %v318_v0 = vld [vmem:[%s419_s1] sm:$0xff]   ;;  %v319_v1 = vld [vmem:[%s419_s1 + $0x8] sm:$0xff]   ;;  %v322_v3 = vld [vmem:[%s420_s0 + $0x10] sm:$0xff]  }
   0x2   :  { %302 = vmatprep.subr.bf16.mxu0 %v318_v0  ;;  %314 = vmatprep.subr.bf16.mxu1 %v318_v0  ;;  %v320_v2 = vld [vmem:[%s420_s0] sm:$0xff]   ;;  %v321_v4 = vld [vmem:[%s420_s0 + $0x8] sm:$0xff]   ;;  %v323_v5 = vld [vmem:[%s420_s0 + $0x18] sm:$0xff]  }
   0x3   :  { %303 = vmatpush3.bf16.msra.mxu0 %v318_v0  ;;  %316 = vmatpush3.bf16.msra.mxu1 %v318_v0  ;;  %v269_v6 = vld [vmem:[%s421_s2] ss:$0 sm:$0xff] }
   0x4   :  { %304 = vmatprep.subr.bf16.mxu0 %v319_v1  ;;  %306 = vmatprep.mubr.msk.bf16.mxu0 %vm66_vm0, %v320_v2 }
   0x5   :  { %315 = vmatprep.subr.bf16.mxu1 %v319_v1  ;;  %310 = vmatprep.mubr.msk.bf16.mxu1 %vm66_vm0, %v322_v3 }
   0x7   :  { %305 = vmatpush3.bf16.msra.mxu0 %v319_v1  ;;  %317 = vmatpush3.bf16.msra.mxu1 %v319_v1 }
   0xa   :  { %307 = vmatmul.mubr.msk.bf16.vlgmr.msra.gmra.mrb[0].mxu0 %vm66_vm0, %v321_v4  ;;  %311 = vmatmul.mubr.msk.bf16.vlgmr.msra.gmra.mrb[0].mxu1 %vm66_vm0, %v323_v5 }
  0xdd   :  { %v308_v7 = vpop.f32.mrb[0].mxu0  ;;  %v312_v8 = vpop.f32.mrb[0].mxu1 }
  0xde   :  { %v113_v9 = vpop.f32.mrb[1].mxu0  ;;  %v129_v10 = vpop.f32.mrb[1].mxu1  ;;  %v122_v16 = vadd.f32 %v308_v7, %v269_v6  ;;  %v138_v29 = vadd.f32 %v312_v8, %v269_v6 }
  0xdf   :  { %v114_v11 = vadd.f32 %v269_v6, %v113_v9  ;;  %v309_v12 = vpop.f32.mrb[2].mxu0  ;;  %v313_v13 = vpop.f32.mrb[2].mxu1  ;;  %v130_v21 = vadd.f32 %v269_v6, %v129_v10 }
  0xe0   :  { %v116_v14 = vpop.f32.mrb[3].mxu0  ;;  %v132_v15 = vpop.f32.mrb[3].mxu1  ;;  %v125_v19 = vadd.f32 %v309_v12, %v269_v6  ;;  %v148_v23 = vsel %vm144_vm1, %v122_v16, 0.0  ;;  %v141_v31 = vadd.f32 %v313_v13, %v269_v6  ;;  %v156_v34 = vsel %vm144_vm1, %v138_v29, 0.0 }
  0xe1   :  { %v117_v17 = vadd.f32 %v269_v6, %v116_v14  ;;  %v145_v18 = vsel %vm144_vm1, %v114_v11, 0.0  ;;  %v152_v26 = vsel %vm144_vm1, %v130_v21, 0.0  ;;  %v133_v27 = vadd.f32 %v269_v6, %v132_v15 }
  0xe2   :  { %v150_v25 = vsel %vm144_vm1, %v125_v19, 0.0  ;;  %v158_v36 = vsel %vm144_vm1, %v141_v31, 0.0 }
  0xe3   :  { %v146_v20 = vsel %vm144_vm1, %v117_v17, 0.0  ;;  %v154_v32 = vsel %vm144_vm1, %v133_v27, 0.0 }
  0xe4   :  { %v147_v22 = vadd.f32 %v146_v20, %v145_v18 }
  0xe6   :  { %v149_v24 = vadd.f32 %v148_v23, %v147_v22 }
  0xe8   :  { %v151_v28 = vadd.f32 %v150_v25, %v149_v24 }
  0xea   :  { %v153_v30 = vadd.f32 %v152_v26, %v151_v28 }
  0xec   :  { %v155_v33 = vadd.f32 %v154_v32, %v153_v30 }
  0xee   :  { %v157_v35 = vadd.f32 %v156_v34, %v155_v33 }
  0xf0   :  { %v159_v37 = vadd.f32 %v158_v36, %v157_v35 }
  0xf2   :  { %v160_v38 = vrot.slane %v159_v37, 4 }
  0xf4   :  { %v161_v39 = vadd.f32 %v160_v38, %v159_v37 }
  0xf6   :  { %v162_v40 = vrot.slane %v161_v39, 2 }
  0xf8   :  { %v163_v41 = vadd.f32 %v162_v40, %v161_v39 }
  0xfa   :  { %v164_v42 = vrot.slane %v163_v41, 1 }
  0xfc   :  { %v165_v43 = vadd.f32 %v164_v42, %v163_v41 }
  0xfe   :  { %v167_v44 = vmul.f32 0.015625, %v165_v43 }
 0x100   :  { %v168_v45 = vsub.f32 %v114_v11, %v167_v44  ;;  %v169_v46 = vsub.f32 %v117_v17, %v167_v44  ;;  %v170_v47 = vsub.f32 %v122_v16, %v167_v44  ;;  %v171_v48 = vsub.f32 %v125_v19, %v167_v44 }
 0x101   :  { %v172_v49 = vsub.f32 %v130_v21, %v167_v44  ;;  %v173_v50 = vsub.f32 %v133_v27, %v167_v44  ;;  %v174_v51 = vsub.f32 %v138_v29, %v167_v44  ;;  %v175_v52 = vsub.f32 %v141_v31, %v167_v44 }
 0x102   :  { %v176_v53 = vmul.f32 %v168_v45, %v168_v45  ;;  %v177_v54 = vmul.f32 %v169_v46, %v169_v46  ;;  %v178_v55 = vmul.f32 %v170_v47, %v170_v47  ;;  %v179_v56 = vmul.f32 %v171_v48, %v171_v48 }
 0x103   :  { %v180_v60 = vmul.f32 %v172_v49, %v172_v49  ;;  %v181_v63 = vmul.f32 %v173_v50, %v173_v50  ;;  %v182_v2 = vmul.f32 %v174_v51, %v174_v51  ;;  %v183_v5 = vmul.f32 %v175_v52, %v175_v52 }
 0x104   :  { %v184_v57 = vsel %vm144_vm1, %v176_v53, 0.0  ;;  %v185_v58 = vsel %vm144_vm1, %v177_v54, 0.0  ;;  %v187_v61 = vsel %vm144_vm1, %v178_v55, 0.0  ;;  %v189_v0 = vsel %vm144_vm1, %v179_v56, 0.0 }
 0x105   :  { %v186_v59 = vadd.f32 %v185_v58, %v184_v57  ;;  %v191_v3 = vsel %vm144_vm1, %v180_v60, 0.0  ;;  %v193_v6 = vsel %vm144_vm1, %v181_v63, 0.0  ;;  %v195_v8 = vsel %vm144_vm1, %v182_v2, 0.0 }
 0x106   :  { %v197_v10 = vsel %vm144_vm1, %v183_v5, 0.0 }
 0x107   :  { %v188_v62 = vadd.f32 %v187_v61, %v186_v59 }
 0x109   :  { %v190_v1 = vadd.f32 %v189_v0, %v188_v62 }
 0x10b   :  { %v192_v4 = vadd.f32 %v191_v3, %v190_v1 }
 0x10d   :  { %v194_v7 = vadd.f32 %v193_v6, %v192_v4 }
 0x10f   :  { %v196_v9 = vadd.f32 %v195_v8, %v194_v7 }
 0x111   :  { %v198_v11 = vadd.f32 %v197_v10, %v196_v9 }
 0x113   :  { %v199_v12 = vrot.slane %v198_v11, 4 }
 0x115   :  { %v200_v13 = vadd.f32 %v199_v12, %v198_v11 }
 0x117   :  { %v201_v14 = vrot.slane %v200_v13, 2 }
 0x119   :  { %v202_v15 = vadd.f32 %v201_v14, %v200_v13 }
 0x11b   :  { %v203_v16 = vrot.slane %v202_v15, 1 }
 0x11d   :  { %v204_v17 = vadd.f32 %v203_v16, %v202_v15 }
 0x11f   :  { %v205_v18 = vmul.f32 0.015625, %v204_v17 }
 0x121   :  { %v206_v19 = vadd.f32 1e-05, %v205_v18 }
 0x123   :  { %324 = vrsqrt.f32 %v206_v19 }
 0x12d   :  { %v325_v20 = vpop.eup %324 }
 0x12e   :  { %v208_v21 = vmul.f32 %v325_v20, %v168_v45  ;;  %v209_v22 = vmul.f32 %v325_v20, %v169_v46  ;;  %v210_v23 = vmul.f32 %v325_v20, %v170_v47  ;;  %v211_v24 = vmul.f32 %v325_v20, %v171_v48 }
 0x12f   :  { %v212_v25 = vmul.f32 %v325_v20, %v172_v49  ;;  %v213_v26 = vmul.f32 %v325_v20, %v173_v50  ;;  %v214_v27 = vmul.f32 %v325_v20, %v174_v51  ;;  %v215_v28 = vmul.f32 %v325_v20, %v175_v52 }
 0x130   :  { %v216_v29 = vmax.f32 %v208_v21, 0.0  ;;  %v217_v30 = vmax.f32 %v209_v22, 0.0  ;;  %v218_v31 = vmax.f32 %v210_v23, 0.0  ;;  %v219_v32 = vmax.f32 %v211_v24, 0.0 }
 0x131   :  { %v220_v33 = vmax.f32 %v212_v25, 0.0  ;;  %v221_v34 = vmax.f32 %v213_v26, 0.0  ;;  %v222_v35 = vmax.f32 %v214_v27, 0.0  ;;  %v223_v36 = vmax.f32 %v215_v28, 0.0 }
 0x132   :  { %v288_v37 = vpack.c.bf16 %v216_v29, %v216_v29  ;;  %v289_v38 = vpack.c.bf16 %v217_v30, %v217_v30  ;;  %v290_v39 = vpack.c.bf16 %v218_v31, %v218_v31  ;;  %v291_v40 = vpack.c.bf16 %v219_v32, %v219_v32 }
 0x133   :  { %v292_v41 = vpack.c.bf16 %v220_v33, %v220_v33  ;;  %v293_v42 = vpack.c.bf16 %v221_v34, %v221_v34  ;;  %v294_v43 = vpack.c.bf16 %v222_v35, %v222_v35  ;;  %v295_v44 = vpack.c.bf16 %v223_v36, %v223_v36 }
 0x134   :  { %257 = vst.msk [vmem:[%s422_s3] sm:$0xf] %vm256_vm2, %v288_v37  ;;  %258 = vst.msk [vmem:[%s422_s3 + $0x4] sm:$0xf] %vm256_vm2, %v289_v38 }
 0x135   :  { %259 = vst.msk [vmem:[%s422_s3 + $0x8] sm:$0xf] %vm256_vm2, %v290_v39  ;;  %260 = vst.msk [vmem:[%s422_s3 + $0xc] sm:$0xf] %vm256_vm2, %v291_v40 }
 0x136   :  { %261 = vst.msk [vmem:[%s422_s3 + $0x10] sm:$0xf] %vm256_vm2, %v292_v41  ;;  %262 = vst.msk [vmem:[%s422_s3 + $0x14] sm:$0xf] %vm256_vm2, %v293_v42 }
 0x137   :  { %263 = vst.msk [vmem:[%s422_s3 + $0x18] sm:$0xf] %vm256_vm2, %v294_v43  ;;  %264 = vst.msk [vmem:[%s422_s3 + $0x1c] sm:$0xf] %vm256_vm2, %v295_v44 }

// kernel: _lambda_.33
= control target key start
LH: loop header
LB: loop body
LE: loop exit
PB: predicated region body
PF: predicated region fallthrough
CT: control target
= control target key end

     0   :  { %v3950_v0 = vmov 2   ;;  %v3951_v1 = vmov 1   ;;  %v3952_v19 = vmov 0   ;;  %vm665_vm0 = vcmask 523264   ;;  %s5908_s2 = inlined_call_operand.vmem [shape: f32[5,64,3], index: 2, kind: input, shape index: {}]   ;;  %s5909_s4 = inlined_call_operand.vmem [shape: f32[64,3], index: 4, kind: input, shape index: {}]   ;;  %s5910_s7 = inlined_call_operand.vmem [shape: bf16[64,32], index: 7, kind: input, shape index: {}]   ;;  %s5911_s5 = inlined_call_operand.vmem [shape: f32[3,64], index: 5, kind: input, shape index: {}]   ;;  %s5912_s6 = inlined_call_operand.vmem [shape: f32[1,64], index: 6, kind: input, shape index: {}]   ;;  %s5913_s1 = inlined_call_operand.vmem [shape: bf16[5,64,32], index: 1, kind: input, shape index: {}]   ;;  %s5914_s0 = inlined_call_operand.vmem [shape: bf16[5,64,32], index: 0, kind: input, shape index: {}]   ;;  %s5915_s9 = inlined_call_operand.vmem [shape: bf16[32,64], index: 9, kind: input, shape index: {}]   ;;  %s5916_s3 = inlined_call_operand.vmem [shape: bf16[64,32], index: 3, kind: input, shape index: {}]   ;;  %s5917_s8 = inlined_call_operand.vmem [shape: f32[1,32], index: 8, kind: input, shape index: {}]   ;;  %s5918_s11 = inlined_call_operand.vmem [shape: bf16[64,32], index: 11, kind: input, shape index: {}]   ;;  %s5919_s10 = inlined_call_operand.vmem [shape: f32[1,64], index: 10, kind: input, shape index: {}]   ;;  %s5920_s12 = inlined_call_operand.vmem [shape: f32[1,32], index: 12, kind: input, shape index: {}]   ;;  %s5921_s13 = inlined_call_operand.vmem [shape: bf16[64,32], index: 13, kind: output, shape index: {}]  }
   0x1   :  { %3692 = vset.pattern.permute.xlu0 %v3950_v0  ;;  %3688 = vset.pattern.permute.xlu1 %v3951_v1  ;;  %v4028_v2 = vld [vmem:[%s5909_s4 + $0x8] sm:$0xff]  ;;  %v4036_v4 = vld [vmem:[%s5909_s4] sm:$0xff]  ;;  %v4055_v11 = vld [vmem:[%s5909_s4 + $0x38] sm:$0xff]  ;;  %vm861_vm1 = vcmask 261120   ;;  %vm3125_vm2 = vcmask 257024  }
   0x2   :  { %v95_v3 = vld [vmem:[%s5908_s2 + $0x8] sm:$0xff]  ;;  %v94_v6 = vld [vmem:[%s5908_s2] sm:$0xff]  ;;  %v101_v12 = vld [vmem:[%s5908_s2 + $0x38] sm:$0xff] }
   0x3   :  { %v103_v5 = vsub.f32 %v4028_v2, %v95_v3  ;;  %v4045_v7 = vld [vmem:[%s5909_s4 + $0x20] sm:$0xff]  ;;  %v102_v9 = vsub.f32 %v4036_v4, %v94_v6  ;;  %v4063_v13 = vld [vmem:[%s5909_s4 + $0x18] sm:$0xff]  ;;  %v109_v15 = vsub.f32 %v4055_v11, %v101_v12  ;;  %v3139_v16 = vld [vmem:[%s5908_s2 + $0x48] sm:$0xff] }
   0x4   :  { %v98_v8 = vld [vmem:[%s5908_s2 + $0x20] sm:$0xff]  ;;  %v97_v14 = vld [vmem:[%s5908_s2 + $0x18] sm:$0xff]  ;;  %v4074_v18 = vsub.f32 %v4028_v2, %v3139_v16  ;;  %v4083_v20 = vld [vmem:[%s5909_s4 + $0x10] sm:$0xff] }
   0x5   :  { %494 = vperm.xlu0 %3692, %v103_v5   ;;  %v106_v10 = vsub.f32 %v4045_v7, %v98_v8  ;;  %390 = vperm.xlu1 %3688, %v102_v9   ;;  %v105_v17 = vsub.f32 %v4063_v13, %v97_v14  ;;  %v96_v21 = vld [vmem:[%s5908_s2 + $0x10] sm:$0xff]  ;;  %v4093_v23 = vld [vmem:[%s5909_s4 + $0x28] sm:$0xff]  ;;  %v3142_v28 = vld [vmem:[%s5908_s2 + $0x60] sm:$0xff] }
   0x6   :  { %v104_v22 = vsub.f32 %v4083_v20, %v96_v21  ;;  %v99_v24 = vld [vmem:[%s5908_s2 + $0x28] sm:$0xff]  ;;  %v3140_v26 = vld [vmem:[%s5908_s2 + $0x50] sm:$0xff]  ;;  %v4121_v31 = vsub.f32 %v4045_v7, %v3142_v28  ;;  %v4128_v33 = vld [vmem:[%s5910_s7] sm:$0xff]  }
   0x7   :  { %v107_v25 = vsub.f32 %v4093_v23, %v99_v24  ;;  %v4105_v27 = vsub.f32 %v4083_v20, %v3140_v26  ;;  %v4113_v29 = vld [vmem:[%s5909_s4 + $0x30] sm:$0xff]  ;;  %3505 = vmatprep.subr.bf16.mxu0 %v4128_v33  ;;  %v4137_v34 = vld [vmem:[%s5910_s7 + $0x8] sm:$0xff]   ;;  %v4152_v36 = vld [vmem:[%s5910_s7 + $0x18] sm:$0xff]  }
   0x8   :  { %v100_v30 = vld [vmem:[%s5908_s2 + $0x30] sm:$0xff]  ;;  %3506 = vmatpush3.bf16.msra.mxu0 %v4128_v33  ;;  %v3143_v37 = vld [vmem:[%s5908_s2 + $0x68] sm:$0xff]  ;;  %v3138_v39 = vld [vmem:[%s5908_s2 + $0x40] sm:$0xff] }
   0x9   :  { %506 = vperm.xlu0 %3692, %v106_v10   ;;  %394 = vperm.xlu1 %3688, %v103_v5   ;;  %v108_v32 = vsub.f32 %v4113_v29, %v100_v30  ;;  %v4144_v35 = vld [vmem:[%s5910_s7 + $0x10] sm:$0xff]   ;;  %v4163_v38 = vsub.f32 %v4093_v23, %v3143_v37  ;;  %v119_v41 = vsub.f32 %v4036_v4, %v3138_v39  ;;  %v3145_v43 = vld [vmem:[%s5908_s2 + $0x78] sm:$0xff]  ;;  %v3217_v45 = vld [vmem:[%s5908_s2 + $0x88] sm:$0xff] }
   0xa   :  { %3507 = vmatprep.subr.bf16.mxu0 %v4137_v34  ;;  %v3144_v40 = vld [vmem:[%s5908_s2 + $0x70] sm:$0xff]  ;;  %v126_v44 = vsub.f32 %v4055_v11, %v3145_v43  ;;  %v3141_v46 = vld [vmem:[%s5908_s2 + $0x58] sm:$0xff]  ;;  %v4193_v47 = vsub.f32 %v4028_v2, %v3217_v45  ;;  %v3220_v49 = vld [vmem:[%s5908_s2 + $0xa0] sm:$0xff] }
   0xb   :  { %v4174_v42 = vsub.f32 %v4113_v29, %v3144_v40  ;;  %v122_v48 = vsub.f32 %v4063_v13, %v3141_v46  ;;  %v4202_v50 = vsub.f32 %v4045_v7, %v3220_v49  ;;  %v3223_v51 = vld [vmem:[%s5908_s2 + $0xb8] sm:$0xff]  ;;  %v3225_v53 = vld [vmem:[%s5908_s2 + $0xc8] sm:$0xff]  ;;  %v3218_v55 = vld [vmem:[%s5908_s2 + $0x90] sm:$0xff] }
   0xc   :  { %3508 = vmatpush3.bf16.msra.mxu0 %v4137_v34  ;;  %v4209_v52 = vsub.f32 %v4055_v11, %v3223_v51  ;;  %v4217_v54 = vsub.f32 %v4028_v2, %v3225_v53  ;;  %v4228_v56 = vsub.f32 %v4083_v20, %v3218_v55  ;;  %v3226_v57 = vld [vmem:[%s5908_s2 + $0xd0] sm:$0xff]  ;;  %v3228_v59 = vld [vmem:[%s5908_s2 + $0xe0] sm:$0xff]  ;;  %v3221_v61 = vld [vmem:[%s5908_s2 + $0xa8] sm:$0xff] }
   0xd   :  { %518 = vperm.xlu0 %3692, %v109_v15   ;;  %3689 = vset.pattern.permute.xlu1 %v3952_v19  ;;  %v4241_v58 = vsub.f32 %v4083_v20, %v3226_v57  ;;  %v4249_v60 = vsub.f32 %v4045_v7, %v3228_v59  ;;  %v4260_v62 = vsub.f32 %v4093_v23, %v3221_v61  ;;  %v3222_v63 = vld [vmem:[%s5908_s2 + $0xb0] sm:$0xff]  ;;  %v369_v7 = vlaneseq  ;;  %v3216_v8 = vld [vmem:[%s5908_s2 + $0x80] sm:$0xff] }
   0xe   :  { %306 = vperm.xlu1 %3689, %v105_v17   ;;  %3509 = vmatprep.subr.bf16.mxu0 %v4144_v35  ;;  %v1335_v12 = vsub.f32 %v4036_v4, %v3216_v8  ;;  %v4310_v46 = vld [vmem:[%s5912_s6] ss:$0 sm:$0xff] }
   0xf   :  { %v370_v14 = vshrl.u32 %v369_v7, 7 }
  0x10   :  { %3510 = vmatpush3.bf16.msra.mxu0 %v4144_v35 }
  0x11   :  { %526 = vperm.xlu0 %3692, %v4074_v18   ;;  %3511 = vmatprep.subr.bf16.mxu0 %v4152_v36  ;;  %v455_v16 = vsub.s32 1, %v370_v14  ;;  %v371_v20 = vsub.s32 0, %v370_v14 }
  0x12   :  { %3690 = vset.pattern.permute.xlu1 %v3951_v1 }
  0x13   :  { %402 = vperm.xlu1 %3690, %v105_v17  }
  0x14   :  { %3512 = vmatpush3.bf16.msra.mxu0 %v4152_v36 }
  0x15   :  { %3703 = vset.pattern.permute.xlu0 %v3952_v19  ;;  %3573 = vmatprep.subr.bf16.mxu0 %v4128_v33 }
  0x16   :  { %291 = vperm.xlu0 %3703, %v102_v9  }
  0x17   :  { %3691 = vset.pattern.permute.xlu1 %v3950_v0 }
  0x18   :  { %490 = vperm.xlu1 %3691, %v102_v9  }
  0x1a   :  { %296 = vperm.xlu0 %3703, %v103_v5   ;;  %v4269_v5 = vsub.f32 %v4113_v29, %v3222_v63 }
  0x1c   :  { %498 = vperm.xlu1 %3691, %v104_v22  }
  0x1e   :  { %301 = vperm.xlu0 %3703, %v104_v22  }
  0x20   :  { %502 = vperm.xlu1 %3691, %v105_v17  }
  0x22   :  { %311 = vperm.xlu0 %3703, %v106_v10  }
  0x24   :  { %3693 = vset.pattern.permute.xlu1 %v3952_v19 }
  0x25   :  { %316 = vperm.xlu1 %3693, %v107_v25  }
  0x26   :  { %336 = vperm.xlu0 %3703, %v4074_v18  }
  0x29   :  { %3694 = vset.pattern.permute.xlu1 %v3951_v1 }
  0x2a   :  { %341 = vperm.xlu0 %3703, %v4105_v27   ;;  %406 = vperm.xlu1 %3694, %v106_v10  }
  0x2e   :  { %351 = vperm.xlu0 %3703, %v4121_v31   ;;  %3695 = vset.pattern.permute.xlu1 %v3952_v19 }
  0x2f   :  { %321 = vperm.xlu1 %3695, %v108_v32  }
  0x32   :  { %3704 = vset.pattern.permute.xlu0 %v3951_v1 }
  0x33   :  { %398 = vperm.xlu0 %3704, %v104_v22   ;;  %326 = vperm.xlu1 %3695, %v109_v15   ;;  %v555_v22 = vsub.s32 2, %v370_v14 }
  0x37   :  { %410 = vperm.xlu0 %3704, %v107_v25   ;;  %3696 = vset.pattern.permute.xlu1 %v3951_v1 }
  0x38   :  { %418 = vperm.xlu1 %3696, %v109_v15  }
  0x3b   :  { %414 = vperm.xlu0 %3704, %v108_v32  }
  0x3c   :  { %3697 = vset.pattern.permute.xlu1 %v3950_v0 }
  0x3d   :  { %510 = vperm.xlu1 %3697, %v107_v25  }
  0x3f   :  { %430 = vperm.xlu0 %3704, %v4105_v27  }
  0x41   :  { %514 = vperm.xlu1 %3697, %v108_v32  }
  0x43   :  { %442 = vperm.xlu0 %3704, %v4163_v38  }
  0x45   :  { %3698 = vset.pattern.permute.xlu1 %v3952_v19 }
  0x46   :  { %331 = vperm.xlu1 %3698, %v119_v41  }
  0x47   :  { %446 = vperm.xlu0 %3704, %v4174_v42  }
  0x4a   :  { %3699 = vset.pattern.permute.xlu1 %v3951_v1 }
  0x4b   :  { %3709 = vset.pattern.permute.xlu0 %v3950_v0  ;;  %422 = vperm.xlu1 %3699, %v119_v41  }
  0x4c   :  { %538 = vperm.xlu0 %3709, %v4121_v31  }
  0x4f   :  { %426 = vperm.xlu1 %3699, %v4074_v18   ;;  %v45_v18 = vld [vmem:[%s5911_s5] sm:$0x7] }
  0x50   :  { %550 = vperm.xlu0 %3709, %v126_v44   ;;  %v4289_v24 = vrot.slane %v45_v18, %v455_v16  ;;  %v4291_v26 = vrot.slane %v45_v18, %v371_v20  ;;  %v4296_v28 = vrot.slane %v45_v18, %v555_v22 }
  0x53   :  { %3700 = vset.pattern.permute.xlu1 %v3952_v19 }
  0x54   :  { %1721 = vperm.xlu0 %3709, %v4193_v47   ;;  %346 = vperm.xlu1 %3700, %v122_v48  }
  0x58   :  { %1733 = vperm.xlu0 %3709, %v4202_v50   ;;  %3701 = vset.pattern.permute.xlu1 %v3951_v1 }
  0x59   :  { %434 = vperm.xlu1 %3701, %v122_v48  }
  0x5c   :  { %1745 = vperm.xlu0 %3709, %v4209_v52  }
  0x5d   :  { %3702 = vset.pattern.permute.xlu1 %v3950_v0 }
  0x5e   :  { %522 = vperm.xlu1 %3702, %v119_v41  }
  0x60   :  { %1753 = vperm.xlu0 %3709, %v4217_v54  }
  0x62   :  { %530 = vperm.xlu1 %3702, %v4105_v27   ;;  %v3219_v27 = vld [vmem:[%s5908_s2 + $0x98] sm:$0xff] }
  0x63   :  { %v1338_v37 = vsub.f32 %v4063_v13, %v3219_v27 }
  0x64   :  { %3726 = vset.pattern.permute.xlu0 %v3952_v19 }
  0x65   :  { %1531 = vperm.xlu0 %3726, %v4193_v47  }
  0x66   :  { %534 = vperm.xlu1 %3702, %v122_v48  }
  0x69   :  { %1536 = vperm.xlu0 %3726, %v4228_v56  }
  0x6a   :  { %3705 = vset.pattern.permute.xlu1 %v3952_v19 }
  0x6b   :  { %356 = vperm.xlu1 %3705, %v4163_v38  }
  0x6d   :  { %1546 = vperm.xlu0 %3726, %v4202_v50  }
  0x6f   :  { %3706 = vset.pattern.permute.xlu1 %v3951_v1 }
  0x70   :  { %438 = vperm.xlu1 %3706, %v4121_v31  }
  0x71   :  { %1571 = vperm.xlu0 %3726, %v4217_v54  }
  0x74   :  { %3707 = vset.pattern.permute.xlu1 %v3952_v19 }
  0x75   :  { %1576 = vperm.xlu0 %3726, %v4241_v58   ;;  %361 = vperm.xlu1 %3707, %v4174_v42  }
  0x79   :  { %1586 = vperm.xlu0 %3726, %v4249_v60   ;;  %366 = vperm.xlu1 %3707, %v126_v44  }
  0x7d   :  { %3727 = vset.pattern.permute.xlu0 %v3951_v1  ;;  %3708 = vset.pattern.permute.xlu1 %v3951_v1 }
  0x7e   :  { %1629 = vperm.xlu0 %3727, %v4228_v56   ;;  %450 = vperm.xlu1 %3708, %v126_v44  }
  0x82   :  { %1641 = vperm.xlu0 %3727, %v4260_v62   ;;  %3710 = vset.pattern.permute.xlu1 %v3950_v0 }
  0x83   :  { %542 = vperm.xlu1 %3710, %v4163_v38  }
  0x84   :  { %v495_v3 = vpop.permute.xlu0 %494  ;;  %v391_v6 = vpop.permute.xlu1 %390 }
  0x85   :  { %v457_v31 = vmul.f32 %v4289_v24, %v391_v6 }
  0x86   :  { %1645 = vperm.xlu0 %3727, %v4269_v5  }
  0x87   :  { %546 = vperm.xlu1 %3710, %v4174_v42   ;;  %v558_v42 = vmul.f32 %v4296_v28, %v495_v3 }
  0x88   :  { %v4276_v9 = vpop.permute.xlu0 %506  ;;  %v395_v10 = vpop.permute.xlu1 %394 }
  0x89   :  { %v458_v43 = vmul.f32 %v4289_v24, %v395_v10 }
  0x8a   :  { %1661 = vperm.xlu0 %3727, %v4241_v58  }
  0x8b   :  { %3711 = vset.pattern.permute.xlu1 %v3952_v19 }
  0x8c   :  { %v4281_v15 = vpop.permute.xlu0 %518  ;;  %1526 = vperm.xlu1 %3711, %v1335_v12  }
  0x8d   :  { %v307_v17 = vpop.permute.xlu1 %306 }
  0x8e   :  { %v376_v18 = vmul.f32 %v4291_v26, %v307_v17 }
  0x90   :  { %v4286_v21 = vpop.permute.xlu0 %526  ;;  %3712 = vset.pattern.permute.xlu1 %v3951_v1 }
  0x91   :  { %1621 = vperm.xlu1 %3712, %v1335_v12  }
  0x92   :  { %v403_v25 = vpop.permute.xlu1 %402 }
  0x93   :  { %v460_v14 = vmul.f32 %v4289_v24, %v403_v25 }
  0x95   :  { %v292_v30 = vpop.permute.xlu0 %291  ;;  %1625 = vperm.xlu1 %3712, %v4193_v47   ;;  %v476_v22 = vadd.f32 %v460_v14, %v376_v18 }
  0x96   :  { %v373_v32 = vmul.f32 %v4291_v26, %v292_v30 }
  0x97   :  { %v491_v39 = vpop.permute.xlu1 %490 }
  0x98   :  { %v473_v38 = vadd.f32 %v457_v31, %v373_v32  ;;  %v557_v40 = vmul.f32 %v4296_v28, %v491_v39 }
  0x99   :  { %v297_v41 = vpop.permute.xlu0 %296  ;;  %3713 = vset.pattern.permute.xlu1 %v3952_v19 }
  0x9a   :  { %v374_v44 = vmul.f32 %v4291_v26, %v297_v41  ;;  %v573_v45 = vadd.f32 %v557_v40, %v473_v38  ;;  %1541 = vperm.xlu1 %3713, %v1338_v37  }
  0x9b   :  { %v499_v48 = vpop.permute.xlu1 %498 }
  0x9c   :  { %v474_v47 = vadd.f32 %v458_v43, %v374_v44  ;;  %v595_v53 = vadd.f32 %v4310_v46, %v573_v45  ;;  %v559_v17 = vmul.f32 %v4296_v28, %v499_v48  ;;  %v561_v43 = vmul.f32 %v4296_v28, %v4276_v9 }
  0x9d   :  { %v302_v49 = vpop.permute.xlu0 %301  ;;  %v564_v9 = vmul.f32 %v4296_v28, %v4281_v15 }
  0x9e   :  { %v574_v51 = vadd.f32 %v558_v42, %v474_v47  ;;  %3714 = vset.pattern.permute.xlu1 %v3951_v1  ;;  %v611_v61 = vmax.f32 %v595_v53, 0.0  ;;  %v375_v27 = vmul.f32 %v4291_v26, %v302_v49  ;;  %v3229_v42 = vld [vmem:[%s5908_s2 + $0xe8] sm:$0xff] }
  0x9f   :  { %1633 = vperm.xlu1 %3714, %v1338_v37   ;;  %v503_v55 = vpop.permute.xlu1 %502  ;;  %v4343_v47 = vsub.f32 %v4093_v23, %v3229_v42 }
  0xa0   :  { %v596_v57 = vadd.f32 %v4310_v46, %v574_v51  ;;  %v560_v20 = vmul.f32 %v4296_v28, %v503_v55 }
  0xa1   :  { %v312_v59 = vpop.permute.xlu0 %311  ;;  %1673 = vperm.xlu0 %3727, %v4343_v47  }
  0xa2   :  { %v612_v63 = vmax.f32 %v596_v57, 0.0  ;;  %v576_v30 = vadd.f32 %v560_v20, %v476_v22  ;;  %v377_v32 = vmul.f32 %v4291_v26, %v312_v59 }
  0xa3   :  { %3715 = vset.pattern.permute.xlu1 %v3950_v0 }
  0xa4   :  { %v627_v3 = vpack.c.bf16 %v612_v63, %v611_v61  ;;  %1717 = vperm.xlu1 %3715, %v1335_v12   ;;  %v317_v6 = vpop.permute.xlu1 %316  ;;  %v598_v40 = vadd.f32 %v4310_v46, %v576_v30 }
  0xa5   :  { %v4316_v7 = vpop.permute.xlu0 %336  ;;  %v378_v23 = vmul.f32 %v4291_v26, %v317_v6  ;;  %v3230_v6 = vld [vmem:[%s5908_s2 + $0xf0] sm:$0xff] }
  0xa6   :  { %3513 = vmatprep.mubr.msk.bf16.mxu0 %vm665_vm0, %v627_v3  ;;  %v614_v53 = vmax.f32 %v598_v40, 0.0  ;;  %v4366_v30 = vsub.f32 %v4113_v29, %v3230_v6 }
  0xa8   :  { %1725 = vperm.xlu1 %3715, %v4228_v56   ;;  %1677 = vperm.xlu0 %3727, %v4366_v30  }
  0xa9   :  { %v4320_v8 = vpop.permute.xlu0 %341  ;;  %v407_v10 = vpop.permute.xlu1 %406 }
  0xac   :  { %1729 = vperm.xlu1 %3715, %v1338_v37   ;;  %v461_v37 = vmul.f32 %v4289_v24, %v407_v10  ;;  %3732 = vset.pattern.permute.xlu0 %v3950_v0 }
  0xad   :  { %v4323_v16 = vpop.permute.xlu0 %351  ;;  %1765 = vperm.xlu0 %3732, %v4249_v60  }
  0xae   :  { %v322_v12 = vpop.permute.xlu1 %321  ;;  %v477_v44 = vadd.f32 %v461_v37, %v377_v32 }
  0xaf   :  { %v379_v20 = vmul.f32 %v4291_v26, %v322_v12 }
  0xb0   :  { %3716 = vset.pattern.permute.xlu1 %v3952_v19  ;;  %v577_v59 = vadd.f32 %v561_v43, %v477_v44 }
  0xb1   :  { %1551 = vperm.xlu1 %3716, %v4260_v62  }
  0xb2   :  { %v399_v56 = vpop.permute.xlu0 %398  ;;  %v327_v25 = vpop.permute.xlu1 %326  ;;  %v599_v22 = vadd.f32 %v4310_v46, %v577_v59 }
  0xb3   :  { %v459_v31 = vmul.f32 %v4289_v24, %v399_v56  ;;  %v380_v51 = vmul.f32 %v4291_v26, %v327_v25 }
  0xb4   :  { %v615_v32 = vmax.f32 %v599_v22, 0.0 }
  0xb5   :  { %v475_v38 = vadd.f32 %v459_v31, %v375_v27  ;;  %3717 = vset.pattern.permute.xlu1 %v3951_v1 }
  0xb6   :  { %v411_v39 = vpop.permute.xlu0 %410  ;;  %1637 = vperm.xlu1 %3717, %v4202_v50  }
  0xb7   :  { %v575_v41 = vadd.f32 %v559_v17, %v475_v38  ;;  %v419_v45 = vpop.permute.xlu1 %418  ;;  %v462_v50 = vmul.f32 %v4289_v24, %v411_v39 }
  0xb8   :  { %v464_v49 = vmul.f32 %v4289_v24, %v419_v45 }
  0xb9   :  { %v597_v48 = vadd.f32 %v4310_v46, %v575_v41  ;;  %v478_v10 = vadd.f32 %v462_v50, %v378_v23 }
  0xba   :  { %v415_v57 = vpop.permute.xlu0 %414  ;;  %3718 = vset.pattern.permute.xlu1 %v3952_v19  ;;  %v480_v61 = vadd.f32 %v464_v49, %v380_v51 }
  0xbb   :  { %v613_v55 = vmax.f32 %v597_v48, 0.0  ;;  %1556 = vperm.xlu1 %3718, %v4269_v5   ;;  %v463_v14 = vmul.f32 %v4289_v24, %v415_v57 }
  0xbc   :  { %v511_v63 = vpop.permute.xlu1 %510  ;;  %v580_v15 = vadd.f32 %v564_v9, %v480_v61  ;;  %v383_v61 = vmul.f32 %v4291_v26, %v4320_v8 }
  0xbd   :  { %v628_v3 = vpack.c.bf16 %v614_v53, %v613_v55  ;;  %v562_v18 = vmul.f32 %v4296_v28, %v511_v63  ;;  %v479_v12 = vadd.f32 %v463_v14, %v379_v20  ;;  %v566_v53 = vmul.f32 %v4296_v28, %v4286_v21 }
  0xbe   :  { %v431_v43 = vpop.permute.xlu0 %430 }
  0xbf   :  { %3514 = vmatmul.mubr.msk.bf16.vlgmr.msra.gmra.mrb[0].mxu0 %vm665_vm0, %v628_v3  ;;  %v578_v27 = vadd.f32 %v562_v18, %v478_v10  ;;  %1561 = vperm.xlu1 %3718, %v4209_v52   ;;  %v467_v3 = vmul.f32 %v4289_v24, %v431_v43 }
  0xc0   :  { %3574 = vmatpush3.bf16.msra.mxu0 %v4128_v33  ;;  %v515_v56 = vpop.permute.xlu1 %514  ;;  %v602_v33 = vadd.f32 %v4310_v46, %v580_v15 }
  0xc1   :  { %3575 = vmatprep.subr.bf16.mxu0 %v4137_v34  ;;  %v600_v31 = vadd.f32 %v4310_v46, %v578_v27  ;;  %v563_v25 = vmul.f32 %v4296_v28, %v515_v56  ;;  %v483_v20 = vadd.f32 %v467_v3, %v383_v61 }
  0xc2   :  { %v618_v40 = vmax.f32 %v602_v33, 0.0  ;;  %v4399_v48 = vpop.permute.xlu0 %442 }
  0xc3   :  { %v616_v37 = vmax.f32 %v600_v31, 0.0  ;;  %v579_v17 = vadd.f32 %v563_v25, %v479_v12  ;;  %3719 = vset.pattern.permute.xlu1 %v3951_v1 }
  0xc4   :  { %3576 = vmatpush3.bf16.msra.mxu0 %v4137_v34  ;;  %1649 = vperm.xlu1 %3719, %v4209_v52   ;;  %v3231_v34 = vld [vmem:[%s5908_s2 + $0xf8] sm:$0xff] }
  0xc5   :  { %3577 = vmatprep.subr.bf16.mxu0 %v4144_v35  ;;  %v601_v29 = vadd.f32 %v4310_v46, %v579_v17  ;;  %v332_v38 = vpop.permute.xlu1 %331  ;;  %v629_v39 = vpack.c.bf16 %v616_v37, %v615_v32  ;;  %v4393_v44 = vsub.f32 %v4055_v11, %v3231_v34  ;;  %v382_v11 = vmul.f32 %v4291_v26, %v4316_v7 }
  0xc6   :  { %v4403_v50 = vpop.permute.xlu0 %446  ;;  %v381_v7 = vmul.f32 %v4291_v26, %v332_v38 }
  0xc7   :  { %v617_v41 = vmax.f32 %v601_v29, 0.0  ;;  %3517 = vmatprep.mubr.msk.bf16.mxu0 %vm665_vm0, %v629_v39  ;;  %1777 = vperm.xlu0 %3732, %v4393_v44  }
  0xc8   :  { %3578 = vmatpush3.bf16.msra.mxu0 %v4144_v35  ;;  %3720 = vset.pattern.permute.xlu1 %v3950_v0  ;;  %v3224_v35 = vld [vmem:[%s5908_s2 + $0xc0] sm:$0xff] }
  0xc9   :  { %3579 = vmatprep.subr.bf16.mxu0 %v4152_v36  ;;  %1737 = vperm.xlu1 %3720, %v4260_v62   ;;  %v630_v52 = vpack.c.bf16 %v618_v40, %v617_v41  ;;  %v1352_v45 = vsub.f32 %v4036_v4, %v3224_v35  ;;  %v3227_v4 = vld [vmem:[%s5908_s2 + $0xd8] sm:$0xff] }
  0xca   :  { %v423_v42 = vpop.permute.xlu1 %422  ;;  %v1355_v23 = vsub.f32 %v4063_v13, %v3227_v4 }
  0xcb   :  { %3518 = vmatmul.mubr.msk.bf16.gmra.mrb[4].mxu0 %vm665_vm0, %v630_v52  ;;  %v465_v55 = vmul.f32 %v4289_v24, %v423_v42  ;;  %v4414_v57 = vpop.permute.xlu0 %538  ;;  %v3305_v42 = vld [vmem:[%s5908_s2 + $0x108] sm:$0xff] }
  0xcc   :  { %3580 = vmatpush3.bf16.msra.mxu0 %v4152_v36  ;;  %v4445_v43 = vsub.f32 %v4028_v2, %v3305_v42 }
  0xcd   :  { %1741 = vperm.xlu1 %3720, %v4269_v5   ;;  %v481_v63 = vadd.f32 %v465_v55, %v381_v7 }
  0xce   :  { %v427_v62 = vpop.permute.xlu1 %426  ;;  %2631 = vperm.xlu0 %3732, %v4445_v43  }
  0xcf   :  { %v466_v51 = vmul.f32 %v4289_v24, %v427_v62 }
  0xd1   :  { %3721 = vset.pattern.permute.xlu1 %v3952_v19  ;;  %v482_v36 = vadd.f32 %v466_v51, %v382_v11  ;;  %v569_v11 = vmul.f32 %v4296_v28, %v4414_v57 }
  0xd2   :  { %1566 = vperm.xlu1 %3721, %v1352_v45   ;;  %3739 = vset.pattern.permute.xlu0 %v3952_v19 }
  0xd3   :  { %v347_v49 = vpop.permute.xlu1 %346  ;;  %v582_v9 = vadd.f32 %v566_v53, %v482_v36  ;;  %2537 = vperm.xlu0 %3739, %v4445_v43   ;;  %v470_v53 = vmul.f32 %v4289_v24, %v4399_v48 }
  0xd4   :  { %v384_v27 = vmul.f32 %v4291_v26, %v347_v49  ;;  %v385_v49 = vmul.f32 %v4291_v26, %v4323_v16 }
  0xd5   :  { %v604_v10 = vadd.f32 %v4310_v46, %v582_v9 }
  0xd6   :  { %3722 = vset.pattern.permute.xlu1 %v3951_v1 }
  0xd7   :  { %1653 = vperm.xlu1 %3722, %v1352_v45   ;;  %v620_v15 = vmax.f32 %v604_v10, 0.0 }
  0xd8   :  { %v435_v5 = vpop.permute.xlu1 %434 }
  0xd9   :  { %v468_v13 = vmul.f32 %v4289_v24, %v435_v5 }
  0xdb   :  { %1657 = vperm.xlu1 %3722, %v4217_v54   ;;  %v551_v54 = vpop.permute.xlu0 %550  ;;  %v484_v31 = vadd.f32 %v468_v13, %v384_v27 }
  0xdd   :  { %v523_v59 = vpop.permute.xlu1 %522 }
  0xde   :  { %v565_v21 = vmul.f32 %v4296_v28, %v523_v59 }
  0xdf   :  { %3723 = vset.pattern.permute.xlu1 %v3952_v19  ;;  %v4431_v33 = vpop.permute.xlu0 %1721 }
  0xe0   :  { %v581_v14 = vadd.f32 %v565_v21, %v481_v63  ;;  %1581 = vperm.xlu1 %3723, %v1355_v23   ;;  %v471_v63 = vmul.f32 %v4289_v24, %v4403_v50 }
  0xe1   :  { %v531_v18 = vpop.permute.xlu1 %530 }
  0xe2   :  { %v603_v22 = vadd.f32 %v4310_v46, %v581_v14  ;;  %v567_v8 = vmul.f32 %v4296_v28, %v531_v18 }
  0xe3   :  { %v4437_v41 = vpop.permute.xlu0 %1733 }
  0xe4   :  { %v619_v6 = vmax.f32 %v603_v22, 0.0  ;;  %v583_v56 = vadd.f32 %v567_v8, %v483_v20  ;;  %3724 = vset.pattern.permute.xlu1 %v3951_v1 }
  0xe5   :  { %1665 = vperm.xlu1 %3724, %v1355_v23   ;;  %v535_v12 = vpop.permute.xlu1 %534 }
  0xe6   :  { %v568_v25 = vmul.f32 %v4296_v28, %v535_v12  ;;  %v631_v32 = vpack.c.bf16 %v620_v15, %v619_v6  ;;  %v605_v37 = vadd.f32 %v4310_v46, %v583_v56 }
  0xe7   :  { %v4447_v35 = vpop.permute.xlu0 %1745 }
  0xe8   :  { %v584_v17 = vadd.f32 %v568_v25, %v484_v31  ;;  %3521 = vmatprep.mubr.msk.bf16.mxu0 %vm665_vm0, %v631_v32  ;;  %v621_v39 = vmax.f32 %v605_v37, 0.0 }
  0xe9   :  { %3725 = vset.pattern.permute.xlu1 %v3950_v0 }
  0xea   :  { %v606_v29 = vadd.f32 %v4310_v46, %v584_v17  ;;  %1749 = vperm.xlu1 %3725, %v1352_v45   ;;  %v357_v38 = vpop.permute.xlu1 %356 }
  0xeb   :  { %v4454_v45 = vpop.permute.xlu0 %1753  ;;  %v386_v55 = vmul.f32 %v4291_v26, %v357_v38 }
  0xec   :  { %v622_v40 = vmax.f32 %v606_v29, 0.0  ;;  %v3933_v29 = vld [vmem:[%s5909_s4] sm:$0xff] }
  0xed   :  { %v486_v59 = vadd.f32 %v470_v53, %v386_v55 }
  0xee   :  { %v632_v34 = vpack.c.bf16 %v622_v40, %v621_v39  ;;  %1757 = vperm.xlu1 %3725, %v4241_v58  }
  0xef   :  { %v439_v52 = vpop.permute.xlu1 %438  ;;  %v1532_v51 = vpop.permute.xlu0 %1531 }
  0xf0   :  { %3522 = vmatmul.mubr.msk.bf16.gmra.mrb[8].mxu0 %vm665_vm0, %v632_v34  ;;  %v469_v2 = vmul.f32 %v4289_v24, %v439_v52  ;;  %v4515_v34 = vld [vmem:[%s5915_s9 + $0x8] sm:$0xff]   ;;  %v1605_v52 = vmul.f32 %v1532_v51, %v4291_v26  ;;  %v3307_v51 = vld [vmem:[%s5908_s2 + $0x118] sm:$0xff] }
  0xf2   :  { %1761 = vperm.xlu1 %3725, %v1355_v23   ;;  %v485_v36 = vadd.f32 %v469_v2, %v385_v49 }
  0xf3   :  { %v4468_v16 = vpop.permute.xlu0 %1536 }
  0xf4   :  { %v362_v62 = vpop.permute.xlu1 %361  ;;  %v585_v9 = vadd.f32 %v569_v11, %v485_v36  ;;  %v1781_v36 = vmul.f32 %v4431_v33, %v4296_v28 }
  0xf5   :  { %v387_v61 = vmul.f32 %v4291_v26, %v362_v62 }
  0xf6   :  { %3728 = vset.pattern.permute.xlu1 %v3952_v19  ;;  %v607_v3 = vadd.f32 %v4310_v46, %v585_v9 }
  0xf7   :  { %1591 = vperm.xlu1 %3728, %v4343_v47   ;;  %v487_v18 = vadd.f32 %v471_v63, %v387_v61 }
  0xf8   :  { %v367_v58 = vpop.permute.xlu1 %366  ;;  %v623_v22 = vmax.f32 %v607_v3, 0.0 }
  0xf9   :  { %v388_v7 = vmul.f32 %v4291_v26, %v367_v58 }
  0xfb   :  { %3729 = vset.pattern.permute.xlu1 %v3951_v1 }
  0xfc   :  { %1669 = vperm.xlu1 %3729, %v4249_v60   ;;  %v572_v60 = vmul.f32 %v4296_v28, %v551_v54  ;;  %v4479_v54 = vpop.permute.xlu0 %1546 }
  0xfd   :  { %v451_v5 = vpop.permute.xlu1 %450 }
  0xfe   :  { %v472_v4 = vmul.f32 %v4289_v24, %v451_v5  ;;  %v1606_v5 = vmul.f32 %v4468_v16, %v4291_v26 }
 0x100   :  { %3730 = vset.pattern.permute.xlu1 %v3952_v19  ;;  %v488_v23 = vadd.f32 %v472_v4, %v388_v7  ;;  %v4487_v12 = vpop.permute.xlu0 %1571  ;;  %v3934_v7 = vld [vmem:[%s5909_s4 + $0x18] sm:$0xff] }
 0x101   :  { %1596 = vperm.xlu1 %3730, %v4366_v30   ;;  %v4536_v9 = vsub.f32 %v3934_v7, %v3307_v51 }
 0x102   :  { %v543_v57 = vpop.permute.xlu1 %542  ;;  %v588_v21 = vadd.f32 %v572_v60, %v488_v23 }
 0x103   :  { %v570_v48 = vmul.f32 %v4296_v28, %v543_v57 }
 0x104   :  { %v610_v8 = vadd.f32 %v4310_v46, %v588_v21  ;;  %v4496_v17 = vpop.permute.xlu0 %1576 }
 0x105   :  { %v586_v10 = vadd.f32 %v570_v48, %v486_v59  ;;  %1601 = vperm.xlu1 %3730, %v4393_v44  }
 0x106   :  { %v547_v14 = vpop.permute.xlu1 %546  ;;  %v626_v31 = vmax.f32 %v610_v8, 0.0 }
 0x107   :  { %v608_v20 = vadd.f32 %v4310_v46, %v586_v10  ;;  %v571_v13 = vmul.f32 %v4296_v28, %v547_v14 }
 0x108   :  { %v4509_v40 = vpop.permute.xlu0 %1586 }
 0x109   :  { %v624_v15 = vmax.f32 %v608_v20, 0.0  ;;  %v587_v27 = vadd.f32 %v571_v13, %v487_v18  ;;  %3731 = vset.pattern.permute.xlu1 %v3951_v1 }
 0x10a   :  { %1681 = vperm.xlu1 %3731, %v4393_v44   ;;  %v3304_v44 = vld [vmem:[%s5908_s2 + $0x100] sm:$0xff] }
 0x10b   :  { %v633_v50 = vpack.c.bf16 %v624_v15, %v623_v22  ;;  %v609_v6 = vadd.f32 %v4310_v46, %v587_v27  ;;  %v1527_v56 = vpop.permute.xlu1 %1526  ;;  %v2488_v38 = vsub.f32 %v3933_v29, %v3304_v44  ;;  %v1608_v44 = vmul.f32 %v4479_v54, %v4291_v26 }
 0x10c   :  { %v1604_v62 = vmul.f32 %v1527_v56, %v4291_v26  ;;  %v1630_v11 = vpop.permute.xlu0 %1629 }
 0x10d   :  { %v625_v25 = vmax.f32 %v609_v6, 0.0  ;;  %3525 = vmatprep.mubr.msk.bf16.mxu0 %vm665_vm0, %v633_v50  ;;  %v1686_v4 = vmul.f32 %v1630_v11, %v4289_v24 }
 0x10e   :  { %3733 = vset.pattern.permute.xlu1 %v3950_v0 }
 0x10f   :  { %v634_v32 = vpack.c.bf16 %v626_v31, %v625_v25  ;;  %1769 = vperm.xlu1 %3733, %v4343_v47   ;;  %v4505_v47 = vld [vmem:[%s5915_s9] sm:$0xff]   ;;  %v1702_v57 = vadd.f32 %v1686_v4, %v1606_v5  ;;  %v1787_v4 = vmul.f32 %v4447_v35, %v4296_v28 }
 0x110   :  { %v1622_v37 = vpop.permute.xlu1 %1621  ;;  %3529 = vmatprep.subr.bf16.mxu1 %v4505_v47 }
 0x111   :  { %3526 = vmatmul.mubr.msk.bf16.gmra.mrb[12].mxu0 %vm665_vm0, %v634_v32  ;;  %3530 = vmatpush3.bf16.msra.mxu1 %v4505_v47  ;;  %v1684_v58 = vmul.f32 %v1622_v37, %v4289_v24  ;;  %v1642_v32 = vpop.permute.xlu0 %1641 }
 0x112   :  { %3531 = vmatprep.subr.bf16.mxu1 %v4515_v34 }
 0x113   :  { %1773 = vperm.xlu1 %3733, %v4366_v30   ;;  %v1700_v53 = vadd.f32 %v1684_v58, %v1604_v62 }
 0x114   :  { %v1626_v39 = vpop.permute.xlu1 %1625 }
 0x115   :  { %v1685_v42 = vmul.f32 %v1626_v39, %v4289_v24  ;;  %3532 = vmatpush3.bf16.msra.mxu1 %v4515_v34  ;;  %v1646_v62 = vpop.permute.xlu0 %1645 }
 0x117   :  { %3734 = vset.pattern.permute.xlu1 %v3952_v19  ;;  %v1701_v2 = vadd.f32 %v1685_v42, %v1605_v52 }
 0x118   :  { %2532 = vperm.xlu1 %3734, %v2488_v38  }
 0x119   :  { %v1542_v30 = vpop.permute.xlu1 %1541  ;;  %v1797_v55 = vadd.f32 %v1781_v36, %v1701_v2  ;;  %v1784_v2 = vmul.f32 %v4437_v41, %v4296_v28 }
 0x11a   :  { %v1607_v16 = vmul.f32 %v1542_v30, %v4291_v26 }
 0x11b   :  { %v1813_v33 = vadd.f32 %v4310_v46, %v1797_v55 }
 0x11c   :  { %3735 = vset.pattern.permute.xlu1 %v3951_v1 }
 0x11d   :  { %2579 = vperm.xlu1 %3735, %v2488_v38   ;;  %v1829_v3 = vmax.f32 %v1813_v33, 0.0 }
 0x11e   :  { %v1634_v49 = vpop.permute.xlu1 %1633 }
 0x121   :  { %2583 = vperm.xlu1 %3735, %v4445_v43   ;;  %v1687_v43 = vmul.f32 %v1634_v49, %v4289_v24  ;;  %v1690_v49 = vmul.f32 %v1646_v62, %v4289_v24 }
 0x123   :  { %v1718_v60 = vpop.permute.xlu1 %1717  ;;  %v1703_v21 = vadd.f32 %v1687_v43, %v1607_v16 }
 0x124   :  { %v1780_v23 = vmul.f32 %v1718_v60, %v4296_v28 }
 0x125   :  { %3736 = vset.pattern.permute.xlu1 %v3952_v19 }
 0x126   :  { %v1796_v59 = vadd.f32 %v1780_v23, %v1700_v53  ;;  %2547 = vperm.xlu1 %3736, %v4536_v9  }
 0x127   :  { %v1726_v61 = vpop.permute.xlu1 %1725 }
 0x128   :  { %v1812_v48 = vadd.f32 %v4310_v46, %v1796_v59  ;;  %v1782_v63 = vmul.f32 %v1726_v61, %v4296_v28 }
 0x12a   :  { %v1828_v10 = vmax.f32 %v1812_v48, 0.0  ;;  %v1798_v14 = vadd.f32 %v1782_v63, %v1702_v57  ;;  %3737 = vset.pattern.permute.xlu1 %v3951_v1 }
 0x12b   :  { %v1730_v18 = vpop.permute.xlu1 %1729  ;;  %2591 = vperm.xlu1 %3737, %v4536_v9  }
 0x12c   :  { %v1844_v20 = vpack.c.bf16 %v1829_v3, %v1828_v10  ;;  %v1783_v13 = vmul.f32 %v1730_v18, %v4296_v28  ;;  %v1814_v22 = vadd.f32 %v4310_v46, %v1798_v14  ;;  %v1613_v18 = vmul.f32 %v4487_v12, %v4291_v26 }
 0x12e   :  { %v1799_v8 = vadd.f32 %v1783_v13, %v1703_v21  ;;  %3581 = vmatprep.mubr.msk.bf16.mxu0 %vm665_vm0, %v1844_v20  ;;  %v1830_v50 = vmax.f32 %v1814_v22, 0.0  ;;  %v1789_v22 = vmul.f32 %v4454_v45, %v4296_v28 }
 0x12f   :  { %3738 = vset.pattern.permute.xlu1 %v3950_v0 }
 0x130   :  { %v1815_v15 = vadd.f32 %v4310_v46, %v1799_v8  ;;  %v1552_v27 = vpop.permute.xlu1 %1551  ;;  %2627 = vperm.xlu1 %3738, %v2488_v38   ;;  %v1689_v38 = vmul.f32 %v1642_v32, %v4289_v24 }
 0x131   :  { %v1609_v39 = vmul.f32 %v1552_v27, %v4291_v26 }
 0x132   :  { %v1831_v6 = vmax.f32 %v1815_v15, 0.0 }
 0x133   :  { %v1705_v36 = vadd.f32 %v1689_v38, %v1609_v39 }
 0x134   :  { %v1845_v56 = vpack.c.bf16 %v1831_v6, %v1830_v50 }
 0x135   :  { %v1638_v31 = vpop.permute.xlu1 %1637 }
 0x136   :  { %3582 = vmatmul.mubr.msk.bf16.vlgmr.msra.gmra.mrb[16].mxu0 %vm665_vm0, %v1845_v56  ;;  %v1688_v29 = vmul.f32 %v1638_v31, %v4289_v24  ;;  %v1662_v31 = vpop.permute.xlu0 %1661 }
 0x137   :  { %v1694_v12 = vmul.f32 %v1662_v31, %v4289_v24 }
 0x138   :  { %v1704_v30 = vadd.f32 %v1688_v29, %v1608_v44 }
 0x13a   :  { %v1557_v25 = vpop.permute.xlu1 %1556  ;;  %v1800_v11 = vadd.f32 %v1784_v2, %v1704_v30 }
 0x13b   :  { %v1610_v54 = vmul.f32 %v1557_v25, %v4291_v26  ;;  %v1614_v25 = vmul.f32 %v4496_v17, %v4291_v26 }
 0x13c   :  { %v1816_v55 = vadd.f32 %v4310_v46, %v1800_v11 }
 0x13d   :  { %v1706_v23 = vadd.f32 %v1690_v49, %v1610_v54  ;;  %v1710_v29 = vadd.f32 %v1694_v12, %v1614_v25 }
 0x13e   :  { %v1562_v37 = vpop.permute.xlu1 %1561  ;;  %v1832_v16 = vmax.f32 %v1816_v55, 0.0 }
 0x13f   :  { %v1611_v52 = vmul.f32 %v1562_v37, %v4291_v26 }
 0x143   :  { %v1650_v42 = vpop.permute.xlu1 %1649 }
 0x144   :  { %v1691_v58 = vmul.f32 %v1650_v42, %v4289_v24 }
 0x146   :  { %v1707_v51 = vadd.f32 %v1691_v58, %v1611_v52 }
 0x148   :  { %v1738_v5 = vpop.permute.xlu1 %1737  ;;  %v1803_v7 = vadd.f32 %v1787_v4, %v1707_v51 }
 0x149   :  { %v1785_v53 = vmul.f32 %v1738_v5, %v4296_v28 }
 0x14a   :  { %v1819_v43 = vadd.f32 %v4310_v46, %v1803_v7 }
 0x14b   :  { %v1801_v60 = vadd.f32 %v1785_v53, %v1705_v36 }
 0x14c   :  { %v1742_v57 = vpop.permute.xlu1 %1741  ;;  %v1835_v3 = vmax.f32 %v1819_v43, 0.0 }
 0x14d   :  { %v1817_v41 = vadd.f32 %v4310_v46, %v1801_v60  ;;  %v1786_v33 = vmul.f32 %v1742_v57, %v4296_v28  ;;  %v1674_v60 = vpop.permute.xlu0 %1673 }
 0x14f   :  { %v1833_v59 = vmax.f32 %v1817_v41, 0.0  ;;  %v1802_v61 = vadd.f32 %v1786_v33, %v1706_v23 }
 0x151   :  { %v1846_v48 = vpack.c.bf16 %v1833_v59, %v1832_v16  ;;  %v1818_v35 = vadd.f32 %v4310_v46, %v1802_v61  ;;  %v1567_v63 = vpop.permute.xlu1 %1566  ;;  %v1678_v41 = vpop.permute.xlu0 %1677  ;;  %v1616_v16 = vmul.f32 %v4509_v40, %v4291_v26  ;;  %v1697_v40 = vmul.f32 %v1674_v60, %v4289_v24 }
 0x152   :  { %v1612_v50 = vmul.f32 %v1567_v63, %v4291_v26  ;;  %v1698_v25 = vmul.f32 %v1678_v41, %v4289_v24 }
 0x153   :  { %v1834_v21 = vmax.f32 %v1818_v35, 0.0  ;;  %3585 = vmatprep.mubr.msk.bf16.mxu0 %vm665_vm0, %v1846_v48 }
 0x155   :  { %v1847_v10 = vpack.c.bf16 %v1835_v3, %v1834_v21  ;;  %v1766_v61 = vpop.permute.xlu0 %1765  ;;  %v3404_v3 = vld [vmem:[%s5916_s3 + $0x8] sm:$0xff]  }
 0x156   :  { %v1654_v14 = vpop.permute.xlu1 %1653  ;;  %v1792_v35 = vmul.f32 %v1766_v61, %v4296_v28  ;;  %v3751_v21 = vld [vmem:[%s5913_s1 + $0x8] sm:$0xff]  }
 0x157   :  { %3586 = vmatmul.mubr.msk.bf16.gmra.mrb[20].mxu0 %vm665_vm0, %v1847_v10  ;;  %v1692_v6 = vmul.f32 %v1654_v14, %v4289_v24 }
 0x159   :  { %v1708_v32 = vadd.f32 %v1692_v6, %v1612_v50  ;;  %v194_v6 = vunpack.c.l.bf16 %v3751_v21 }
 0x15a   :  { %v1658_v20 = vpop.permute.xlu1 %1657 }
 0x15b   :  { %v1693_v13 = vmul.f32 %v1658_v20, %v4289_v24  ;;  %v3753_v20 = vld [vmem:[%s5913_s1] sm:$0xff]  }
 0x15d   :  { %v1709_v8 = vadd.f32 %v1693_v13, %v1613_v18  ;;  %v1778_v18 = vpop.permute.xlu0 %1777 }
 0x15e   :  { %v1795_v50 = vmul.f32 %v1778_v18, %v4296_v28 }
 0x15f   :  { %v1805_v15 = vadd.f32 %v1789_v22, %v1709_v8  ;;  %v1582_v27 = vpop.permute.xlu1 %1581  ;;  %v3357_v22 = vld [vmem:[%s5916_s3] sm:$0xff]  }
 0x160   :  { %v1615_v39 = vmul.f32 %v1582_v27, %v4291_v26  ;;  %v4621_v12 = vunpack.c.l.bf16 %v3357_v22 }
 0x161   :  { %v1821_v45 = vadd.f32 %v4310_v46, %v1805_v15  ;;  %v4616_v15 = vunpack.c.l.bf16 %v3404_v3 }
 0x162   :  { %6014 = vst [vmem:[#allocation3_spill] sm:$0xff] %v4621_v12 }
 0x163   :  { %v1837_v17 = vmax.f32 %v1821_v45, 0.0  ;;  %6013 = vst [vmem:[#allocation2_spill] sm:$0xff] %v4616_v15  ;;  %v4628_v45 = vld [vmem:[%s5917_s8] ss:$0 sm:$0xff] }
 0x164   :  { %v1666_v56 = vpop.permute.xlu1 %1665 }
 0x165   :  { %v1695_v30 = vmul.f32 %v1666_v56, %v4289_v24 }
 0x167   :  { %v1711_v58 = vadd.f32 %v1695_v30, %v1615_v39 }
 0x169   :  { %v1750_v37 = vpop.permute.xlu1 %1749 }
 0x16a   :  { %v1788_v44 = vmul.f32 %v1750_v37, %v4296_v28  ;;  %v4623_v37 = vunpack.c.h.bf16 %v3404_v3 }
 0x16c   :  { %v1804_v52 = vadd.f32 %v1788_v44, %v1708_v32  ;;  %v192_v32 = vunpack.c.l.bf16 %v3753_v20  ;;  %6015 = vst [vmem:[#allocation4_spill] sm:$0xff] %v4623_v37  ;;  %v195_v44 = vunpack.c.h.bf16 %v3751_v21 }
 0x16d   :  { %v1758_v42 = vpop.permute.xlu1 %1757 }
 0x16e   :  { %v1820_v38 = vadd.f32 %v4310_v46, %v1804_v52  ;;  %v1790_v62 = vmul.f32 %v1758_v42, %v4296_v28  ;;  %v4632_v52 = vunpack.c.h.bf16 %v3357_v22  ;;  %v193_v42 = vunpack.c.h.bf16 %v3753_v20  ;;  %v3757_v20 = vld [vmem:[%s5913_s1 + $0x18] sm:$0xff]  }
 0x16f   :  { %v3406_v22 = vld [vmem:[%s5916_s3 + $0x18] sm:$0xff]  }
 0x170   :  { %v1836_v2 = vmax.f32 %v1820_v38, 0.0  ;;  %v1806_v49 = vadd.f32 %v1790_v62, %v1710_v29  ;;  %6016 = vst [vmem:[#allocation5_spill] sm:$0xff] %v4632_v52  ;;  %v804_v41 = vsub.f32 %v4632_v52, %v193_v42 }
 0x171   :  { %v1762_v11 = vpop.permute.xlu1 %1761 }
 0x172   :  { %v1848_v54 = vpack.c.bf16 %v1837_v17, %v1836_v2  ;;  %v1791_v51 = vmul.f32 %v1762_v11, %v4296_v28  ;;  %v1822_v36 = vadd.f32 %v4310_v46, %v1806_v49  ;;  %v805_v49 = vsub.f32 %v4616_v15, %v194_v6  ;;  %v3405_v6 = vld [vmem:[%s5916_s3 + $0x10] sm:$0xff]  }
 0x173   :  { %v4692_v42 = vunpack.c.h.bf16 %v3405_v6 }
 0x174   :  { %3589 = vmatprep.mubr.msk.bf16.mxu0 %vm665_vm0, %v1848_v54  ;;  %v1807_v5 = vadd.f32 %v1791_v51, %v1711_v58  ;;  %v1838_v55 = vmax.f32 %v1822_v36, 0.0  ;;  %v803_v54 = vsub.f32 %v4621_v12, %v192_v32  ;;  %v806_v51 = vsub.f32 %v4623_v37, %v195_v44 }
 0x175   :  { %v4687_v32 = vunpack.c.h.bf16 %v3406_v22  ;;  %v199_v44 = vunpack.c.h.bf16 %v3757_v20  ;;  %6020 = vst [vmem:[#allocation9_spill] sm:$0xff] %v4692_v42 }
 0x176   :  { %v1823_v4 = vadd.f32 %v4310_v46, %v1807_v5  ;;  %v1592_v53 = vpop.permute.xlu1 %1591 }
 0x177   :  { %v1617_v10 = vmul.f32 %v1592_v53, %v4291_v26  ;;  %6018 = vst [vmem:[#allocation7_spill] sm:$0xff] %v4687_v32 }
 0x178   :  { %v1839_v7 = vmax.f32 %v1823_v4, 0.0 }
 0x179   :  { %v1713_v31 = vadd.f32 %v1697_v40, %v1617_v10 }
 0x17a   :  { %v1849_v23 = vpack.c.bf16 %v1839_v7, %v1838_v55 }
 0x17b   :  { %v1670_v57 = vpop.permute.xlu1 %1669 }
 0x17c   :  { %3590 = vmatmul.mubr.msk.bf16.gmra.mrb[24].mxu0 %vm665_vm0, %v1849_v23  ;;  %v1696_v43 = vmul.f32 %v1670_v57, %v4289_v24 }
 0x17e   :  { %v1712_v48 = vadd.f32 %v1696_v43, %v1616_v16 }
 0x180   :  { %v1597_v33 = vpop.permute.xlu1 %1596  ;;  %v1808_v8 = vadd.f32 %v1792_v35, %v1712_v48 }
 0x181   :  { %v1618_v56 = vmul.f32 %v1597_v33, %v4291_v26  ;;  %v4653_v33 = vld [vmem:[%s5912_s6] ss:$0 sm:$0xff] }
 0x182   :  { %v1824_v39 = vadd.f32 %v4310_v46, %v1808_v8  ;;  %v3759_v8 = vld [vmem:[%s5913_s1 + $0x10] sm:$0xff]  }
 0x183   :  { %v1714_v17 = vadd.f32 %v1698_v25, %v1618_v56  ;;  %v198_v25 = vunpack.c.l.bf16 %v3757_v20 }
 0x184   :  { %v1602_v59 = vpop.permute.xlu1 %1601  ;;  %v1840_v53 = vmax.f32 %v1824_v39, 0.0  ;;  %v4689_v39 = vunpack.c.l.bf16 %v3405_v6  ;;  %v3938_v6 = vld [vmem:[%s5909_s4 + $0x28] sm:$0xff] }
 0x185   :  { %v1619_v63 = vmul.f32 %v1602_v59, %v4291_v26 }
 0x186   :  { %6019 = vst [vmem:[#allocation8_spill] sm:$0xff] %v4689_v39 }
 0x189   :  { %v1682_v14 = vpop.permute.xlu1 %1681 }
 0x18a   :  { %v1699_v13 = vmul.f32 %v1682_v14, %v4289_v24 }
 0x18c   :  { %v1715_v27 = vadd.f32 %v1699_v13, %v1619_v63 }
 0x18e   :  { %v1770_v29 = vpop.permute.xlu1 %1769  ;;  %v1811_v38 = vadd.f32 %v1795_v50, %v1715_v27 }
 0x18f   :  { %v1793_v30 = vmul.f32 %v1770_v29, %v4296_v28 }
 0x190   :  { %v1827_v16 = vadd.f32 %v4653_v33, %v1811_v38  ;;  %v197_v38 = vunpack.c.h.bf16 %v3759_v8 }
 0x191   :  { %v1809_v58 = vadd.f32 %v1793_v30, %v1713_v31  ;;  %v4684_v31 = vunpack.c.l.bf16 %v3406_v22  ;;  %v196_v30 = vunpack.c.l.bf16 %v3759_v8  ;;  %v3937_v22 = vld [vmem:[%s5909_s4 + $0x20] sm:$0xff] }
 0x192   :  { %v3515_v62 = vpop.f32.mrb[0].mxu0  ;;  %v1774_v36 = vpop.permute.xlu1 %1773  ;;  %v1843_v10 = vmax.f32 %v1827_v16, 0.0 }
 0x193   :  { %v4635_v2 = vadd.f32 %v3515_v62, %v4628_v45  ;;  %v724_v11 = vpop.f32.mrb[1].mxu0  ;;  %v1825_v55 = vadd.f32 %v4310_v46, %v1809_v58  ;;  %v1794_v7 = vmul.f32 %v1774_v36, %v4296_v28  ;;  %6017 = vst [vmem:[#allocation6_spill] sm:$0xff] %v4684_v31  ;;  %v810_v36 = vsub.f32 %v4687_v32, %v199_v44  ;;  %v3763_v44 = vld [vmem:[%s5913_s1 + $0x20] sm:$0xff]  }
 0x194   :  { %v4641_v5 = vadd.f32 %v4628_v45, %v724_v11  ;;  %v3516_v4 = vpop.f32.mrb[2].mxu0 }
 0x195   :  { %v5945_v60 = vmax.f32 %v4635_v2, 0.0  ;;  %v4647_v23 = vadd.f32 %v3516_v4, %v4628_v45  ;;  %v727_v57 = vpop.f32.mrb[3].mxu0  ;;  %v1841_v59 = vmax.f32 %v1825_v55, 0.0  ;;  %v1810_v61 = vadd.f32 %v1794_v7, %v1714_v17 }
 0x196   :  { %v5939_v43 = vmax.f32 %v4641_v5, 0.0  ;;  %v4658_v46 = vadd.f32 %v4628_v45, %v727_v57  ;;  %v807_v55 = vsub.f32 %v4689_v39, %v196_v30  ;;  %v808_v57 = vsub.f32 %v4692_v42, %v197_v38 }
 0x197   :  { %v5937_v48 = vmax.f32 %v4647_v23, 0.0  ;;  %v1850_v63 = vpack.c.bf16 %v1841_v59, %v1840_v53  ;;  %v821_v3 = vadd.f32 %v805_v49, %v5945_v60  ;;  %v1826_v40 = vadd.f32 %v4653_v33, %v1810_v61 }
 0x198   :  { %v5935_v35 = vmax.f32 %v4658_v46, 0.0  ;;  %v819_v14 = vadd.f32 %v803_v54, %v5939_v43  ;;  %v809_v54 = vsub.f32 %v4684_v31, %v198_v25  ;;  %v3761_v25 = vld [vmem:[%s5913_s1 + $0x28] sm:$0xff]   ;;  %v200_v38 = vunpack.c.l.bf16 %v3763_v44 }
 0x199   :  { %v822_v21 = vadd.f32 %v806_v51, %v5937_v48  ;;  %3593 = vmatprep.mubr.msk.bf16.mxu0 %vm665_vm0, %v1850_v63  ;;  %v1842_v27 = vmax.f32 %v1826_v40, 0.0  ;;  %v3306_v40 = vld [vmem:[%s5908_s2 + $0x110] sm:$0xff] }
 0x19a   :  { %v820_v18 = vadd.f32 %v804_v41, %v5935_v35 }
 0x19b   :  { %v836_v13 = vpack.c.bf16 %v822_v21, %v821_v3  ;;  %v1851_v56 = vpack.c.bf16 %v1843_v10, %v1842_v27  ;;  %v4745_v27 = vld [vmem:[%s5918_s11 + $0x8] sm:$0xff]  }
 0x19c   :  { %v835_v50 = vpack.c.bf16 %v820_v18, %v819_v14  ;;  %v3308_v14 = vld [vmem:[%s5908_s2 + $0x120] sm:$0xff]  ;;  %v3936_v18 = vld [vmem:[%s5909_s4 + $0x10] sm:$0xff] }
 0x19d   :  { %3594 = vmatmul.mubr.msk.bf16.gmra.mrb[28].mxu0 %vm665_vm0, %v1851_v56  ;;  %v2490_v20 = vsub.f32 %v3936_v18, %v3306_v40  ;;  %v2492_v8 = vsub.f32 %v3937_v22, %v3308_v14  ;;  %v811_v14 = vsub.f32 %v4621_v12, %v200_v38  ;;  %v3311_v22 = vld [vmem:[%s5908_s2 + $0x138] sm:$0xff] }
 0x19e   :  { %3533 = vmatprep.mubr.msk.bf16.mxu1 %vm861_vm1, %v835_v50  ;;  %v3519_v29 = vpop.f32.mrb[4].mxu0  ;;  %v3309_v50 = vld [vmem:[%s5908_s2 + $0x128] sm:$0xff] }
 0x19f   :  { %3534 = vmatmul.mubr.msk.bf16.vlgmr.msra.gmra.mrb[0].mxu1 %vm861_vm1, %v836_v13  ;;  %v4696_v62 = vadd.f32 %v3519_v29, %v4628_v45  ;;  %v740_v17 = vpop.f32.mrb[5].mxu0  ;;  %v4737_v13 = vld [vmem:[%s5918_s11] sm:$0xff]   ;;  %2635 = vperm.xlu1 %3738, %v2490_v20   ;;  %v2493_v56 = vsub.f32 %v3938_v6, %v3309_v50  ;;  %v203_v29 = vunpack.c.h.bf16 %v3761_v25 }
 0x1a0   :  { %v4699_v58 = vadd.f32 %v4628_v45, %v740_v17  ;;  %v3520_v49 = vpop.f32.mrb[6].mxu0  ;;  %2542 = vperm.xlu0 %3739, %v2490_v20   ;;  %3549 = vmatprep.subr.bf16.mxu1 %v4737_v13  ;;  %v201_v17 = vunpack.c.h.bf16 %v3763_v44 }
 0x1a1   :  { %v5933_v11 = vmax.f32 %v4696_v62, 0.0  ;;  %v4704_v51 = vadd.f32 %v3520_v49, %v4628_v45  ;;  %v743_v4 = vpop.f32.mrb[7].mxu0  ;;  %3617 = vmatprep.subr.bf16.mxu0 %v4737_v13  ;;  %3550 = vmatpush3.bf16.msra.mxu1 %v4737_v13  ;;  %v3310_v49 = vld [vmem:[%s5908_s2 + $0x130] sm:$0xff] }
 0x1a2   :  { %6021 = vst [vmem:[#allocation10_spill] sm:$0xff] %v4699_v58  ;;  %v5931_v53 = vmax.f32 %v4699_v58, 0.0  ;;  %v4710_v7 = vadd.f32 %v4628_v45, %v743_v4  ;;  %3618 = vmatpush3.bf16.msra.mxu0 %v4737_v13  ;;  %3551 = vmatprep.subr.bf16.mxu1 %v4745_v27 }
 0x1a3   :  { %6022 = vst [vmem:[#allocation11_spill] sm:$0xff] %v4704_v51  ;;  %v5930_v41 = vmax.f32 %v4704_v51, 0.0  ;;  %v825_v59 = vadd.f32 %v809_v54, %v5933_v11  ;;  %3619 = vmatprep.subr.bf16.mxu0 %v4745_v27  ;;  %2639 = vperm.xlu1 %3738, %v4536_v9   ;;  %v202_v9 = vunpack.c.l.bf16 %v3761_v25 }
 0x1a4   :  { %6023 = vst [vmem:[#allocation12_spill] sm:$0xff] %v4710_v7  ;;  %v5924_v16 = vmax.f32 %v4710_v7, 0.0  ;;  %v823_v63 = vadd.f32 %v807_v55, %v5931_v53  ;;  %2552 = vperm.xlu0 %3739, %v2492_v8  }
 0x1a5   :  { %v826_v61 = vadd.f32 %v810_v36, %v5930_v41  ;;  %3552 = vmatpush3.bf16.msra.mxu1 %v4745_v27  ;;  %v813_v4 = vsub.f32 %v4616_v15, %v202_v9  ;;  %v3940_v9 = vld [vmem:[%s5909_s4 + $0x38] sm:$0xff] }
 0x1a6   :  { %v824_v3 = vadd.f32 %v808_v57, %v5924_v16  ;;  %3620 = vmatpush3.bf16.msra.mxu0 %v4745_v27 }
 0x1a7   :  { %v838_v21 = vpack.c.bf16 %v826_v61, %v825_v59  ;;  %3741 = vset.pattern.permute.xlu1 %v3952_v19 }
 0x1a8   :  { %v837_v10 = vpack.c.bf16 %v824_v3, %v823_v63  ;;  %3740 = vset.pattern.permute.xlu0 %v3951_v1  ;;  %2557 = vperm.xlu1 %3741, %v2493_v56   ;;  %v814_v63 = vsub.f32 %v4623_v37, %v203_v29  ;;  %v2495_v29 = vsub.f32 %v3940_v9, %v3311_v22 }
 0x1a9   :  { %2587 = vperm.xlu0 %3740, %v2490_v20   ;;  %v812_v20 = vsub.f32 %v4632_v52, %v201_v17 }
 0x1aa   :  { %3537 = vmatprep.mubr.msk.bf16.mxu1 %vm861_vm1, %v837_v10 }
 0x1ab   :  { %3538 = vmatmul.mubr.msk.bf16.gmra.mrb[4].mxu1 %vm861_vm1, %v838_v21  ;;  %v3939_v21 = vld [vmem:[%s5909_s4 + $0x30] sm:$0xff] }
 0x1ac   :  { %3742 = vset.pattern.permute.xlu1 %v3951_v1  ;;  %v2494_v10 = vsub.f32 %v3939_v21, %v3310_v49  ;;  %v3765_v49 = vld [vmem:[%s5913_s1 + $0x38] sm:$0xff]  }
 0x1ad   :  { %2599 = vperm.xlu0 %3740, %v2493_v56   ;;  %2595 = vperm.xlu1 %3742, %v2492_v8  }
 0x1b1   :  { %2603 = vperm.xlu0 %3740, %v2494_v10   ;;  %3743 = vset.pattern.permute.xlu1 %v3952_v19 }
 0x1b2   :  { %2562 = vperm.xlu1 %3743, %v2494_v10  }
 0x1b5   :  { %3745 = vset.pattern.permute.xlu0 %v3950_v0 }
 0x1b6   :  { %2643 = vperm.xlu0 %3745, %v2492_v8   ;;  %2567 = vperm.xlu1 %3743, %v2495_v29   ;;  %v3767_v8 = vld [vmem:[%s5913_s1 + $0x30] sm:$0xff]  }
 0x1ba   :  { %2655 = vperm.xlu0 %3745, %v2495_v29   ;;  %3744 = vset.pattern.permute.xlu1 %v3951_v1 }
 0x1bb   :  { %2607 = vperm.xlu1 %3744, %v2495_v29  }
 0x1bf   :  { %3746 = vset.pattern.permute.xlu1 %v3950_v0 }
 0x1c0   :  { %2647 = vperm.xlu1 %3746, %v2493_v56  }
 0x1c3   :  { %v3523_v30 = vpop.f32.mrb[8].mxu0 }
 0x1c4   :  { %v4774_v54 = vadd.f32 %v3523_v30, %v4628_v45  ;;  %v756_v36 = vpop.f32.mrb[9].mxu0  ;;  %2651 = vperm.xlu1 %3746, %v2494_v10  }
 0x1c5   :  { %v4779_v55 = vadd.f32 %v4628_v45, %v756_v36  ;;  %v3524_v57 = vpop.f32.mrb[10].mxu0  ;;  %v206_v36 = vunpack.c.l.bf16 %v3765_v49 }
 0x1c6   :  { %v5944_v59 = vmax.f32 %v4774_v54, 0.0  ;;  %v4783_v61 = vadd.f32 %v3524_v57, %v4628_v45  ;;  %v759_v3 = vpop.f32.mrb[11].mxu0 }
 0x1c7   :  { %v5938_v40 = vmax.f32 %v4779_v55, 0.0  ;;  %v4792_v18 = vadd.f32 %v4628_v45, %v759_v3  ;;  %v205_v3 = vunpack.c.h.bf16 %v3767_v8 }
 0x1c8   :  { %v5936_v50 = vmax.f32 %v4783_v61, 0.0  ;;  %v829_v25 = vadd.f32 %v813_v4, %v5944_v59  ;;  %v207_v4 = vunpack.c.h.bf16 %v3765_v49 }
 0x1c9   :  { %v5934_v6 = vmax.f32 %v4792_v18, 0.0  ;;  %v827_v30 = vadd.f32 %v811_v14, %v5938_v40  ;;  %v817_v14 = vsub.f32 %v4684_v31, %v206_v36 }
 0x1ca   :  { %v830_v44 = vadd.f32 %v814_v63, %v5936_v50  ;;  %v204_v63 = vunpack.c.l.bf16 %v3767_v8  ;;  %v818_v22 = vsub.f32 %v4687_v32, %v207_v4 }
 0x1cb   :  { %v828_v38 = vadd.f32 %v812_v20, %v5934_v6 }
 0x1cc   :  { %v840_v17 = vpack.c.bf16 %v830_v44, %v829_v25  ;;  %v815_v9 = vsub.f32 %v4689_v39, %v204_v63  ;;  %v4856_v63 = vld [vmem:[%s5918_s11 + $0x10] sm:$0xff]  }
 0x1cd   :  { %v839_v19 = vpack.c.bf16 %v828_v38, %v827_v30  ;;  %v816_v30 = vsub.f32 %v4692_v42, %v205_v3  ;;  %3553 = vmatprep.subr.bf16.mxu1 %v4856_v63  ;;  %3621 = vmatprep.subr.bf16.mxu0 %v4856_v63  ;;  %v4865_v3 = vld [vmem:[%s5918_s11 + $0x18] sm:$0xff]  }
 0x1ce   :  { %3554 = vmatpush3.bf16.msra.mxu1 %v4856_v63  ;;  %3622 = vmatpush3.bf16.msra.mxu0 %v4856_v63 }
 0x1cf   :  { %3541 = vmatprep.mubr.msk.bf16.mxu1 %vm861_vm1, %v839_v19  ;;  %3555 = vmatprep.subr.bf16.mxu1 %v4865_v3 }
 0x1d0   :  { %3542 = vmatmul.mubr.msk.bf16.gmra.mrb[8].mxu1 %vm861_vm1, %v840_v17  ;;  %3623 = vmatprep.subr.bf16.mxu0 %v4865_v3 }
 0x1d2   :  { %3556 = vmatpush3.bf16.msra.mxu1 %v4865_v3  ;;  %3624 = vmatpush3.bf16.msra.mxu0 %v4865_v3 }
 0x1d3   :  { %3597 = vmatprep.subr.bf16.mxu1 %v4505_v47  ;;  %3657 = vmatprep.subr.bf16.mxu0 %v4505_v47 }
 0x1e4   :  { %v3527_v57 = vpop.f32.mrb[12].mxu0 }
 0x1e5   :  { %v4824_v1 = vadd.f32 %v3527_v57, %v4628_v45  ;;  %v772_v21 = vpop.f32.mrb[13].mxu0 }
 0x1e6   :  { %v4827_v0 = vadd.f32 %v4628_v45, %v772_v21  ;;  %v3528_v56 = vpop.f32.mrb[14].mxu0  ;;  %v3769_v21 = vld [vmem:[%s5913_s1 + $0x48] sm:$0xff]  }
 0x1e7   :  { %v5932_v10 = vmax.f32 %v4824_v1, 0.0  ;;  %v4832_v20 = vadd.f32 %v3528_v56, %v4628_v45  ;;  %v775_v25 = vpop.f32.mrb[15].mxu0  ;;  %v3771_v56 = vld [vmem:[%s5913_s1 + $0x40] sm:$0xff]  }
 0x1e8   :  { %6024 = vst [vmem:[#allocation13_spill] sm:$0xff] %v4827_v0  ;;  %v5928_v44 = vmax.f32 %v4827_v0, 0.0  ;;  %v4838_v29 = vadd.f32 %v4628_v45, %v775_v25  ;;  %v1429_v25 = vunpack.c.h.bf16 %v3769_v21 }
 0x1e9   :  { %6025 = vst [vmem:[#allocation14_spill] sm:$0xff] %v4832_v20  ;;  %v5923_v38 = vmax.f32 %v4832_v20, 0.0  ;;  %v833_v19 = vadd.f32 %v817_v14, %v5932_v10  ;;  %v1428_v14 = vunpack.c.l.bf16 %v3769_v21 }
 0x1ea   :  { %6026 = vst [vmem:[#allocation15_spill] sm:$0xff] %v4838_v29  ;;  %v5922_v17 = vmax.f32 %v4838_v29, 0.0  ;;  %v831_v8 = vadd.f32 %v815_v9, %v5928_v44  ;;  %v1992_v21 = vsub.f32 %v4623_v37, %v1429_v25 }
 0x1eb   :  { %v834_v49 = vadd.f32 %v818_v22, %v5923_v38  ;;  %v1426_v22 = vunpack.c.l.bf16 %v3771_v56 }
 0x1ec   :  { %v832_v36 = vadd.f32 %v816_v30, %v5922_v17  ;;  %v1427_v30 = vunpack.c.h.bf16 %v3771_v56 }
 0x1ed   :  { %v842_v4 = vpack.c.bf16 %v834_v49, %v833_v19  ;;  %v1991_v49 = vsub.f32 %v4616_v15, %v1428_v14 }
 0x1ee   :  { %v841_v57 = vpack.c.bf16 %v832_v36, %v831_v8  ;;  %v1989_v36 = vsub.f32 %v4621_v12, %v1426_v22  ;;  %v1990_v14 = vsub.f32 %v4632_v52, %v1427_v30 }
 0x1f0   :  { %3545 = vmatprep.mubr.msk.bf16.mxu1 %vm861_vm1, %v841_v57 }
 0x1f1   :  { %3546 = vmatmul.mubr.msk.bf16.gmra.mrb[12].mxu1 %vm861_vm1, %v842_v4 }
 0x209   :  { %v3583_v9 = vpop.f32.mrb[16].mxu0 }
 0x20a   :  { %v4880_v19 = vadd.f32 %v3583_v9, %v4628_v45  ;;  %v1910_v8 = vpop.f32.mrb[17].mxu0 }
 0x20b   :  { %v4884_v47 = vadd.f32 %v4628_v45, %v1910_v8  ;;  %v3584_v4 = vpop.f32.mrb[18].mxu0 }
 0x20c   :  { %6027 = vst [vmem:[#allocation16_spill] sm:$0xff] %v4880_v19  ;;  %v5927_v57 = vmax.f32 %v4880_v19, 0.0  ;;  %v4889_v17 = vadd.f32 %v3584_v4, %v4628_v45  ;;  %v1913_v56 = vpop.f32.mrb[19].mxu0 }
 0x20d   :  { %6028 = vst [vmem:[#allocation17_spill] sm:$0xff] %v4884_v47  ;;  %v5925_v9 = vmax.f32 %v4884_v47, 0.0  ;;  %v4894_v38 = vadd.f32 %v4628_v45, %v1913_v56 }
 0x20e   :  { %6029 = vst [vmem:[#allocation18_spill] sm:$0xff] %v4889_v17  ;;  %v4899_v8 = vadd.f32 %v1991_v49, %v5927_v57  ;;  %v5926_v22 = vmax.f32 %v4889_v17, 0.0 }
 0x20f   :  { %6030 = vst [vmem:[#allocation19_spill] sm:$0xff] %v4894_v38  ;;  %v4904_v4 = vadd.f32 %v1989_v36, %v5925_v9  ;;  %v5929_v25 = vmax.f32 %v4894_v38, 0.0  ;;  %v3773_v36 = vld [vmem:[%s5913_s1 + $0x58] sm:$0xff]   ;;  %v3775_v9 = vld [vmem:[%s5913_s1 + $0x50] sm:$0xff]  }
 0x210   :  { %v4909_v16 = vadd.f32 %v1992_v21, %v5926_v22  ;;  %v1432_v21 = vunpack.c.l.bf16 %v3773_v36  ;;  %v1433_v22 = vunpack.c.h.bf16 %v3773_v36  ;;  %v1430_v44 = vunpack.c.l.bf16 %v3775_v9 }
 0x211   :  { %v4913_v56 = vadd.f32 %v1990_v14, %v5929_v25  ;;  %v1431_v14 = vunpack.c.h.bf16 %v3775_v9 }
 0x212   :  { %v1995_v6 = vsub.f32 %v4684_v31, %v1432_v21  ;;  %v1996_v36 = vsub.f32 %v4687_v32, %v1433_v22 }
 0x22a   :  { %v3587_v57 = vpop.f32.mrb[20].mxu0 }
 0x22b   :  { %v4926_v25 = vadd.f32 %v3587_v57, %v4628_v45  ;;  %v1926_v41 = vpop.f32.mrb[21].mxu0  ;;  %v1993_v57 = vsub.f32 %v4689_v39, %v1430_v44 }
 0x22c   :  { %v4929_v53 = vadd.f32 %v4628_v45, %v1926_v41  ;;  %v3588_v10 = vpop.f32.mrb[22].mxu0  ;;  %v1994_v41 = vsub.f32 %v4692_v42, %v1431_v14 }
 0x22d   :  { %6031 = vst [vmem:[#allocation20_spill] sm:$0xff] %v4926_v25  ;;  %v5942_v11 = vmax.f32 %v4926_v25, 0.0  ;;  %v4934_v35 = vadd.f32 %v3588_v10, %v4628_v45  ;;  %v1929_v50 = vpop.f32.mrb[23].mxu0 }
 0x22e   :  { %6032 = vst [vmem:[#allocation21_spill] sm:$0xff] %v4929_v53  ;;  %v5941_v9 = vmax.f32 %v4929_v53, 0.0  ;;  %v4940_v48 = vadd.f32 %v4628_v45, %v1929_v50 }
 0x22f   :  { %6033 = vst [vmem:[#allocation22_spill] sm:$0xff] %v4934_v35  ;;  %v5940_v40 = vmax.f32 %v4934_v35, 0.0  ;;  %v4947_v10 = vadd.f32 %v1995_v6, %v5942_v11  ;;  %v3781_v6 = vld [vmem:[%s5913_s1 + $0x68] sm:$0xff]  }
 0x230   :  { %6034 = vst [vmem:[#allocation23_spill] sm:$0xff] %v4940_v48  ;;  %v5943_v43 = vmax.f32 %v4940_v48, 0.0  ;;  %v4955_v44 = vadd.f32 %v1993_v57, %v5941_v9  ;;  %v1436_v57 = vunpack.c.l.bf16 %v3781_v6  ;;  %v1437_v9 = vunpack.c.h.bf16 %v3781_v6 }
 0x231   :  { %v4951_v22 = vadd.f32 %v1996_v36, %v5940_v40  ;;  %v3783_v36 = vld [vmem:[%s5913_s1 + $0x60] sm:$0xff]  }
 0x232   :  { %v4959_v50 = vadd.f32 %v1994_v41, %v5943_v43  ;;  %v1434_v40 = vunpack.c.l.bf16 %v3783_v36  ;;  %v1435_v41 = vunpack.c.h.bf16 %v3783_v36  ;;  %v1999_v59 = vsub.f32 %v4616_v15, %v1436_v57 }
 0x233   :  { %v2000_v6 = vsub.f32 %v4623_v37, %v1437_v9 }
 0x234   :  { %v1997_v14 = vsub.f32 %v4621_v12, %v1434_v40  ;;  %v1998_v57 = vsub.f32 %v4632_v52, %v1435_v41 }
 0x24f   :  { %v3591_v11 = vpop.f32.mrb[24].mxu0 }
 0x250   :  { %v4972_v43 = vadd.f32 %v3591_v11, %v4628_v45  ;;  %v1942_v60 = vpop.f32.mrb[25].mxu0 }
 0x251   :  { %v4976_v21 = vadd.f32 %v4628_v45, %v1942_v60  ;;  %v3592_v30 = vpop.f32.mrb[26].mxu0 }
 0x252   :  { %6035 = vst [vmem:[#allocation24_spill] sm:$0xff] %v4972_v43  ;;  %v5952_v49 = vmax.f32 %v4972_v43, 0.0  ;;  %v4981_v48 = vadd.f32 %v3592_v30, %v4628_v45  ;;  %v1945_v36 = vpop.f32.mrb[27].mxu0 }
 0x253   :  { %6036 = vst [vmem:[#allocation25_spill] sm:$0xff] %v4976_v21  ;;  %v5949_v11 = vmax.f32 %v4976_v21, 0.0  ;;  %v4986_v35 = vadd.f32 %v4628_v45, %v1945_v36 }
 0x254   :  { %6037 = vst [vmem:[#allocation26_spill] sm:$0xff] %v4981_v48  ;;  %v4991_v60 = vadd.f32 %v1999_v59, %v5952_v49  ;;  %v5951_v40 = vmax.f32 %v4981_v48, 0.0 }
 0x255   :  { %6038 = vst [vmem:[#allocation27_spill] sm:$0xff] %v4986_v35  ;;  %v4996_v30 = vadd.f32 %v1997_v14, %v5949_v11  ;;  %v5950_v9 = vmax.f32 %v4986_v35, 0.0  ;;  %v3785_v14 = vld [vmem:[%s5913_s1 + $0x78] sm:$0xff]   ;;  %v3787_v11 = vld [vmem:[%s5913_s1 + $0x70] sm:$0xff]  }
 0x256   :  { %v5001_v53 = vadd.f32 %v2000_v6, %v5951_v40  ;;  %v1440_v6 = vunpack.c.l.bf16 %v3785_v14  ;;  %v1441_v40 = vunpack.c.h.bf16 %v3785_v14  ;;  %v1439_v35 = vunpack.c.h.bf16 %v3787_v11 }
 0x257   :  { %v5005_v36 = vadd.f32 %v1998_v57, %v5950_v9  ;;  %v5020_v57 = vld [vmem:[%s5919_s10] ss:$0 sm:$0xff]  ;;  %v1438_v9 = vunpack.c.l.bf16 %v3787_v11 }
 0x258   :  { %v2003_v43 = vsub.f32 %v4684_v31, %v1440_v6  ;;  %v2004_v6 = vsub.f32 %v4687_v32, %v1441_v40 }
 0x259   :  { %v2001_v14 = vsub.f32 %v4689_v39, %v1438_v9  ;;  %v2002_v9 = vsub.f32 %v4692_v42, %v1439_v35  ;;  %v2632_v42 = vpop.permute.xlu0 %2631 }
 0x25d   :  { %v2538_v29 = vpop.permute.xlu0 %2537 }
 0x270   :  { %v3595_v59 = vpop.f32.mrb[28].mxu0 }
 0x271   :  { %v5024_v21 = vadd.f32 %v3595_v59, %v4628_v45  ;;  %v1958_v25 = vpop.f32.mrb[29].mxu0 }
 0x272   :  { %v3535_v49 = vpop.f32.mrb[0].mxu1  ;;  %v5029_v47 = vadd.f32 %v4628_v45, %v1958_v25  ;;  %v3596_v19 = vpop.f32.mrb[30].mxu0 }
 0x273   :  { %v929_v41 = vadd.f32 %v3535_v49, %v5020_v57  ;;  %v920_v48 = vpop.f32.mrb[1].mxu1  ;;  %6039 = vst [vmem:[#allocation28_spill] sm:$0xff] %v5024_v21  ;;  %v5972_v49 = vmax.f32 %v5024_v21, 0.0  ;;  %v5035_v59 = vadd.f32 %v3596_v19, %v4628_v45  ;;  %v1961_v31 = vpop.f32.mrb[31].mxu0 }
 0x274   :  { %v921_v38 = vadd.f32 %v5020_v57, %v920_v48  ;;  %v3536_v17 = vpop.f32.mrb[2].mxu1  ;;  %6040 = vst [vmem:[#allocation29_spill] sm:$0xff] %v5029_v47  ;;  %v5971_v12 = vmax.f32 %v5029_v47, 0.0  ;;  %v5041_v25 = vadd.f32 %v4628_v45, %v1961_v31 }
 0x275   :  { %v932_v11 = vadd.f32 %v3536_v17, %v5020_v57  ;;  %v923_v52 = vpop.f32.mrb[3].mxu1  ;;  %6041 = vst [vmem:[#allocation30_spill] sm:$0xff] %v5035_v59  ;;  %v985_v39 = vmax.f32 %v929_v41, 0.0  ;;  %v5046_v37 = vadd.f32 %v2003_v43, %v5972_v49  ;;  %v5970_v19 = vmax.f32 %v5035_v59, 0.0 }
 0x276   :  { %v924_v48 = vadd.f32 %v5020_v57, %v923_v52  ;;  %6042 = vst [vmem:[#allocation31_spill] sm:$0xff] %v5041_v25  ;;  %v983_v15 = vmax.f32 %v921_v38, 0.0  ;;  %v5051_v52 = vadd.f32 %v2001_v14, %v5971_v12  ;;  %v5969_v32 = vmax.f32 %v5041_v25, 0.0  ;;  %v2533_v12 = vpop.permute.xlu1 %2532 }
 0x277   :  { %v986_v17 = vmax.f32 %v932_v11, 0.0  ;;  %v5056_v35 = vadd.f32 %v2004_v6, %v5970_v19 }
 0x278   :  { %v984_v40 = vmax.f32 %v924_v48, 0.0  ;;  %v5060_v43 = vadd.f32 %v2002_v9, %v5969_v32 }
 0x279   :  { %v1000_v45 = vpack.c.bf16 %v986_v17, %v985_v39  ;;  %v5071_v39 = vld [vmem:[%s5915_s9] sm:$0xff]  }
 0x27a   :  { %v999_v31 = vpack.c.bf16 %v984_v40, %v983_v15  ;;  %6043 = vst [vmem:[#allocation32_spill] sm:$0xff] %v5071_v39  ;;  %v5081_v40 = vld [vmem:[%s5915_s9 + $0x8] sm:$0xff]   ;;  %v2580_v49 = vpop.permute.xlu1 %2579 }
 0x27b   :  { %6044 = vst [vmem:[#allocation33_spill] sm:$0xff] %v5081_v40 }
 0x27c   :  { %3557 = vmatprep.mubr.msk.bf16.mxu1 %vm665_vm0, %v999_v31 }
 0x27d   :  { %3558 = vmatmul.mubr.msk.bf16.vlgmr.msra.gmra.mrb[16].mxu1 %vm665_vm0, %v1000_v45 }
 0x27e   :  { %3598 = vmatpush3.bf16.msra.mxu1 %v5071_v39  ;;  %v3539_v15 = vpop.f32.mrb[4].mxu1  ;;  %v2584_v38 = vpop.permute.xlu1 %2583 }
 0x27f   :  { %3599 = vmatprep.subr.bf16.mxu1 %v4515_v34  ;;  %v945_v14 = vadd.f32 %v3539_v15, %v5020_v57  ;;  %v936_v11 = vpop.f32.mrb[5].mxu1  ;;  %v3943_v34 = vld [vmem:[%s5910_s7] sm:$0xff]  }
 0x280   :  { %v937_v6 = vadd.f32 %v5020_v57, %v936_v11  ;;  %v3540_v48 = vpop.f32.mrb[6].mxu1 }
 0x281   :  { %v948_v9 = vadd.f32 %v3540_v48, %v5020_v57  ;;  %v939_v17 = vpop.f32.mrb[7].mxu1  ;;  %v989_v31 = vmax.f32 %v945_v14, 0.0 }
 0x282   :  { %3600 = vmatpush3.bf16.msra.mxu1 %v5081_v40  ;;  %v940_v45 = vadd.f32 %v5020_v57, %v939_v17  ;;  %v987_v11 = vmax.f32 %v937_v6, 0.0 }
 0x283   :  { %3641 = vmatprep.subr.bf16.mxu1 %v3943_v34  ;;  %v990_v15 = vmax.f32 %v948_v9, 0.0 }
 0x284   :  { %v988_v32 = vmax.f32 %v940_v45, 0.0 }
 0x285   :  { %v1002_v48 = vpack.c.bf16 %v990_v15, %v989_v31 }
 0x286   :  { %v1001_v19 = vpack.c.bf16 %v988_v32, %v987_v11 }
 0x288   :  { %3561 = vmatprep.mubr.msk.bf16.mxu1 %vm665_vm0, %v1001_v19  ;;  %v2548_v19 = vpop.permute.xlu1 %2547 }
 0x289   :  { %3562 = vmatmul.mubr.msk.bf16.gmra.mrb[20].mxu1 %vm665_vm0, %v1002_v48 }
 0x2a3   :  { %v3543_v41 = vpop.f32.mrb[8].mxu1 }
 0x2a4   :  { %v961_v17 = vadd.f32 %v3543_v41, %v5020_v57  ;;  %v952_v25 = vpop.f32.mrb[9].mxu1  ;;  %v2592_v41 = vpop.permute.xlu1 %2591 }
 0x2a5   :  { %v953_v59 = vadd.f32 %v5020_v57, %v952_v25  ;;  %v3544_v47 = vpop.f32.mrb[10].mxu1 }
 0x2a6   :  { %v964_v14 = vadd.f32 %v3544_v47, %v5020_v57  ;;  %v955_v6 = vpop.f32.mrb[11].mxu1  ;;  %v993_v32 = vmax.f32 %v961_v17, 0.0 }
 0x2a7   :  { %v956_v9 = vadd.f32 %v5020_v57, %v955_v6  ;;  %v991_v31 = vmax.f32 %v953_v59, 0.0 }
 0x2a8   :  { %v994_v45 = vmax.f32 %v964_v14, 0.0  ;;  %v2628_v21 = vpop.permute.xlu1 %2627 }
 0x2a9   :  { %v992_v15 = vmax.f32 %v956_v9, 0.0 }
 0x2aa   :  { %v1004_v11 = vpack.c.bf16 %v994_v45, %v993_v32  ;;  %v2543_v45 = vpop.permute.xlu0 %2542 }
 0x2ab   :  { %v1003_v48 = vpack.c.bf16 %v992_v15, %v991_v31 }
 0x2ac   :  { %v5096_v25 = vpop.permute.xlu1 %2635 }
 0x2ad   :  { %3565 = vmatprep.mubr.msk.bf16.mxu1 %vm665_vm0, %v1003_v48 }
 0x2ae   :  { %3566 = vmatmul.mubr.msk.bf16.gmra.mrb[24].mxu1 %vm665_vm0, %v1004_v11  ;;  %v2553_v58 = vpop.permute.xlu0 %2552 }
 0x2b0   :  { %v5098_v47 = vpop.permute.xlu1 %2639 }
 0x2b4   :  { %v2558_v17 = vpop.permute.xlu1 %2557 }
 0x2b8   :  { %v2596_v39 = vpop.permute.xlu1 %2595 }
 0x2c4   :  { %v3547_v6 = vpop.f32.mrb[12].mxu1 }
 0x2c5   :  { %v977_v14 = vadd.f32 %v3547_v6, %v5020_v57  ;;  %v968_v59 = vpop.f32.mrb[13].mxu1  ;;  %v6045_v6 = vpack.c.bf16 %v4913_v56, %v4904_v4  ;;  %v2571_v4 = vmul.f32 %v2538_v29, %v4291_v26  ;;  %v2659_v56 = vmul.f32 %v2632_v42, %v4296_v28 }
 0x2c6   :  { %v969_v9 = vadd.f32 %v5020_v57, %v968_v59  ;;  %v3548_v32 = vpop.f32.mrb[14].mxu1  ;;  %v2563_v59 = vpop.permute.xlu1 %2562  ;;  %v2573_v29 = vmul.f32 %v2548_v19, %v4291_v26  ;;  %v2572_v42 = vmul.f32 %v2543_v45, %v4291_v26  ;;  %v2575_v19 = vmul.f32 %v2558_v17, %v4291_v26 }
 0x2c7   :  { %v980_v31 = vadd.f32 %v3548_v32, %v5020_v57  ;;  %v971_v15 = vpop.f32.mrb[15].mxu1  ;;  %v997_v48 = vmax.f32 %v977_v14, 0.0  ;;  %v2588_v32 = vpop.permute.xlu0 %2587 }
 0x2c8   :  { %v972_v11 = vadd.f32 %v5020_v57, %v971_v15  ;;  %v995_v7 = vmax.f32 %v969_v9, 0.0  ;;  %v6046_v9 = vpack.c.bf16 %v4909_v16, %v4899_v8  ;;  %v3944_v16 = vld [vmem:[%s5910_s7 + $0x8] sm:$0xff]  }
 0x2c9   :  { %v998_v20 = vmax.f32 %v980_v31, 0.0  ;;  %v6049_v31 = vpack.c.bf16 %v5005_v36, %v4996_v30 }
 0x2ca   :  { %v996_v0 = vmax.f32 %v972_v11, 0.0  ;;  %v2568_v14 = vpop.permute.xlu1 %2567 }
 0x2cb   :  { %v1006_v40 = vpack.c.bf16 %v998_v20, %v997_v48  ;;  %v2600_v15 = vpop.permute.xlu0 %2599  ;;  %v2611_v20 = vmul.f32 %v2584_v38, %v4289_v24  ;;  %v6048_v38 = vpack.c.bf16 %v4951_v22, %v4947_v10  ;;  %v3946_v10 = vld [vmem:[%s5910_s7 + $0x18] sm:$0xff]   ;;  %v2574_v22 = vmul.f32 %v2553_v58, %v4291_v26 }
 0x2cc   :  { %v1005_v51 = vpack.c.bf16 %v996_v0, %v995_v7  ;;  %v2570_v7 = vmul.f32 %v2533_v12, %v4291_v26  ;;  %v2610_v0 = vmul.f32 %v2580_v49, %v4289_v24  ;;  %v3945_v49 = vld [vmem:[%s5910_s7 + $0x10] sm:$0xff]   ;;  %v2615_v45 = vmul.f32 %v2600_v15, %v4289_v24 }
 0x2ce   :  { %3569 = vmatprep.mubr.msk.bf16.mxu1 %vm665_vm0, %v1005_v51  ;;  %v6047_v51 = vpack.c.bf16 %v4959_v50, %v4955_v44  ;;  %v2618_v8 = vadd.f32 %v2610_v0, %v2570_v7  ;;  %v2619_v44 = vadd.f32 %v2611_v20, %v2571_v4  ;;  %v2658_v50 = vmul.f32 %v2628_v21, %v4296_v28  ;;  %v2608_v12 = vpop.permute.xlu1 %2607 }
 0x2cf   :  { %3570 = vmatmul.mubr.msk.bf16.gmra.mrb[28].mxu1 %vm665_vm0, %v1006_v40  ;;  %v2604_v40 = vpop.permute.xlu0 %2603  ;;  %v2612_v21 = vmul.f32 %v2588_v32, %v4289_v24  ;;  %v2660_v32 = vmul.f32 %v5096_v25, %v4296_v28  ;;  %v2623_v17 = vadd.f32 %v2615_v45, %v2575_v19  ;;  %v6050_v25 = vpack.c.bf16 %v5001_v53, %v4991_v60 }
 0x2d0   :  { %3601 = vmatprep.mubr.msk.bf16.mxu1 %vm861_vm1, %v6045_v6  ;;  %v2667_v11 = vadd.f32 %v2659_v56, %v2619_v44  ;;  %v2666_v48 = vadd.f32 %v2658_v50, %v2618_v8  ;;  %v6051_v4 = vpack.c.bf16 %v5060_v43, %v5051_v52  ;;  %v2577_v8 = vmul.f32 %v2568_v14, %v4291_v26 }
 0x2d1   :  { %v2616_v56 = vmul.f32 %v2604_v40, %v4289_v24  ;;  %v2617_v44 = vmul.f32 %v2608_v12, %v4289_v24  ;;  %v6052_v12 = vpack.c.bf16 %v5056_v35, %v5046_v37 }
 0x2d2   :  { %v2648_v30 = vpop.permute.xlu1 %2647  ;;  %v2675_v7 = vadd.f32 %v4653_v33, %v2667_v11  ;;  %v2674_v58 = vadd.f32 %v4653_v33, %v2666_v48 }
 0x2d3   :  { %v2644_v6 = vpop.permute.xlu0 %2643  ;;  %v2663_v0 = vmul.f32 %v2648_v30, %v4296_v28 }
 0x2d4   :  { %v2662_v15 = vmul.f32 %v2644_v6, %v4296_v28  ;;  %v2683_v50 = vmax.f32 %v2675_v7, 0.0 }
 0x2d5   :  { %v2671_v60 = vadd.f32 %v2663_v0, %v2623_v17 }
 0x2d7   :  { %3602 = vmatmul.mubr.msk.bf16.vlgmr.msra.gmra.mrb[32].mxu1 %vm861_vm1, %v6046_v9  ;;  %v2661_v9 = vmul.f32 %v5098_v47, %v4296_v28 }
 0x2d8   :  { %3642 = vmatpush3.bf16.msra.mxu1 %v3943_v34  ;;  %3605 = vmatprep.mubr.msk.bf16.mxu1 %vm861_vm1, %v6047_v51  ;;  %v2613_v34 = vmul.f32 %v2592_v41, %v4289_v24  ;;  %v2614_v41 = vmul.f32 %v2596_v39, %v4289_v24  ;;  %v2620_v51 = vadd.f32 %v2612_v21, %v2572_v42 }
 0x2d9   :  { %3643 = vmatprep.subr.bf16.mxu1 %v3944_v16  ;;  %v2625_v42 = vadd.f32 %v2617_v44, %v2577_v8  ;;  %v2679_v24 = vadd.f32 %v4653_v33, %v2671_v60 }
 0x2da   :  { %v2621_v36 = vadd.f32 %v2613_v34, %v2573_v29  ;;  %v2622_v39 = vadd.f32 %v2614_v41, %v2574_v22  ;;  %v2668_v20 = vadd.f32 %v2660_v32, %v2620_v51  ;;  %v2656_v29 = vpop.permute.xlu0 %2655 }
 0x2db   :  { %v2687_v22 = vmax.f32 %v2679_v24, 0.0 }
 0x2dc   :  { %3644 = vmatpush3.bf16.msra.mxu1 %v3944_v16  ;;  %v2669_v47 = vadd.f32 %v2661_v9, %v2621_v36  ;;  %v2576_v16 = vmul.f32 %v2563_v59, %v4291_v26  ;;  %v2670_v53 = vadd.f32 %v2662_v15, %v2622_v39  ;;  %v2676_v52 = vadd.f32 %v4653_v33, %v2668_v20 }
 0x2dd   :  { %3645 = vmatprep.subr.bf16.mxu1 %v3945_v49  ;;  %v2665_v59 = vmul.f32 %v2656_v29, %v4296_v28 }
 0x2de   :  { %v2677_v34 = vadd.f32 %v4653_v33, %v2669_v47  ;;  %v2624_v43 = vadd.f32 %v2616_v56, %v2576_v16  ;;  %v2678_v40 = vadd.f32 %v4653_v33, %v2670_v53 }
 0x2df   :  { %3606 = vmatmul.mubr.msk.bf16.gmra.mrb[36].mxu1 %vm861_vm1, %v6048_v38  ;;  %v2652_v38 = vpop.permute.xlu1 %2651  ;;  %v2673_v11 = vadd.f32 %v2665_v59, %v2625_v42 }
 0x2e0   :  { %3609 = vmatprep.mubr.msk.bf16.mxu1 %vm861_vm1, %v6049_v31  ;;  %3646 = vmatpush3.bf16.msra.mxu1 %v3945_v49  ;;  %v2682_v49 = vmax.f32 %v2674_v58, 0.0  ;;  %v2664_v26 = vmul.f32 %v2652_v38, %v4296_v28  ;;  %v2685_v21 = vmax.f32 %v2677_v34, 0.0  ;;  %v2684_v31 = vmax.f32 %v2676_v52, 0.0 }
 0x2e1   :  { %3647 = vmatprep.subr.bf16.mxu1 %v3946_v10  ;;  %v2681_v28 = vadd.f32 %v4653_v33, %v2673_v11 }
 0x2e2   :  { %v2690_v14 = vpack.c.bf16 %v2683_v50, %v2682_v49  ;;  %v2672_v48 = vadd.f32 %v2664_v26, %v2624_v43  ;;  %v2691_v19 = vpack.c.bf16 %v2685_v21, %v2684_v31 }
 0x2e3   :  { %v2689_v37 = vmax.f32 %v2681_v28, 0.0 }
 0x2e4   :  { %3648 = vmatpush3.bf16.msra.mxu1 %v3946_v10  ;;  %v2686_v10 = vmax.f32 %v2678_v40, 0.0  ;;  %v2680_v41 = vadd.f32 %v4653_v33, %v2672_v48 }
 0x2e5   :  { %3669 = vmatprep.subr.bf16.mxu1 %v4737_v13 }
 0x2e6   :  { %v2692_v45 = vpack.c.bf16 %v2687_v22, %v2686_v10  ;;  %v2688_v35 = vmax.f32 %v2680_v41, 0.0 }
 0x2e7   :  { %3610 = vmatmul.mubr.msk.bf16.gmra.mrb[40].mxu1 %vm861_vm1, %v6050_v25 }
 0x2e8   :  { %3613 = vmatprep.mubr.msk.bf16.mxu1 %vm861_vm1, %v6051_v4  ;;  %v2693_v6 = vpack.c.bf16 %v2689_v37, %v2688_v35  ;;  %v3752_v35 = vld [vmem:[%s5914_s0 + $0x8] sm:$0xff]  }
 0x2ef   :  { %3614 = vmatmul.mubr.msk.bf16.gmra.mrb[44].mxu1 %vm861_vm1, %v6052_v12 }
 0x2f0   :  { %3649 = vmatprep.mubr.msk.bf16.mxu1 %vm665_vm0, %v2690_v14 }
 0x2f7   :  { %3650 = vmatmul.mubr.msk.bf16.vlgmr.msra.gmra.mrb[48].mxu1 %vm665_vm0, %v2691_v19 }
 0x2f8   :  { %3653 = vmatprep.mubr.msk.bf16.mxu1 %vm665_vm0, %v2692_v45  ;;  %3670 = vmatpush3.bf16.msra.mxu1 %v4737_v13 }
 0x2f9   :  { %3671 = vmatprep.subr.bf16.mxu1 %v4745_v27 }
 0x2fc   :  { %3672 = vmatpush3.bf16.msra.mxu1 %v4745_v27 }
 0x2fd   :  { %3673 = vmatprep.subr.bf16.mxu1 %v4856_v63 }
 0x2ff   :  { %3654 = vmatmul.mubr.msk.bf16.gmra.mrb[52].mxu1 %vm665_vm0, %v2693_v6 }
 0x300   :  { %3674 = vmatpush3.bf16.msra.mxu1 %v4856_v63  ;;  %v5204_v63 = vld [vmem:[%s5920_s12] ss:$0 sm:$0xff] }
 0x301   :  { %3675 = vmatprep.subr.bf16.mxu1 %v4865_v3 }
 0x304   :  { %3676 = vmatpush3.bf16.msra.mxu1 %v4865_v3 }
 0x350   :  { %v3559_v33 = vpop.f32.mrb[16].mxu1 }
 0x351   :  { %v1095_v30 = vpop.f32.mrb[17].mxu1  ;;  %v1104_v7 = vadd.f32 %v3559_v33, %v5204_v63  ;;  %v3762_v33 = vld [vmem:[%s5914_s0 + $0x28] sm:$0xff]  }
 0x352   :  { %v3560_v13 = vpop.f32.mrb[18].mxu1  ;;  %v1096_v3 = vadd.f32 %v5204_v63, %v1095_v30 }
 0x353   :  { %v1098_v36 = vpop.f32.mrb[19].mxu1  ;;  %v1107_v39 = vadd.f32 %v3560_v13, %v5204_v63  ;;  %v1160_v20 = vmax.f32 %v1104_v7, 0.0 }
 0x354   :  { %v1099_v0 = vadd.f32 %v5204_v63, %v1098_v36  ;;  %v1158_v56 = vmax.f32 %v1096_v3, 0.0  ;;  %v3754_v36 = vld [vmem:[%s5914_s0] sm:$0xff]   ;;  %v275_v3 = vunpack.c.l.bf16 %v3752_v35 }
 0x355   :  { %v1161_v49 = vmax.f32 %v1107_v39, 0.0 }
 0x356   :  { %v1159_v29 = vmax.f32 %v1099_v0, 0.0  ;;  %v273_v0 = vunpack.c.l.bf16 %v3754_v36 }
 0x35c   :  { %v5193_v32 = vpop.f32.mrb[20].mxu1 }
 0x35d   :  { %v5195_v9 = vpop.f32.mrb[21].mxu1 }
 0x35e   :  { %v5197_v27 = vpop.f32.mrb[22].mxu1 }
 0x35f   :  { %v5199_v51 = vpop.f32.mrb[23].mxu1 }
 0x381   :  { %v3567_v58 = vpop.f32.mrb[24].mxu1 }
 0x382   :  { %v1136_v17 = vadd.f32 %v3567_v58, %v5204_v63  ;;  %v1127_v15 = vpop.f32.mrb[25].mxu1  ;;  %v3764_v58 = vld [vmem:[%s5914_s0 + $0x20] sm:$0xff]  }
 0x383   :  { %v1128_v25 = vadd.f32 %v5204_v63, %v1127_v15  ;;  %v3568_v47 = vpop.f32.mrb[26].mxu1 }
 0x384   :  { %v1168_v4 = vmax.f32 %v1136_v17, 0.0  ;;  %v1139_v16 = vadd.f32 %v3568_v47, %v5204_v63  ;;  %v1130_v8 = vpop.f32.mrb[27].mxu1  ;;  %v283_v17 = vunpack.c.l.bf16 %v3762_v33  ;;  %v6053_v47 = vmax.f32 %v4635_v2, 0.0 }
 0x385   :  { %v1166_v44 = vmax.f32 %v1128_v25, 0.0  ;;  %v1131_v50 = vadd.f32 %v5204_v63, %v1130_v8  ;;  %v6054_v8 = vmax.f32 %v4774_v54, 0.0 }
 0x386   :  { %v5214_v53 = vmax.f32 %v1160_v20, %v1168_v4  ;;  %v1169_v60 = vmax.f32 %v1139_v16, 0.0 }
 0x387   :  { %v5216_v38 = vmax.f32 %v1158_v56, %v1166_v44  ;;  %v1167_v34 = vmax.f32 %v1131_v50, 0.0 }
 0x388   :  { %v1200_v52 = vsub.f32 -inf, %v5214_v53  ;;  %v1224_v43 = vsub.f32 %v1160_v20, %v5214_v53  ;;  %v1248_v42 = vsub.f32 %v1168_v4, %v5214_v53  ;;  %v5221_v59 = vmax.f32 %v1161_v49, %v1169_v60 }
 0x389   :  { %v1198_v26 = vsub.f32 -inf, %v5216_v38  ;;  %v1222_v14 = vsub.f32 %v1158_v56, %v5216_v38  ;;  %v1246_v40 = vsub.f32 %v1166_v44, %v5216_v38  ;;  %v5226_v24 = vmax.f32 %v1159_v29, %v1167_v34 }
 0x38a   :  { %v1210_v12 = vmul.f32 1.442695, %v1200_v52  ;;  %v1234_v21 = vmul.f32 1.442695, %v1224_v43  ;;  %v1258_v31 = vmul.f32 1.442695, %v1248_v42  ;;  %v1225_v11 = vsub.f32 %v1161_v49, %v5221_v59 }
 0x38b   :  { %v1206_v48 = vmul.f32 1.442695, %v1198_v26  ;;  %v1249_v10 = vsub.f32 %v1169_v60, %v5221_v59  ;;  %v1230_v22 = vmul.f32 1.442695, %v1222_v14  ;;  %v1254_v19 = vmul.f32 1.442695, %v1246_v40 }
 0x38c   :  { %3789 = vpow2.f32 %v1210_v12  ;;  %v1201_v28 = vsub.f32 -inf, %v5221_v59  ;;  %v1199_v41 = vsub.f32 -inf, %v5226_v24  ;;  %v1223_v45 = vsub.f32 %v1159_v29, %v5226_v24 }
 0x38d   :  { %3791 = vpow2.f32 %v1234_v21  ;;  %v1247_v37 = vsub.f32 %v1167_v34, %v5226_v24  ;;  %v1236_v30 = vmul.f32 1.442695, %v1225_v11  ;;  %v1260_v13 = vmul.f32 1.442695, %v1249_v10 }
 0x38e   :  { %3793 = vpow2.f32 %v1258_v31  ;;  %v1212_v6 = vmul.f32 1.442695, %v1201_v28  ;;  %v1208_v7 = vmul.f32 1.442695, %v1199_v41  ;;  %v1232_v39 = vmul.f32 1.442695, %v1223_v45 }
 0x38f   :  { %3795 = vpow2.f32 %v1206_v48  ;;  %v1256_v15 = vmul.f32 1.442695, %v1247_v37  ;;  %v1176_v20 = vadd.f32 %v6053_v47, %v275_v3  ;;  %v281_v4 = vunpack.c.l.bf16 %v3764_v58 }
 0x390   :  { %3797 = vpow2.f32 %v1230_v22  ;;  %v1184_v56 = vadd.f32 %v6054_v8, %v283_v17  ;;  %v276_v49 = vunpack.c.h.bf16 %v3752_v35  ;;  %v6055_v34 = vmax.f32 %v4641_v5, 0.0 }
 0x391   :  { %3799 = vpow2.f32 %v1254_v19  ;;  %v284_v43 = vunpack.c.h.bf16 %v3762_v33  ;;  %v6056_v14 = vmax.f32 %v4779_v55, 0.0  ;;  %v274_v31 = vunpack.c.h.bf16 %v3754_v36 }
 0x392   :  { %3801 = vpow2.f32 %v1212_v6  ;;  %v1174_v52 = vadd.f32 %v6055_v34, %v273_v0  ;;  %v282_v11 = vunpack.c.h.bf16 %v3764_v58  ;;  %v6057_v19 = vmax.f32 %v4647_v23, 0.0 }
 0x393   :  { %3803 = vpow2.f32 %v1236_v30  ;;  %v1182_v40 = vadd.f32 %v6056_v14, %v281_v4  ;;  %v6058_v55 = vmax.f32 %v4783_v61, 0.0  ;;  %v6059_v3 = vmax.f32 %v4658_v46, 0.0 }
 0x394   :  { %3805 = vpow2.f32 %v1260_v13  ;;  %v1177_v5 = vadd.f32 %v6057_v19, %v276_v49  ;;  %v6060_v0 = vmax.f32 %v4792_v18, 0.0  ;;  %v1120_v4 = vadd.f32 %v5193_v32, %v5204_v63  ;;  %v5281_v18 = vld [vmem:[%s5914_s0 + $0x18] sm:$0xff]  }
 0x395   :  { %3807 = vpow2.f32 %v1208_v7  ;;  %v1185_v35 = vadd.f32 %v6058_v55, %v284_v43  ;;  %v1175_v58 = vadd.f32 %v6059_v3, %v274_v31  ;;  %v1112_v46 = vadd.f32 %v5204_v63, %v5195_v9  ;;  %v5289_v9 = vld [vmem:[%s5914_s0 + $0x10] sm:$0xff]  }
 0x396   :  { %v3790_v25 = vpop.eup %3789  ;;  %3809 = vpow2.f32 %v1232_v39  ;;  %v277_v19 = vunpack.c.l.bf16 %v5289_v9 }
 0x397   :  { %v3792_v16 = vpop.eup %3791  ;;  %v1272_v44 = vmul.f32 0.0, %v3790_v25  ;;  %3811 = vpow2.f32 %v1256_v15  ;;  %v1183_v25 = vadd.f32 %v6060_v0, %v282_v11  ;;  %v279_v11 = vunpack.c.l.bf16 %v5281_v18 }
 0x398   :  { %v3794_v50 = vpop.eup %3793  ;;  %v1296_v60 = vmul.f32 %v3792_v16, %v1176_v20 }
 0x399   :  { %v3796_v29 = vpop.eup %3795  ;;  %v1280_v42 = vadd.f32 %v3792_v16, %v1272_v44  ;;  %v1312_v26 = vmul.f32 %v3794_v50, %v1184_v56 }
 0x39a   :  { %v3798_v2 = vpop.eup %3797  ;;  %v1304_v12 = vadd.f32 %v1296_v60, %v1272_v44  ;;  %v1270_v21 = vmul.f32 0.0, %v3796_v29  ;;  %v1123_v60 = vadd.f32 %v5197_v27, %v5204_v63 }
 0x39b   :  { %v3800_v54 = vpop.eup %3799  ;;  %v5254_v48 = vadd.f32 %v3794_v50, %v1280_v42  ;;  %v1294_v10 = vmul.f32 %v3798_v2, %v1174_v52  ;;  %v1115_v52 = vadd.f32 %v5204_v63, %v5199_v51 }
 0x39c   :  { %v3802_v22 = vpop.eup %3801  ;;  %v5258_v28 = vadd.f32 %v1312_v26, %v1304_v12  ;;  %v1278_v41 = vadd.f32 %v3798_v2, %v1270_v21  ;;  %v1310_v45 = vmul.f32 %v3800_v54, %v1182_v40  ;;  %v1164_v2 = vmax.f32 %v1120_v4, 0.0 }
 0x39d   :  { %v3804_v37 = vpop.eup %3803  ;;  %v1302_v6 = vadd.f32 %v1294_v10, %v1270_v21  ;;  %v1273_v33 = vmul.f32 0.0, %v3802_v22  ;;  %v1162_v21 = vmax.f32 %v1112_v46, 0.0  ;;  %v1165_v10 = vmax.f32 %v1123_v60, 0.0 }
 0x39e   :  { %v3806_v30 = vpop.eup %3805  ;;  %v5262_v13 = vadd.f32 %v3800_v54, %v1278_v41  ;;  %v1297_v36 = vmul.f32 %v3804_v37, %v1177_v5  ;;  %v1163_v5 = vmax.f32 %v1115_v52, 0.0 }
 0x39f   :  { %v3808_v7 = vpop.eup %3807  ;;  %v5266_v23 = vadd.f32 %v1310_v45, %v1302_v6  ;;  %v1281_v39 = vadd.f32 %v3804_v37, %v1273_v33  ;;  %v1313_v17 = vmul.f32 %v3806_v30, %v1185_v35 }
 0x3a0   :  { %v3810_v15 = vpop.eup %3809  ;;  %v1305_v61 = vadd.f32 %v1297_v36, %v1273_v33  ;;  %v1271_v47 = vmul.f32 0.0, %v3808_v7  ;;  %v5314_v33 = vld [vmem:[%s5914_s0 + $0x38] sm:$0xff]  }
 0x3a1   :  { %v3812_v20 = vpop.eup %3811  ;;  %v5272_v16 = vadd.f32 %v3806_v30, %v1281_v39  ;;  %v1295_v8 = vmul.f32 %v3810_v15, %v1175_v58 }
 0x3a2   :  { %v5276_v56 = vadd.f32 %v1313_v17, %v1305_v61  ;;  %v1279_v44 = vadd.f32 %v3810_v15, %v1271_v47  ;;  %v1311_v50 = vmul.f32 %v3812_v20, %v1183_v25  ;;  %v3571_v49 = vpop.f32.mrb[28].mxu1  ;;  %v280_v25 = vunpack.c.h.bf16 %v5281_v18 }
 0x3a3   :  { %v1303_v32 = vadd.f32 %v1295_v8, %v1271_v47  ;;  %v1152_v29 = vadd.f32 %v3571_v49, %v5204_v63  ;;  %v1143_v34 = vpop.f32.mrb[29].mxu1  ;;  %v278_v61 = vunpack.c.h.bf16 %v5289_v9 }
 0x3a4   :  { %v5293_v43 = vadd.f32 %v3812_v20, %v1279_v44  ;;  %v1144_v42 = vadd.f32 %v5204_v63, %v1143_v34  ;;  %v3572_v26 = vpop.f32.mrb[30].mxu1 }
 0x3a5   :  { %v5296_v14 = vadd.f32 %v1311_v50, %v1303_v32  ;;  %v1172_v27 = vmax.f32 %v1152_v29, 0.0  ;;  %v1155_v40 = vadd.f32 %v3572_v26, %v5204_v63  ;;  %v1146_v12 = vpop.f32.mrb[31].mxu1  ;;  %v287_v29 = vunpack.c.l.bf16 %v5314_v33  ;;  %v5334_v26 = vld [vmem:[%s5914_s0 + $0x30] sm:$0xff]  }
 0x3a6   :  { %v1170_v54 = vmax.f32 %v1144_v42, 0.0  ;;  %v1147_v31 = vadd.f32 %v5204_v63, %v1146_v12 }
 0x3a7   :  { %v5301_v51 = vmax.f32 %v1164_v2, %v1172_v27  ;;  %v1173_v22 = vmax.f32 %v1155_v40, 0.0 }
 0x3a8   :  { %v5304_v41 = vmax.f32 %v1162_v21, %v1170_v54  ;;  %v1171_v45 = vmax.f32 %v1147_v31, 0.0 }
 0x3a9   :  { %v1204_v37 = vsub.f32 -inf, %v5301_v51  ;;  %v1228_v55 = vsub.f32 %v1164_v2, %v5301_v51  ;;  %v1252_v35 = vsub.f32 %v1172_v27, %v5301_v51  ;;  %v5309_v6 = vmax.f32 %v1165_v10, %v1173_v22 }
 0x3aa   :  { %v1202_v30 = vsub.f32 -inf, %v5304_v41  ;;  %v1226_v36 = vsub.f32 %v1162_v21, %v5304_v41  ;;  %v1250_v7 = vsub.f32 %v1170_v54, %v5304_v41  ;;  %v5319_v3 = vmax.f32 %v1163_v5, %v1171_v45  ;;  %v3603_v58 = vpop.f32.mrb[32].mxu1 }
 0x3ab   :  { %v1218_v39 = vmul.f32 1.442695, %v1204_v37  ;;  %v1242_v17 = vmul.f32 1.442695, %v1228_v55  ;;  %v1266_v15 = vmul.f32 1.442695, %v1252_v35  ;;  %v1229_v0 = vsub.f32 %v1165_v10, %v5309_v6 }
 0x3ac   :  { %v1214_v47 = vmul.f32 1.442695, %v1202_v30  ;;  %v1253_v20 = vsub.f32 %v1173_v22, %v5309_v6  ;;  %v1238_v4 = vmul.f32 1.442695, %v1226_v36  ;;  %v1205_v8 = vsub.f32 -inf, %v5309_v6  ;;  %v2087_v44 = vpop.f32.mrb[33].mxu1 }
 0x3ad   :  { %3813 = vpow2.f32 %v1218_v39  ;;  %v1203_v46 = vsub.f32 -inf, %v5319_v3  ;;  %v1262_v50 = vmul.f32 1.442695, %v1250_v7  ;;  %v1227_v49 = vsub.f32 %v1163_v5, %v5319_v3  ;;  %v3604_v32 = vpop.f32.mrb[34].mxu1 }
 0x3ae   :  { %3815 = vpow2.f32 %v1242_v17  ;;  %v1251_v60 = vsub.f32 %v1171_v45, %v5319_v3  ;;  %v1220_v34 = vmul.f32 1.442695, %v1205_v8  ;;  %v2096_v52 = vadd.f32 %v3603_v58, %v5020_v57  ;;  %v2090_v42 = vpop.f32.mrb[35].mxu1 }
 0x3af   :  { %3817 = vpow2.f32 %v1266_v15  ;;  %v1244_v2 = vmul.f32 1.442695, %v1229_v0  ;;  %v1268_v27 = vmul.f32 1.442695, %v1253_v20  ;;  %v2088_v40 = vadd.f32 %v5020_v57, %v2087_v44 }
 0x3b0   :  { %3819 = vpow2.f32 %v1214_v47  ;;  %v1216_v12 = vmul.f32 1.442695, %v1203_v46  ;;  %v2099_v21 = vadd.f32 %v3604_v32, %v5020_v57  ;;  %v2091_v54 = vadd.f32 %v5020_v57, %v2090_v42 }
 0x3b1   :  { %3821 = vpow2.f32 %v1238_v4  ;;  %v1240_v31 = vmul.f32 1.442695, %v1227_v49  ;;  %v2152_v10 = vmax.f32 %v2096_v52, 0.0  ;;  %v2150_v22 = vmax.f32 %v2088_v40, 0.0  ;;  %v6063_v52 = vld [vmem:[#allocation10_spill] sm:$0xff] }
 0x3b2   :  { %3823 = vpow2.f32 %v1262_v50  ;;  %v3607_v5 = vpop.f32.mrb[36].mxu1  ;;  %v2153_v45 = vmax.f32 %v2099_v21, 0.0  ;;  %v2151_v37 = vmax.f32 %v2091_v54, 0.0  ;;  %v285_v30 = vunpack.c.l.bf16 %v5334_v26  ;;  %v6067_v21 = vld [vmem:[#allocation32_spill] sm:$0xff] }
 0x3b3   :  { %3825 = vpow2.f32 %v1220_v34  ;;  %v2112_v55 = vadd.f32 %v3607_v5, %v5020_v57  ;;  %v2103_v35 = vpop.f32.mrb[37].mxu1  ;;  %v1264_v36 = vmul.f32 1.442695, %v1251_v60  ;;  %v288_v39 = vunpack.c.h.bf16 %v5314_v33 }
 0x3b4   :  { %3827 = vpow2.f32 %v1244_v2  ;;  %v2104_v7 = vadd.f32 %v5020_v57, %v2103_v35  ;;  %v3608_v58 = vpop.f32.mrb[38].mxu1  ;;  %v2167_v17 = vpack.c.bf16 %v2153_v45, %v2152_v10  ;;  %v2166_v15 = vpack.c.bf16 %v2151_v37, %v2150_v22  ;;  %v6068_v37 = vld [vmem:[#allocation33_spill] sm:$0xff] }
 0x3b5   :  { %3829 = vpow2.f32 %v1268_v27  ;;  %v2106_v0 = vpop.f32.mrb[39].mxu1  ;;  %v6061_v47 = vmax.f32 %v4696_v62, 0.0  ;;  %v2115_v4 = vadd.f32 %v3608_v58, %v5020_v57  ;;  %v6062_v44 = vmax.f32 %v4824_v1, 0.0  ;;  %v6065_v1 = vld [vmem:[#allocation11_spill] sm:$0xff] }
 0x3b6   :  { %3831 = vpow2.f32 %v1216_v12  ;;  %v2107_v8 = vadd.f32 %v5020_v57, %v2106_v0  ;;  %v2156_v33 = vmax.f32 %v2112_v55, 0.0  ;;  %v2154_v49 = vmax.f32 %v2104_v7, 0.0  ;;  %3625 = vmatprep.mubr.msk.bf16.mxu0 %vm665_vm0, %v2166_v15 }
 0x3b7   :  { %v1180_v20 = vadd.f32 %v6061_v47, %v279_v11  ;;  %v3814_v46 = vpop.eup %3813  ;;  %v1188_v50 = vadd.f32 %v6062_v44, %v287_v29  ;;  %3833 = vpow2.f32 %v1240_v31  ;;  %v2157_v34 = vmax.f32 %v2115_v4, 0.0  ;;  %3626 = vmatmul.mubr.msk.bf16.vlgmr.msra.gmra.mrb[32].mxu0 %vm665_vm0, %v2167_v17  ;;  %v6071_v17 = vld [vmem:[#allocation12_spill] sm:$0xff]  ;;  %v6073_v47 = vld [vmem:[#allocation14_spill] sm:$0xff] }
 0x3b8   :  { %v3816_v60 = vpop.eup %3815  ;;  %v1276_v32 = vmul.f32 0.0, %v3814_v46  ;;  %3835 = vpow2.f32 %v1264_v36  ;;  %v2155_v62 = vmax.f32 %v2107_v8, 0.0  ;;  %v6064_v42 = vmax.f32 %v6063_v52, 0.0  ;;  %3658 = vmatpush3.bf16.msra.mxu0 %v6067_v21 }
 0x3b9   :  { %v3818_v11 = vpop.eup %3817  ;;  %v6066_v29 = vmax.f32 %v6065_v1, 0.0  ;;  %v286_v40 = vunpack.c.h.bf16 %v5334_v26  ;;  %v1300_v12 = vmul.f32 %v3816_v60, %v1180_v20  ;;  %v2169_v22 = vpack.c.bf16 %v2157_v34, %v2156_v33  ;;  %3659 = vmatprep.subr.bf16.mxu0 %v6068_v37 }
 0x3ba   :  { %v1178_v2 = vadd.f32 %v6064_v42, %v277_v19  ;;  %v3820_v54 = vpop.eup %3819  ;;  %v1284_v31 = vadd.f32 %v3816_v60, %v1276_v32  ;;  %v1316_v10 = vmul.f32 %v3818_v11, %v1188_v50  ;;  %v2168_v5 = vpack.c.bf16 %v2155_v62, %v2154_v49  ;;  %v3611_v45 = vpop.f32.mrb[40].mxu1  ;;  %v6069_v19 = vld [vmem:[#allocation13_spill] sm:$0xff] }
 0x3bb   :  { %v1181_v27 = vadd.f32 %v6066_v29, %v280_v25  ;;  %v3822_v55 = vpop.eup %3821  ;;  %v6070_v35 = vmax.f32 %v6069_v19, 0.0  ;;  %v1308_v36 = vadd.f32 %v1300_v12, %v1276_v32  ;;  %v1274_v7 = vmul.f32 0.0, %v3820_v54  ;;  %v2119_v26 = vpop.f32.mrb[41].mxu1  ;;  %v6075_v32 = vld [vmem:[#allocation15_spill] sm:$0xff] }
 0x3bc   :  { %v2128_v25 = vadd.f32 %v3611_v45, %v5020_v57  ;;  %v3824_v58 = vpop.eup %3823  ;;  %v6072_v15 = vmax.f32 %v6071_v17, 0.0  ;;  %v6074_v20 = vmax.f32 %v6073_v47, 0.0  ;;  %v5373_v8 = vadd.f32 %v3818_v11, %v1284_v31  ;;  %v3612_v44 = vpop.f32.mrb[42].mxu1  ;;  %3629 = vmatprep.mubr.msk.bf16.mxu0 %vm665_vm0, %v2168_v5  ;;  %3660 = vmatpush3.bf16.msra.mxu0 %v6068_v37 }
 0x3bd   :  { %v1186_v18 = vadd.f32 %v6070_v35, %v285_v30  ;;  %v1298_v46 = vmul.f32 %v3822_v55, %v1178_v2  ;;  %v3826_v30 = vpop.eup %3825  ;;  %v5376_v50 = vadd.f32 %v1316_v10, %v1308_v36  ;;  %v1282_v33 = vadd.f32 %v3822_v55, %v1274_v7  ;;  %v2122_v9 = vpop.f32.mrb[43].mxu1 }
 0x3be   :  { %v1179_v0 = vadd.f32 %v6072_v15, %v278_v61  ;;  %v1189_v4 = vadd.f32 %v6074_v20, %v288_v39  ;;  %v2120_v60 = vadd.f32 %v5020_v57, %v2119_v26  ;;  %v3828_v61 = vpop.eup %3827  ;;  %v6076_v34 = vmax.f32 %v6075_v32, 0.0 }
 0x3bf   :  { %v1314_v49 = vmul.f32 %v3824_v58, %v1186_v18  ;;  %v1306_v62 = vadd.f32 %v1298_v46, %v1274_v7  ;;  %v1277_v11 = vmul.f32 0.0, %v3826_v30  ;;  %v2131_v52 = vadd.f32 %v3612_v44, %v5020_v57  ;;  %v3830_v42 = vpop.eup %3829  ;;  %3630 = vmatmul.mubr.msk.bf16.gmra.mrb[36].mxu0 %vm665_vm0, %v2169_v22 }
 0x3c0   :  { %v1187_v39 = vadd.f32 %v6076_v34, %v286_v40  ;;  %v5383_v2 = vadd.f32 %v3824_v58, %v1282_v33  ;;  %v1301_v1 = vmul.f32 %v3828_v61, %v1181_v27  ;;  %v2160_v29 = vmax.f32 %v2128_v25, 0.0  ;;  %v3832_v21 = vpop.eup %3831  ;;  %v5404_v33 = vld [vmem:[%s5919_s10] ss:$0 sm:$0xff] }
 0x3c1   :  { %v2123_v12 = vadd.f32 %v5020_v57, %v2122_v9  ;;  %v5386_v54 = vadd.f32 %v1314_v49, %v1306_v62  ;;  %v1285_v31 = vadd.f32 %v3828_v61, %v1277_v11  ;;  %v1317_v10 = vmul.f32 %v3830_v42, %v1189_v4  ;;  %v3834_v40 = vpop.eup %3833 }
 0x3c2   :  { %v2161_v5 = vmax.f32 %v2131_v52, 0.0  ;;  %v1309_v45 = vadd.f32 %v1301_v1, %v1277_v11  ;;  %v1275_v37 = vmul.f32 0.0, %v3832_v21  ;;  %v2158_v55 = vmax.f32 %v2120_v60, 0.0  ;;  %v3836_v35 = vpop.eup %3835  ;;  %v3615_v7 = vpop.f32.mrb[44].mxu1  ;;  %v3408_v60 = vld [vmem:[%s5913_s1 + $0x88] sm:$0xff]  }
 0x3c3   :  { %v2159_v19 = vmax.f32 %v2123_v12, 0.0  ;;  %v5389_v18 = vadd.f32 %v3830_v42, %v1285_v31  ;;  %v1299_v27 = vmul.f32 %v3834_v40, %v1179_v0  ;;  %v1315_v58 = vmul.f32 %v3836_v35, %v1187_v39  ;;  %v2135_v15 = vpop.f32.mrb[45].mxu1  ;;  %v3948_v12 = vld [vmem:[%s5917_s8] ss:$0 sm:$0xff] }
 0x3c4   :  { %v2171_v36 = vpack.c.bf16 %v2161_v5, %v2160_v29  ;;  %v5391_v25 = vadd.f32 %v1317_v10, %v1309_v45  ;;  %v1283_v26 = vadd.f32 %v3834_v40, %v1275_v37  ;;  %v2144_v22 = vadd.f32 %v3615_v7, %v5020_v57  ;;  %v3616_v4 = vpop.f32.mrb[46].mxu1  ;;  %v6083_v45 = vld [vmem:[#allocation2_spill] sm:$0xff]  ;;  %v6086_v7 = vld [vmem:[#allocation3_spill] sm:$0xff] }
 0x3c5   :  { %6077 = vst [vmem:[#allocation10_spill] sm:$0xff] %v5389_v18  ;;  %v2170_v17 = vpack.c.bf16 %v2159_v19, %v2158_v55  ;;  %v1307_v47 = vadd.f32 %v1299_v27, %v1275_v37  ;;  %v2136_v20 = vadd.f32 %v5020_v57, %v2135_v15  ;;  %v2147_v44 = vadd.f32 %v3616_v4, %v5020_v57  ;;  %v2138_v0 = vpop.f32.mrb[47].mxu1  ;;  %v3407_v57 = vld [vmem:[%s5913_s1 + $0x80] sm:$0xff]   ;;  %v6085_v19 = vld [vmem:[#allocation4_spill] sm:$0xff] }
 0x3c6   :  { %6078 = vst [vmem:[#allocation11_spill] sm:$0xff] %v5391_v25  ;;  %v5395_v46 = vadd.f32 %v3836_v35, %v1283_v26  ;;  %v2139_v49 = vadd.f32 %v5404_v33, %v2138_v0  ;;  %v2164_v9 = vmax.f32 %v2144_v22, 0.0  ;;  %v3378_v62 = vunpack.c.l.bf16 %v3408_v60 }
 0x3c7   :  { %3633 = vmatprep.mubr.msk.bf16.mxu0 %vm665_vm0, %v2170_v17  ;;  %v5399_v30 = vadd.f32 %v1315_v58, %v1307_v47  ;;  %v2165_v61 = vmax.f32 %v2147_v44, 0.0  ;;  %v2162_v32 = vmax.f32 %v2136_v20, 0.0  ;;  %v3379_v11 = vunpack.c.h.bf16 %v3408_v60  ;;  %v6088_v17 = vld [vmem:[#allocation5_spill] sm:$0xff]  ;;  %v3409_v20 = vld [vmem:[%s5913_s1 + $0x90] sm:$0xff]  }
 0x3c8   :  { %6079 = vst [vmem:[#allocation32_spill] sm:$0xff] %v5395_v46  ;;  %v2163_v34 = vmax.f32 %v2139_v49, 0.0  ;;  %3634 = vmatmul.mubr.msk.bf16.gmra.mrb[40].mxu0 %vm665_vm0, %v2171_v36  ;;  %v3374_v1 = vunpack.c.l.bf16 %v3407_v57  ;;  %v3375_v29 = vunpack.c.h.bf16 %v3407_v57  ;;  %v2781_v37 = vsub.f32 %v6083_v45, %v3378_v62  ;;  %v3410_v47 = vld [vmem:[%s5913_s1 + $0x98] sm:$0xff]  }
 0x3c9   :  { %6080 = vst [vmem:[#allocation33_spill] sm:$0xff] %v5399_v30  ;;  %v2173_v39 = vpack.c.bf16 %v2165_v61, %v2164_v9  ;;  %v2782_v35 = vsub.f32 %v6085_v19, %v3379_v11  ;;  %v3386_v49 = vunpack.c.l.bf16 %v3410_v47  ;;  %v3387_v60 = vunpack.c.h.bf16 %v3410_v47 }
 0x3ca   :  { %v2172_v52 = vpack.c.bf16 %v2163_v34, %v2162_v32  ;;  %v3651_v42 = vpop.f32.mrb[48].mxu1  ;;  %v2779_v26 = vsub.f32 %v6086_v7, %v3374_v1  ;;  %v2780_v15 = vsub.f32 %v6088_v17, %v3375_v29  ;;  %v3382_v32 = vunpack.c.l.bf16 %v3409_v20  ;;  %v6094_v7 = vld [vmem:[#allocation8_spill] sm:$0xff] }
 0x3cb   :  { %v5417_v21 = vadd.f32 %v3948_v12, %v3651_v42  ;;  %v2740_v31 = vpop.f32.mrb[49].mxu1  ;;  %v3383_v34 = vunpack.c.h.bf16 %v3409_v20 }
 0x3cc   :  { %v5419_v10 = vadd.f32 %v3948_v12, %v2740_v31  ;;  %3637 = vmatprep.mubr.msk.bf16.mxu0 %vm665_vm0, %v2172_v52  ;;  %v3652_v5 = vpop.f32.mrb[50].mxu1  ;;  %v6091_v31 = vld [vmem:[#allocation6_spill] sm:$0xff] }
 0x3cd   :  { %6081 = vst [vmem:[#allocation13_spill] sm:$0xff] %v5417_v21  ;;  %v5994_v40 = vmax.f32 %v5417_v21, 0.0  ;;  %v5424_v55 = vadd.f32 %v3948_v12, %v3652_v5  ;;  %v2743_v27 = vpop.f32.mrb[51].mxu1  ;;  %v2785_v5 = vsub.f32 %v6091_v31, %v3386_v49  ;;  %v5491_v31 = vld [vmem:[%s5914_s0 + $0x50] sm:$0xff]  }
 0x3ce   :  { %6082 = vst [vmem:[#allocation12_spill] sm:$0xff] %v5419_v10  ;;  %v5993_v36 = vmax.f32 %v5419_v10, 0.0  ;;  %v5429_v58 = vadd.f32 %v3948_v12, %v2743_v27  ;;  %v6106_v10 = vld [vmem:[#allocation19_spill] sm:$0xff] }
 0x3cf   :  { %6084 = vst [vmem:[#allocation14_spill] sm:$0xff] %v5424_v55  ;;  %v5992_v22 = vmax.f32 %v5424_v55, 0.0  ;;  %v2789_v44 = vadd.f32 %v2781_v37, %v5994_v40  ;;  %v6093_v37 = vld [vmem:[#allocation7_spill] sm:$0xff] }
 0x3d0   :  { %6087 = vst [vmem:[#allocation15_spill] sm:$0xff] %v5429_v58  ;;  %3638 = vmatmul.mubr.msk.bf16.gmra.mrb[44].mxu0 %vm665_vm0, %v2173_v39  ;;  %v5991_v4 = vmax.f32 %v5429_v58, 0.0  ;;  %v2787_v9 = vadd.f32 %v2779_v26, %v5993_v36  ;;  %v2786_v19 = vsub.f32 %v6093_v37, %v3387_v60  ;;  %v2783_v26 = vsub.f32 %v6094_v7, %v3382_v32  ;;  %v3784_v37 = vld [vmem:[%s5914_s0 + $0x60] sm:$0xff]   ;;  %v6102_v36 = vld [vmem:[#allocation17_spill] sm:$0xff] }
 0x3d1   :  { %v2790_v0 = vadd.f32 %v2782_v35, %v5992_v22  ;;  %6098 = vst [vmem:[#allocation7_spill] sm:$0xff] %v5491_v31  ;;  %v6103_v40 = vmax.f32 %v6102_v36, 0.0 }
 0x3d2   :  { %v2788_v61 = vadd.f32 %v2780_v15, %v5991_v4  ;;  %v3655_v57 = vpop.f32.mrb[52].mxu1  ;;  %v6096_v15 = vld [vmem:[#allocation9_spill] sm:$0xff] }
 0x3d3   :  { %v2796_v39 = vpack.c.bf16 %v2790_v0, %v2789_v44  ;;  %v5449_v62 = vadd.f32 %v3948_v12, %v3655_v57  ;;  %v2756_v11 = vpop.f32.mrb[53].mxu1  ;;  %v2784_v47 = vsub.f32 %v6096_v15, %v3383_v34 }
 0x3d4   :  { %v2795_v52 = vpack.c.bf16 %v2788_v61, %v2787_v9  ;;  %v5451_v42 = vadd.f32 %v3948_v12, %v2756_v11  ;;  %v3656_v1 = vpop.f32.mrb[54].mxu1  ;;  %v3770_v11 = vld [vmem:[%s5914_s0 + $0x48] sm:$0xff]  }
 0x3d5   :  { %6089 = vst [vmem:[#allocation2_spill] sm:$0xff] %v5449_v62  ;;  %v5990_v29 = vmax.f32 %v5449_v62, 0.0  ;;  %v5455_v45 = vadd.f32 %v3948_v12, %v3656_v1  ;;  %v2759_v35 = vpop.f32.mrb[55].mxu1  ;;  %v5486_v1 = vld [vmem:[%s5914_s0 + $0x58] sm:$0xff]   ;;  %v1510_v7 = vunpack.c.l.bf16 %v3770_v11  ;;  %v6104_v62 = vld [vmem:[#allocation18_spill] sm:$0xff] }
 0x3d6   :  { %6090 = vst [vmem:[#allocation4_spill] sm:$0xff] %v5451_v42  ;;  %v5989_v27 = vmax.f32 %v5451_v42, 0.0  ;;  %v5460_v17 = vadd.f32 %v3948_v12, %v2759_v35  ;;  %3661 = vmatprep.mubr.msk.bf16.mxu0 %vm861_vm1, %v2795_v52  ;;  %v3772_v52 = vld [vmem:[%s5914_s0 + $0x40] sm:$0xff]   ;;  %6097 = vst [vmem:[#allocation6_spill] sm:$0xff] %v5486_v1  ;;  %v6105_v58 = vmax.f32 %v6104_v62, 0.0 }
 0x3d7   :  { %6092 = vst [vmem:[#allocation3_spill] sm:$0xff] %v5455_v45  ;;  %v5988_v20 = vmax.f32 %v5455_v45, 0.0  ;;  %v2793_v0 = vadd.f32 %v2785_v5, %v5990_v29  ;;  %v3782_v5 = vld [vmem:[%s5914_s0 + $0x68] sm:$0xff]   ;;  %v6100_v29 = vld [vmem:[#allocation16_spill] sm:$0xff] }
 0x3d8   :  { %6095 = vst [vmem:[#allocation5_spill] sm:$0xff] %v5460_v17  ;;  %v5987_v44 = vmax.f32 %v5460_v17, 0.0  ;;  %3662 = vmatmul.mubr.msk.bf16.vlgmr.msra.gmra.mrb[48].mxu0 %vm861_vm1, %v2796_v39  ;;  %v2791_v12 = vadd.f32 %v2783_v26, %v5989_v27  ;;  %v1508_v26 = vunpack.c.l.bf16 %v3772_v52  ;;  %v1517_v27 = vunpack.c.h.bf16 %v3784_v37 }
 0x3d9   :  { %v2794_v49 = vadd.f32 %v2786_v19, %v5988_v20  ;;  %v5509_v20 = vld [vmem:[%s5914_s0 + $0x70] sm:$0xff]   ;;  %v6101_v4 = vmax.f32 %v6100_v29, 0.0 }
 0x3da   :  { %v2792_v60 = vadd.f32 %v2784_v47, %v5987_v44  ;;  %v1511_v47 = vunpack.c.h.bf16 %v3770_v11  ;;  %v5504_v44 = vld [vmem:[%s5914_s0 + $0x78] sm:$0xff]   ;;  %6099 = vst [vmem:[#allocation8_spill] sm:$0xff] %v5509_v20  ;;  %v5518_v17 = vadd.f32 %v6103_v40, %v1508_v26  ;;  %v6107_v11 = vmax.f32 %v6106_v10, 0.0  ;;  %v6112_v26 = vld [vmem:[#allocation24_spill] sm:$0xff] }
 0x3db   :  { %v2798_v9 = vpack.c.bf16 %v2794_v49, %v2793_v0  ;;  %v1509_v0 = vunpack.c.h.bf16 %v3772_v52  ;;  %v1514_v49 = vunpack.c.l.bf16 %v5486_v1  ;;  %v1519_v52 = vunpack.c.h.bf16 %v3782_v5 }
 0x3dc   :  { %v2797_v61 = vpack.c.bf16 %v2792_v60, %v2791_v12  ;;  %v1512_v12 = vunpack.c.l.bf16 %v5491_v31  ;;  %v5514_v22 = vadd.f32 %v6101_v4, %v1510_v7  ;;  %v5524_v55 = vadd.f32 %v6105_v58, %v1511_v47  ;;  %v6110_v7 = vld [vmem:[#allocation21_spill] sm:$0xff] }
 0x3dd   :  { %v6111_v36 = vmax.f32 %v6110_v7, 0.0  ;;  %v1522_v10 = vunpack.c.l.bf16 %v5504_v44  ;;  %v1520_v47 = vunpack.c.l.bf16 %v5509_v20 }
 0x3de   :  { %3665 = vmatprep.mubr.msk.bf16.mxu0 %vm861_vm1, %v2797_v61  ;;  %v1516_v61 = vunpack.c.l.bf16 %v3784_v37  ;;  %v6108_v37 = vld [vmem:[#allocation20_spill] sm:$0xff] }
 0x3df   :  { %v6109_v29 = vmax.f32 %v6108_v37, 0.0  ;;  %v5536_v40 = vadd.f32 %v6111_v36, %v1512_v12 }
 0x3e0   :  { %3666 = vmatmul.mubr.msk.bf16.gmra.mrb[52].mxu0 %vm861_vm1, %v2798_v9  ;;  %v1518_v9 = vunpack.c.l.bf16 %v3782_v5  ;;  %v5528_v5 = vadd.f32 %v6107_v11, %v1509_v0  ;;  %v6116_v11 = vld [vmem:[#allocation26_spill] sm:$0xff] }
 0x3e1   :  { %v5532_v4 = vadd.f32 %v6109_v29, %v1514_v49  ;;  %v6117_v49 = vmax.f32 %v6116_v11, 0.0  ;;  %v6118_v29 = vld [vmem:[#allocation27_spill] sm:$0xff] }
 0x3e2   :  { %v6119_v12 = vmax.f32 %v6118_v29, 0.0  ;;  %v6120_v29 = vld [vmem:[#allocation28_spill] sm:$0xff] }
 0x3e3   :  { %v5550_v37 = vadd.f32 %v6117_v49, %v1519_v52 }
 0x3e4   :  { %v5554_v7 = vadd.f32 %v6119_v12, %v1517_v27  ;;  %v6121_v12 = vmax.f32 %v6120_v29, 0.0 }
 0x48a   :  { %v3627_v57 = vpop.f32.mrb[32].mxu0 }
 0x48b   :  { %v2232_v32 = vpop.f32.mrb[33].mxu0  ;;  %v2241_v45 = vadd.f32 %v3627_v57, %v5204_v63  ;;  %v6113_v57 = vmax.f32 %v6112_v26, 0.0 }
 0x48c   :  { %v3628_v34 = vpop.f32.mrb[34].mxu0  ;;  %v2233_v42 = vadd.f32 %v5204_v63, %v2232_v32  ;;  %v6114_v32 = vld [vmem:[#allocation25_spill] sm:$0xff] }
 0x48d   :  { %v2235_v39 = vpop.f32.mrb[35].mxu0  ;;  %v5540_v21 = vadd.f32 %v6113_v57, %v1518_v9  ;;  %v6115_v62 = vmax.f32 %v6114_v32, 0.0  ;;  %v2244_v9 = vadd.f32 %v3628_v34, %v5204_v63 }
 0x48e   :  { %v2295_v57 = vmax.f32 %v2233_v42, 0.0  ;;  %v2236_v32 = vadd.f32 %v5204_v63, %v2235_v39 }
 0x48f   :  { %v5544_v58 = vadd.f32 %v6115_v62, %v1516_v61  ;;  %v2297_v61 = vmax.f32 %v2241_v45, 0.0 }
 0x490   :  { %v2296_v31 = vmax.f32 %v2236_v32, 0.0 }
 0x492   :  { %v3631_v19 = vpop.f32.mrb[36].mxu0 }
 0x493   :  { %v2248_v35 = vpop.f32.mrb[37].mxu0  ;;  %v5561_v11 = vadd.f32 %v3631_v19, %v5204_v63  ;;  %v5576_v19 = vadd.f32 %v6121_v12, %v1522_v10 }
 0x494   :  { %v3632_v15 = vpop.f32.mrb[38].mxu0  ;;  %v5564_v52 = vadd.f32 %v5204_v63, %v2248_v35 }
 0x495   :  { %v2251_v60 = vpop.f32.mrb[39].mxu0 }
 0x496   :  { %v5571_v42 = vadd.f32 %v5204_v63, %v2251_v60 }
 0x49b   :  { %v3635_v0 = vpop.f32.mrb[40].mxu0 }
 0x49c   :  { %v2273_v36 = vadd.f32 %v3635_v0, %v5204_v63  ;;  %v2264_v26 = vpop.f32.mrb[41].mxu0  ;;  %v5568_v0 = vadd.f32 %v3632_v15, %v5204_v63 }
 0x49d   :  { %v2265_v62 = vadd.f32 %v5204_v63, %v2264_v26  ;;  %v3636_v30 = vpop.f32.mrb[42].mxu0  ;;  %v2298_v26 = vmax.f32 %v2244_v9, 0.0 }
 0x49e   :  { %v2305_v27 = vmax.f32 %v2273_v36, 0.0  ;;  %v2276_v49 = vadd.f32 %v3636_v30, %v5204_v63  ;;  %v2267_v34 = vpop.f32.mrb[43].mxu0  ;;  %v6122_v36 = vld [vmem:[#allocation29_spill] sm:$0xff] }
 0x49f   :  { %v2303_v45 = vmax.f32 %v2265_v62, 0.0  ;;  %v2268_v39 = vadd.f32 %v5204_v63, %v2267_v34  ;;  %v6123_v20 = vmax.f32 %v6122_v36, 0.0 }
 0x4a0   :  { %v2329_v35 = vmax.f32 %v2297_v61, %v2305_v27  ;;  %v2306_v46 = vmax.f32 %v2276_v49, 0.0 }
 0x4a1   :  { %v5580_v30 = vadd.f32 %v6123_v20, %v1520_v47  ;;  %v2327_v15 = vmax.f32 %v2295_v57, %v2303_v45  ;;  %v2304_v25 = vmax.f32 %v2268_v39, 0.0 }
 0x4a2   :  { %v5585_v34 = vmax.f32 %v5214_v53, %v2329_v35  ;;  %v2330_v29 = vmax.f32 %v2298_v26, %v2306_v46 }
 0x4a3   :  { %6124 = vst [vmem:[#allocation9_spill] sm:$0xff] %v5580_v30  ;;  %v5590_v49 = vmax.f32 %v5216_v38, %v2327_v15  ;;  %v2328_v20 = vmax.f32 %v2296_v31, %v2304_v25  ;;  %v3639_v47 = vpop.f32.mrb[44].mxu0 }
 0x4a4   :  { %6125 = vst [vmem:[#allocation16_spill] sm:$0xff] %v5585_v34  ;;  %v2345_v32 = vsub.f32 %v5214_v53, %v5585_v34  ;;  %v2369_v39 = vsub.f32 %v2297_v61, %v5585_v34  ;;  %v2393_v12 = vsub.f32 %v2305_v27, %v5585_v34  ;;  %v5597_v35 = vmax.f32 %v5221_v59, %v2330_v29  ;;  %v2280_v36 = vpop.f32.mrb[45].mxu0 }
 0x4a5   :  { %v2343_v10 = vsub.f32 %v5216_v38, %v5590_v49  ;;  %v2367_v9 = vsub.f32 %v2295_v57, %v5590_v49  ;;  %v2391_v15 = vsub.f32 %v2303_v45, %v5590_v49  ;;  %v5604_v62 = vmax.f32 %v5226_v24, %v2328_v20  ;;  %v3640_v60 = vpop.f32.mrb[46].mxu0 }
 0x4a6   :  { %v2355_v53 = vmul.f32 1.442695, %v2345_v32  ;;  %v2379_v18 = vmul.f32 1.442695, %v2369_v39  ;;  %v2403_v61 = vmul.f32 1.442695, %v2393_v12  ;;  %v2346_v27 = vsub.f32 %v5221_v59, %v5597_v35 }
 0x4a7   :  { %v2351_v29 = vmul.f32 1.442695, %v2343_v10  ;;  %v2375_v34 = vmul.f32 1.442695, %v2367_v9  ;;  %v2399_v1 = vmul.f32 1.442695, %v2391_v15  ;;  %v2370_v30 = vsub.f32 %v2298_v26, %v5597_v35 }
 0x4a8   :  { %3837 = vpow2.f32 %v2355_v53  ;;  %v2357_v38 = vmul.f32 1.442695, %v2346_v27  ;;  %v2394_v57 = vsub.f32 %v2306_v46, %v5597_v35  ;;  %v2344_v45 = vsub.f32 %v5226_v24, %v5604_v62  ;;  %v2283_v20 = vpop.f32.mrb[47].mxu0 }
 0x4a9   :  { %3839 = vpow2.f32 %v2379_v18  ;;  %v2381_v32 = vmul.f32 1.442695, %v2370_v30  ;;  %v2368_v39 = vsub.f32 %v2296_v31, %v5604_v62  ;;  %v2392_v12 = vsub.f32 %v2304_v25, %v5604_v62 }
 0x4aa   :  { %3841 = vpow2.f32 %v2403_v61  ;;  %v2405_v59 = vmul.f32 1.442695, %v2394_v57  ;;  %v2353_v10 = vmul.f32 1.442695, %v2344_v45  ;;  %v2289_v9 = vadd.f32 %v3639_v47, %v5204_v63 }
 0x4ab   :  { %3843 = vpow2.f32 %v2351_v29  ;;  %v2377_v26 = vmul.f32 1.442695, %v2368_v39  ;;  %v2401_v15 = vmul.f32 1.442695, %v2392_v12  ;;  %v5616_v46 = vadd.f32 %v5204_v63, %v2280_v36  ;;  %v3663_v53 = vpop.f32.mrb[48].mxu0 }
 0x4ac   :  { %3845 = vpow2.f32 %v2375_v34  ;;  %v2309_v24 = vmax.f32 %v2289_v9, 0.0  ;;  %v5619_v18 = vadd.f32 %v3640_v60, %v5204_v63  ;;  %v5622_v31 = vadd.f32 %v5204_v63, %v2283_v20  ;;  %v2845_v25 = vpop.f32.mrb[49].mxu0 }
 0x4ad   :  { %3847 = vpow2.f32 %v2399_v1  ;;  %v6010_v30 = vmax.f32 %v5616_v46, 0.0  ;;  %v5626_v47 = vadd.f32 %v5404_v33, %v3663_v53  ;;  %v5629_v61 = vadd.f32 %v5404_v33, %v2845_v25  ;;  %v3664_v36 = vpop.f32.mrb[50].mxu0 }
 0x4ae   :  { %3849 = vpow2.f32 %v2357_v38  ;;  %v6126_v34 = vmax.f32 %v5561_v11, 0.0  ;;  %v6009_v60 = vmax.f32 %v5619_v18, 0.0  ;;  %v6008_v63 = vmax.f32 %v5622_v31, 0.0  ;;  %v2848_v29 = vpop.f32.mrb[51].mxu0 }
 0x4af   :  { %3851 = vpow2.f32 %v2381_v32  ;;  %v6127_v1 = vmax.f32 %v5564_v52, 0.0  ;;  %v6129_v39 = vmax.f32 %v5568_v0, 0.0  ;;  %v6130_v32 = vmax.f32 %v5571_v42, 0.0 }
 0x4b0   :  { %v2333_v27 = vmax.f32 %v6126_v34, %v2309_v24  ;;  %3853 = vpow2.f32 %v2405_v59  ;;  %v5658_v59 = vadd.f32 %v5404_v33, %v3664_v36  ;;  %v5661_v25 = vadd.f32 %v5404_v33, %v2848_v29 }
 0x4b1   :  { %v2331_v57 = vmax.f32 %v6127_v1, %v6010_v30  ;;  %v2334_v12 = vmax.f32 %v6129_v39, %v6009_v60  ;;  %v5652_v9 = vmax.f32 %v6130_v32, %v6008_v63  ;;  %3855 = vpow2.f32 %v2353_v10 }
 0x4b2   :  { %v5642_v38 = vmax.f32 %v5301_v51, %v2333_v27  ;;  %v3838_v34 = vpop.eup %3837  ;;  %3857 = vpow2.f32 %v2377_v26  ;;  %v6131_v1 = vmax.f32 %v5561_v11, 0.0 }
 0x4b3   :  { %v5655_v53 = vmax.f32 %v5304_v41, %v2331_v57  ;;  %v3840_v32 = vpop.eup %3839  ;;  %v2417_v57 = vmul.f32 %v3838_v34, %v5254_v48  ;;  %v2441_v36 = vmul.f32 %v3838_v34, %v5258_v28  ;;  %3859 = vpow2.f32 %v2401_v15  ;;  %v5673_v20 = vpop.f32.mrb[52].mxu0 }
 0x4b4   :  { %6128 = vst [vmem:[#allocation17_spill] sm:$0xff] %v5642_v38  ;;  %v2349_v27 = vsub.f32 %v5301_v51, %v5642_v38  ;;  %v2373_v39 = vsub.f32 %v6131_v1, %v5642_v38  ;;  %v2397_v10 = vsub.f32 %v2309_v24, %v5642_v38  ;;  %v3842_v26 = vpop.eup %3841  ;;  %v2449_v51 = vmul.f32 %v3840_v32, %v5514_v22  ;;  %v5680_v15 = vpop.f32.mrb[53].mxu0 }
 0x4b5   :  { %v2347_v29 = vsub.f32 %v5304_v41, %v5655_v53  ;;  %v3844_v1 = vpop.eup %3843  ;;  %v2425_v60 = vadd.f32 %v3840_v32, %v2417_v57  ;;  %v2465_v24 = vmul.f32 %v3842_v26, %v5540_v21  ;;  %v6132_v48 = vmax.f32 %v5564_v52, 0.0 }
 0x4b6   :  { %v2363_v45 = vmul.f32 1.442695, %v2349_v27  ;;  %v2387_v63 = vmul.f32 1.442695, %v2373_v39  ;;  %v2411_v11 = vmul.f32 1.442695, %v2397_v10  ;;  %v3846_v41 = vpop.eup %3845  ;;  %v2457_v34 = vadd.f32 %v2449_v51, %v2441_v36 }
 0x4b7   :  { %v2359_v30 = vmul.f32 1.442695, %v2347_v29  ;;  %v2371_v28 = vsub.f32 %v6132_v48, %v5655_v53  ;;  %v2415_v38 = vmul.f32 %v3844_v1, %v5262_v13  ;;  %v2439_v22 = vmul.f32 %v3844_v1, %v5266_v23  ;;  %v5684_v27 = vpop.f32.mrb[54].mxu0  ;;  %v3848_v39 = vpop.eup %3847 }
 0x4b8   :  { %3861 = vpow2.f32 %v2363_v45  ;;  %v5686_v10 = vadd.f32 %v3842_v26, %v2425_v60  ;;  %v2447_v21 = vmul.f32 %v3846_v41, %v5518_v17  ;;  %v5689_v52 = vpop.f32.mrb[55].mxu0  ;;  %v3850_v57 = vpop.eup %3849  ;;  %v5691_v29 = vadd.f32 %v2465_v24, %v2457_v34 }
 0x4b9   :  { %3863 = vpow2.f32 %v2387_v63  ;;  %v2383_v32 = vmul.f32 1.442695, %v2371_v28  ;;  %v2423_v36 = vadd.f32 %v3846_v41, %v2415_v38  ;;  %v2463_v13 = vmul.f32 %v3848_v39, %v5544_v58  ;;  %v3852_v23 = vpop.eup %3851 }
 0x4ba   :  { %3865 = vpow2.f32 %v2411_v11  ;;  %v2455_v45 = vadd.f32 %v2447_v21, %v2439_v22  ;;  %v2418_v51 = vmul.f32 %v3850_v57, %v5272_v16  ;;  %v2442_v60 = vmul.f32 %v3850_v57, %v5276_v56  ;;  %v3854_v26 = vpop.eup %3853 }
 0x4bb   :  { %3867 = vpow2.f32 %v2359_v30  ;;  %v5696_v17 = vadd.f32 %v3848_v39, %v2423_v36  ;;  %v2450_v63 = vmul.f32 %v3852_v23, %v5524_v55  ;;  %v6133_v1 = vmax.f32 %v5616_v46, 0.0  ;;  %v3856_v24 = vpop.eup %3855 }
 0x4bc   :  { %3869 = vpow2.f32 %v2383_v32  ;;  %v5702_v58 = vadd.f32 %v2463_v13, %v2455_v45  ;;  %v2426_v11 = vadd.f32 %v3852_v23, %v2418_v51  ;;  %v2466_v48 = vmul.f32 %v3854_v26, %v5550_v37  ;;  %v3858_v56 = vpop.eup %3857 }
 0x4bd   :  { %v2395_v38 = vsub.f32 %v6133_v1, %v5655_v53  ;;  %v5706_v16 = vmax.f32 %v5309_v6, %v2334_v12  ;;  %v2458_v30 = vadd.f32 %v2450_v63, %v2442_v60  ;;  %v2416_v28 = vmul.f32 %v3856_v24, %v5293_v43  ;;  %v3860_v34 = vpop.eup %3859 }
 0x4be   :  { %v2440_v55 = vmul.f32 %v3856_v24, %v5296_v14  ;;  %v5710_v22 = vadd.f32 %v3854_v26, %v2426_v11  ;;  %v2448_v46 = vmul.f32 %v3858_v56, %v5528_v5  ;;  %v6134_v37 = vmax.f32 %v5568_v0, 0.0 }
 0x4bf   :  { %v2407_v41 = vmul.f32 1.442695, %v2395_v38  ;;  %v2350_v39 = vsub.f32 %v5309_v6, %v5706_v16  ;;  %v5718_v21 = vadd.f32 %v2466_v48, %v2458_v30  ;;  %v2424_v32 = vadd.f32 %v3858_v56, %v2416_v28 }
 0x4c0   :  { %v2374_v12 = vsub.f32 %v6134_v37, %v5706_v16  ;;  %v2464_v43 = vmul.f32 %v3860_v34, %v5554_v7  ;;  %v2456_v14 = vadd.f32 %v2448_v46, %v2440_v55  ;;  %v6135_v13 = vmax.f32 %v5619_v18, 0.0 }
 0x4c1   :  { %3871 = vpow2.f32 %v2407_v41  ;;  %v2365_v57 = vmul.f32 1.442695, %v2350_v39  ;;  %v5724_v45 = vadd.f32 %v3860_v34, %v2424_v32  ;;  %v5728_v6 = vmax.f32 %v5319_v3, %v5652_v9 }
 0x4c2   :  { %v2389_v36 = vmul.f32 1.442695, %v2374_v12  ;;  %v2398_v5 = vsub.f32 %v6135_v13, %v5706_v16  ;;  %v3862_v23 = vpop.eup %3861  ;;  %v2879_v0 = vmax.f32 %v5658_v59, 0.0  ;;  %v2877_v51 = vmax.f32 %v5661_v25, 0.0 }
 0x4c3   :  { %v3864_v7 = vpop.eup %3863  ;;  %v5732_v60 = vadd.f32 %v2464_v43, %v2456_v14  ;;  %v2421_v26 = vmul.f32 %v3862_v23, %v5373_v8  ;;  %v2445_v63 = vmul.f32 %v3862_v23, %v5376_v50  ;;  %3873 = vpow2.f32 %v2365_v57 }
 0x4c4   :  { %v3866_v18 = vpop.eup %3865  ;;  %v2453_v1 = vmul.f32 %v3864_v7, %v5532_v4  ;;  %3875 = vpow2.f32 %v2389_v36  ;;  %v2413_v38 = vmul.f32 1.442695, %v2398_v5  ;;  %v2348_v9 = vsub.f32 %v5319_v3, %v5728_v6 }
 0x4c5   :  { %v3868_v24 = vpop.eup %3867  ;;  %v2429_v59 = vadd.f32 %v3864_v7, %v2421_v26  ;;  %v2469_v25 = vmul.f32 %v3866_v18, %v5576_v19  ;;  %v6136_v11 = vmax.f32 %v5571_v42, 0.0  ;;  %v6137_v8 = vmax.f32 %v5622_v31, 0.0  ;;  %v6145_v26 = vld [vmem:[#allocation10_spill] sm:$0xff] }
 0x4c6   :  { %v3870_v56 = vpop.eup %3869  ;;  %v2461_v30 = vadd.f32 %v2453_v1, %v2445_v63  ;;  %v2419_v4 = vmul.f32 %v3868_v24, %v5383_v2  ;;  %v2443_v28 = vmul.f32 %v3868_v24, %v5386_v54  ;;  %3877 = vpow2.f32 %v2413_v38  ;;  %v6147_v24 = vld [vmem:[#allocation7_spill] sm:$0xff] }
 0x4c7   :  { %v2372_v48 = vsub.f32 %v6136_v11, %v5728_v6  ;;  %v2396_v50 = vsub.f32 %v6137_v8, %v5728_v6  ;;  %v5748_v3 = vadd.f32 %v3866_v18, %v2429_v59  ;;  %v2451_v55 = vmul.f32 %v3870_v56, %v5536_v40  ;;  %v6146_v18 = vld [vmem:[#allocation11_spill] sm:$0xff] }
 0x4c8   :  { %v2361_v19 = vmul.f32 1.442695, %v2348_v9  ;;  %v5751_v34 = vadd.f32 %v2469_v25, %v2461_v30  ;;  %v2427_v42 = vadd.f32 %v3870_v56, %v2419_v4  ;;  %v6138_v31 = vmax.f32 %v5626_v47, 0.0  ;;  %v6148_v25 = vld [vmem:[#allocation30_spill] sm:$0xff]  ;;  %v6150_v56 = vld [vmem:[#allocation8_spill] sm:$0xff] }
 0x4c9   :  { %v2385_v41 = vmul.f32 1.442695, %v2372_v48  ;;  %v2409_v46 = vmul.f32 1.442695, %v2396_v50  ;;  %v2459_v37 = vadd.f32 %v2451_v55, %v2443_v28  ;;  %v6139_v2 = vmax.f32 %v5629_v61, 0.0  ;;  %v6140_v61 = vld [vmem:[#allocation9_spill] sm:$0xff] }
 0x4ca   :  { %v2885_v39 = vpack.c.bf16 %v2879_v0, %v6138_v31  ;;  %3879 = vpow2.f32 %v2361_v19  ;;  %v2870_v54 = vadd.f32 %v5404_v33, %v5673_v20  ;;  %v2862_v40 = vadd.f32 %v5404_v33, %v5680_v15 }
 0x4cb   :  { %v2884_v12 = vpack.c.bf16 %v2877_v51, %v6139_v2  ;;  %v3872_v32 = vpop.eup %3871  ;;  %3881 = vpow2.f32 %v2385_v41  ;;  %v2873_v43 = vadd.f32 %v5404_v33, %v5684_v27  ;;  %v2865_v47 = vadd.f32 %v5404_v33, %v5689_v52  ;;  %v6141_v27 = vld [vmem:[#allocation6_spill] sm:$0xff]  ;;  %v6153_v2 = vld [vmem:[#allocation31_spill] sm:$0xff] }
 0x4cc   :  { %v1523_v14 = vunpack.c.h.bf16 %v5504_v44  ;;  %v5766_v57 = vadd.f32 %v3872_v32, %v2427_v42  ;;  %v2467_v36 = vmul.f32 %v3872_v32, %v6140_v61  ;;  %3883 = vpow2.f32 %v2409_v46  ;;  %v6143_v51 = vld [vmem:[#allocation22_spill] sm:$0xff]  ;;  %v6151_v42 = vld [vmem:[#allocation23_spill] sm:$0xff]  ;;  %v6155_v32 = vld [vmem:[#allocation32_spill] sm:$0xff] }
 0x4cd   :  { %3677 = vmatprep.mubr.msk.bf16.mxu1 %vm665_vm0, %v2884_v12  ;;  %v2882_v20 = vmax.f32 %v2870_v54, 0.0  ;;  %v2880_v13 = vmax.f32 %v2862_v40, 0.0  ;;  %v2883_v5 = vmax.f32 %v2873_v43, 0.0  ;;  %v2881_v23 = vmax.f32 %v2865_v47, 0.0  ;;  %v3874_v15 = vpop.eup %3873  ;;  %v6156_v43 = vld [vmem:[#allocation33_spill] sm:$0xff] }
 0x4ce   :  { %3678 = vmatmul.mubr.msk.bf16.vlgmr.msra.gmra.mrb[56].mxu1 %vm665_vm0, %v2885_v39  ;;  %v6142_v0 = vunpack.c.h.bf16 %v6141_v27  ;;  %v6144_v33 = vmax.f32 %v6143_v51, 0.0  ;;  %v5775_v44 = vadd.f32 %v2467_v36, %v2459_v37  ;;  %v3876_v7 = vpop.eup %3875  ;;  %v2422_v63 = vmul.f32 %v3874_v15, %v6145_v26  ;;  %v3949_v27 = vld [vmem:[%s5920_s12] ss:$0 sm:$0xff] }
 0x4cf   :  { %v2446_v1 = vmul.f32 %v3874_v15, %v6146_v18  ;;  %v2887_v38 = vpack.c.bf16 %v2883_v5, %v2882_v20  ;;  %v2886_v9 = vpack.c.bf16 %v2881_v23, %v2880_v13  ;;  %v1513_v59 = vunpack.c.h.bf16 %v6147_v24 }
 0x4d0   :  { %v2318_v52 = vadd.f32 %v6144_v33, %v6142_v0  ;;  %v6149_v11 = vmax.f32 %v6148_v25, 0.0  ;;  %v3878_v50 = vpop.eup %3877  ;;  %v1521_v30 = vunpack.c.h.bf16 %v6150_v56  ;;  %v2430_v4 = vadd.f32 %v3876_v7, %v2422_v63 }
 0x4d1   :  { %3681 = vmatprep.mubr.msk.bf16.mxu1 %vm665_vm0, %v2886_v9  ;;  %v6152_v46 = vmax.f32 %v6151_v42, 0.0  ;;  %v6154_v12 = vmax.f32 %v6153_v2, 0.0  ;;  %v6157_v9 = vld [vmem:[#allocation16_spill] sm:$0xff] }
 0x4d2   :  { %v2326_v48 = vadd.f32 %v6149_v11, %v1523_v14  ;;  %v2454_v8 = vmul.f32 %v3876_v7, %v2318_v52  ;;  %v5784_v19 = vadd.f32 %v3878_v50, %v2430_v4 }
 0x4d3   :  { %v2316_v31 = vadd.f32 %v6152_v46, %v1513_v59  ;;  %v2324_v54 = vadd.f32 %v6154_v12, %v1521_v30  ;;  %v5815_v30 = vld [vmem:[%s5914_s0 + $0x80] sm:$0xff]  }
 0x4d4   :  { %v2462_v28 = vadd.f32 %v2454_v8, %v2446_v1  ;;  %v2470_v55 = vmul.f32 %v3878_v50, %v2326_v48  ;;  %v3880_v41 = vpop.eup %3879 }
 0x4d5   :  { %v3882_v37 = vpop.eup %3881  ;;  %v2420_v40 = vmul.f32 %v3880_v41, %v6155_v32  ;;  %v2444_v47 = vmul.f32 %v3880_v41, %v6156_v43 }
 0x4d6   :  { %v5788_v39 = vadd.f32 %v2470_v55, %v2462_v28  ;;  %3682 = vmatmul.mubr.msk.bf16.gmra.mrb[60].mxu1 %vm665_vm0, %v2887_v38  ;;  %v3884_v14 = vpop.eup %3883  ;;  %v2452_v61 = vmul.f32 %v3882_v37, %v2316_v31  ;;  %v5805_v38 = vld [vmem:[%s5914_s0 + $0x88] sm:$0xff]  }
 0x4d7   :  { %v2428_v36 = vadd.f32 %v3882_v37, %v2420_v40  ;;  %v2468_v20 = vmul.f32 %v3884_v14, %v2324_v54  ;;  %v3394_v56 = vunpack.c.l.bf16 %v5805_v38 }
 0x4d8   :  { %v2460_v13 = vadd.f32 %v2452_v61, %v2444_v47  ;;  %v3390_v47 = vunpack.c.l.bf16 %v5815_v30 }
 0x4d9   :  { %v5795_v5 = vadd.f32 %v3884_v14, %v2428_v36 }
 0x4da   :  { %v5797_v23 = vadd.f32 %v2468_v20, %v2460_v13 }
 0x5a1   :  { %v3679_v15 = vpop.f32.mrb[56].mxu1 }
 0x5a2   :  { %v2943_v0 = vadd.f32 %v3949_v27, %v3679_v15  ;;  %v2934_v51 = vpop.f32.mrb[57].mxu1 }
 0x5a3   :  { %v2935_v33 = vadd.f32 %v3949_v27, %v2934_v51  ;;  %v3680_v52 = vpop.f32.mrb[58].mxu1  ;;  %v3395_v51 = vunpack.c.h.bf16 %v5805_v38 }
 0x5a4   :  { %v2967_v7 = vmax.f32 %v2943_v0, 0.0  ;;  %v2946_v26 = vadd.f32 %v3949_v27, %v3680_v52  ;;  %v2937_v63 = vpop.f32.mrb[59].mxu1 }
 0x5a5   :  { %v2965_v18 = vmax.f32 %v2935_v33, 0.0  ;;  %v2938_v1 = vadd.f32 %v3949_v27, %v2937_v63 }
 0x5a6   :  { %v2983_v24 = vmax.f32 %v6157_v9, %v2967_v7  ;;  %v2968_v59 = vmax.f32 %v2946_v26, 0.0 }
 0x5a7   :  { %v2981_v25 = vmax.f32 %v5590_v49, %v2965_v18  ;;  %v2966_v11 = vmax.f32 %v2938_v1, 0.0  ;;  %v3391_v1 = vunpack.c.h.bf16 %v5815_v30 }
 0x5a8   :  { %v2991_v48 = vsub.f32 %v6157_v9, %v2983_v24  ;;  %v3015_v8 = vsub.f32 %v2967_v7, %v2983_v24  ;;  %v2984_v50 = vmax.f32 %v5597_v35, %v2968_v59  ;;  %v6158_v7 = vld [vmem:[#allocation17_spill] sm:$0xff] }
 0x5a9   :  { %v2989_v4 = vsub.f32 %v5590_v49, %v2981_v25  ;;  %v3013_v28 = vsub.f32 %v2965_v18, %v2981_v25  ;;  %v2982_v55 = vmax.f32 %v5604_v62, %v2966_v11  ;;  %v3683_v41 = vpop.f32.mrb[60].mxu1 }
 0x5aa   :  { %v3001_v42 = vmul.f32 1.442695, %v2991_v48  ;;  %v3025_v46 = vmul.f32 1.442695, %v3015_v8  ;;  %v2992_v31 = vsub.f32 %v5597_v35, %v2984_v50  ;;  %v3016_v37 = vsub.f32 %v2968_v59, %v2984_v50  ;;  %v2950_v2 = vpop.f32.mrb[61].mxu1  ;;  %v5825_v35 = vld [vmem:[%s5914_s0 + $0x98] sm:$0xff]  }
 0x5ab   :  { %v2997_v12 = vmul.f32 1.442695, %v2989_v4  ;;  %v3021_v54 = vmul.f32 1.442695, %v3013_v28  ;;  %v2990_v32 = vsub.f32 %v5604_v62, %v2982_v55  ;;  %v3014_v40 = vsub.f32 %v2966_v11, %v2982_v55  ;;  %v3684_v43 = vpop.f32.mrb[62].mxu1 }
 0x5ac   :  { %3885 = vpow2.f32 %v3001_v42  ;;  %v3003_v49 = vmul.f32 1.442695, %v2992_v31  ;;  %v2959_v14 = vadd.f32 %v3949_v27, %v3683_v41  ;;  %v2953_v61 = vpop.f32.mrb[63].mxu1  ;;  %v3027_v36 = vmul.f32 1.442695, %v3016_v37  ;;  %v6159_v31 = vld [vmem:[#allocation13_spill] sm:$0xff] }
 0x5ad   :  { %3887 = vpow2.f32 %v3025_v46  ;;  %v2999_v20 = vmul.f32 1.442695, %v2990_v32  ;;  %v2951_v13 = vadd.f32 %v3949_v27, %v2950_v2  ;;  %v2962_v62 = vadd.f32 %v3949_v27, %v3684_v43  ;;  %v6163_v43 = vld [vmem:[#allocation14_spill] sm:$0xff] }
 0x5ae   :  { %3889 = vpow2.f32 %v2997_v12  ;;  %v2971_v15 = vmax.f32 %v2959_v14, 0.0  ;;  %v2954_v0 = vadd.f32 %v3949_v27, %v2953_v61  ;;  %v3023_v33 = vmul.f32 1.442695, %v3014_v40  ;;  %v6161_v12 = vld [vmem:[#allocation12_spill] sm:$0xff] }
 0x5af   :  { %3891 = vpow2.f32 %v3021_v54  ;;  %v2969_v52 = vmax.f32 %v2951_v13, 0.0  ;;  %v2972_v63 = vmax.f32 %v2962_v62, 0.0  ;;  %v3402_v9 = vunpack.c.l.bf16 %v5825_v35 }
 0x5b0   :  { %3893 = vpow2.f32 %v3003_v49  ;;  %v2987_v26 = vmax.f32 %v6158_v7, %v2971_v15  ;;  %v2970_v18 = vmax.f32 %v2954_v0, 0.0  ;;  %v6160_v37 = vmax.f32 %v6159_v31, 0.0  ;;  %v6169_v31 = vld [vmem:[#allocation4_spill] sm:$0xff] }
 0x5b1   :  { %3895 = vpow2.f32 %v3027_v36  ;;  %v2985_v24 = vmax.f32 %v5655_v53, %v2969_v52  ;;  %v2988_v38 = vmax.f32 %v5706_v16, %v2972_v63  ;;  %v6162_v54 = vmax.f32 %v6161_v12, 0.0  ;;  %v6165_v36 = vld [vmem:[#allocation15_spill] sm:$0xff] }
 0x5b2   :  { %3897 = vpow2.f32 %v2999_v20  ;;  %v2995_v27 = vsub.f32 %v6158_v7, %v2987_v26  ;;  %v3019_v59 = vsub.f32 %v2971_v15, %v2987_v26  ;;  %v2986_v48 = vmax.f32 %v5728_v6, %v2970_v18  ;;  %v3413_v26 = vld [vmem:[%s5914_s0 + $0x90] sm:$0xff]  }
 0x5b3   :  { %3899 = vpow2.f32 %v3023_v33  ;;  %v2993_v25 = vsub.f32 %v5655_v53, %v2985_v24  ;;  %v3017_v11 = vsub.f32 %v2969_v52, %v2985_v24  ;;  %v2996_v30 = vsub.f32 %v5706_v16, %v2988_v38 }
 0x5b4   :  { %v3009_v8 = vmul.f32 1.442695, %v2995_v27  ;;  %v3033_v50 = vmul.f32 1.442695, %v3019_v59  ;;  %v3020_v4 = vsub.f32 %v2972_v63, %v2988_v38  ;;  %v2994_v41 = vsub.f32 %v5728_v6, %v2986_v48 }
 0x5b5   :  { %v3005_v28 = vmul.f32 1.442695, %v2993_v25  ;;  %v3029_v55 = vmul.f32 1.442695, %v3017_v11  ;;  %v3018_v42 = vsub.f32 %v2970_v18, %v2986_v48  ;;  %v2975_v2 = vadd.f32 %v3394_v56, %v6160_v37 }
 0x5b6   :  { %v3886_v46 = vpop.eup %3885  ;;  %v2973_v53 = vadd.f32 %v3390_v47, %v6162_v54  ;;  %3901 = vpow2.f32 %v3009_v8  ;;  %v3011_v32 = vmul.f32 1.442695, %v2996_v30  ;;  %v6164_v49 = vmax.f32 %v6163_v43, 0.0 }
 0x5b7   :  { %v3888_v40 = vpop.eup %3887  ;;  %v3039_v16 = vmul.f32 %v3886_v46, %v5686_v10  ;;  %v3055_v61 = vmul.f32 %v3886_v46, %v5691_v29  ;;  %3903 = vpow2.f32 %v3033_v50  ;;  %v6166_v20 = vmax.f32 %v6165_v36, 0.0 }
 0x5b8   :  { %v2976_v14 = vadd.f32 %v3395_v51, %v6164_v49  ;;  %v3890_v6 = vpop.eup %3889  ;;  %v3063_v15 = vmul.f32 %v3888_v40, %v2975_v2  ;;  %3905 = vpow2.f32 %v3005_v28  ;;  %v3035_v56 = vmul.f32 1.442695, %v3020_v4 }
 0x5b9   :  { %v2974_v13 = vadd.f32 %v3391_v1, %v6166_v20  ;;  %v3892_v62 = vpop.eup %3891  ;;  %v3047_v47 = vadd.f32 %v3888_v40, %v3039_v16  ;;  %v3037_v0 = vmul.f32 %v3890_v6, %v5696_v17  ;;  %v3053_v33 = vmul.f32 %v3890_v6, %v5702_v58  ;;  %v6171_v40 = vld [vmem:[#allocation3_spill] sm:$0xff] }
 0x5ba   :  { %3907 = vpow2.f32 %v3029_v55  ;;  %v3894_v51 = vpop.eup %3893  ;;  %v3071_v52 = vadd.f32 %v3063_v15, %v3055_v61  ;;  %v3061_v10 = vmul.f32 %v3892_v62, %v2973_v53  ;;  %v3007_v29 = vmul.f32 1.442695, %v2994_v41 }
 0x5bb   :  { %3909 = vpow2.f32 %v3011_v32  ;;  %v3896_v7 = vpop.eup %3895  ;;  %v3045_v63 = vadd.f32 %v3892_v62, %v3037_v0  ;;  %v3040_v18 = vmul.f32 %v3894_v51, %v5710_v22  ;;  %v3056_v1 = vmul.f32 %v3894_v51, %v5718_v21  ;;  %v6167_v21 = vld [vmem:[#allocation2_spill] sm:$0xff] }
 0x5bc   :  { %3911 = vrcp.f32 %v3047_v47  ;;  %v3898_v17 = vpop.eup %3897  ;;  %v3069_v24 = vadd.f32 %v3061_v10, %v3053_v33  ;;  %v3064_v58 = vmul.f32 %v3896_v7, %v2976_v14  ;;  %v3031_v27 = vmul.f32 1.442695, %v3018_v42  ;;  %v6173_v47 = vld [vmem:[#allocation5_spill] sm:$0xff] }
 0x5bd   :  { %3913 = vpow2.f32 %v3035_v56  ;;  %v3900_v59 = vpop.eup %3899  ;;  %v3048_v38 = vadd.f32 %v3896_v7, %v3040_v18  ;;  %v3038_v25 = vmul.f32 %v3898_v17, %v5724_v45  ;;  %v3054_v11 = vmul.f32 %v3898_v17, %v5732_v60 }
 0x5be   :  { %3915 = vrcp.f32 %v3045_v63  ;;  %v3398_v48 = vunpack.c.l.bf16 %v3413_v26  ;;  %v3072_v8 = vadd.f32 %v3064_v58, %v3056_v1  ;;  %v3062_v50 = vmul.f32 %v3900_v59, %v2974_v13 }
 0x5bf   :  { %3917 = vpow2.f32 %v3007_v29  ;;  %v3046_v22 = vadd.f32 %v3900_v59, %v3038_v25  ;;  %v6168_v4 = vmax.f32 %v6167_v21, 0.0  ;;  %v3403_v55 = vunpack.c.h.bf16 %v5825_v35 }
 0x5c0   :  { %3919 = vrcp.f32 %v3048_v38  ;;  %v3902_v30 = vpop.eup %3901  ;;  %v3070_v41 = vadd.f32 %v3062_v50, %v3054_v11  ;;  %v6170_v37 = vmax.f32 %v6169_v31, 0.0  ;;  %v6172_v43 = vmax.f32 %v6171_v40, 0.0 }
 0x5c1   :  { %v2979_v28 = vadd.f32 %v3402_v9, %v6168_v4  ;;  %3921 = vpow2.f32 %v3031_v27  ;;  %v3904_v42 = vpop.eup %3903  ;;  %v3043_v45 = vmul.f32 %v3902_v30, %v5748_v3  ;;  %v3059_v60 = vmul.f32 %v3902_v30, %v5751_v34 }
 0x5c2   :  { %3923 = vrcp.f32 %v3046_v22  ;;  %v3906_v46 = vpop.eup %3905  ;;  %v2977_v2 = vadd.f32 %v3398_v48, %v6170_v37  ;;  %v2980_v49 = vadd.f32 %v3403_v55, %v6172_v43  ;;  %v3399_v14 = vunpack.c.h.bf16 %v3413_v26 }
 0x5c3   :  { %v3067_v12 = vmul.f32 %v3904_v42, %v2979_v28  ;;  %v3051_v53 = vadd.f32 %v3904_v42, %v3043_v45  ;;  %v3041_v32 = vmul.f32 %v3906_v46, %v5766_v57  ;;  %v3057_v9 = vmul.f32 %v3906_v46, %v5775_v44 }
 0x5c4   :  { %v3908_v54 = vpop.eup %3907  ;;  %v6174_v0 = vmax.f32 %v6173_v47, 0.0 }
 0x5c5   :  { %v3910_v35 = vpop.eup %3909  ;;  %v3075_v16 = vadd.f32 %v3067_v12, %v3059_v60  ;;  %v3065_v3 = vmul.f32 %v3908_v54, %v2977_v2  ;;  %3925 = vrcp.f32 %v3051_v53  ;;  %v3049_v34 = vadd.f32 %v3908_v54, %v3041_v32 }
 0x5c6   :  { %v3912_v61 = vpop.eup %3911  ;;  %v3044_v6 = vmul.f32 %v3910_v35, %v5784_v19  ;;  %v3060_v36 = vmul.f32 %v3910_v35, %v5788_v39  ;;  %v2978_v33 = vadd.f32 %v3399_v14, %v6174_v0 }
 0x5c7   :  { %v3914_v20 = vpop.eup %3913  ;;  %v3082_v13 = vmul.f32 %v3912_v61, %v3071_v52  ;;  %v3073_v15 = vadd.f32 %v3065_v3, %v3057_v9  ;;  %3927 = vrcp.f32 %v3049_v34 }
 0x5c8   :  { %v3916_v57 = vpop.eup %3915  ;;  %v3052_v44 = vadd.f32 %v3914_v20, %v3044_v6  ;;  %v3068_v56 = vmul.f32 %v3914_v20, %v2980_v49 }
 0x5c9   :  { %v3918_v62 = vpop.eup %3917  ;;  %v3350_v51 = vpack.c.bf16 %v3082_v13, %v3082_v13  ;;  %v3078_v10 = vmul.f32 %v3916_v57, %v3069_v24 }
 0x5ca   :  { %v3920_v29 = vpop.eup %3919  ;;  %v3076_v7 = vadd.f32 %v3068_v56, %v3060_v36  ;;  %3929 = vrcp.f32 %v3052_v44  ;;  %v3042_v19 = vmul.f32 %v3918_v62, %v5795_v5  ;;  %v3058_v39 = vmul.f32 %v3918_v62, %v5797_v23 }
 0x5cb   :  { %v3922_v52 = vpop.eup %3921  ;;  %3128 = vst.msk [vmem:[%s5921_s13 + $0x8] sm:$0xf] %vm3125_vm2, %v3350_v51  ;;  %v3348_v26 = vpack.c.bf16 %v3078_v10, %v3078_v10  ;;  %v3084_v63 = vmul.f32 %v3920_v29, %v3072_v8 }
 0x5cc   :  { %v3924_v18 = vpop.eup %3923  ;;  %v3050_v1 = vadd.f32 %v3922_v52, %v3042_v19  ;;  %v3066_v17 = vmul.f32 %v3922_v52, %v2978_v33 }
 0x5cd   :  { %3126 = vst.msk [vmem:[%s5921_s13] sm:$0xf] %vm3125_vm2, %v3348_v26  ;;  %v3351_v24 = vpack.c.bf16 %v3084_v63, %v3084_v63  ;;  %v3080_v5 = vmul.f32 %v3924_v18, %v3070_v41 }
 0x5ce   :  { %v3074_v58 = vadd.f32 %v3066_v17, %v3058_v39  ;;  %3931 = vrcp.f32 %v3050_v1 }
 0x5cf   :  { %3129 = vst.msk [vmem:[%s5921_s13 + $0xc] sm:$0xf] %vm3125_vm2, %v3351_v24  ;;  %v3349_v23 = vpack.c.bf16 %v3080_v5, %v3080_v5  ;;  %v3926_v27 = vpop.eup %3925 }
 0x5d0   :  { %v3090_v59 = vmul.f32 %v3926_v27, %v3075_v16 }
 0x5d1   :  { %3127 = vst.msk [vmem:[%s5921_s13 + $0x4] sm:$0xf] %vm3125_vm2, %v3349_v23  ;;  %v3928_v38 = vpop.eup %3927 }
 0x5d2   :  { %v3354_v25 = vpack.c.bf16 %v3090_v59, %v3090_v59  ;;  %v3086_v11 = vmul.f32 %v3928_v38, %v3073_v15 }
 0x5d4   :  { %v3930_v48 = vpop.eup %3929  ;;  %3132 = vst.msk [vmem:[%s5921_s13 + $0x18] sm:$0xf] %vm3125_vm2, %v3354_v25  ;;  %v3352_v8 = vpack.c.bf16 %v3086_v11, %v3086_v11 }
 0x5d5   :  { %v3092_v50 = vmul.f32 %v3930_v48, %v3076_v7 }
 0x5d6   :  { %3130 = vst.msk [vmem:[%s5921_s13 + $0x10] sm:$0xf] %vm3125_vm2, %v3352_v8 }
 0x5d7   :  { %v3355_v22 = vpack.c.bf16 %v3092_v50, %v3092_v50 }
 0x5d8   :  { %v3932_v30 = vpop.eup %3931 }
 0x5d9   :  { %3133 = vst.msk [vmem:[%s5921_s13 + $0x1c] sm:$0xf] %vm3125_vm2, %v3355_v22  ;;  %v3088_v21 = vmul.f32 %v3932_v30, %v3074_v58 }
 0x5db   :  { %v3353_v4 = vpack.c.bf16 %v3088_v21, %v3088_v21 }
 0x5dd   :  { %3131 = vst.msk [vmem:[%s5921_s13 + $0x14] sm:$0xf] %vm3125_vm2, %v3353_v4 }

// kernel: _lambda_.35
= control target key start
LH: loop header
LB: loop body
LE: loop exit
PB: predicated region body
PF: predicated region fallthrough
CT: control target
= control target key end

     0   :  { %s405_s6 = smov 0   ;;  %s558_s0 = inlined_call_operand.vmem [shape: f32[64,3], index: 0, kind: input, shape index: {}]   ;;  %s559_s1 = inlined_call_operand.vmem [shape: s32[1,16], index: 1, kind: output, shape index: {}]  }
   0x1 LB: > { %s365_s7 = sadd.s32 4294967295, %s390_s6   ;;  %p367_p0 = scmp.ge.s32.totalorder %s390_s6, 1  ;;  %s390_s6 = sphi %s405_s6, %s11_s6  }
   0x2   : > { %p72_p1 = scmp.lt.s32.totalorder %s390_s6, 17 }
   0x4   : > { %p73_p2 = pnand %p367_p0, %p72_p1 }
   0x5   : > { %p368_p3 = scmp.ne.s32.totalorder (!%p73_p2), %s365_s7, 0 }
   0x6   : > { %76 = sbr.rel (%p73_p2) target bundleno = 401 (0x191), region = 24 }
   0xd   : > { %85 = sbr.rel (%p368_p3) target bundleno = 20 (0x14), region = 28  ;;  %vm86_vm0 = vcmask (!%p368_p3), 122880   ;;  %vm88_vm1 = vcmask (!%p368_p3), 0   ;;  %vm90_vm2 = vcmask (!%p368_p3), 7168   ;;  %v392_v0 = vmov (!%p368_p3), 0  }
   0xe   : > { %87 = vst.msk [vmem:[%s559_s1] sm:$0x1] (!%p368_p3), %vm86_vm0, %v392_v0  ;;  %v393_v1 = vmov (!%p368_p3), inf  }
   0xf   : > { %89 = vst.msk [vmem:[#allocation3] sm:$0x1] (!%p368_p3), %vm88_vm1, %v392_v0 }
  0x10   : > { %91 = vst.msk [vmem:[#allocation2] sm:$0xff] (!%p368_p3), %vm90_vm2, %v393_v1  ;;  %92 = vst.msk [vmem:[#allocation2 + $0x8] sm:$0xff] (!%p368_p3), %vm90_vm2, %v393_v1 }
  0x11   : > { %93 = vst.msk [vmem:[#allocation2 + $0x10] sm:$0xff] (!%p368_p3), %vm90_vm2, %v393_v1  ;;  %94 = vst.msk [vmem:[#allocation2 + $0x18] sm:$0xff] (!%p368_p3), %vm90_vm2, %v393_v1 }
  0x12   : > { %95 = vst.msk [vmem:[#allocation2 + $0x20] sm:$0xff] (!%p368_p3), %vm90_vm2, %v393_v1  ;;  %96 = vst.msk [vmem:[#allocation2 + $0x28] sm:$0xff] (!%p368_p3), %vm90_vm2, %v393_v1 }
  0x13   : > { %97 = vst.msk [vmem:[#allocation2 + $0x30] sm:$0xff] (!%p368_p3), %vm90_vm2, %v393_v1  ;;  %98 = vst.msk [vmem:[#allocation2 + $0x38] sm:$0xff] (!%p368_p3), %vm90_vm2, %v393_v1 }
  0x14 PF: > { %v107_v2 = vlaneseq  ;;  %v394_v3 = vmov 0   ;;  %v99_v25 = vld [vmem:[%s558_s0] sm:$0xff]  ;;  %v101_v26 = vld [vmem:[%s558_s0 + $0x10] sm:$0xff]  ;;  %v100_v27 = vld [vmem:[%s558_s0 + $0x8] sm:$0xff]  ;;  %vm192_vm13 = vcmask 23552  }
  0x15   : > { %383 = vset.pattern.permute.xlu1 %v394_v3  ;;  %382 = vset.pattern.permute.xlu0 %v394_v3  ;;  %v102_v31 = vld [vmem:[%s558_s0 + $0x18] sm:$0xff]  ;;  %v103_v36 = vld [vmem:[%s558_s0 + $0x20] sm:$0xff]  ;;  %v104_v42 = vld [vmem:[%s558_s0 + $0x28] sm:$0xff] }
  0x16   : > { %v419_v4 = vshrl.u32 %v107_v2, 7  ;;  %v421_v5 = vld [vmem:[#allocation3] sm:$0x1]  ;;  %v105_v46 = vld [vmem:[%s558_s0 + $0x30] sm:$0xff]  ;;  %v106_v52 = vld [vmem:[%s558_s0 + $0x38] sm:$0xff] }
  0x18   : > { %v127_v6 = vsub.s32 0, %v419_v4  ;;  %v425_v7 = vadd.s32 16, %v419_v4  ;;  %v428_v8 = vadd.s32 24, %v419_v4  ;;  %v431_v9 = vadd.s32 8, %v419_v4 }
  0x19   : > { %v437_v11 = vadd.s32 40, %v419_v4  ;;  %v440_v12 = vadd.s32 32, %v419_v4  ;;  %v449_v17 = vadd.s32 56, %v419_v4  ;;  %v452_v18 = vadd.s32 48, %v419_v4 }
  0x1a   : > { %v135_v10 = vrot.slane %v421_v5, %v127_v6 }
  0x1c   : > { %vm136_vm3 = vcmp.eq.s32.totalorder %v419_v4, %v135_v10  ;;  %vm138_vm4 = vcmp.eq.s32.totalorder %v425_v7, %v135_v10  ;;  %vm139_vm5 = vcmp.eq.s32.totalorder %v428_v8, %v135_v10  ;;  %vm137_vm6 = vcmp.eq.s32.totalorder %v431_v9, %v135_v10 }
  0x1d   : > { %v144_v13 = vsel %vm136_vm3, 1, %v394_v3  ;;  %v146_v14 = vsel %vm138_vm4, 1, %v394_v3  ;;  %v147_v15 = vsel %vm139_vm5, 1, %v394_v3  ;;  %v145_v16 = vsel %vm137_vm6, 1, %v394_v3 }
  0x1e   : > { %153 = vperm.xlu0 %382, %v144_v13   ;;  %159 = vperm.xlu1 %383, %v146_v14   ;;  %vm141_vm7 = vcmp.eq.s32.totalorder %v437_v11, %v135_v10  ;;  %vm140_vm8 = vcmp.eq.s32.totalorder %v440_v12, %v135_v10  ;;  %vm143_vm9 = vcmp.eq.s32.totalorder %v449_v17, %v135_v10  ;;  %vm270_vm4 = vcmask 7168  }
  0x1f   : > { %v149_v19 = vsel %vm141_vm7, 1, %v394_v3  ;;  %v148_v20 = vsel %vm140_vm8, 1, %v394_v3  ;;  %vm142_vm10 = vcmp.eq.s32.totalorder %v452_v18, %v135_v10  ;;  %v151_v21 = vsel %vm143_vm9, 1, %v394_v3 }
  0x20   : > { %v150_v22 = vsel %vm142_vm10, 1, %v394_v3  ;;  %vm130_vm6 = vcmask 122880  }
  0x22   : > { %162 = vperm.xlu1 %383, %v147_v15   ;;  %156 = vperm.xlu0 %382, %v145_v16  }
  0x26   : > { %168 = vperm.xlu1 %383, %v149_v19   ;;  %165 = vperm.xlu0 %382, %v148_v20  }
  0x2a   : > { %174 = vperm.xlu1 %383, %v151_v21   ;;  %171 = vperm.xlu0 %382, %v150_v22  }
  0x9d   : > { %v154_v23 = vpop.permute.xlu0 %153  ;;  %v160_v24 = vpop.permute.xlu1 %159 }
  0x9e   : > { %vm176_vm11 = vcmp.eq.s32.totalorder %v154_v23, 1  ;;  %vm178_vm12 = vcmp.eq.s32.totalorder %v160_v24, 1 }
  0x9f   : > { %v184_v28 = vsel %vm176_vm11, %v99_v25, 0.0  ;;  %v186_v32 = vsel %vm178_vm12, %v101_v26, 0.0 }
  0xa0   : > { %v193_v34 = vsel %vm192_vm13, %v184_v28, 0.0  ;;  %v196_v41 = vsel %vm192_vm13, %v186_v32, 0.0 }
  0xa1   : > { %v163_v29 = vpop.permute.xlu1 %162  ;;  %v157_v30 = vpop.permute.xlu0 %156 }
  0xa2   : > { %vm179_vm14 = vcmp.eq.s32.totalorder %v163_v29, 1  ;;  %vm177_vm15 = vcmp.eq.s32.totalorder %v157_v30, 1 }
  0xa3   : > { %v185_v33 = vsel %vm177_vm15, %v100_v27, 0.0  ;;  %v187_v37 = vsel %vm179_vm14, %v102_v31, 0.0 }
  0xa4   : > { %v194_v35 = vsel %vm192_vm13, %v185_v33, 0.0  ;;  %v198_v45 = vsel %vm192_vm13, %v187_v37, 0.0 }
  0xa5   : > { %v195_v38 = vadd.f32 %v194_v35, %v193_v34  ;;  %v169_v39 = vpop.permute.xlu1 %168  ;;  %v166_v40 = vpop.permute.xlu0 %165 }
  0xa6   : > { %vm181_vm0 = vcmp.eq.s32.totalorder %v169_v39, 1  ;;  %vm180_vm1 = vcmp.eq.s32.totalorder %v166_v40, 1  ;;  %v255_v39 = vld [vmem:[#allocation2 + $0x8] sm:$0xff]  ;;  %v254_v40 = vld [vmem:[#allocation2] sm:$0xff] }
  0xa7   : > { %v197_v43 = vadd.f32 %v196_v41, %v195_v38  ;;  %v188_v44 = vsel %vm180_vm1, %v103_v36, 0.0  ;;  %v189_v47 = vsel %vm181_vm0, %v104_v42, 0.0 }
  0xa8   : > { %v200_v51 = vsel %vm192_vm13, %v188_v44, 0.0  ;;  %v202_v55 = vsel %vm192_vm13, %v189_v47, 0.0 }
  0xa9   : > { %v199_v48 = vadd.f32 %v198_v45, %v197_v43  ;;  %v175_v49 = vpop.permute.xlu1 %174  ;;  %v172_v50 = vpop.permute.xlu0 %171  ;;  %v258_v45 = vld [vmem:[#allocation2 + $0x20] sm:$0xff] }
  0xaa   : > { %vm183_vm2 = vcmp.eq.s32.totalorder %v175_v49, 1  ;;  %vm182_vm3 = vcmp.eq.s32.totalorder %v172_v50, 1  ;;  %v260_v50 = vld [vmem:[#allocation2 + $0x30] sm:$0xff] }
  0xab   : > { %v201_v53 = vadd.f32 %v200_v51, %v199_v48  ;;  %v190_v54 = vsel %vm182_vm3, %v105_v46, 0.0  ;;  %v191_v56 = vsel %vm183_vm2, %v106_v52, 0.0  ;;  %v257_v51 = vld [vmem:[#allocation2 + $0x18] sm:$0xff] }
  0xac   : > { %v204_v58 = vsel %vm192_vm13, %v190_v54, 0.0  ;;  %v206_v60 = vsel %vm192_vm13, %v191_v56, 0.0  ;;  %v118_v54 = vand.u32 127, %v107_v2 }
  0xad   : > { %v203_v57 = vadd.f32 %v202_v55, %v201_v53 }
  0xaf   : > { %v205_v59 = vadd.f32 %v204_v58, %v203_v57  ;;  %v119_v57 = vstv %s365_s7  ;;  %v259_v58 = vld [vmem:[#allocation2 + $0x28] sm:$0xff] }
  0xb0   : > { %vm120_vm5 = vcmp.eq.s32.totalorder %v118_v54, %v119_v57 }
  0xb1   : > { %v207_v61 = vadd.f32 %v206_v60, %v205_v59  ;;  %v121_v59 = vld [vmem:[%s559_s1] sm:$0x1] }
  0xb3   : > { %v208_v62 = vrot.slane %v207_v61, 4 }
  0xb5   : > { %v209_v63 = vadd.f32 %v208_v62, %v207_v61 }
  0xb7   : > { %v210_v0 = vrot.slane %v209_v63, 2 }
  0xb9   : > { %v211_v1 = vadd.f32 %v210_v0, %v209_v63  ;;  %v261_v63 = vld [vmem:[#allocation2 + $0x38] sm:$0xff] }
  0xbb   : > { %v212_v3 = vrot.slane %v211_v1, 1 }
  0xbd   : > { %v213_v10 = vadd.f32 %v212_v3, %v211_v1 }
  0xbf   : > { %v215_v13 = vsub.f32 %v100_v27, %v213_v10  ;;  %v214_v14 = vsub.f32 %v99_v25, %v213_v10  ;;  %v218_v15 = vsub.f32 %v103_v36, %v213_v10  ;;  %v216_v16 = vsub.f32 %v101_v26, %v213_v10 }
  0xc0   : > { %v220_v21 = vsub.f32 %v105_v46, %v213_v10  ;;  %v217_v22 = vsub.f32 %v102_v31, %v213_v10  ;;  %v219_v30 = vsub.f32 %v104_v42, %v213_v10  ;;  %v221_v35 = vsub.f32 %v106_v52, %v213_v10  ;;  %v256_v46 = vld [vmem:[#allocation2 + $0x10] sm:$0xff] }
  0xc1   : > { %v223_v19 = vmul.f32 %v215_v13, %v215_v13  ;;  %v222_v20 = vmul.f32 %v214_v14, %v214_v14  ;;  %v226_v28 = vmul.f32 %v218_v15, %v218_v15  ;;  %v224_v29 = vmul.f32 %v216_v16, %v216_v16 }
  0xc2   : > { %v228_v25 = vmul.f32 %v220_v21, %v220_v21  ;;  %v225_v33 = vmul.f32 %v217_v22, %v217_v22  ;;  %v227_v34 = vmul.f32 %v219_v30, %v219_v30  ;;  %v229_v37 = vmul.f32 %v221_v35, %v221_v35 }
  0xc3   : > { %v233_v23 = vsel %vm192_vm13, %v223_v19, 0.0  ;;  %v230_v24 = vsel %vm192_vm13, %v222_v20, 0.0  ;;  %v242_v32 = vsel %vm192_vm13, %v226_v28, 0.0  ;;  %v236_v27 = vsel %vm192_vm13, %v224_v29, 0.0 }
  0xc4   : > { %234 = vadd.xlane.f32.xlu1 %v233_v23  ;;  %231 = vadd.xlane.f32.xlu0 %v230_v24  ;;  %v248_v26 = vsel %vm192_vm13, %v228_v25, 0.0  ;;  %v239_v31 = vsel %vm192_vm13, %v225_v33, 0.0  ;;  %v245_v36 = vsel %vm192_vm13, %v227_v34, 0.0  ;;  %v251_v38 = vsel %vm192_vm13, %v229_v37, 0.0 }
  0xc8   : > { %243 = vadd.xlane.f32.xlu1 %v242_v32  ;;  %237 = vadd.xlane.f32.xlu0 %v236_v27 }
  0xcc   : > { %249 = vadd.xlane.f32.xlu1 %v248_v26  ;;  %240 = vadd.xlane.f32.xlu0 %v239_v31 }
  0xd0   : > { %246 = vadd.xlane.f32.xlu0 %v245_v36 }
  0xd4   : > { %252 = vadd.xlane.f32.xlu0 %v251_v38 }
  0xdd   : > { %123 = vperm.xlu1 %383, %v421_v5  }
 0x151   : > { %v235_v41 = vpop.xlane.xlu1 %234  ;;  %v232_v42 = vpop.xlane.xlu0 %231 }
 0x152   : > { %v497_v43 = vmin.f32 %v255_v39, %v235_v41  ;;  %v499_v44 = vmin.f32 %v254_v40, %v232_v42 }
 0x154   : > { %272 = vst.msk [vmem:[#allocation2 + $0x8] sm:$0xff] %vm270_vm4, %v497_v43  ;;  %271 = vst.msk [vmem:[#allocation2] sm:$0xff] %vm270_vm4, %v499_v44  ;;  %v280_v10 = vsel %vm270_vm4, %v497_v43, -inf  ;;  %v279_v16 = vsel %vm270_vm4, %v499_v44, -inf }
 0x155   : > { %v244_v47 = vpop.xlane.xlu1 %243  ;;  %v238_v5 = vpop.xlane.xlu0 %237 }
 0x156   : > { %v505_v48 = vmin.f32 %v258_v45, %v244_v47  ;;  %v264_v49 = vmin.f32 %v256_v46, %v238_v5 }
 0x158   : > { %275 = vst.msk [vmem:[#allocation2 + $0x20] sm:$0xff] %vm270_vm4, %v505_v48  ;;  %273 = vst.msk [vmem:[#allocation2 + $0x10] sm:$0xff] %vm270_vm4, %v264_v49  ;;  %v283_v13 = vsel %vm270_vm4, %v505_v48, -inf  ;;  %v281_v19 = vsel %vm270_vm4, %v264_v49, -inf }
 0x159   : > { %v250_v52 = vpop.xlane.xlu1 %249  ;;  %v241_v53 = vpop.xlane.xlu0 %240  ;;  %v284_v22 = vmax.f32 %v279_v16, %v283_v13 }
 0x15a   : > { %v268_v55 = vmin.f32 %v260_v50, %v250_v52  ;;  %v265_v56 = vmin.f32 %v257_v51, %v241_v53 }
 0x15c   : > { %277 = vst.msk [vmem:[#allocation2 + $0x30] sm:$0xff] %vm270_vm4, %v268_v55  ;;  %274 = vst.msk [vmem:[#allocation2 + $0x18] sm:$0xff] %vm270_vm4, %v265_v56  ;;  %v282_v20 = vsel %vm270_vm4, %v265_v56, -inf }
 0x15d   : > { %v124_v60 = vpop.permute.xlu1 %123  ;;  %v247_v61 = vpop.xlane.xlu0 %246 }
 0x15e   : > { %v128_v2 = vrot.slane %v124_v60, %v127_v6  ;;  %v267_v62 = vmin.f32 %v259_v58, %v247_v61  ;;  %v287_v6 = vsel %vm270_vm4, %v268_v55, -inf }
 0x15f   : > { %v288_v23 = vmax.f32 %v281_v19, %v287_v6 }
 0x160   : > { %v129_v0 = vsel %vm120_vm5, %v128_v2, %v121_v59  ;;  %276 = vst.msk [vmem:[#allocation2 + $0x28] sm:$0xff] %vm270_vm4, %v267_v62  ;;  %v285_v1 = vsel %vm270_vm4, %v267_v62, -inf }
 0x161   : > { %131 = vst.msk [vmem:[%s559_s1] sm:$0x1] %vm130_vm6, %v129_v0  ;;  %v253_v3 = vpop.xlane.xlu0 %252  ;;  %v286_v15 = vmax.f32 %v280_v10, %v285_v1 }
 0x162   : > { %v269_v14 = vmin.f32 %v261_v63, %v253_v3 }
 0x163   : > { %v291_v28 = vmax.f32 %v284_v22, %v286_v15 }
 0x164   : > { %278 = vst.msk [vmem:[#allocation2 + $0x38] sm:$0xff] %vm270_vm4, %v269_v14  ;;  %v289_v21 = vsel %vm270_vm4, %v269_v14, -inf }
 0x165   : > { %v290_v24 = vmax.f32 %v282_v20, %v289_v21 }
 0x167   : > { %v292_v29 = vmax.f32 %v288_v23, %v290_v24 }
 0x169   : > { %v293_v30 = vmax.f32 %v291_v28, %v292_v29 }
 0x16b   : > { %v294_v32 = vrot.slane %v293_v30, 4 }
 0x16d   : > { %v295_v27 = vmax.f32 %v293_v30, %v294_v32 }
 0x16f   : > { %v296_v25 = vrot.slane %v295_v27, 2 }
 0x171   : > { %v297_v33 = vmax.f32 %v295_v27, %v296_v25 }
 0x173   : > { %v298_v26 = vrot.slane %v297_v33, 1 }
 0x175   : > { %v299_v31 = vmax.f32 %v297_v33, %v298_v26 }
 0x177   : > { %vm300_vm7 = vcmp.eq.f32.partialorder %v499_v44, %v299_v31  ;;  %vm301_vm8 = vcmp.eq.f32.partialorder %v497_v43, %v299_v31  ;;  %vm302_vm9 = vcmp.eq.f32.partialorder %v264_v49, %v299_v31  ;;  %vm303_vm10 = vcmp.eq.f32.partialorder %v265_v56, %v299_v31 }
 0x178   : > { %vm304_vm11 = vcmp.eq.f32.partialorder %v505_v48, %v299_v31  ;;  %vm305_vm12 = vcmp.eq.f32.partialorder %v267_v62, %v299_v31  ;;  %vm306_vm13 = vcmp.eq.f32.partialorder %v268_v55, %v299_v31  ;;  %vm307_vm14 = vcmp.eq.f32.partialorder %v269_v14, %v299_v31 }
 0x179   : > { %v308_v34 = vsel %vm300_vm7, %v419_v4, 64  ;;  %v309_v35 = vsel %vm301_vm8, %v431_v9, 64  ;;  %v310_v36 = vsel %vm302_vm9, %v425_v7, 64  ;;  %v311_v37 = vsel %vm303_vm10, %v428_v8, 64 }
 0x17a   : > { %v312_v38 = vsel %vm304_vm11, %v440_v12, 64  ;;  %v313_v39 = vsel %vm305_vm12, %v437_v11, 64  ;;  %v314_v40 = vsel %vm306_vm13, %v452_v18, 64  ;;  %v315_v41 = vsel %vm307_vm14, %v449_v17, 64 }
 0x17b   : > { %v316_v42 = vsel %vm270_vm4, %v308_v34, 2147483647  ;;  %v317_v43 = vsel %vm270_vm4, %v309_v35, 2147483647  ;;  %v318_v4 = vsel %vm270_vm4, %v310_v36, 2147483647 }
 0x17c   : > { %v319_v9 = vsel %vm270_vm4, %v311_v37, 2147483647  ;;  %v320_v7 = vsel %vm270_vm4, %v312_v38, 2147483647  ;;  %v323_v8 = vsel %vm270_vm4, %v313_v39, 2147483647 }
 0x17d   : > { %vm321_vm15 = vcmp.lt.s32.totalorder %v316_v42, %v320_v7  ;;  %vm324_vm0 = vcmp.lt.s32.totalorder %v317_v43, %v323_v8  ;;  %v326_v11 = vsel %vm270_vm4, %v314_v40, 2147483647  ;;  %v329_v12 = vsel %vm270_vm4, %v315_v41, 2147483647 }
 0x17e   : > { %v322_v18 = vsel %vm321_vm15, %v316_v42, %v320_v7  ;;  %v325_v17 = vsel %vm324_vm0, %v317_v43, %v323_v8  ;;  %vm327_vm1 = vcmp.lt.s32.totalorder %v318_v4, %v326_v11  ;;  %vm330_vm2 = vcmp.lt.s32.totalorder %v319_v9, %v329_v12 }
 0x17f   : > { %v328_v44 = vsel %vm327_vm1, %v318_v4, %v326_v11  ;;  %v331_v45 = vsel %vm330_vm2, %v319_v9, %v329_v12  ;;  %vm332_vm3 = vcmp.lt.s32.totalorder %v322_v18, %v325_v17  ;;  %vm347_vm4 = vcmask 0  }
 0x180   : > { %v333_v46 = vsel %vm332_vm3, %v322_v18, %v325_v17  ;;  %vm334_vm5 = vcmp.lt.s32.totalorder %v328_v44, %v331_v45 }
 0x181   : > { %v335_v47 = vsel %vm334_vm5, %v328_v44, %v331_v45 }
 0x182   : > { %vm336_vm6 = vcmp.lt.s32.totalorder %v333_v46, %v335_v47 }
 0x183   : > { %v337_v5 = vsel %vm336_vm6, %v333_v46, %v335_v47 }
 0x184   : > { %v338_v48 = vrot.slane %v337_v5, 4 }
 0x186   : > { %vm339_vm7 = vcmp.lt.s32.totalorder %v337_v5, %v338_v48 }
 0x187   : > { %v340_v49 = vsel %vm339_vm7, %v337_v5, %v338_v48 }
 0x188   : > { %v341_v50 = vrot.slane %v340_v49, 2 }
 0x18a   : > { %vm342_vm8 = vcmp.lt.s32.totalorder %v340_v49, %v341_v50 }
 0x18b   : > { %v343_v51 = vsel %vm342_vm8, %v340_v49, %v341_v50 }
 0x18c   : > { %v344_v52 = vrot.slane %v343_v51, 1 }
 0x18e   : > { %vm345_vm9 = vcmp.lt.s32.totalorder %v343_v51, %v344_v52 }
 0x18f   : > { %v346_v53 = vsel %vm345_vm9, %v343_v51, %v344_v52 }
 0x190   : > { %348 = vst.msk [vmem:[#allocation3] sm:$0x1] %vm347_vm4, %v346_v53 }
 0x191 PF: > { %s11_s6 = sadd.s32 1, %s390_s6  }
 0x192   : > { %p8_p4 = scmp.ge.s32.totalorder %s11_s6, 18  }
 0x194   :  { %10 = sbr.rel (!%p8_p4) target bundleno = 1 (0x1), region = 51 }

// kernel: neg.5
= control target key start
LH: loop header
LB: loop body
LE: loop exit
PB: predicated region body
PF: predicated region fallthrough
CT: control target
= control target key end

     0   :  { %s40_s0 = inlined_call_operand.vmem [shape: f32[16,64], index: 0, kind: input, shape index: {}]   ;;  %s41_s1 = inlined_call_operand.vmem [shape: f32[16,64], index: 1, kind: output, shape index: {}]  }
   0x1   :  { %v2_v0 = vld [vmem:[%s40_s0] sm:$0xff]  ;;  %v16_v1 = vld [vmem:[%s40_s0 + $0x8] sm:$0xff] }
   0x2   :  { %v5_v2 = vxor.u32 2147483648, %v2_v0  ;;  %v12_v3 = vxor.u32 2147483648, %v16_v1 }
   0x4   :  { %7 = vst [vmem:[%s41_s1] sm:$0xff] %v5_v2  ;;  %17 = vst [vmem:[%s41_s1 + $0x8] sm:$0xff] %v12_v3 }

// kernel: _lambda_.36
= control target key start
LH: loop header
LB: loop body
LE: loop exit
PB: predicated region body
PF: predicated region fallthrough
CT: control target
= control target key end

     0   :  { %vm21_vm0 = vcmask 1042432   ;;  %vm14_vm1 = vcmask 23552   ;;  %vm109_vm2 = vcmask 518144   ;;  %vm123_vm3 = vcmask 523264   ;;  %s171_s1 = inlined_call_operand.vmem [shape: f32[3,64], index: 1, kind: input, shape index: {}]   ;;  %s172_s0 = inlined_call_operand.vmem [shape: f32[16,3], index: 0, kind: input, shape index: {}]   ;;  %s173_s2 = inlined_call_operand.vmem [shape: f32[16,64], index: 2, kind: output, shape index: {}]  }
   0x1   :  { %v13_v0 = vld [vmem:[%s171_s1] sm:$0x7]  ;;  %v12_v2 = vld [vmem:[%s172_s0 + $0x8] sm:$0xff] }
   0x2   :  { %v11_v1 = vld [vmem:[%s172_s0] sm:$0xff]  ;;  %136 = vmatprep.subr.msk.mxu0 %vm21_vm0, %v13_v0  ;;  %v101_v4 = vmul.f32 %v12_v2, %v12_v2  ;;  %v108_v7 = vmul.f32 %v13_v0, %v13_v0 }
   0x3   :  { %138 = vmatprep.mubr.msk.f32.mxu0 %vm14_vm1, %v11_v1  ;;  %v100_v3 = vmul.f32 %v11_v1, %v11_v1  ;;  %137 = vmatpush3.msk.msra.mxu0 %vm21_vm0, %v13_v0 }
   0x4   :  { %139 = vmatmul.mubr.msk.f32.vlgmr.msra.gmra.mrb[0].mxu0 %vm14_vm1, %v12_v2  ;;  %v105_v6 = vsel %vm14_vm1, %v101_v4, 0.0  ;;  %v110_v8 = vsel %vm109_vm2, %v108_v7, 0.0 }
   0x5   :  { %v102_v5 = vsel %vm14_vm1, %v100_v3, 0.0  ;;  %v111_v9 = vrot.slane %v110_v8, 4 }
   0x6   :  { %103 = vadd.xlane.f32.xlu0 %v102_v5 }
   0x7   :  { %v112_v10 = vadd.f32 %v111_v9, %v110_v8 }
   0x9   :  { %v113_v11 = vrot.slane %v112_v10, 2 }
   0xa   :  { %106 = vadd.xlane.f32.xlu0 %v105_v6 }
   0xb   :  { %v114_v12 = vadd.f32 %v113_v11, %v112_v10 }
   0xd   :  { %v115_v14 = vrot.slane %v114_v12, 1 }
   0xf   :  { %v116_v16 = vadd.f32 %v115_v14, %v114_v12 }
  0x93   :  { %v104_v13 = vpop.xlane.xlu0 %103 }
  0x94   :  { %v117_v21 = vadd.f32 %v116_v16, %v104_v13 }
  0x97   :  { %v107_v15 = vpop.xlane.xlu0 %106 }
  0x98   :  { %v118_v17 = vadd.f32 %v116_v16, %v107_v15 }
  0xd7   :  { %v140_v18 = vpop.f32.mrb[0].mxu0 }
  0xd8   :  { %v120_v19 = vmul.f32 2.0, %v140_v18  ;;  %v91_v20 = vpop.f32.mrb[1].mxu0 }
  0xd9   :  { %v119_v22 = vmul.f32 2.0, %v91_v20 }
  0xda   :  { %v122_v23 = vsub.f32 %v118_v17, %v120_v19 }
  0xdb   :  { %v121_v24 = vsub.f32 %v117_v21, %v119_v22 }
  0xdc   :  { %125 = vst.msk [vmem:[%s173_s2 + $0x8] sm:$0xff] %vm123_vm3, %v122_v23 }
  0xdd   :  { %124 = vst.msk [vmem:[%s173_s2] sm:$0xff] %vm123_vm3, %v121_v24 }

// kernel: _lambda_.40
= control target key start
LH: loop header
LB: loop body
LE: loop exit
PB: predicated region body
PF: predicated region fallthrough
CT: control target
= control target key end

     0   :  { %v158_v0 = vmov 0.0   ;;  %vm159_vm0 = vmmov 0   ;;  %vm61_vm1 = vcmask 523264   ;;  %vm116_vm2 = vcmask 519168   ;;  %s204_s1 = inlined_call_operand.vmem [shape: bf16[64,64], index: 1, kind: input, shape index: {}]   ;;  %s205_s0 = inlined_call_operand.vmem [shape: bf16[16,64], index: 0, kind: input, shape index: {}]   ;;  %s206_s2 = inlined_call_operand.vmem [shape: f32[1,64], index: 2, kind: input, shape index: {}]   ;;  %s207_s3 = inlined_call_operand.vmem [shape: bf16[16,64], index: 3, kind: output, shape index: {}]  }
   0x1   :  { %139 = vmatprep.subr.bf16.mxu0 %v158_v0  ;;  %v153_v1 = vld [vmem:[%s204_s1] sm:$0xff]   ;;  %147 = vmatprep.mubr.msk.bf16.mxu0 %vm159_vm0, %v158_v0  ;;  %v154_v2 = vld [vmem:[%s204_s1 + $0x8] sm:$0xff]   ;;  %v155_v3 = vld [vmem:[%s204_s1 + $0x10] sm:$0xff]  }
   0x2   :  { %140 = vmatpush3.bf16.msra.mxu0 %v153_v1  ;;  %v156_v4 = vld [vmem:[%s204_s1 + $0x18] sm:$0xff]   ;;  %v157_v5 = vld [vmem:[%s205_s0] sm:$0xff]  }
   0x3   :  { %141 = vmatprep.subr.bf16.mxu0 %v158_v0  ;;  %v123_v6 = vld [vmem:[%s206_s2] ss:$0 sm:$0xff] }
   0x6   :  { %142 = vmatpush3.bf16.msra.mxu0 %v154_v2 }
   0x7   :  { %143 = vmatprep.subr.bf16.mxu0 %v158_v0 }
   0xa   :  { %144 = vmatpush3.bf16.msra.mxu0 %v155_v3 }
   0xb   :  { %145 = vmatprep.subr.bf16.mxu0 %v158_v0 }
   0xe   :  { %146 = vmatpush3.bf16.msra.mxu0 %v156_v4 }
  0x11   :  { %148 = vmatmul.mubr.msk.bf16.vlgmr.msra.gmra.mrb[0].mxu0 %vm61_vm1, %v157_v5 }
  0xe4   :  { %v99_v7 = vpop.f32.mrb[0].mxu0 }
  0xe5   :  { %v100_v8 = vadd.f32 %v123_v6, %v99_v7  ;;  %v149_v9 = vpop.f32.mrb[1].mxu0 }
  0xe6   :  { %v102_v10 = vpop.f32.mrb[2].mxu0 }
  0xe7   :  { %v106_v11 = vmax.f32 %v100_v8, 0.0  ;;  %v103_v12 = vadd.f32 %v123_v6, %v102_v10  ;;  %v150_v13 = vpop.f32.mrb[3].mxu0 }
  0xe9   :  { %v132_v14 = vpack.c.bf16 %v106_v11, %v106_v11  ;;  %v107_v15 = vmax.f32 %v103_v12, 0.0 }
  0xeb   :  { %117 = vst.msk [vmem:[%s207_s3] sm:$0xf] %vm116_vm2, %v132_v14  ;;  %v133_v16 = vpack.c.bf16 %v107_v15, %v107_v15 }
  0xed   :  { %118 = vst.msk [vmem:[%s207_s3 + $0x4] sm:$0xf] %vm116_vm2, %v133_v16 }

// kernel: _lambda_.41
= control target key start
LH: loop header
LB: loop body
LE: loop exit
PB: predicated region body
PF: predicated region fallthrough
CT: control target
= control target key end

     0   :  { %v178_v1 = vmov 0   ;;  %vm82_vm0 = vcmask 523264   ;;  %v27_v10 = vlaneseq  ;;  %vm141_vm1 = vcmask 1043456   ;;  %s235_s1 = inlined_call_operand.vmem [shape: bf16[64,192], index: 1, kind: input, shape index: {}]   ;;  %s236_s0 = inlined_call_operand.vmem [shape: bf16[16,64], index: 0, kind: input, shape index: {}]   ;;  %s237_s2 = inlined_call_operand.vmem [shape: f32[1,192], index: 2, kind: input, shape index: {}]   ;;  %s238_s3 = inlined_call_operand.vmem [shape: bf16[16,192], index: 3, kind: output, shape index: {}]  }
   0x1   :  { %v165_v0 = vld [vmem:[%s235_s1 + $0x4] ss:$8 sps:$4 sm:$0xff]   ;;  %118 = vmatprep.mubr.bf16.mxu0 %v178_v1  ;;  %v167_v2 = vld [vmem:[%s235_s1] ss:$8 sps:$4 sm:$0xff]   ;;  %v168_v3 = vld [vmem:[%s235_s1 + $0x14] ss:$8 sps:$4 sm:$0xff]  }
   0x2   :  { %86 = vmatprep.subr.bf16.mxu0 %v165_v0  ;;  %v170_v4 = vld [vmem:[%s235_s1 + $0x10] ss:$8 sps:$4 sm:$0xff]   ;;  %v171_v5 = vld [vmem:[%s235_s1 + $0x24] ss:$8 sps:$4 sm:$0xff]   ;;  %v173_v6 = vld [vmem:[%s235_s1 + $0x20] ss:$8 sps:$4 sm:$0xff]  }
   0x3   :  { %87 = vmatpush1.bf16.msra.mxu0 %v167_v2  ;;  %v174_v7 = vld [vmem:[%s235_s1 + $0x34] ss:$8 sps:$4 sm:$0xff]   ;;  %v176_v8 = vld [vmem:[%s235_s1 + $0x30] ss:$8 sps:$4 sm:$0xff]   ;;  %v177_v9 = vld [vmem:[%s236_s0] sm:$0xff]   ;;  %v28_v11 = vshrl.u32 %v27_v10, 7 }
   0x4   :  { %88 = vmatprep.subr.bf16.mxu0 %v168_v3  ;;  %v25_v13 = vld [vmem:[%s237_s2] sm:$0x3]  ;;  %vm142_vm2 = vcmask 523268  }
   0x5   :  { %v29_v12 = vsub.s32 0, %v28_v11  ;;  %v33_v14 = vsub.s32 1, %v28_v11  ;;  %vm143_vm3 = vmor %vm142_vm2, %vm141_vm1 }
   0x7   :  { %89 = vmatpush1.bf16.msra.mxu0 %v170_v4  ;;  %v30_v15 = vrot.slane %v25_v13, %v29_v12  ;;  %v34_v16 = vrot.slane %v25_v13, %v33_v14 }
   0x8   :  { %90 = vmatprep.subr.bf16.mxu0 %v171_v5 }
   0xb   :  { %91 = vmatpush1.bf16.msra.mxu0 %v173_v6 }
   0xc   :  { %92 = vmatprep.subr.bf16.mxu0 %v174_v7 }
   0xf   :  { %93 = vmatpush1.bf16.msra.mxu0 %v176_v8 }
  0x12   :  { %159 = vmatmul.mubr.msk.bf16.vlgmr.msra.gmra.mrb[0].mxu0 %vm82_vm0, %v177_v9 }
  0xe5   :  { %v120_v17 = vpop.f32.mrb[0].mxu0 }
  0xe6   :  { %v121_v18 = vadd.f32 %v120_v17, %v30_v15  ;;  %v122_v19 = vpop.f32.mrb[1].mxu0 }
  0xe7   :  { %v123_v20 = vadd.f32 %v122_v19, %v34_v16  ;;  %v124_v21 = vpop.f32.mrb[2].mxu0 }
  0xe8   :  { %v125_v22 = vadd.f32 %v124_v21, %v30_v15  ;;  %v126_v23 = vpop.f32.mrb[3].mxu0 }
  0xe9   :  { %v162_v24 = vpack.c.bf16 %v123_v20, %v121_v18  ;;  %v127_v25 = vadd.f32 %v126_v23, %v34_v16 }
  0xeb   :  { %144 = vst.msk [vmem:[%s238_s3] sm:$0xff] %vm143_vm3, %v162_v24  ;;  %v163_v26 = vpack.c.bf16 %v127_v25, %v125_v22 }
  0xed   :  { %145 = vst.msk [vmem:[%s238_s3 + $0x8] sm:$0xff] %vm143_vm3, %v163_v26 }

// kernel: _lambda_.38
= control target key start
LH: loop header
LB: loop body
LE: loop exit
PB: predicated region body
PF: predicated region fallthrough
CT: control target
= control target key end

     0   :  { %vm17_vm0 = vcmask 519168   ;;  %s105_s0 = inlined_call_operand.vmem [shape: bf16[4,16,64], index: 0, kind: input, shape index: {}]   ;;  %s106_s1 = inlined_call_operand.vmem [shape: bf16[16,64], index: 1, kind: output, shape index: {}]  }
   0x1   :  { %v9_v0 = vld [vmem:[%s105_s0] sm:$0xf]  ;;  %v11_v1 = vld [vmem:[%s105_s0 + $0x8] sm:$0xf]  ;;  %v13_v2 = vld [vmem:[%s105_s0 + $0x10] sm:$0xf] }
   0x2   :  { %v15_v3 = vld [vmem:[%s105_s0 + $0x18] sm:$0xf]  ;;  %v20_v4 = vsel %vm17_vm0, %v9_v0, 4286644096  ;;  %v23_v5 = vsel %vm17_vm0, %v11_v1, 4286644096 }
   0x3   :  { %v26_v6 = vsel %vm17_vm0, %v13_v2, 4286644096  ;;  %v30_v7 = vsel %vm17_vm0, %v15_v3, 4286644096  ;;  %v10_v8 = vld [vmem:[%s105_s0 + $0x4] sm:$0xf] }
   0x4   :  { %v28_v9 = vmax.bf16 %v26_v6, %v20_v4  ;;  %v32_v10 = vmax.bf16 %v30_v7, %v23_v5  ;;  %v12_v11 = vld [vmem:[%s105_s0 + $0xc] sm:$0xf]  ;;  %v14_v12 = vld [vmem:[%s105_s0 + $0x14] sm:$0xf]  ;;  %v16_v13 = vld [vmem:[%s105_s0 + $0x1c] sm:$0xf] }
   0x5   :  { %v35_v14 = vsel %vm17_vm0, %v10_v8, 4286644096  ;;  %v38_v15 = vsel %vm17_vm0, %v12_v11, 4286644096  ;;  %v41_v16 = vsel %vm17_vm0, %v14_v12, 4286644096 }
   0x6   :  { %v33_v17 = vmax.bf16 %v32_v10, %v28_v9  ;;  %v43_v18 = vmax.bf16 %v41_v16, %v35_v14  ;;  %v45_v19 = vsel %vm17_vm0, %v16_v13, 4286644096 }
   0x7   :  { %v47_v20 = vmax.bf16 %v45_v19, %v38_v15 }
   0x8   :  { %49 = vst.msk [vmem:[%s106_s1] sm:$0xf] %vm17_vm0, %v33_v17 }
   0x9   :  { %v48_v21 = vmax.bf16 %v47_v20, %v43_v18 }
   0xb   :  { %50 = vst.msk [vmem:[%s106_s1 + $0x4] sm:$0xf] %vm17_vm0, %v48_v21 }

// kernel: neg.6
= control target key start
LH: loop header
LB: loop body
LE: loop exit
PB: predicated region body
PF: predicated region fallthrough
CT: control target
= control target key end

     0   :  { %s40_s0 = inlined_call_operand.vmem [shape: f32[16,16], index: 0, kind: input, shape index: {}]   ;;  %s41_s1 = inlined_call_operand.vmem [shape: f32[16,16], index: 1, kind: output, shape index: {}]  }
   0x1   :  { %v2_v0 = vld [vmem:[%s40_s0] sm:$0xff]  ;;  %v16_v1 = vld [vmem:[%s40_s0 + $0x8] sm:$0xff] }
   0x2   :  { %v5_v2 = vxor.u32 2147483648, %v2_v0  ;;  %v12_v3 = vxor.u32 2147483648, %v16_v1 }
   0x4   :  { %7 = vst [vmem:[%s41_s1] sm:$0xff] %v5_v2  ;;  %17 = vst [vmem:[%s41_s1 + $0x8] sm:$0xff] %v12_v3 }

// kernel: _lambda_.39
= control target key start
LH: loop header
LB: loop body
LE: loop exit
PB: predicated region body
PF: predicated region fallthrough
CT: control target
= control target key end

     0   :  { %vm21_vm0 = vcmask 1042432   ;;  %vm14_vm1 = vcmask 23552   ;;  %vm109_vm2 = vcmask 124928   ;;  %v123_v14 = vlaneseq  ;;  %s187_s1 = inlined_call_operand.vmem [shape: f32[3,16], index: 1, kind: input, shape index: {}]   ;;  %s188_s0 = inlined_call_operand.vmem [shape: f32[16,3], index: 0, kind: input, shape index: {}]   ;;  %s189_s2 = inlined_call_operand.vmem [shape: f32[16,16], index: 2, kind: output, shape index: {}]  }
   0x1   :  { %v13_v0 = vld [vmem:[%s187_s1] sm:$0x7]  ;;  %v12_v2 = vld [vmem:[%s188_s0 + $0x8] sm:$0xff]  ;;  %vm139_vm4 = vcmask 130048  }
   0x2   :  { %v11_v1 = vld [vmem:[%s188_s0] sm:$0xff]  ;;  %152 = vmatprep.subr.msk.mxu0 %vm21_vm0, %v13_v0  ;;  %v101_v4 = vmul.f32 %v12_v2, %v12_v2  ;;  %v108_v7 = vmul.f32 %v13_v0, %v13_v0  ;;  %v124_v16 = vshrl.u32 %v123_v14, 7  ;;  %v131_v20 = vand.u32 127, %v123_v14 }
   0x3   :  { %154 = vmatprep.mubr.msk.f32.mxu0 %vm14_vm1, %v11_v1  ;;  %v100_v3 = vmul.f32 %v11_v1, %v11_v1  ;;  %153 = vmatpush3.msk.msra.mxu0 %vm21_vm0, %v13_v0 }
   0x4   :  { %155 = vmatmul.mubr.msk.f32.vlgmr.msra.gmra.mrb[0].mxu0 %vm14_vm1, %v12_v2  ;;  %v105_v6 = vsel %vm14_vm1, %v101_v4, 0.0  ;;  %v110_v8 = vsel %vm109_vm2, %v108_v7, 0.0  ;;  %v125_v19 = vadd.s32 8, %v124_v16  ;;  %vm135_vm5 = vcmp.eq.s32.totalorder %v124_v16, %v131_v20 }
   0x5   :  { %v102_v5 = vsel %vm14_vm1, %v100_v3, 0.0  ;;  %v111_v9 = vrot.slane %v110_v8, 4 }
   0x6   :  { %103 = vadd.xlane.f32.xlu0 %v102_v5  ;;  %vm136_vm3 = vcmp.eq.s32.totalorder %v125_v19, %v131_v20 }
   0x7   :  { %v112_v10 = vadd.f32 %v111_v9, %v110_v8 }
   0x9   :  { %v113_v11 = vrot.slane %v112_v10, 2 }
   0xa   :  { %106 = vadd.xlane.f32.xlu0 %v105_v6 }
   0xb   :  { %v114_v12 = vadd.f32 %v113_v11, %v112_v10 }
   0xd   :  { %v115_v15 = vrot.slane %v114_v12, 1 }
   0xf   :  { %v116_v18 = vadd.f32 %v115_v15, %v114_v12 }
  0x93   :  { %v104_v13 = vpop.xlane.xlu0 %103 }
  0x94   :  { %v117_v25 = vadd.f32 %v116_v18, %v104_v13 }
  0x97   :  { %v107_v17 = vpop.xlane.xlu0 %106 }
  0x98   :  { %v118_v21 = vadd.f32 %v116_v18, %v107_v17 }
  0xd7   :  { %v156_v22 = vpop.f32.mrb[0].mxu0 }
  0xd8   :  { %v120_v23 = vmul.f32 2.0, %v156_v22  ;;  %v91_v24 = vpop.f32.mrb[1].mxu0 }
  0xd9   :  { %v119_v26 = vmul.f32 2.0, %v91_v24 }
  0xda   :  { %v122_v27 = vsub.f32 %v118_v21, %v120_v23 }
  0xdb   :  { %v121_v28 = vsub.f32 %v117_v25, %v119_v26 }
  0xdc   :  { %v138_v29 = vsel %vm136_vm3, inf, %v122_v27 }
  0xdd   :  { %141 = vst.msk [vmem:[%s189_s2 + $0x8] sm:$0xff] %vm139_vm4, %v138_v29  ;;  %v137_v30 = vsel %vm135_vm5, inf, %v121_v28 }
  0xde   :  { %140 = vst.msk [vmem:[%s189_s2] sm:$0xff] %vm139_vm4, %v137_v30 }

// kernel: _lambda_.50
= control target key start
LH: loop header
LB: loop body
LE: loop exit
PB: predicated region body
PF: predicated region fallthrough
CT: control target
= control target key end

     0   :  { %vm45_vm0 = vcmask 1042432   ;;  %vm20_vm1 = vcmask 23552   ;;  %vm187_vm2 = vcmask 124928   ;;  %vm219_vm3 = vcmask 130048   ;;  %s356_s1 = inlined_call_operand.vmem [shape: f32[3,16], index: 1, kind: input, shape index: {}]   ;;  %s357_s0 = inlined_call_operand.vmem [shape: f32[64,3], index: 0, kind: input, shape index: {}]   ;;  %s358_s2 = inlined_call_operand.vmem [shape: f32[64,16], index: 2, kind: output, shape index: {}]  }
   0x1   :  { %v19_v0 = vld [vmem:[%s356_s1] sm:$0x7]  ;;  %v12_v4 = vld [vmem:[%s357_s0 + $0x8] sm:$0xff]  ;;  %v13_v6 = vld [vmem:[%s357_s0 + $0x10] sm:$0xff] }
   0x2   :  { %v11_v1 = vld [vmem:[%s357_s0] sm:$0xff]  ;;  %250 = vmatprep.subr.msk.mxu0 %vm45_vm0, %v19_v0  ;;  %264 = vmatprep.subr.msk.mxu1 %vm45_vm0, %v19_v0  ;;  %v16_v5 = vld [vmem:[%s357_s0 + $0x28] sm:$0xff]  ;;  %v17_v7 = vld [vmem:[%s357_s0 + $0x30] sm:$0xff]  ;;  %v156_v9 = vmul.f32 %v13_v6, %v13_v6  ;;  %v155_v12 = vmul.f32 %v12_v4, %v12_v4  ;;  %v186_v25 = vmul.f32 %v19_v0, %v19_v0 }
   0x3   :  { %v15_v2 = vld [vmem:[%s357_s0 + $0x20] sm:$0xff]  ;;  %v154_v3 = vmul.f32 %v11_v1, %v11_v1  ;;  %251 = vmatpush3.msk.msra.mxu0 %vm45_vm0, %v19_v0  ;;  %265 = vmatpush3.msk.msra.mxu1 %vm45_vm0, %v19_v0  ;;  %v14_v8 = vld [vmem:[%s357_s0 + $0x18] sm:$0xff]  ;;  %v159_v18 = vmul.f32 %v16_v5, %v16_v5  ;;  %v160_v22 = vmul.f32 %v17_v7, %v17_v7 }
   0x4   :  { %252 = vmatprep.mubr.msk.f32.mxu0 %vm20_vm1, %v11_v1  ;;  %258 = vmatprep.mubr.msk.f32.mxu1 %vm20_vm1, %v15_v2  ;;  %v157_v11 = vmul.f32 %v14_v8, %v14_v8  ;;  %v168_v13 = vsel %vm20_vm1, %v156_v9, 0.0  ;;  %v18_v14 = vld [vmem:[%s357_s0 + $0x38] sm:$0xff]  ;;  %v158_v15 = vmul.f32 %v15_v2, %v15_v2  ;;  %v165_v17 = vsel %vm20_vm1, %v155_v12, 0.0 }
   0x5   :  { %v162_v10 = vsel %vm20_vm1, %v154_v3, 0.0  ;;  %253 = vmatmul.mubr.msk.f32.vlgmr.msra.gmra.mrb[0].mxu0 %vm20_vm1, %v12_v4  ;;  %259 = vmatmul.mubr.msk.f32.vlgmr.msra.gmra.mrb[0].mxu1 %vm20_vm1, %v16_v5  ;;  %v177_v19 = vsel %vm20_vm1, %v159_v18, 0.0  ;;  %v161_v21 = vmul.f32 %v18_v14, %v18_v14  ;;  %v180_v24 = vsel %vm20_vm1, %v160_v22, 0.0 }
   0x6   :  { %255 = vmatprep.mubr.msk.f32.mxu0 %vm20_vm1, %v13_v6  ;;  %261 = vmatprep.mubr.msk.f32.mxu1 %vm20_vm1, %v17_v7  ;;  %v171_v16 = vsel %vm20_vm1, %v157_v11, 0.0  ;;  %v174_v20 = vsel %vm20_vm1, %v158_v15, 0.0  ;;  %v188_v26 = vsel %vm187_vm2, %v186_v25, 0.0 }
   0x7   :  { %169 = vadd.xlane.f32.xlu1 %v168_v13  ;;  %163 = vadd.xlane.f32.xlu0 %v162_v10  ;;  %v183_v23 = vsel %vm20_vm1, %v161_v21, 0.0  ;;  %v189_v27 = vrot.slane %v188_v26, 4 }
   0x9   :  { %256 = vmatmul.mubr.msk.f32.gmra.mrb[2].mxu0 %vm20_vm1, %v14_v8  ;;  %262 = vmatmul.mubr.msk.f32.gmra.mrb[2].mxu1 %vm20_vm1, %v18_v14  ;;  %v190_v28 = vadd.f32 %v189_v27, %v188_v26 }
   0xb   :  { %172 = vadd.xlane.f32.xlu1 %v171_v16  ;;  %166 = vadd.xlane.f32.xlu0 %v165_v17  ;;  %v191_v31 = vrot.slane %v190_v28, 2 }
   0xd   :  { %v192_v34 = vadd.f32 %v191_v31, %v190_v28 }
   0xf   :  { %178 = vadd.xlane.f32.xlu1 %v177_v19  ;;  %175 = vadd.xlane.f32.xlu0 %v174_v20  ;;  %v193_v35 = vrot.slane %v192_v34, 1 }
  0x11   :  { %v194_v38 = vadd.f32 %v193_v35, %v192_v34 }
  0x13   :  { %184 = vadd.xlane.f32.xlu1 %v183_v23  ;;  %181 = vadd.xlane.f32.xlu0 %v180_v24 }
  0x94   :  { %v170_v29 = vpop.xlane.xlu1 %169  ;;  %v164_v30 = vpop.xlane.xlu0 %163 }
  0x95   :  { %v195_v50 = vadd.f32 %v194_v38, %v164_v30  ;;  %v197_v2 = vadd.f32 %v194_v38, %v170_v29 }
  0x98   :  { %v173_v32 = vpop.xlane.xlu1 %172  ;;  %v167_v33 = vpop.xlane.xlu0 %166 }
  0x99   :  { %v196_v45 = vadd.f32 %v194_v38, %v167_v33  ;;  %v198_v61 = vadd.f32 %v194_v38, %v173_v32 }
  0x9c   :  { %v179_v36 = vpop.xlane.xlu1 %178  ;;  %v176_v37 = vpop.xlane.xlu0 %175 }
  0x9d   :  { %v200_v39 = vadd.f32 %v194_v38, %v179_v36  ;;  %v199_v44 = vadd.f32 %v194_v38, %v176_v37 }
  0xa0   :  { %v185_v40 = vpop.xlane.xlu1 %184  ;;  %v182_v41 = vpop.xlane.xlu0 %181 }
  0xa1   :  { %v202_v55 = vadd.f32 %v194_v38, %v185_v40  ;;  %v201_v60 = vadd.f32 %v194_v38, %v182_v41 }
  0xd8   :  { %v260_v42 = vpop.f32.mrb[0].mxu1  ;;  %v254_v43 = vpop.f32.mrb[0].mxu0 }
  0xd9   :  { %v208_v46 = vmul.f32 2.0, %v260_v42  ;;  %v204_v47 = vmul.f32 2.0, %v254_v43  ;;  %v135_v48 = vpop.f32.mrb[1].mxu1  ;;  %v115_v49 = vpop.f32.mrb[1].mxu0 }
  0xda   :  { %v207_v51 = vmul.f32 2.0, %v135_v48  ;;  %v203_v52 = vmul.f32 2.0, %v115_v49 }
  0xdb   :  { %v216_v53 = vsub.f32 %v200_v39, %v208_v46  ;;  %v212_v54 = vsub.f32 %v196_v45, %v204_v47 }
  0xdc   :  { %v215_v56 = vsub.f32 %v199_v44, %v207_v51  ;;  %v211_v57 = vsub.f32 %v195_v50, %v203_v52  ;;  %v263_v58 = vpop.f32.mrb[2].mxu1  ;;  %v257_v59 = vpop.f32.mrb[2].mxu0 }
  0xdd   :  { %225 = vst.msk [vmem:[%s358_s2 + $0x28] sm:$0xff] %vm219_vm3, %v216_v53  ;;  %221 = vst.msk [vmem:[%s358_s2 + $0x8] sm:$0xff] %vm219_vm3, %v212_v54  ;;  %v210_v62 = vmul.f32 2.0, %v263_v58  ;;  %v206_v63 = vmul.f32 2.0, %v257_v59  ;;  %v145_v0 = vpop.f32.mrb[3].mxu1  ;;  %v125_v1 = vpop.f32.mrb[3].mxu0 }
  0xde   :  { %224 = vst.msk [vmem:[%s358_s2 + $0x20] sm:$0xff] %vm219_vm3, %v215_v56  ;;  %220 = vst.msk [vmem:[%s358_s2] sm:$0xff] %vm219_vm3, %v211_v57  ;;  %v209_v3 = vmul.f32 2.0, %v145_v0  ;;  %v205_v4 = vmul.f32 2.0, %v125_v1 }
  0xdf   :  { %v218_v5 = vsub.f32 %v202_v55, %v210_v62  ;;  %v214_v6 = vsub.f32 %v198_v61, %v206_v63 }
  0xe0   :  { %v217_v7 = vsub.f32 %v201_v60, %v209_v3  ;;  %v213_v8 = vsub.f32 %v197_v2, %v205_v4 }
  0xe1   :  { %227 = vst.msk [vmem:[%s358_s2 + $0x38] sm:$0xff] %vm219_vm3, %v218_v5  ;;  %223 = vst.msk [vmem:[%s358_s2 + $0x18] sm:$0xff] %vm219_vm3, %v214_v6 }
  0xe2   :  { %226 = vst.msk [vmem:[%s358_s2 + $0x30] sm:$0xff] %vm219_vm3, %v217_v7  ;;  %222 = vst.msk [vmem:[%s358_s2 + $0x10] sm:$0xff] %vm219_vm3, %v213_v8 }

// kernel: neg.7
= control target key start
LH: loop header
LB: loop body
LE: loop exit
PB: predicated region body
PF: predicated region fallthrough
CT: control target
= control target key end

     0   :  { %s136_s0 = inlined_call_operand.vmem [shape: f32[64,16], index: 0, kind: input, shape index: {}]   ;;  %s137_s1 = inlined_call_operand.vmem [shape: f32[64,16], index: 1, kind: output, shape index: {}]  }
   0x1   :  { %v2_v0 = vld [vmem:[%s136_s0] sm:$0xff]  ;;  %v64_v1 = vld [vmem:[%s136_s0 + $0x8] sm:$0xff]  ;;  %v66_v2 = vld [vmem:[%s136_s0 + $0x10] sm:$0xff] }
   0x2   :  { %v5_v3 = vxor.u32 2147483648, %v2_v0  ;;  %v12_v4 = vxor.u32 2147483648, %v64_v1  ;;  %v20_v5 = vxor.u32 2147483648, %v66_v2  ;;  %v68_v6 = vld [vmem:[%s136_s0 + $0x18] sm:$0xff]  ;;  %v70_v7 = vld [vmem:[%s136_s0 + $0x20] sm:$0xff]  ;;  %v72_v8 = vld [vmem:[%s136_s0 + $0x28] sm:$0xff] }
   0x3   :  { %v28_v9 = vxor.u32 2147483648, %v68_v6  ;;  %v36_v10 = vxor.u32 2147483648, %v70_v7  ;;  %v44_v11 = vxor.u32 2147483648, %v72_v8  ;;  %v74_v12 = vld [vmem:[%s136_s0 + $0x30] sm:$0xff]  ;;  %v76_v13 = vld [vmem:[%s136_s0 + $0x38] sm:$0xff] }
   0x4   :  { %7 = vst [vmem:[%s137_s1] sm:$0xff] %v5_v3  ;;  %65 = vst [vmem:[%s137_s1 + $0x8] sm:$0xff] %v12_v4  ;;  %v52_v14 = vxor.u32 2147483648, %v74_v12  ;;  %v60_v15 = vxor.u32 2147483648, %v76_v13 }
   0x5   :  { %67 = vst [vmem:[%s137_s1 + $0x10] sm:$0xff] %v20_v5  ;;  %69 = vst [vmem:[%s137_s1 + $0x18] sm:$0xff] %v28_v9 }
   0x6   :  { %71 = vst [vmem:[%s137_s1 + $0x20] sm:$0xff] %v36_v10  ;;  %73 = vst [vmem:[%s137_s1 + $0x28] sm:$0xff] %v44_v11 }
   0x7   :  { %75 = vst [vmem:[%s137_s1 + $0x30] sm:$0xff] %v52_v14  ;;  %77 = vst [vmem:[%s137_s1 + $0x38] sm:$0xff] %v60_v15 }

// kernel: _lambda_.49
= control target key start
LH: loop header
LB: loop body
LE: loop exit
PB: predicated region body
PF: predicated region fallthrough
CT: control target
= control target key end

     0   :  { %v190_v0 = vmov 0.0   ;;  %vm191_vm0 = vmmov 0   ;;  %vm61_vm1 = vcmask 523264   ;;  %vm106_vm2 = vcmask 261120   ;;  %s240_s1 = inlined_call_operand.vmem [shape: bf16[64,32], index: 1, kind: input, shape index: {}]   ;;  %s241_s0 = inlined_call_operand.vmem [shape: bf16[16,64], index: 0, kind: input, shape index: {}]   ;;  %s242_s2 = inlined_call_operand.vmem [shape: f32[1,32], index: 2, kind: input, shape index: {}]   ;;  %s243_s3 = inlined_call_operand.vmem [shape: bf16[16,32], index: 3, kind: output, shape index: {}]  }
   0x1   :  { %169 = vmatprep.subr.bf16.mxu0 %v190_v0  ;;  %v183_v1 = vld [vmem:[%s240_s1] sm:$0xff]   ;;  %177 = vmatprep.mubr.msk.bf16.mxu0 %vm191_vm0, %v190_v0  ;;  %v184_v2 = vld [vmem:[%s240_s1 + $0x8] sm:$0xff]   ;;  %v185_v3 = vld [vmem:[%s240_s1 + $0x10] sm:$0xff]   ;;  %vm146_vm3 = vcmask 257024  }
   0x2   :  { %170 = vmatpush3.bf16.msra.mxu0 %v183_v1  ;;  %v186_v4 = vld [vmem:[%s240_s1 + $0x18] sm:$0xff]   ;;  %v187_v5 = vld [vmem:[%s241_s0] sm:$0xff]  }
   0x3   :  { %171 = vmatprep.subr.bf16.mxu0 %v190_v0  ;;  %v153_v6 = vld [vmem:[%s242_s2] ss:$0 sm:$0xff] }
   0x6   :  { %172 = vmatpush3.bf16.msra.mxu0 %v184_v2 }
   0x7   :  { %173 = vmatprep.subr.bf16.mxu0 %v190_v0 }
   0xa   :  { %174 = vmatpush3.bf16.msra.mxu0 %v185_v3 }
   0xb   :  { %175 = vmatprep.subr.bf16.mxu0 %v190_v0 }
   0xe   :  { %176 = vmatpush3.bf16.msra.mxu0 %v186_v4 }
  0x11   :  { %178 = vmatmul.mubr.msk.bf16.vlgmr.msra.gmra.mrb[0].mxu0 %vm61_vm1, %v187_v5 }
  0xe4   :  { %v99_v7 = vpop.f32.mrb[0].mxu0 }
  0xe5   :  { %v100_v8 = vadd.f32 %v153_v6, %v99_v7  ;;  %v179_v9 = vpop.f32.mrb[1].mxu0 }
  0xe6   :  { %v102_v10 = vpop.f32.mrb[2].mxu0 }
  0xe7   :  { %v103_v11 = vadd.f32 %v153_v6, %v102_v10  ;;  %v180_v12 = vpop.f32.mrb[3].mxu0  ;;  %v107_v13 = vsel %vm106_vm2, %v100_v8, 0.0 }
  0xe9   :  { %v108_v14 = vsel %vm106_vm2, %v103_v11, 0.0 }
  0xea   :  { %v109_v15 = vadd.f32 %v108_v14, %v107_v13 }
  0xec   :  { %v110_v16 = vrot.slane %v109_v15, 4 }
  0xee   :  { %v111_v17 = vadd.f32 %v110_v16, %v109_v15 }
  0xf0   :  { %v112_v18 = vrot.slane %v111_v17, 2 }
  0xf2   :  { %v113_v19 = vadd.f32 %v112_v18, %v111_v17 }
  0xf4   :  { %v114_v20 = vrot.slane %v113_v19, 1 }
  0xf6   :  { %v115_v21 = vadd.f32 %v114_v20, %v113_v19 }
  0xf8   :  { %v117_v22 = vmul.f32 0.0625, %v115_v21 }
  0xfa   :  { %v118_v23 = vsub.f32 %v100_v8, %v117_v22  ;;  %v119_v24 = vsub.f32 %v103_v11, %v117_v22 }
  0xfc   :  { %v120_v25 = vmul.f32 %v118_v23, %v118_v23  ;;  %v121_v26 = vmul.f32 %v119_v24, %v119_v24 }
  0xfe   :  { %v122_v27 = vsel %vm106_vm2, %v120_v25, 0.0  ;;  %v123_v28 = vsel %vm106_vm2, %v121_v26, 0.0 }
  0xff   :  { %v124_v29 = vadd.f32 %v123_v28, %v122_v27 }
 0x101   :  { %v125_v30 = vrot.slane %v124_v29, 4 }
 0x103   :  { %v126_v31 = vadd.f32 %v125_v30, %v124_v29 }
 0x105   :  { %v127_v32 = vrot.slane %v126_v31, 2 }
 0x107   :  { %v128_v33 = vadd.f32 %v127_v32, %v126_v31 }
 0x109   :  { %v129_v34 = vrot.slane %v128_v33, 1 }
 0x10b   :  { %v130_v35 = vadd.f32 %v129_v34, %v128_v33 }
 0x10d   :  { %v131_v36 = vmul.f32 0.0625, %v130_v35 }
 0x10f   :  { %v132_v37 = vadd.f32 1e-05, %v131_v36 }
 0x111   :  { %188 = vrsqrt.f32 %v132_v37 }
 0x11b   :  { %v189_v38 = vpop.eup %188 }
 0x11c   :  { %v134_v39 = vmul.f32 %v189_v38, %v118_v23  ;;  %v135_v40 = vmul.f32 %v189_v38, %v119_v24 }
 0x11e   :  { %v136_v41 = vmax.f32 %v134_v39, 0.0  ;;  %v137_v42 = vmax.f32 %v135_v40, 0.0 }
 0x120   :  { %v162_v43 = vpack.c.bf16 %v136_v41, %v136_v41  ;;  %v163_v44 = vpack.c.bf16 %v137_v42, %v137_v42 }
 0x122   :  { %147 = vst.msk [vmem:[%s243_s3] sm:$0xf] %vm146_vm3, %v162_v43  ;;  %148 = vst.msk [vmem:[%s243_s3 + $0x4] sm:$0xf] %vm146_vm3, %v163_v44 }

// kernel: _lambda_.42
= control target key start
LH: loop header
LB: loop body
LE: loop exit
PB: predicated region body
PF: predicated region fallthrough
CT: control target
= control target key end

     0   :  { %v1482_v0 = vmov 1   ;;  %v1483_v1 = vmov 0   ;;  %v1484_v12 = vmov 2   ;;  %v151_v26 = vlaneseq  ;;  %s2042_s2 = inlined_call_operand.vmem [shape: f32[5,16,3], index: 2, kind: input, shape index: {}]   ;;  %s2043_s4 = inlined_call_operand.vmem [shape: f32[16,3], index: 4, kind: input, shape index: {}]   ;;  %s2044_s7 = inlined_call_operand.vmem [shape: bf16[64,64], index: 7, kind: input, shape index: {}]   ;;  %s2045_s9 = inlined_call_operand.vmem [shape: bf16[64,64], index: 9, kind: input, shape index: {}]   ;;  %s2046_s1 = inlined_call_operand.vmem [shape: bf16[5,16,64], index: 1, kind: input, shape index: {}]   ;;  %s2047_s0 = inlined_call_operand.vmem [shape: bf16[5,16,64], index: 0, kind: input, shape index: {}]   ;;  %s2048_s5 = inlined_call_operand.vmem [shape: f32[3,64], index: 5, kind: input, shape index: {}]   ;;  %s2049_s6 = inlined_call_operand.vmem [shape: f32[1,64], index: 6, kind: input, shape index: {}]   ;;  %s2050_s11 = inlined_call_operand.vmem [shape: bf16[64,64], index: 11, kind: input, shape index: {}]   ;;  %s2051_s3 = inlined_call_operand.vmem [shape: bf16[16,64], index: 3, kind: input, shape index: {}]   ;;  %s2052_s8 = inlined_call_operand.vmem [shape: f32[1,64], index: 8, kind: input, shape index: {}]   ;;  %s2053_s10 = inlined_call_operand.vmem [shape: f32[1,64], index: 10, kind: input, shape index: {}]   ;;  %s2054_s12 = inlined_call_operand.vmem [shape: f32[1,64], index: 12, kind: input, shape index: {}]   ;;  %s2055_s13 = inlined_call_operand.vmem [shape: bf16[16,64], index: 13, kind: output, shape index: {}]  }
   0x1   :  { %1407 = vset.pattern.permute.xlu1 %v1482_v0  ;;  %1406 = vset.pattern.permute.xlu0 %v1483_v1  ;;  %v1562_v2 = vld [vmem:[%s2043_s4] sm:$0xff]  ;;  %v1570_v4 = vld [vmem:[%s2043_s4 + $0x8] sm:$0xff]  ;;  %v1161_v8 = vld [vmem:[%s2042_s2 + $0x10] sm:$0xff]  ;;  %vm261_vm0 = vcmask 523264   ;;  %vm1486_vm1 = vmmov 0   ;;  %vm1154_vm2 = vcmask 519168  }
   0x2   :  { %v80_v3 = vld [vmem:[%s2042_s2] sm:$0xff]  ;;  %v81_v6 = vld [vmem:[%s2042_s2 + $0x8] sm:$0xff]  ;;  %v1162_v9 = vld [vmem:[%s2042_s2 + $0x18] sm:$0xff]  ;;  %v87_v10 = vsub.f32 %v1562_v2, %v1161_v8  ;;  %v152_v29 = vshrl.u32 %v151_v26, 7 }
   0x3   :  { %v82_v5 = vsub.f32 %v1562_v2, %v80_v3  ;;  %v83_v7 = vsub.f32 %v1570_v4, %v81_v6  ;;  %v88_v11 = vsub.f32 %v1570_v4, %v1162_v9  ;;  %v1593_v13 = vld [vmem:[%s2044_s7] sm:$0xff]   ;;  %v1601_v14 = vld [vmem:[%s2044_s7 + $0x8] sm:$0xff]   ;;  %v1608_v15 = vld [vmem:[%s2044_s7 + $0x10] sm:$0xff]  }
   0x4   :  { %1293 = vmatprep.subr.bf16.mxu0 %v1593_v13  ;;  %v1615_v16 = vld [vmem:[%s2044_s7 + $0x18] sm:$0xff]   ;;  %v1194_v17 = vld [vmem:[%s2042_s2 + $0x28] sm:$0xff]  ;;  %v1193_v18 = vld [vmem:[%s2042_s2 + $0x20] sm:$0xff]  ;;  %v177_v32 = vsub.s32 1, %v152_v29  ;;  %v153_v33 = vsub.s32 0, %v152_v29  ;;  %v205_v37 = vsub.s32 2, %v152_v29 }
   0x5   :  { %160 = vperm.xlu1 %1407, %v82_v5   ;;  %133 = vperm.xlu0 %1406, %v82_v5   ;;  %v553_v19 = vsub.f32 %v1570_v4, %v1194_v17  ;;  %v552_v20 = vsub.f32 %v1562_v2, %v1193_v18  ;;  %v1195_v21 = vld [vmem:[%s2042_s2 + $0x30] sm:$0xff]  ;;  %v1196_v23 = vld [vmem:[%s2042_s2 + $0x38] sm:$0xff]  ;;  %v1647_v25 = vld [vmem:[%s2045_s9] sm:$0xff]  }
   0x6   :  { %1294 = vmatpush3.bf16.msra.mxu0 %v1593_v13  ;;  %v557_v22 = vsub.f32 %v1562_v2, %v1195_v21  ;;  %v558_v24 = vsub.f32 %v1570_v4, %v1196_v23  ;;  %1305 = vmatprep.subr.bf16.mxu1 %v1647_v25  ;;  %v45_v35 = vld [vmem:[%s2048_s5] sm:$0x7]  ;;  %v1693_v23 = vld [vmem:[%s2045_s9 + $0x10] sm:$0xff]  }
   0x7   :  { %1295 = vmatprep.subr.bf16.mxu0 %v1601_v14  ;;  %1306 = vmatpush3.bf16.msra.mxu1 %v1647_v25  ;;  %v1654_v38 = vrot.slane %v45_v35, %v177_v32  ;;  %v1656_v39 = vrot.slane %v45_v35, %v153_v33  ;;  %v1660_v44 = vrot.slane %v45_v35, %v205_v37  ;;  %v1670_v54 = vld [vmem:[%s2049_s6] ss:$0 sm:$0xff] }
   0x8   :  { %v1215_v26 = vld [vmem:[%s2042_s2 + $0x40] sm:$0xff] }
   0x9   :  { %164 = vperm.xlu1 %1407, %v83_v7   ;;  %138 = vperm.xlu0 %1406, %v83_v7  }
   0xa   :  { %1296 = vmatpush3.bf16.msra.mxu0 %v1601_v14 }
   0xb   :  { %1297 = vmatprep.subr.bf16.mxu0 %v1608_v15 }
   0xd   :  { %1408 = vset.pattern.permute.xlu1 %v1483_v1  ;;  %143 = vperm.xlu0 %1406, %v87_v10  }
   0xe   :  { %148 = vperm.xlu1 %1408, %v88_v11   ;;  %1298 = vmatpush3.bf16.msra.mxu0 %v1608_v15 }
   0xf   :  { %1299 = vmatprep.subr.bf16.mxu0 %v1615_v16 }
  0x11   :  { %1409 = vset.pattern.permute.xlu0 %v1482_v0 }
  0x12   :  { %1410 = vset.pattern.permute.xlu1 %v1482_v0  ;;  %168 = vperm.xlu0 %1409, %v87_v10  }
  0x13   :  { %172 = vperm.xlu1 %1410, %v88_v11   ;;  %1300 = vmatpush3.bf16.msra.mxu0 %v1615_v16 }
  0x16   :  { %1412 = vset.pattern.permute.xlu0 %v1484_v12 }
  0x17   :  { %1411 = vset.pattern.permute.xlu1 %v1484_v12  ;;  %192 = vperm.xlu0 %1412, %v83_v7  }
  0x18   :  { %188 = vperm.xlu1 %1411, %v82_v5  }
  0x1b   :  { %1413 = vset.pattern.permute.xlu0 %v1483_v1 }
  0x1c   :  { %196 = vperm.xlu1 %1411, %v87_v10   ;;  %605 = vperm.xlu0 %1413, %v552_v20  }
  0x20   :  { %200 = vperm.xlu1 %1411, %v88_v11   ;;  %1416 = vset.pattern.permute.xlu0 %v1482_v0 }
  0x21   :  { %632 = vperm.xlu0 %1416, %v553_v19  }
  0x24   :  { %1414 = vset.pattern.permute.xlu1 %v1483_v1 }
  0x25   :  { %610 = vperm.xlu1 %1414, %v553_v19   ;;  %636 = vperm.xlu0 %1416, %v557_v22  }
  0x29   :  { %1415 = vset.pattern.permute.xlu1 %v1482_v0  ;;  %1419 = vset.pattern.permute.xlu0 %v1484_v12 }
  0x2a   :  { %628 = vperm.xlu1 %1415, %v552_v20   ;;  %652 = vperm.xlu0 %1419, %v552_v20  }
  0x2e   :  { %1417 = vset.pattern.permute.xlu1 %v1483_v1  ;;  %664 = vperm.xlu0 %1419, %v558_v24  }
  0x2f   :  { %615 = vperm.xlu1 %1417, %v557_v22  }
  0x32   :  { %1422 = vset.pattern.permute.xlu0 %v1483_v1 }
  0x33   :  { %620 = vperm.xlu1 %1417, %v558_v24  }
  0x37   :  { %1418 = vset.pattern.permute.xlu1 %v1482_v0 }
  0x38   :  { %640 = vperm.xlu1 %1418, %v558_v24   ;;  %v1700_v24 = vld [vmem:[%s2045_s9 + $0x18] sm:$0xff]  }
  0x3c   :  { %1420 = vset.pattern.permute.xlu1 %v1484_v12 }
  0x3d   :  { %656 = vperm.xlu1 %1420, %v553_v19  }
  0x41   :  { %660 = vperm.xlu1 %1420, %v557_v22   ;;  %v1686_v22 = vld [vmem:[%s2045_s9 + $0x8] sm:$0xff]  }
  0x42   :  { %1307 = vmatprep.subr.bf16.mxu1 %v1686_v22 }
  0x43   :  { %1308 = vmatpush3.bf16.msra.mxu1 %v1686_v22 }
  0x44   :  { %1309 = vmatprep.subr.bf16.mxu1 %v1693_v23 }
  0x45   :  { %1421 = vset.pattern.permute.xlu1 %v1483_v1 }
  0x47   :  { %1310 = vmatpush3.bf16.msra.mxu1 %v1693_v23 }
  0x48   :  { %1311 = vmatprep.subr.bf16.mxu1 %v1700_v24 }
  0x4b   :  { %1312 = vmatpush3.bf16.msra.mxu1 %v1700_v24 }
  0x4c   :  { %1329 = vmatprep.subr.bf16.mxu1 %v1593_v13 }
  0x84   :  { %v161_v27 = vpop.permute.xlu1 %160  ;;  %v134_v28 = vpop.permute.xlu0 %133 }
  0x85   :  { %v179_v45 = vmul.f32 %v1654_v38, %v161_v27  ;;  %v155_v46 = vmul.f32 %v1656_v39, %v134_v28  ;;  %v1216_v27 = vld [vmem:[%s2042_s2 + $0x48] sm:$0xff]  ;;  %v919_v28 = vsub.f32 %v1562_v2, %v1215_v26 }
  0x86   :  { %v920_v29 = vsub.f32 %v1570_v4, %v1216_v27 }
  0x87   :  { %v183_v51 = vadd.f32 %v179_v45, %v155_v46  ;;  %933 = vperm.xlu1 %1421, %v919_v28  }
  0x88   :  { %v165_v30 = vpop.permute.xlu1 %164  ;;  %v139_v31 = vpop.permute.xlu0 %138  ;;  %938 = vperm.xlu0 %1422, %v920_v29  }
  0x89   :  { %v180_v42 = vmul.f32 %v1654_v38, %v165_v30  ;;  %v156_v43 = vmul.f32 %v1656_v39, %v139_v31  ;;  %v1716_v30 = vld [vmem:[%s2050_s11] sm:$0xff]   ;;  %v1721_v31 = vld [vmem:[%s2050_s11 + $0x8] sm:$0xff]  }
  0x8a   :  { %1317 = vmatprep.subr.bf16.mxu0 %v1716_v30 }
  0x8b   :  { %v184_v48 = vadd.f32 %v180_v42, %v156_v43  ;;  %1423 = vset.pattern.permute.xlu1 %v1482_v0 }
  0x8c   :  { %v144_v34 = vpop.permute.xlu0 %143  ;;  %1424 = vset.pattern.permute.xlu0 %v1484_v12  ;;  %944 = vperm.xlu1 %1423, %v919_v28  }
  0x8d   :  { %v149_v36 = vpop.permute.xlu1 %148  ;;  %v157_v56 = vmul.f32 %v1656_v39, %v144_v34  ;;  %956 = vperm.xlu0 %1424, %v919_v28  }
  0x8e   :  { %v158_v3 = vmul.f32 %v1656_v39, %v149_v36 }
  0x90   :  { %948 = vperm.xlu1 %1423, %v920_v29  }
  0x91   :  { %v169_v40 = vpop.permute.xlu0 %168 }
  0x92   :  { %v173_v41 = vpop.permute.xlu1 %172  ;;  %v181_v52 = vmul.f32 %v1654_v38, %v169_v40 }
  0x93   :  { %v182_v61 = vmul.f32 %v1654_v38, %v173_v41 }
  0x94   :  { %v185_v60 = vadd.f32 %v181_v52, %v157_v56  ;;  %1425 = vset.pattern.permute.xlu1 %v1484_v12 }
  0x95   :  { %v186_v8 = vadd.f32 %v182_v61, %v158_v3  ;;  %960 = vperm.xlu1 %1425, %v920_v29  }
  0x96   :  { %v193_v47 = vpop.permute.xlu0 %192 }
  0x97   :  { %v208_v49 = vmul.f32 %v1660_v44, %v193_v47  ;;  %v189_v50 = vpop.permute.xlu1 %188 }
  0x98   :  { %v207_v53 = vmul.f32 %v1660_v44, %v189_v50  ;;  %v1229_v50 = vld [vmem:[%s2051_s3] sm:$0xff]  }
  0x99   :  { %v212_v55 = vadd.f32 %v208_v49, %v184_v48  ;;  %v1431_v49 = vld [vmem:[%s2046_s1 + $0x8] sm:$0xff]   ;;  %v1750_v56 = vunpack.c.l.bf16 %v1229_v50 }
  0x9a   :  { %v211_v57 = vadd.f32 %v207_v53, %v183_v51  ;;  %v1434_v51 = vld [vmem:[%s2046_s1] sm:$0xff]  }
  0x9b   :  { %v197_v58 = vpop.permute.xlu1 %196  ;;  %v222_v59 = vadd.f32 %v1670_v54, %v212_v55  ;;  %v606_v33 = vpop.permute.xlu0 %605  ;;  %v1748_v55 = vld [vmem:[%s2052_s8] ss:$0 sm:$0xff]  ;;  %v106_v61 = vunpack.c.l.bf16 %v1434_v51 }
  0x9c   :  { %v209_v62 = vmul.f32 %v1660_v44, %v197_v58  ;;  %v221_v63 = vadd.f32 %v1670_v54, %v211_v57  ;;  %v623_v41 = vmul.f32 %v606_v33, %v1656_v39  ;;  %v108_v57 = vunpack.c.l.bf16 %v1431_v49 }
  0x9d   :  { %v226_v1 = vmax.f32 %v222_v59, 0.0  ;;  %v1752_v58 = vunpack.c.h.bf16 %v1229_v50  ;;  %v109_v59 = vunpack.c.h.bf16 %v1431_v49 }
  0x9e   :  { %v213_v5 = vadd.f32 %v209_v62, %v185_v60  ;;  %v225_v6 = vmax.f32 %v221_v63, 0.0  ;;  %v107_v62 = vunpack.c.h.bf16 %v1434_v51 }
  0x9f   :  { %v201_v7 = vpop.permute.xlu1 %200 }
  0xa0   :  { %v210_v9 = vmul.f32 %v1660_v44, %v201_v7  ;;  %v229_v10 = vpack.c.bf16 %v226_v1, %v225_v6  ;;  %v223_v11 = vadd.f32 %v1670_v54, %v213_v5  ;;  %v633_v35 = vpop.permute.xlu0 %632 }
  0xa1   :  { %v644_v42 = vmul.f32 %v633_v35, %v1654_v38 }
  0xa2   :  { %v214_v17 = vadd.f32 %v210_v9, %v186_v8  ;;  %1301 = vmatprep.mubr.msk.bf16.mxu0 %vm261_vm0, %v229_v10  ;;  %v227_v19 = vmax.f32 %v223_v11, 0.0  ;;  %v323_v9 = vsub.f32 %v1750_v56, %v108_v57  ;;  %v324_v11 = vsub.f32 %v1752_v58, %v109_v59  ;;  %v1810_v59 = vld [vmem:[%s2050_s11 + $0x10] sm:$0xff]  }
  0xa4   :  { %v224_v18 = vadd.f32 %v1670_v54, %v214_v17  ;;  %v611_v2 = vpop.permute.xlu1 %610  ;;  %v637_v37 = vpop.permute.xlu0 %636 }
  0xa5   :  { %v624_v0 = vmul.f32 %v611_v2, %v1656_v39  ;;  %v645_v28 = vmul.f32 %v637_v37, %v1654_v38 }
  0xa6   :  { %v228_v20 = vmax.f32 %v224_v18, 0.0 }
  0xa7   :  { %v648_v46 = vadd.f32 %v644_v42, %v624_v0 }
  0xa8   :  { %v230_v21 = vpack.c.bf16 %v228_v20, %v227_v19  ;;  %v321_v19 = vsub.f32 %v1750_v56, %v106_v61  ;;  %v1485_v61 = vmov 0.0  }
  0xa9   :  { %v629_v4 = vpop.permute.xlu1 %628  ;;  %v653_v45 = vpop.permute.xlu0 %652 }
  0xaa   :  { %1302 = vmatmul.mubr.msk.bf16.vlgmr.msra.gmra.mrb[0].mxu0 %vm261_vm0, %v230_v21  ;;  %v643_v40 = vmul.f32 %v629_v4, %v1654_v38  ;;  %v667_v48 = vmul.f32 %v653_v45, %v1660_v44  ;;  %v322_v21 = vsub.f32 %v1752_v58, %v107_v62  ;;  %v1830_v62 = vld [vmem:[%s2053_s10] ss:$0 sm:$0xff] }
  0xab   :  { %1318 = vmatpush3.bf16.msra.mxu0 %v1716_v30 }
  0xac   :  { %1319 = vmatprep.subr.bf16.mxu0 %v1721_v31  ;;  %v647_v12 = vadd.f32 %v643_v40, %v623_v41 }
  0xad   :  { %v665_v42 = vpop.permute.xlu0 %664 }
  0xae   :  { %v616_v32 = vpop.permute.xlu1 %615  ;;  %v671_v53 = vadd.f32 %v667_v48, %v647_v12 }
  0xaf   :  { %1320 = vmatpush3.bf16.msra.mxu0 %v1721_v31  ;;  %v625_v27 = vmul.f32 %v616_v32, %v1656_v39 }
  0xb0   :  { %v675_v5 = vadd.f32 %v1670_v54, %v671_v53  ;;  %1321 = vmatprep.subr.bf16.mxu0 %v1810_v59 }
  0xb2   :  { %v621_v34 = vpop.permute.xlu1 %620  ;;  %v679_v40 = vmax.f32 %v675_v5, 0.0 }
  0xb3   :  { %v626_v2 = vmul.f32 %v621_v34, %v1656_v39  ;;  %1322 = vmatpush3.bf16.msra.mxu0 %v1810_v59 }
  0xb7   :  { %v641_v36 = vpop.permute.xlu1 %640 }
  0xb8   :  { %v646_v4 = vmul.f32 %v641_v36, %v1654_v38  ;;  %v649_v36 = vadd.f32 %v645_v28, %v625_v27 }
  0xba   :  { %v650_v45 = vadd.f32 %v646_v4, %v626_v2 }
  0xbc   :  { %v657_v43 = vpop.permute.xlu1 %656 }
  0xbd   :  { %v668_v47 = vmul.f32 %v657_v43, %v1660_v44 }
  0xbf   :  { %v672_v52 = vadd.f32 %v668_v47, %v648_v46  ;;  %v670_v46 = vmul.f32 %v665_v42, %v1660_v44 }
  0xc0   :  { %v661_v41 = vpop.permute.xlu1 %660 }
  0xc1   :  { %v676_v3 = vadd.f32 %v1670_v54, %v672_v52  ;;  %v669_v12 = vmul.f32 %v661_v41, %v1660_v44  ;;  %v674_v49 = vadd.f32 %v670_v46, %v650_v45  ;;  %v1444_v41 = vld [vmem:[%s2046_s1 + $0x10] sm:$0xff]  }
  0xc3   :  { %v680_v0 = vmax.f32 %v676_v3, 0.0  ;;  %v673_v48 = vadd.f32 %v669_v12, %v649_v36  ;;  %v678_v51 = vadd.f32 %v1670_v54, %v674_v49 }
  0xc5   :  { %v683_v47 = vpack.c.bf16 %v680_v0, %v679_v40  ;;  %v677_v50 = vadd.f32 %v1670_v54, %v673_v48  ;;  %v682_v53 = vmax.f32 %v678_v51, 0.0  ;;  %v1442_v40 = vld [vmem:[%s2046_s1 + $0x18] sm:$0xff]  }
  0xc6   :  { %v580_v42 = vunpack.c.h.bf16 %v1442_v40 }
  0xc7   :  { %v681_v52 = vmax.f32 %v677_v50, 0.0 }
  0xc9   :  { %v684_v57 = vpack.c.bf16 %v682_v53, %v681_v52  ;;  %v747_v52 = vsub.f32 %v1752_v58, %v580_v42 }
 0x106   :  { %v934_v28 = vpop.permute.xlu1 %933 }
 0x107   :  { %v939_v46 = vpop.permute.xlu0 %938 }
 0x10b   :  { %v945_v0 = vpop.permute.xlu1 %944 }
 0x10f   :  { %v949_v36 = vpop.permute.xlu1 %948 }
 0x17d   :  { %v1303_v60 = vpop.f32.mrb[0].mxu0 }
 0x17e   :  { %v1755_v63 = vadd.f32 %v1303_v60, %v1748_v55  ;;  %v302_v1 = vpop.f32.mrb[1].mxu0  ;;  %v1819_v60 = vld [vmem:[%s2050_s11 + $0x18] sm:$0xff]  }
 0x17f   :  { %v1760_v6 = vadd.f32 %v1748_v55, %v302_v1  ;;  %v1304_v7 = vpop.f32.mrb[2].mxu0  ;;  %1323 = vmatprep.subr.bf16.mxu0 %v1819_v60 }
 0x180   :  { %v319_v8 = vmax.f32 %v1755_v63, 0.0  ;;  %v1765_v10 = vadd.f32 %v1304_v7, %v1748_v55  ;;  %v305_v17 = vpop.f32.mrb[3].mxu0  ;;  %1324 = vmatpush3.bf16.msra.mxu0 %v1819_v60 }
 0x181   :  { %v317_v18 = vmax.f32 %v1760_v6, 0.0  ;;  %v1771_v20 = vadd.f32 %v1748_v55, %v305_v17  ;;  %1341 = vmatprep.subr.bf16.mxu0 %v1647_v25 }
 0x182   :  { %v320_v26 = vmax.f32 %v1765_v10, 0.0  ;;  %v327_v33 = vadd.f32 %v323_v9, %v319_v8  ;;  %v1240_v10 = vld [vmem:[%s2046_s1 + $0x20] sm:$0xff]  }
 0x183   :  { %v318_v29 = vmax.f32 %v1771_v20, 0.0  ;;  %v325_v32 = vadd.f32 %v321_v19, %v317_v18 }
 0x184   :  { %v328_v35 = vadd.f32 %v324_v11, %v320_v26 }
 0x185   :  { %v326_v37 = vadd.f32 %v322_v21, %v318_v29 }
 0x186   :  { %v330_v43 = vpack.c.bf16 %v328_v35, %v327_v33 }
 0x187   :  { %v329_v34 = vpack.c.bf16 %v326_v37, %v325_v32  ;;  %v579_v32 = vunpack.c.l.bf16 %v1442_v40 }
 0x189   :  { %1313 = vmatprep.mubr.msk.bf16.mxu1 %vm261_vm0, %v329_v34  ;;  %v578_v34 = vunpack.c.h.bf16 %v1444_v41  ;;  %v746_v50 = vsub.f32 %v1750_v56, %v579_v32 }
 0x18a   :  { %1314 = vmatmul.mubr.msk.bf16.vlgmr.msra.gmra.mrb[0].mxu1 %vm261_vm0, %v330_v43  ;;  %v577_v43 = vunpack.c.l.bf16 %v1444_v41 }
 0x18b   :  { %1330 = vmatpush3.bf16.msra.mxu1 %v1593_v13  ;;  %1337 = vmatprep.mubr.msk.bf16.mxu1 %vm261_vm0, %v683_v47 }
 0x18c   :  { %1331 = vmatprep.subr.bf16.mxu1 %v1601_v14 }
 0x18f   :  { %1332 = vmatpush3.bf16.msra.mxu1 %v1601_v14 }
 0x190   :  { %1333 = vmatprep.subr.bf16.mxu1 %v1608_v15 }
 0x193   :  { %1334 = vmatpush3.bf16.msra.mxu1 %v1608_v15 }
 0x194   :  { %1335 = vmatprep.subr.bf16.mxu1 %v1615_v16 }
 0x197   :  { %1336 = vmatpush3.bf16.msra.mxu1 %v1615_v16 }
 0x198   :  { %1353 = vmatprep.subr.bf16.mxu1 %v1716_v30 }
 0x19a   :  { %1338 = vmatmul.mubr.msk.bf16.vlgmr.msra.gmra.mrb[4].mxu1 %vm261_vm0, %v684_v57 }
 0x19b   :  { %1354 = vmatpush3.bf16.msra.mxu1 %v1716_v30 }
 0x19c   :  { %1355 = vmatprep.subr.bf16.mxu1 %v1721_v31 }
 0x19f   :  { %1356 = vmatpush3.bf16.msra.mxu1 %v1721_v31 }
 0x1a0   :  { %1357 = vmatprep.subr.bf16.mxu1 %v1810_v59 }
 0x1a3   :  { %1358 = vmatpush3.bf16.msra.mxu1 %v1810_v59 }
 0x1a4   :  { %1359 = vmatprep.subr.bf16.mxu1 %v1819_v60 }
 0x1a7   :  { %1360 = vmatpush3.bf16.msra.mxu1 %v1819_v60 }
 0x1a8   :  { %1377 = vmatprep.subr.bf16.mxu1 %v1485_v61 }
 0x25d   :  { %v1315_v1 = vpop.f32.mrb[0].mxu1 }
 0x25e   :  { %v410_v3 = vadd.f32 %v1315_v1, %v1830_v62  ;;  %v401_v5 = vpop.f32.mrb[1].mxu1  ;;  %v744_v1 = vsub.f32 %v1750_v56, %v577_v43 }
 0x25f   :  { %v402_v7 = vadd.f32 %v1830_v62, %v401_v5  ;;  %v1316_v9 = vpop.f32.mrb[2].mxu1  ;;  %v745_v5 = vsub.f32 %v1752_v58, %v578_v34 }
 0x260   :  { %v413_v11 = vadd.f32 %v1316_v9, %v1830_v62  ;;  %v404_v17 = vpop.f32.mrb[3].mxu1  ;;  %v418_v21 = vmax.f32 %v410_v3, 0.0  ;;  %v941_v9 = vmul.f32 %v934_v28, %v1656_v39 }
 0x261   :  { %v405_v19 = vadd.f32 %v1830_v62, %v404_v17  ;;  %v416_v2 = vmax.f32 %v402_v7, 0.0 }
 0x262   :  { %v419_v27 = vmax.f32 %v413_v11, 0.0  ;;  %v951_v11 = vmul.f32 %v945_v0, %v1654_v38 }
 0x263   :  { %v417_v4 = vmax.f32 %v405_v19, 0.0 }
 0x264   :  { %v421_v33 = vpack.c.bf16 %v419_v27, %v418_v21  ;;  %v952_v21 = vmul.f32 %v949_v36, %v1654_v38  ;;  %v942_v27 = vmul.f32 %v939_v46, %v1656_v39  ;;  %v953_v40 = vadd.f32 %v951_v11, %v941_v9 }
 0x265   :  { %v420_v35 = vpack.c.bf16 %v417_v4, %v416_v2 }
 0x266   :  { %v954_v41 = vadd.f32 %v952_v21, %v942_v27 }
 0x267   :  { %1325 = vmatprep.mubr.msk.bf16.mxu0 %vm261_vm0, %v420_v35  ;;  %v957_v35 = vpop.permute.xlu0 %956 }
 0x268   :  { %1326 = vmatmul.mubr.msk.bf16.vlgmr.msra.gmra.mrb[4].mxu0 %vm261_vm0, %v421_v33  ;;  %v961_v33 = vpop.permute.xlu1 %960  ;;  %v963_v32 = vmul.f32 %v957_v35, %v1660_v44 }
 0x269   :  { %1342 = vmatpush3.bf16.msra.mxu0 %v1647_v25  ;;  %v964_v39 = vmul.f32 %v961_v33, %v1660_v44 }
 0x26a   :  { %1343 = vmatprep.subr.bf16.mxu0 %v1686_v22 }
 0x26b   :  { %v966_v42 = vadd.f32 %v964_v39, %v954_v41 }
 0x26d   :  { %v1339_v37 = vpop.f32.mrb[4].mxu1  ;;  %1344 = vmatpush3.bf16.msra.mxu0 %v1686_v22  ;;  %v968_v43 = vadd.f32 %v1670_v54, %v966_v42 }
 0x26e   :  { %v1848_v45 = vadd.f32 %v1339_v37, %v1748_v55  ;;  %v725_v12 = vpop.f32.mrb[5].mxu1  ;;  %1345 = vmatprep.subr.bf16.mxu0 %v1693_v23  ;;  %v965_v37 = vadd.f32 %v963_v32, %v953_v40  ;;  %v1435_v40 = vld [vmem:[%s2047_s0] sm:$0xff]  }
 0x26f   :  { %v1852_v47 = vadd.f32 %v1748_v55, %v725_v12  ;;  %v1340_v48 = vpop.f32.mrb[6].mxu1  ;;  %v970_v34 = vmax.f32 %v968_v43, 0.0  ;;  %v127_v41 = vunpack.c.l.bf16 %v1435_v40 }
 0x270   :  { %v742_v49 = vmax.f32 %v1848_v45, 0.0  ;;  %v1857_v51 = vadd.f32 %v1340_v48, %v1748_v55  ;;  %v728_v53 = vpop.f32.mrb[7].mxu1  ;;  %v967_v44 = vadd.f32 %v1670_v54, %v965_v37 }
 0x271   :  { %v740_v57 = vmax.f32 %v1852_v47, 0.0  ;;  %v1863_v3 = vadd.f32 %v1748_v55, %v728_v53  ;;  %1346 = vmatpush3.bf16.msra.mxu0 %v1693_v23 }
 0x272   :  { %v743_v7 = vmax.f32 %v1857_v51, 0.0  ;;  %1347 = vmatprep.subr.bf16.mxu0 %v1700_v24  ;;  %v750_v19 = vadd.f32 %v746_v50, %v742_v49 }
 0x273   :  { %v741_v17 = vmax.f32 %v1863_v3, 0.0  ;;  %v748_v4 = vadd.f32 %v744_v1, %v740_v57 }
 0x274   :  { %v751_v2 = vadd.f32 %v747_v52, %v743_v7 }
 0x275   :  { %v749_v28 = vadd.f32 %v745_v5, %v741_v17  ;;  %1348 = vmatpush3.bf16.msra.mxu0 %v1700_v24 }
 0x276   :  { %v753_v0 = vpack.c.bf16 %v751_v2, %v750_v19  ;;  %1365 = vmatprep.subr.bf16.mxu0 %v1485_v61 }
 0x277   :  { %v752_v38 = vpack.c.bf16 %v749_v28, %v748_v4 }
 0x279   :  { %1349 = vmatprep.mubr.msk.bf16.mxu0 %vm261_vm0, %v752_v38  ;;  %v1432_v38 = vld [vmem:[%s2047_s0 + $0x8] sm:$0xff]  }
 0x27a   :  { %1350 = vmatmul.mubr.msk.bf16.vlgmr.msra.gmra.mrb[8].mxu0 %vm261_vm0, %v753_v0  ;;  %v129_v32 = vunpack.c.l.bf16 %v1432_v38 }
 0x27b   :  { %1366 = vmatpush3.bf16.msra.mxu0 %v1593_v13  ;;  %1373 = vmatprep.mubr.msk.bf16.mxu0 %vm1486_vm1, %v1485_v61  ;;  %v969_v13 = vmax.f32 %v967_v44, 0.0 }
 0x27c   :  { %1367 = vmatprep.subr.bf16.mxu0 %v1485_v61 }
 0x27d   :  { %v971_v36 = vpack.c.bf16 %v970_v34, %v969_v13  ;;  %v128_v34 = vunpack.c.h.bf16 %v1435_v40 }
 0x27f   :  { %1368 = vmatpush3.bf16.msra.mxu0 %v1601_v14  ;;  %v1913_v14 = vld [vmem:[%s2054_s12] ss:$0 sm:$0xff] }
 0x280   :  { %1369 = vmatprep.subr.bf16.mxu0 %v1485_v61 }
 0x283   :  { %1370 = vmatpush3.bf16.msra.mxu0 %v1608_v15 }
 0x284   :  { %1371 = vmatprep.subr.bf16.mxu0 %v1485_v61 }
 0x287   :  { %1372 = vmatpush3.bf16.msra.mxu0 %v1615_v16 }
 0x288   :  { %1389 = vmatprep.subr.bf16.mxu0 %v1485_v61 }
 0x28a   :  { %1374 = vmatmul.mubr.msk.bf16.vlgmr.msra.gmra.mrb[12].mxu0 %vm261_vm0, %v971_v36 }
 0x28b   :  { %1390 = vmatpush3.bf16.msra.mxu0 %v1716_v30  ;;  %1397 = vmatprep.mubr.msk.bf16.mxu0 %vm1486_vm1, %v1485_v61 }
 0x28c   :  { %1391 = vmatprep.subr.bf16.mxu0 %v1485_v61 }
 0x28f   :  { %1392 = vmatpush3.bf16.msra.mxu0 %v1721_v31 }
 0x290   :  { %1393 = vmatprep.subr.bf16.mxu0 %v1485_v61 }
 0x293   :  { %1394 = vmatpush3.bf16.msra.mxu0 %v1810_v59 }
 0x294   :  { %1395 = vmatprep.subr.bf16.mxu0 %v1485_v61 }
 0x297   :  { %1396 = vmatpush3.bf16.msra.mxu0 %v1819_v60 }
 0x33b   :  { %v1327_v15 = vpop.f32.mrb[4].mxu0 }
 0x33c   :  { %v501_v16 = vadd.f32 %v1327_v15, %v1913_v14  ;;  %v492_v54 = vpop.f32.mrb[5].mxu0 }
 0x33d   :  { %v493_v30 = vadd.f32 %v1913_v14, %v492_v54  ;;  %v1328_v31 = vpop.f32.mrb[6].mxu0  ;;  %v130_v54 = vunpack.c.h.bf16 %v1432_v38  ;;  %v1234_v38 = vunpack.c.l.bf16 %v1240_v10 }
 0x33e   :  { %v509_v12 = vmax.f32 %v501_v16, 0.0  ;;  %v504_v46 = vadd.f32 %v1328_v31, %v1913_v14  ;;  %v495_v59 = vpop.f32.mrb[7].mxu0  ;;  %v511_v16 = vadd.f32 %v317_v18, %v127_v41  ;;  %v1235_v41 = vunpack.c.h.bf16 %v1240_v10 }
 0x33f   :  { %v507_v48 = vmax.f32 %v493_v30, 0.0  ;;  %v496_v50 = vadd.f32 %v1913_v14, %v495_v59 }
 0x340   :  { %v510_v60 = vmax.f32 %v504_v46, 0.0 }
 0x341   :  { %v1919_v52 = vmax.f32 %v507_v48, %v509_v12  ;;  %v508_v53 = vmax.f32 %v496_v50, 0.0 }
 0x343   :  { %v517_v1 = vsub.f32 -inf, %v1919_v52  ;;  %v523_v5 = vsub.f32 %v507_v48, %v1919_v52  ;;  %v529_v9 = vsub.f32 %v509_v12, %v1919_v52  ;;  %v1924_v11 = vmax.f32 %v508_v53, %v510_v60 }
 0x344   :  { %v513_v12 = vadd.f32 %v319_v8, %v129_v32 }
 0x345   :  { %v519_v19 = vmul.f32 1.442695, %v517_v1  ;;  %v525_v21 = vmul.f32 1.442695, %v523_v5  ;;  %v531_v27 = vmul.f32 1.442695, %v529_v9  ;;  %v524_v2 = vsub.f32 %v508_v53, %v1924_v11 }
 0x346   :  { %v518_v4 = vsub.f32 -inf, %v1924_v11  ;;  %v530_v28 = vsub.f32 %v510_v60, %v1924_v11  ;;  %v512_v9 = vadd.f32 %v318_v29, %v128_v34  ;;  %v1019_v34 = vsub.f32 %v1752_v58, %v1235_v41 }
 0x347   :  { %1446 = vpow2.f32 %v519_v19  ;;  %v527_v33 = vmul.f32 1.442695, %v524_v2 }
 0x348   :  { %1448 = vpow2.f32 %v525_v21  ;;  %v521_v35 = vmul.f32 1.442695, %v518_v4  ;;  %v533_v0 = vmul.f32 1.442695, %v530_v28 }
 0x349   :  { %1450 = vpow2.f32 %v531_v27  ;;  %v514_v27 = vadd.f32 %v320_v26, %v130_v54 }
 0x34a   :  { %1452 = vpow2.f32 %v521_v35 }
 0x34b   :  { %1454 = vpow2.f32 %v527_v33 }
 0x34c   :  { %1456 = vpow2.f32 %v533_v0 }
 0x34d   :  { %v1351_v39 = vpop.f32.mrb[8].mxu0 }
 0x34e   :  { %v803_v42 = vadd.f32 %v1351_v39, %v1830_v62  ;;  %v794_v37 = vpop.f32.mrb[9].mxu0 }
 0x34f   :  { %v795_v43 = vadd.f32 %v1830_v62, %v794_v37  ;;  %v1352_v44 = vpop.f32.mrb[10].mxu0 }
 0x350   :  { %v806_v13 = vadd.f32 %v1352_v44, %v1830_v62  ;;  %v797_v36 = vpop.f32.mrb[11].mxu0  ;;  %v811_v59 = vmax.f32 %v803_v42, 0.0 }
 0x351   :  { %v1447_v15 = vpop.eup %1446  ;;  %v798_v30 = vadd.f32 %v1830_v62, %v797_v36  ;;  %v809_v53 = vmax.f32 %v795_v43, 0.0  ;;  %v1018_v43 = vsub.f32 %v1750_v56, %v1234_v38 }
 0x352   :  { %v1449_v31 = vpop.eup %1448  ;;  %v535_v46 = vmul.f32 0.0, %v1447_v15  ;;  %v812_v48 = vmax.f32 %v806_v13, 0.0 }
 0x353   :  { %v1451_v50 = vpop.eup %1450  ;;  %v541_v60 = vmul.f32 %v1449_v31, %v511_v16  ;;  %v810_v1 = vmax.f32 %v798_v30, 0.0 }
 0x354   :  { %v1453_v5 = vpop.eup %1452  ;;  %v537_v6 = vadd.f32 %v1449_v31, %v535_v46  ;;  %v545_v18 = vmul.f32 %v1451_v50, %v513_v12  ;;  %v814_v19 = vpack.c.bf16 %v812_v48, %v811_v59 }
 0x355   :  { %v1455_v21 = vpop.eup %1454  ;;  %v543_v63 = vadd.f32 %v541_v60, %v535_v46  ;;  %v536_v8 = vmul.f32 0.0, %v1453_v5  ;;  %v813_v2 = vpack.c.bf16 %v810_v1, %v809_v53 }
 0x356   :  { %v1457_v4 = vpop.eup %1456  ;;  %v1947_v28 = vadd.f32 %v1451_v50, %v537_v6  ;;  %v542_v33 = vmul.f32 %v1455_v21, %v512_v9 }
 0x357   :  { %v1949_v35 = vadd.f32 %v545_v18, %v543_v63  ;;  %v538_v0 = vadd.f32 %v1455_v21, %v536_v8  ;;  %v546_v40 = vmul.f32 %v1457_v4, %v514_v27  ;;  %1361 = vmatprep.mubr.msk.bf16.mxu1 %vm261_vm0, %v813_v2 }
 0x358   :  { %v544_v20 = vadd.f32 %v542_v33, %v536_v8  ;;  %1362 = vmatmul.mubr.msk.bf16.vlgmr.msra.gmra.mrb[8].mxu1 %vm261_vm0, %v814_v19 }
 0x359   :  { %v1953_v29 = vadd.f32 %v1457_v4, %v538_v0  ;;  %1378 = vmatpush3.bf16.msra.mxu1 %v1647_v25  ;;  %1385 = vmatprep.mubr.msk.bf16.mxu1 %vm1486_vm1, %v1485_v61  ;;  %v1445_v4 = vld [vmem:[%s2047_s0 + $0x10] sm:$0xff]   ;;  %v1443_v0 = vld [vmem:[%s2047_s0 + $0x18] sm:$0xff]  }
 0x35a   :  { %v1961_v26 = vadd.f32 %v546_v40, %v544_v20  ;;  %1379 = vmatprep.subr.bf16.mxu1 %v1485_v61  ;;  %v599_v41 = vunpack.c.l.bf16 %v1445_v4 }
 0x35d   :  { %v1009_v39 = vpop.f32.mrb[12].mxu0  ;;  %1380 = vmatpush3.bf16.msra.mxu1 %v1686_v22 }
 0x35e   :  { %v1966_v32 = vadd.f32 %v1748_v55, %v1009_v39  ;;  %v1375_v25 = vpop.f32.mrb[13].mxu0  ;;  %1381 = vmatprep.subr.bf16.mxu1 %v1485_v61  ;;  %v601_v39 = vunpack.c.l.bf16 %v1443_v0 }
 0x35f   :  { %v1012_v42 = vpop.f32.mrb[14].mxu0 }
 0x360   :  { %v1016_v37 = vmax.f32 %v1966_v32, 0.0  ;;  %v1972_v44 = vadd.f32 %v1748_v55, %v1012_v42  ;;  %v1376_v13 = vpop.f32.mrb[15].mxu0 }
 0x361   :  { %1382 = vmatpush3.bf16.msra.mxu1 %v1693_v23 }
 0x362   :  { %v1017_v22 = vmax.f32 %v1972_v44, 0.0  ;;  %1383 = vmatprep.subr.bf16.mxu1 %v1485_v61  ;;  %v1020_v36 = vadd.f32 %v1018_v43, %v1016_v37  ;;  %v600_v43 = vunpack.c.h.bf16 %v1445_v4 }
 0x364   :  { %v1021_v15 = vadd.f32 %v1019_v34, %v1017_v22 }
 0x365   :  { %1384 = vmatpush3.bf16.msra.mxu1 %v1700_v24 }
 0x366   :  { %v1022_v56 = vpack.c.bf16 %v1021_v15, %v1020_v36  ;;  %v874_v36 = vadd.f32 %v740_v57, %v599_v41  ;;  %v602_v15 = vunpack.c.h.bf16 %v1443_v0 }
 0x368   :  { %1386 = vmatmul.mubr.msk.bf16.vlgmr.msra.gmra.mrb[12].mxu1 %vm261_vm0, %v1022_v56 }
 0x42b   :  { %v1363_v55 = vpop.f32.mrb[8].mxu1 }
 0x42c   :  { %v864_v58 = vadd.f32 %v1363_v55, %v1913_v14  ;;  %v855_v16 = vpop.f32.mrb[9].mxu1  ;;  %v876_v55 = vadd.f32 %v742_v49, %v601_v39 }
 0x42d   :  { %v856_v23 = vadd.f32 %v1913_v14, %v855_v16  ;;  %v1364_v54 = vpop.f32.mrb[10].mxu1 }
 0x42e   :  { %v872_v30 = vmax.f32 %v864_v58, 0.0  ;;  %v867_v61 = vadd.f32 %v1364_v54, %v1913_v14  ;;  %v858_v31 = vpop.f32.mrb[11].mxu1 }
 0x42f   :  { %v870_v12 = vmax.f32 %v856_v23, 0.0  ;;  %v859_v46 = vadd.f32 %v1913_v14, %v858_v31  ;;  %v877_v31 = vadd.f32 %v743_v7, %v602_v15 }
 0x430   :  { %v873_v59 = vmax.f32 %v867_v61, 0.0 }
 0x431   :  { %v878_v48 = vmax.f32 %v870_v12, %v872_v30  ;;  %v871_v24 = vmax.f32 %v859_v46, 0.0 }
 0x433   :  { %v1989_v50 = vmax.f32 %v1919_v52, %v878_v48  ;;  %v879_v60 = vmax.f32 %v871_v24, %v873_v59 }
 0x435   :  { %v882_v53 = vsub.f32 %v1919_v52, %v1989_v50  ;;  %v888_v1 = vsub.f32 %v870_v12, %v1989_v50  ;;  %v894_v5 = vsub.f32 %v872_v30, %v1989_v50  ;;  %v1996_v9 = vmax.f32 %v1924_v11, %v879_v60 }
 0x436   :  { %v875_v30 = vadd.f32 %v741_v17, %v600_v43 }
 0x437   :  { %v884_v6 = vmul.f32 1.442695, %v882_v53  ;;  %v890_v18 = vmul.f32 1.442695, %v888_v1  ;;  %v896_v19 = vmul.f32 1.442695, %v894_v5  ;;  %v883_v21 = vsub.f32 %v1924_v11, %v1996_v9 }
 0x438   :  { %v889_v27 = vsub.f32 %v871_v24, %v1996_v9  ;;  %v895_v63 = vsub.f32 %v873_v59, %v1996_v9 }
 0x439   :  { %1458 = vpow2.f32 %v884_v6  ;;  %v886_v8 = vmul.f32 1.442695, %v883_v21 }
 0x43a   :  { %1460 = vpow2.f32 %v890_v18  ;;  %v892_v52 = vmul.f32 1.442695, %v889_v27  ;;  %v898_v2 = vmul.f32 1.442695, %v895_v63 }
 0x43b   :  { %1462 = vpow2.f32 %v896_v19  ;;  %v1060_v33 = vpop.f32.mrb[12].mxu1 }
 0x43c   :  { %1464 = vpow2.f32 %v886_v8  ;;  %v1061_v11 = vadd.f32 %v1830_v62, %v1060_v33  ;;  %v1387_v40 = vpop.f32.mrb[13].mxu1 }
 0x43d   :  { %1466 = vpow2.f32 %v892_v52  ;;  %v1063_v20 = vpop.f32.mrb[14].mxu1 }
 0x43e   :  { %1468 = vpow2.f32 %v898_v2  ;;  %v1064_v10 = vadd.f32 %v1830_v62, %v1063_v20  ;;  %v1388_v38 = vpop.f32.mrb[15].mxu1  ;;  %v1067_v25 = vmax.f32 %v1061_v11, 0.0 }
 0x440   :  { %v1068_v42 = vmax.f32 %v1064_v10, 0.0 }
 0x442   :  { %v1069_v34 = vpack.c.bf16 %v1068_v42, %v1067_v25 }
 0x443   :  { %v1459_v13 = vpop.eup %1458 }
 0x444   :  { %v1461_v56 = vpop.eup %1460  ;;  %v900_v58 = vmul.f32 %v1459_v13, %v1947_v28  ;;  %v906_v62 = vmul.f32 %v1459_v13, %v1949_v35  ;;  %1398 = vmatmul.mubr.msk.bf16.vlgmr.msra.gmra.mrb[16].mxu0 %vm261_vm0, %v1069_v34 }
 0x445   :  { %v1463_v16 = vpop.eup %1462  ;;  %v908_v23 = vmul.f32 %v1461_v56, %v874_v36 }
 0x446   :  { %v1465_v54 = vpop.eup %1464  ;;  %v902_v61 = vadd.f32 %v1461_v56, %v900_v58  ;;  %v912_v47 = vmul.f32 %v1463_v16, %v876_v55 }
 0x447   :  { %v1467_v57 = vpop.eup %1466  ;;  %v910_v45 = vadd.f32 %v908_v23, %v906_v62  ;;  %v901_v49 = vmul.f32 %v1465_v54, %v1953_v29  ;;  %v907_v28 = vmul.f32 %v1465_v54, %v1961_v26 }
 0x448   :  { %v1469_v35 = vpop.eup %1468  ;;  %v904_v12 = vadd.f32 %v1463_v16, %v902_v61  ;;  %v909_v46 = vmul.f32 %v1467_v57, %v875_v30 }
 0x449   :  { %v903_v59 = vadd.f32 %v1467_v57, %v901_v49  ;;  %v914_v48 = vadd.f32 %v912_v47, %v910_v45  ;;  %v913_v24 = vmul.f32 %v1469_v35, %v877_v31 }
 0x44a   :  { %v911_v60 = vadd.f32 %v909_v46, %v907_v28 }
 0x44b   :  { %v905_v3 = vadd.f32 %v1469_v35, %v903_v59 }
 0x44c   :  { %v915_v17 = vadd.f32 %v913_v24, %v911_v60 }
 0x517   :  { %v1107_v53 = vpop.f32.mrb[16].mxu0 }
 0x518   :  { %v1108_v1 = vadd.f32 %v1913_v14, %v1107_v53  ;;  %v1399_v5 = vpop.f32.mrb[17].mxu0 }
 0x519   :  { %v1110_v51 = vpop.f32.mrb[18].mxu0 }
 0x51a   :  { %v1114_v7 = vmax.f32 %v1108_v1, 0.0  ;;  %v1111_v6 = vadd.f32 %v1913_v14, %v1110_v51  ;;  %v1400_v29 = vpop.f32.mrb[19].mxu0  ;;  %v1241_v14 = vld [vmem:[%s2047_s0 + $0x20] sm:$0xff]  }
 0x51b   :  { %v1238_v0 = vunpack.c.l.bf16 %v1241_v14 }
 0x51c   :  { %v1118_v26 = vmax.f32 %v1989_v50, %v1114_v7  ;;  %v1115_v18 = vmax.f32 %v1111_v6, 0.0 }
 0x51d   :  { %v1116_v40 = vadd.f32 %v1238_v0, %v1016_v37 }
 0x51e   :  { %v1120_v19 = vsub.f32 %v1989_v50, %v1118_v26  ;;  %v1126_v21 = vsub.f32 %v1114_v7, %v1118_v26  ;;  %v1119_v27 = vmax.f32 %v1996_v9, %v1115_v18  ;;  %v1239_v50 = vunpack.c.h.bf16 %v1241_v14 }
 0x520   :  { %v1122_v63 = vmul.f32 1.442695, %v1120_v19  ;;  %v1128_v8 = vmul.f32 1.442695, %v1126_v21  ;;  %v1121_v52 = vsub.f32 %v1996_v9, %v1119_v27  ;;  %v1127_v2 = vsub.f32 %v1115_v18, %v1119_v27 }
 0x521   :  { %v1117_v41 = vadd.f32 %v1239_v50, %v1017_v22 }
 0x522   :  { %1470 = vpow2.f32 %v1122_v63  ;;  %v1124_v4 = vmul.f32 1.442695, %v1121_v52  ;;  %v1130_v33 = vmul.f32 1.442695, %v1127_v2 }
 0x523   :  { %1472 = vpow2.f32 %v1128_v8 }
 0x524   :  { %1474 = vpow2.f32 %v1124_v4 }
 0x525   :  { %1476 = vpow2.f32 %v1130_v33 }
 0x52c   :  { %v1471_v11 = vpop.eup %1470 }
 0x52d   :  { %v1473_v20 = vpop.eup %1472  ;;  %v1132_v10 = vmul.f32 %v1471_v11, %v904_v12  ;;  %v1136_v9 = vmul.f32 %v1471_v11, %v914_v48 }
 0x52e   :  { %v1475_v38 = vpop.eup %1474  ;;  %v1138_v39 = vmul.f32 %v1473_v20, %v1116_v40 }
 0x52f   :  { %v1477_v25 = vpop.eup %1476  ;;  %v1134_v42 = vadd.f32 %v1473_v20, %v1132_v10  ;;  %v1133_v43 = vmul.f32 %v1475_v38, %v905_v3  ;;  %v1137_v34 = vmul.f32 %v1475_v38, %v915_v17 }
 0x530   :  { %v1140_v13 = vadd.f32 %v1138_v39, %v1136_v9  ;;  %v1139_v36 = vmul.f32 %v1477_v25, %v1117_v41 }
 0x531   :  { %1478 = vrcp.f32 %v1134_v42  ;;  %v1135_v15 = vadd.f32 %v1477_v25, %v1133_v43 }
 0x532   :  { %v1141_v56 = vadd.f32 %v1139_v36, %v1137_v34 }
 0x533   :  { %1480 = vrcp.f32 %v1135_v15 }
 0x53b   :  { %v1479_v32 = vpop.eup %1478 }
 0x53c   :  { %v1143_v37 = vmul.f32 %v1479_v32, %v1140_v13 }
 0x53d   :  { %v1481_v55 = vpop.eup %1480 }
 0x53e   :  { %v1226_v58 = vpack.c.bf16 %v1143_v37, %v1143_v37  ;;  %v1145_v62 = vmul.f32 %v1481_v55, %v1141_v56 }
 0x540   :  { %1155 = vst.msk [vmem:[%s2055_s13] sm:$0xf] %vm1154_vm2, %v1226_v58  ;;  %v1227_v44 = vpack.c.bf16 %v1145_v62, %v1145_v62 }
 0x542   :  { %1156 = vst.msk [vmem:[%s2055_s13 + $0x4] sm:$0xf] %vm1154_vm2, %v1227_v44 }

// kernel: _lambda_.51
= control target key start
LH: loop header
LB: loop body
LE: loop exit
PB: predicated region body
PF: predicated region fallthrough
CT: control target
= control target key end

     0   :  { %vm59_vm0 = vcmask 23552   ;;  %vm276_vm1 = vcmask 261120   ;;  %s821_s1 = inlined_call_operand.vmem [shape: f32[3,64,3], index: 1, kind: input, shape index: {}]   ;;  %s822_s0 = inlined_call_operand.vmem [shape: bf16[3,64,32], index: 0, kind: input, shape index: {}]   ;;  %s823_s2 = inlined_call_operand.vmem [shape: f32[64,32], index: 2, kind: output, shape index: {}]  }
   0x1   :  { %v13_v0 = vld [vmem:[%s821_s1 + $0x10] sm:$0xff]  ;;  %v11_v1 = vld [vmem:[%s821_s1] sm:$0xff]  ;;  %v14_v2 = vld [vmem:[%s821_s1 + $0x18] sm:$0xff] }
   0x2   :  { %v37_v3 = vmul.f32 %v13_v0, %v13_v0  ;;  %v35_v4 = vmul.f32 %v11_v1, %v11_v1  ;;  %v38_v5 = vmul.f32 %v14_v2, %v14_v2  ;;  %v12_v6 = vld [vmem:[%s821_s1 + $0x8] sm:$0xff]  ;;  %v15_v9 = vld [vmem:[%s821_s1 + $0x20] sm:$0xff]  ;;  %v18_v16 = vld [vmem:[%s821_s1 + $0x38] sm:$0xff] }
   0x3   :  { %v36_v7 = vmul.f32 %v12_v6, %v12_v6  ;;  %v16_v8 = vld [vmem:[%s821_s1 + $0x28] sm:$0xff]  ;;  %v39_v15 = vmul.f32 %v15_v9, %v15_v9  ;;  %v17_v17 = vld [vmem:[%s821_s1 + $0x30] sm:$0xff]  ;;  %v42_v20 = vmul.f32 %v18_v16, %v18_v16  ;;  %v19_v23 = vld [vmem:[%s821_s1 + $0x40] sm:$0xff] }
   0x4   :  { %v66_v10 = vsel %vm59_vm0, %v37_v3, 0.0  ;;  %v60_v11 = vsel %vm59_vm0, %v35_v4, 0.0  ;;  %v69_v12 = vsel %vm59_vm0, %v38_v5, 0.0  ;;  %v40_v14 = vmul.f32 %v16_v8, %v16_v8  ;;  %v20_v22 = vld [vmem:[%s821_s1 + $0x48] sm:$0xff]  ;;  %v22_v28 = vld [vmem:[%s821_s1 + $0x58] sm:$0xff]  ;;  %v21_v29 = vld [vmem:[%s821_s1 + $0x50] sm:$0xff] }
   0x5   :  { %67 = vadd.xlane.f32.xlu1 %v66_v10  ;;  %61 = vadd.xlane.f32.xlu0 %v60_v11  ;;  %v63_v13 = vsel %vm59_vm0, %v36_v7, 0.0  ;;  %v72_v19 = vsel %vm59_vm0, %v39_v15, 0.0  ;;  %v41_v21 = vmul.f32 %v17_v17, %v17_v17  ;;  %v81_v24 = vsel %vm59_vm0, %v42_v20, 0.0  ;;  %v24_v34 = vld [vmem:[%s821_s1 + $0x68] sm:$0xff]  ;;  %v23_v35 = vld [vmem:[%s821_s1 + $0x60] sm:$0xff]  ;;  %v26_v40 = vld [vmem:[%s821_s1 + $0x78] sm:$0xff] }
   0x6   :  { %v75_v18 = vsel %vm59_vm0, %v40_v14, 0.0  ;;  %v44_v26 = vmul.f32 %v20_v22, %v20_v22  ;;  %v43_v27 = vmul.f32 %v19_v23, %v19_v23  ;;  %v46_v32 = vmul.f32 %v22_v28, %v22_v28  ;;  %v25_v41 = vld [vmem:[%s821_s1 + $0x70] sm:$0xff]  ;;  %v28_v46 = vld [vmem:[%s821_s1 + $0x88] sm:$0xff]  ;;  %v27_v47 = vld [vmem:[%s821_s1 + $0x80] sm:$0xff] }
   0x7   :  { %v78_v25 = vsel %vm59_vm0, %v41_v21, 0.0  ;;  %v45_v33 = vmul.f32 %v21_v29, %v21_v29  ;;  %v48_v38 = vmul.f32 %v24_v34, %v24_v34  ;;  %v47_v39 = vmul.f32 %v23_v35, %v23_v35  ;;  %v30_v52 = vld [vmem:[%s821_s1 + $0x98] sm:$0xff]  ;;  %v29_v53 = vld [vmem:[%s821_s1 + $0x90] sm:$0xff]  ;;  %v32_v58 = vld [vmem:[%s821_s1 + $0xa8] sm:$0xff] }
   0x8   :  { %v87_v30 = vsel %vm59_vm0, %v44_v26, 0.0  ;;  %v84_v31 = vsel %vm59_vm0, %v43_v27, 0.0  ;;  %v93_v36 = vsel %vm59_vm0, %v46_v32, 0.0  ;;  %v50_v44 = vmul.f32 %v26_v40, %v26_v40  ;;  %v31_v59 = vld [vmem:[%s821_s1 + $0xa0] sm:$0xff]  ;;  %v34_v0 = vld [vmem:[%s821_s1 + $0xb8] sm:$0xff]  ;;  %v33_v1 = vld [vmem:[%s821_s1 + $0xb0] sm:$0xff] }
   0x9   :  { %70 = vadd.xlane.f32.xlu1 %v69_v12  ;;  %64 = vadd.xlane.f32.xlu0 %v63_v13  ;;  %v90_v37 = vsel %vm59_vm0, %v45_v33, 0.0  ;;  %v99_v42 = vsel %vm59_vm0, %v48_v38, 0.0  ;;  %v96_v43 = vsel %vm59_vm0, %v47_v39, 0.0  ;;  %v49_v45 = vmul.f32 %v25_v41, %v25_v41  ;;  %v611_v34 = vld [vmem:[%s822_s0] sm:$0xff]   ;;  %v617_v38 = vld [vmem:[%s822_s0 + $0x10] sm:$0xff]  }
   0xa   :  { %v105_v48 = vsel %vm59_vm0, %v50_v44, 0.0  ;;  %v52_v50 = vmul.f32 %v28_v46, %v28_v46  ;;  %v51_v51 = vmul.f32 %v27_v47, %v27_v47  ;;  %v54_v56 = vmul.f32 %v30_v52, %v30_v52  ;;  %v635_v44 = vld [vmem:[%s822_s0 + $0x28] sm:$0xff]  }
   0xb   :  { %v102_v49 = vsel %vm59_vm0, %v49_v45, 0.0  ;;  %v53_v57 = vmul.f32 %v29_v53, %v29_v53  ;;  %v56_v62 = vmul.f32 %v32_v58, %v32_v58  ;;  %v55_v63 = vmul.f32 %v31_v59, %v31_v59  ;;  %v650_v58 = vld [vmem:[%s822_s0 + $0x30] sm:$0xff]  }
   0xc   :  { %v111_v54 = vsel %vm59_vm0, %v52_v50, 0.0  ;;  %v108_v55 = vsel %vm59_vm0, %v51_v51, 0.0  ;;  %v117_v60 = vsel %vm59_vm0, %v54_v56, 0.0  ;;  %v58_v4 = vmul.f32 %v34_v0, %v34_v0  ;;  %v665_v0 = vld [vmem:[%s822_s0 + $0x40] sm:$0xff]  }
   0xd   :  { %76 = vadd.xlane.f32.xlu1 %v75_v18  ;;  %73 = vadd.xlane.f32.xlu0 %v72_v19  ;;  %v114_v61 = vsel %vm59_vm0, %v53_v57, 0.0  ;;  %v123_v2 = vsel %vm59_vm0, %v56_v62, 0.0  ;;  %v120_v3 = vsel %vm59_vm0, %v55_v63, 0.0  ;;  %v57_v5 = vmul.f32 %v33_v1, %v33_v1  ;;  %v660_v63 = vld [vmem:[%s822_s0 + $0x38] sm:$0xff]  }
   0xe   :  { %v129_v6 = vsel %vm59_vm0, %v58_v4, 0.0  ;;  %v363_v39 = vunpack.c.l.bf16 %v611_v34  ;;  %v364_v41 = vunpack.c.h.bf16 %v611_v34  ;;  %v372_v51 = vunpack.c.h.bf16 %v617_v38 }
   0xf   :  { %v126_v7 = vsel %vm59_vm0, %v57_v5, 0.0  ;;  %v371_v52 = vunpack.c.l.bf16 %v617_v38  ;;  %v383_v62 = vunpack.c.l.bf16 %v635_v44 }
  0x11   :  { %82 = vadd.xlane.f32.xlu1 %v81_v24  ;;  %79 = vadd.xlane.f32.xlu0 %v78_v25 }
  0x15   :  { %88 = vadd.xlane.f32.xlu1 %v87_v30  ;;  %85 = vadd.xlane.f32.xlu0 %v84_v31  ;;  %v602_v30 = vld [vmem:[%s822_s0 + $0x8] sm:$0xff]  }
  0x16   :  { %v368_v40 = vunpack.c.h.bf16 %v602_v30 }
  0x19   :  { %94 = vadd.xlane.f32.xlu1 %v93_v36  ;;  %91 = vadd.xlane.f32.xlu0 %v90_v37  ;;  %v367_v37 = vunpack.c.l.bf16 %v602_v30 }
  0x1d   :  { %100 = vadd.xlane.f32.xlu1 %v99_v42  ;;  %97 = vadd.xlane.f32.xlu0 %v96_v43  ;;  %v625_v42 = vld [vmem:[%s822_s0 + $0x18] sm:$0xff]   ;;  %v630_v43 = vld [vmem:[%s822_s0 + $0x20] sm:$0xff]  }
  0x1e   :  { %v375_v56 = vunpack.c.l.bf16 %v625_v42  ;;  %v380_v57 = vunpack.c.h.bf16 %v630_v43 }
  0x21   :  { %106 = vadd.xlane.f32.xlu1 %v105_v48  ;;  %103 = vadd.xlane.f32.xlu0 %v102_v49 }
  0x25   :  { %112 = vadd.xlane.f32.xlu1 %v111_v54  ;;  %109 = vadd.xlane.f32.xlu0 %v108_v55  ;;  %v376_v55 = vunpack.c.h.bf16 %v625_v42 }
  0x29   :  { %118 = vadd.xlane.f32.xlu1 %v117_v60  ;;  %115 = vadd.xlane.f32.xlu0 %v114_v61  ;;  %v379_v60 = vunpack.c.l.bf16 %v630_v43  ;;  %v384_v61 = vunpack.c.h.bf16 %v635_v44 }
  0x2d   :  { %124 = vadd.xlane.f32.xlu1 %v123_v2  ;;  %121 = vadd.xlane.f32.xlu0 %v120_v3  ;;  %v670_v2 = vld [vmem:[%s822_s0 + $0x48] sm:$0xff]  }
  0x31   :  { %130 = vadd.xlane.f32.xlu1 %v129_v6  ;;  %127 = vadd.xlane.f32.xlu0 %v126_v7 }
  0x92   :  { %v68_v8 = vpop.xlane.xlu1 %67  ;;  %v62_v9 = vpop.xlane.xlu0 %61 }
  0x93   :  { %v134_v18 = vmax.f32 %v68_v8, 1e-16  ;;  %v132_v21 = vmax.f32 %v62_v9, 1e-16  ;;  %v388_v9 = vunpack.c.h.bf16 %v650_v58 }
  0x95   :  { %420 = vrcp.f32 %v134_v18 }
  0x96   :  { %v71_v10 = vpop.xlane.xlu1 %70  ;;  %v65_v11 = vpop.xlane.xlu0 %64  ;;  %422 = vrcp.f32 %v132_v21 }
  0x97   :  { %v135_v22 = vmax.f32 %v71_v10, 1e-16  ;;  %v133_v23 = vmax.f32 %v65_v11, 1e-16  ;;  %v387_v10 = vunpack.c.l.bf16 %v650_v58 }
  0x99   :  { %424 = vrcp.f32 %v135_v22 }
  0x9a   :  { %v77_v12 = vpop.xlane.xlu1 %76  ;;  %v74_v13 = vpop.xlane.xlu0 %73  ;;  %426 = vrcp.f32 %v133_v23  ;;  %v696_v23 = vld [vmem:[%s822_s0 + $0x58] sm:$0xff]  }
  0x9b   :  { %v137_v24 = vmax.f32 %v77_v12, 1e-16  ;;  %v136_v27 = vmax.f32 %v74_v13, 1e-16  ;;  %v392_v13 = vunpack.c.h.bf16 %v660_v63 }
  0x9d   :  { %428 = vrcp.f32 %v137_v24 }
  0x9e   :  { %v83_v14 = vpop.xlane.xlu1 %82  ;;  %v595_v15 = vpop.xlane.xlu0 %79  ;;  %430 = vrcp.f32 %v136_v27 }
  0x9f   :  { %v139_v28 = vmax.f32 %v83_v14, 1e-16  ;;  %v637_v50 = vpop.eup %420  ;;  %v138_v5 = vmax.f32 %v595_v15, 1e-16  ;;  %v391_v14 = vunpack.c.l.bf16 %v660_v63  ;;  %v396_v15 = vunpack.c.h.bf16 %v665_v0 }
  0xa0   :  { %v642_v54 = vpop.eup %422  ;;  %v254_v18 = vmul.f32 %v637_v50, %v367_v37  ;;  %v408_v37 = vunpack.c.h.bf16 %v696_v23 }
  0xa1   :  { %432 = vrcp.f32 %v139_v28 }
  0xa2   :  { %v89_v16 = vpop.xlane.xlu1 %88  ;;  %v86_v17 = vpop.xlane.xlu0 %85 }
  0xa3   :  { %v141_v29 = vmax.f32 %v89_v16, 1e-16  ;;  %v140_v31 = vmax.f32 %v86_v17, 1e-16  ;;  %v652_v59 = vpop.eup %424  ;;  %v686_v16 = vld [vmem:[%s822_s0 + $0x50] sm:$0xff]  }
  0xa4   :  { %v427_v4 = vpop.eup %426 }
  0xa5   :  { %434 = vrcp.f32 %v141_v29 }
  0xa6   :  { %v95_v19 = vpop.xlane.xlu1 %94  ;;  %v92_v20 = vpop.xlane.xlu0 %91  ;;  %436 = vrcp.f32 %v140_v31  ;;  %v399_v31 = vunpack.c.l.bf16 %v670_v2 }
  0xa7   :  { %v143_v35 = vmax.f32 %v95_v19, 1e-16  ;;  %v142_v36 = vmax.f32 %v92_v20, 1e-16  ;;  %v673_v8 = vpop.eup %428  ;;  %v395_v19 = vunpack.c.l.bf16 %v665_v0  ;;  %v400_v20 = vunpack.c.h.bf16 %v670_v2 }
  0xa8   :  { %v678_v12 = vpop.eup %430  ;;  %v257_v30 = vmul.f32 %v673_v8, %v372_v51 }
  0xa9   :  { %438 = vrcp.f32 %v143_v35 }
  0xaa   :  { %v101_v25 = vpop.xlane.xlu1 %100  ;;  %v597_v26 = vpop.xlane.xlu0 %97  ;;  %440 = vrcp.f32 %v142_v36  ;;  %v403_v36 = vunpack.c.l.bf16 %v686_v16 }
  0xab   :  { %v145_v47 = vmax.f32 %v101_v25, 1e-16  ;;  %v144_v53 = vmax.f32 %v597_v26, 1e-16  ;;  %v688_v17 = vpop.eup %432  ;;  %v252_v25 = vmul.f32 %v642_v54, %v363_v39 }
  0xad   :  { %v277_v0 = vsel %vm276_vm1, %v252_v25, 0.0 }
  0xae   :  { %v604_v32 = vpop.xlane.xlu1 %106  ;;  %v606_v33 = vpop.xlane.xlu0 %103 }
  0xaf   :  { %v147_v11 = vmax.f32 %v604_v32, 1e-16  ;;  %v435_v24 = vpop.eup %434  ;;  %v146_v29 = vmax.f32 %v606_v33, 1e-16  ;;  %v404_v32 = vunpack.c.h.bf16 %v686_v16  ;;  %v255_v33 = vmul.f32 %v652_v59, %v368_v40 }
  0xb0   :  { %v437_v28 = vpop.eup %436  ;;  %v261_v34 = vmul.f32 %v435_v24, %v380_v57 }
  0xb2   :  { %v113_v45 = vpop.xlane.xlu1 %112  ;;  %v110_v46 = vpop.xlane.xlu0 %109 }
  0xb3   :  { %v149_v48 = vmax.f32 %v113_v45, 1e-16  ;;  %v148_v49 = vmax.f32 %v110_v46, 1e-16  ;;  %v439_v35 = vpop.eup %438  ;;  %v407_v45 = vunpack.c.l.bf16 %v696_v23  ;;  %v706_v46 = vsel %vm276_vm1, %v254_v18, 0.0 }
  0xb4   :  { %v441_v39 = vpop.eup %440  ;;  %v256_v18 = vmul.f32 %v678_v12, %v371_v52  ;;  %v323_v51 = vadd.f32 %v439_v35, %v652_v59  ;;  %v263_v38 = vmul.f32 %v439_v35, %v384_v61 }
  0xb5   :  { %442 = vrcp.f32 %v149_v48  ;;  %v321_v52 = vadd.f32 %v441_v39, %v637_v50  ;;  %v262_v50 = vmul.f32 %v441_v39, %v383_v62 }
  0xb6   :  { %444 = vrcp.f32 %v148_v49  ;;  %v119_v1 = vpop.xlane.xlu1 %118  ;;  %v116_v3 = vpop.xlane.xlu0 %115  ;;  %v735_v59 = vsel %vm276_vm1, %v256_v18, 0.0 }
  0xb7   :  { %446 = vrcp.f32 %v145_v47  ;;  %v151_v6 = vmax.f32 %v119_v1, 1e-16  ;;  %v150_v7 = vmax.f32 %v116_v3, 1e-16  ;;  %v319_v47 = vadd.f32 %v435_v24, %v427_v4 }
  0xb8   :  { %448 = vrcp.f32 %v144_v53  ;;  %v253_v1 = vmul.f32 %v427_v4, %v364_v41  ;;  %v317_v3 = vadd.f32 %v437_v28, %v642_v54  ;;  %v292_v4 = vsel %vm276_vm1, %v255_v33, 0.0 }
  0xb9   :  { %450 = vrcp.f32 %v151_v6  ;;  %v302_v24 = vsel %vm276_vm1, %v257_v30, 0.0 }
  0xba   :  { %452 = vrcp.f32 %v150_v7  ;;  %v125_v21 = vpop.xlane.xlu1 %124  ;;  %v122_v22 = vpop.xlane.xlu0 %121  ;;  %v282_v25 = vsel %vm276_vm1, %v253_v1, 0.0 }
  0xbb   :  { %454 = vrcp.f32 %v138_v5  ;;  %v153_v26 = vmax.f32 %v125_v21, 1e-16  ;;  %v152_v27 = vmax.f32 %v122_v22, 1e-16  ;;  %v260_v21 = vmul.f32 %v437_v28, %v379_v60 }
  0xbc   :  { %456 = vrcp.f32 %v147_v11  ;;  %v283_v60 = vsel %vm276_vm1, %v261_v34, 0.0 }
  0xbd   :  { %458 = vrcp.f32 %v153_v26  ;;  %v278_v61 = vsel %vm276_vm1, %v260_v21, 0.0 }
  0xbe   :  { %460 = vrcp.f32 %v152_v27  ;;  %v131_v48 = vpop.xlane.xlu1 %130  ;;  %v128_v49 = vpop.xlane.xlu0 %127  ;;  %v279_v39 = vadd.f32 %v278_v61, %v277_v0 }
  0xbf   :  { %v443_v53 = vpop.eup %442  ;;  %v155_v5 = vmax.f32 %v131_v48, 1e-16  ;;  %462 = vrcp.f32 %v146_v29  ;;  %v154_v7 = vmax.f32 %v128_v49, 1e-16 }
  0xc0   :  { %v445_v6 = vpop.eup %444  ;;  %v320_v40 = vadd.f32 %v443_v53, %v319_v47  ;;  %v269_v26 = vmul.f32 %v443_v53, %v396_v15  ;;  %v293_v47 = vsel %vm276_vm1, %v263_v38, 0.0  ;;  %v284_v53 = vadd.f32 %v283_v60, %v282_v25 }
  0xc1   :  { %v447_v11 = vpop.eup %446  ;;  %v318_v41 = vadd.f32 %v445_v6, %v317_v3  ;;  %464 = vrcp.f32 %v155_v5  ;;  %v268_v28 = vmul.f32 %v445_v6, %v395_v19 }
  0xc2   :  { %v449_v54 = vpop.eup %448  ;;  %466 = vrcp.f32 %v320_v40  ;;  %v327_v35 = vadd.f32 %v447_v11, %v673_v8  ;;  %v265_v48 = vmul.f32 %v447_v11, %v388_v9  ;;  %v285_v1 = vsel %vm276_vm1, %v269_v26, 0.0 }
  0xc3   :  { %v451_v22 = vpop.eup %450  ;;  %468 = vrcp.f32 %v318_v41  ;;  %v325_v49 = vadd.f32 %v449_v54, %v678_v12  ;;  %v280_v8 = vsel %vm276_vm1, %v268_v28, 0.0  ;;  %v294_v9 = vadd.f32 %v293_v47, %v292_v4 }
  0xc4   :  { %v453_v57 = vpop.eup %452  ;;  %v324_v27 = vadd.f32 %v451_v22, %v323_v51  ;;  %470 = vrcp.f32 %v154_v7  ;;  %v271_v44 = vmul.f32 %v451_v22, %v400_v20  ;;  %v288_v12 = vsel %vm276_vm1, %v262_v50, 0.0 }
  0xc5   :  { %v732_v43 = vpop.eup %454  ;;  %v322_v29 = vadd.f32 %v453_v57, %v321_v52  ;;  %v270_v3 = vmul.f32 %v453_v57, %v399_v31  ;;  %v303_v7 = vsel %vm276_vm1, %v265_v48, 0.0  ;;  %v264_v20 = vmul.f32 %v449_v54, %v387_v10 }
  0xc6   :  { %v457_v33 = vpop.eup %456  ;;  %472 = vrcp.f32 %v324_v27  ;;  %v286_v0 = vadd.f32 %v285_v1, %v284_v53  ;;  %v281_v18 = vadd.f32 %v280_v8, %v279_v39  ;;  %v295_v2 = vsel %vm276_vm1, %v271_v44, 0.0 }
  0xc7   :  { %v459_v15 = vpop.eup %458  ;;  %474 = vrcp.f32 %v322_v29  ;;  %v331_v30 = vadd.f32 %v457_v33, %v688_v17  ;;  %v290_v51 = vsel %vm276_vm1, %v270_v3, 0.0  ;;  %v289_v54 = vadd.f32 %v288_v12, %v706_v46 }
  0xc8   :  { %v461_v19 = vpop.eup %460  ;;  %v328_v62 = vadd.f32 %v459_v15, %v327_v35  ;;  %v273_v31 = vmul.f32 %v459_v15, %v404_v32  ;;  %v267_v22 = vmul.f32 %v457_v33, %v392_v13  ;;  %v259_v32 = vmul.f32 %v688_v17, %v376_v55 }
  0xc9   :  { %v326_v5 = vadd.f32 %v461_v19, %v325_v49  ;;  %v463_v6 = vpop.eup %462  ;;  %v272_v58 = vmul.f32 %v461_v19, %v403_v36  ;;  %v298_v38 = vsel %vm276_vm1, %v264_v20, 0.0  ;;  %v296_v16 = vadd.f32 %v295_v2, %v294_v9 }
  0xca   :  { %476 = vrcp.f32 %v328_v62  ;;  %v329_v4 = vadd.f32 %v463_v6, %v732_v43  ;;  %v304_v46 = vadd.f32 %v303_v7, %v302_v24  ;;  %v291_v13 = vadd.f32 %v290_v51, %v289_v54 }
  0xcb   :  { %v465_v40 = vpop.eup %464  ;;  %478 = vrcp.f32 %v326_v5  ;;  %v305_v57 = vsel %vm276_vm1, %v273_v31, 0.0  ;;  %v266_v26 = vmul.f32 %v463_v6, %v391_v14  ;;  %v300_v60 = vsel %vm276_vm1, %v272_v58, 0.0 }
  0xcc   :  { %v467_v11 = vpop.eup %466  ;;  %v332_v34 = vadd.f32 %v465_v40, %v331_v30  ;;  %v275_v55 = vmul.f32 %v465_v40, %v408_v37  ;;  %v299_v24 = vadd.f32 %v298_v38, %v735_v59  ;;  %v313_v28 = vsel %vm276_vm1, %v267_v22, 0.0 }
  0xcd   :  { %v469_v41 = vpop.eup %468  ;;  %v336_v21 = vmul.f32 %v467_v11, %v286_v0  ;;  %v258_v33 = vmul.f32 %v732_v43, %v375_v56  ;;  %v306_v63 = vadd.f32 %v305_v57, %v304_v46  ;;  %v312_v61 = vsel %vm276_vm1, %v259_v32, 0.0 }
  0xce   :  { %v471_v10 = vpop.eup %470  ;;  %v334_v25 = vmul.f32 %v469_v41, %v281_v18  ;;  %480 = vrcp.f32 %v332_v34  ;;  %v301_v42 = vadd.f32 %v300_v60, %v299_v24  ;;  %v315_v56 = vsel %vm276_vm1, %v275_v55, 0.0 }
  0xcf   :  { %350 = vst.msk [vmem:[%s823_s2 + $0x8] sm:$0xff] %vm276_vm1, %v336_v21  ;;  %v330_v36 = vadd.f32 %v471_v10, %v329_v4  ;;  %v274_v14 = vmul.f32 %v471_v10, %v407_v45  ;;  %v314_v59 = vadd.f32 %v313_v28, %v312_v61  ;;  %v308_v50 = vsel %vm276_vm1, %v266_v26, 0.0 }
  0xd0   :  { %v473_v52 = vpop.eup %472  ;;  %349 = vst.msk [vmem:[%s823_s2] sm:$0xff] %vm276_vm1, %v334_v25  ;;  %v307_v23 = vsel %vm276_vm1, %v258_v33, 0.0 }
  0xd1   :  { %v475_v17 = vpop.eup %474  ;;  %v340_v27 = vmul.f32 %v473_v52, %v296_v16  ;;  %482 = vrcp.f32 %v330_v36  ;;  %v316_v45 = vadd.f32 %v315_v56, %v314_v59  ;;  %v310_v47 = vsel %vm276_vm1, %v274_v14, 0.0 }
  0xd2   :  { %v338_v29 = vmul.f32 %v475_v17, %v291_v13  ;;  %v309_v49 = vadd.f32 %v308_v50, %v307_v23 }
  0xd3   :  { %352 = vst.msk [vmem:[%s823_s2 + $0x18] sm:$0xff] %vm276_vm1, %v340_v27 }
  0xd4   :  { %v477_v37 = vpop.eup %476  ;;  %351 = vst.msk [vmem:[%s823_s2 + $0x10] sm:$0xff] %vm276_vm1, %v338_v29  ;;  %v311_v53 = vadd.f32 %v310_v47, %v309_v49 }
  0xd5   :  { %v479_v43 = vpop.eup %478  ;;  %v344_v35 = vmul.f32 %v477_v37, %v306_v63 }
  0xd6   :  { %v342_v15 = vmul.f32 %v479_v43, %v301_v42 }
  0xd7   :  { %354 = vst.msk [vmem:[%s823_s2 + $0x28] sm:$0xff] %vm276_vm1, %v344_v35 }
  0xd8   :  { %v481_v48 = vpop.eup %480  ;;  %353 = vst.msk [vmem:[%s823_s2 + $0x20] sm:$0xff] %vm276_vm1, %v342_v15 }
  0xd9   :  { %v348_v19 = vmul.f32 %v481_v48, %v316_v45 }
  0xdb   :  { %v483_v1 = vpop.eup %482  ;;  %356 = vst.msk [vmem:[%s823_s2 + $0x38] sm:$0xff] %vm276_vm1, %v348_v19 }
  0xdc   :  { %v346_v44 = vmul.f32 %v483_v1, %v311_v53 }
  0xde   :  { %355 = vst.msk [vmem:[%s823_s2 + $0x30] sm:$0xff] %vm276_vm1, %v346_v44 }

// kernel: _lambda_.53
= control target key start
LH: loop header
LB: loop body
LE: loop exit
PB: predicated region body
PF: predicated region fallthrough
CT: control target
= control target key end

     0   :  { %vm50_vm0 = vcmask 261120   ;;  %vm168_vm1 = vcmask 257024   ;;  %s317_s1 = inlined_call_operand.vmem [shape: bf16[32,32], index: 1, kind: input, shape index: {}]   ;;  %s318_s0 = inlined_call_operand.vmem [shape: f32[64,32], index: 0, kind: input, shape index: {}]   ;;  %s319_s2 = inlined_call_operand.vmem [shape: f32[1,32], index: 2, kind: input, shape index: {}]   ;;  %s320_s3 = inlined_call_operand.vmem [shape: bf16[64,32], index: 3, kind: output, shape index: {}]  }
   0x1   :  { %v226_v0 = vld [vmem:[%s317_s1] sm:$0xff]   ;;  %v227_v1 = vld [vmem:[%s317_s1 + $0x8] sm:$0xff]   ;;  %v17_v7 = vld [vmem:[%s318_s0 + $0x10] sm:$0xff] }
   0x2   :  { %210 = vmatprep.subr.bf16.mxu0 %v226_v0  ;;  %222 = vmatprep.subr.bf16.mxu1 %v226_v0  ;;  %v15_v2 = vld [vmem:[%s318_s0] sm:$0xff]  ;;  %v16_v3 = vld [vmem:[%s318_s0 + $0x8] sm:$0xff]  ;;  %v18_v8 = vld [vmem:[%s318_s0 + $0x18] sm:$0xff] }
   0x3   :  { %v19_v4 = vld [vmem:[%s318_s0 + $0x20] sm:$0xff]  ;;  %211 = vmatpush3.bf16.msra.mxu0 %v226_v0  ;;  %224 = vmatpush3.bf16.msra.mxu1 %v226_v0  ;;  %v23_v5 = vpack.c.bf16 %v16_v3, %v15_v2  ;;  %v20_v6 = vld [vmem:[%s318_s0 + $0x28] sm:$0xff]  ;;  %v21_v10 = vld [vmem:[%s318_s0 + $0x30] sm:$0xff]  ;;  %v24_v12 = vpack.c.bf16 %v18_v8, %v17_v7 }
   0x4   :  { %212 = vmatprep.subr.bf16.mxu0 %v227_v1  ;;  %223 = vmatprep.subr.bf16.mxu1 %v227_v1  ;;  %v25_v9 = vpack.c.bf16 %v20_v6, %v19_v4  ;;  %v22_v11 = vld [vmem:[%s318_s0 + $0x38] sm:$0xff]  ;;  %v181_v14 = vld [vmem:[%s319_s2] ss:$0 sm:$0xff] }
   0x5   :  { %214 = vmatprep.mubr.msk.bf16.mxu0 %vm50_vm0, %v23_v5  ;;  %v26_v13 = vpack.c.bf16 %v22_v11, %v21_v10 }
   0x6   :  { %218 = vmatprep.mubr.msk.bf16.mxu1 %vm50_vm0, %v25_v9 }
   0x7   :  { %213 = vmatpush3.bf16.msra.mxu0 %v227_v1  ;;  %225 = vmatpush3.bf16.msra.mxu1 %v227_v1 }
   0xa   :  { %215 = vmatmul.mubr.msk.bf16.vlgmr.msra.gmra.mrb[0].mxu0 %vm50_vm0, %v24_v12  ;;  %219 = vmatmul.mubr.msk.bf16.vlgmr.msra.gmra.mrb[0].mxu1 %vm50_vm0, %v26_v13 }
  0xdd   :  { %v216_v15 = vpop.f32.mrb[0].mxu0  ;;  %v220_v16 = vpop.f32.mrb[0].mxu1 }
  0xde   :  { %v106_v17 = vadd.f32 %v216_v15, %v181_v14  ;;  %v122_v18 = vadd.f32 %v220_v16, %v181_v14  ;;  %v97_v19 = vpop.f32.mrb[1].mxu0  ;;  %v113_v20 = vpop.f32.mrb[1].mxu1 }
  0xdf   :  { %v98_v21 = vadd.f32 %v181_v14, %v97_v19  ;;  %v114_v22 = vadd.f32 %v181_v14, %v113_v20  ;;  %v217_v23 = vpop.f32.mrb[2].mxu0  ;;  %v221_v24 = vpop.f32.mrb[2].mxu1 }
  0xe0   :  { %v130_v25 = vmax.f32 %v106_v17, 0.0  ;;  %v134_v26 = vmax.f32 %v122_v18, 0.0  ;;  %v109_v27 = vadd.f32 %v217_v23, %v181_v14  ;;  %v125_v28 = vadd.f32 %v221_v24, %v181_v14  ;;  %v100_v29 = vpop.f32.mrb[3].mxu0  ;;  %v116_v30 = vpop.f32.mrb[3].mxu1 }
  0xe1   :  { %v128_v31 = vmax.f32 %v98_v21, 0.0  ;;  %v132_v32 = vmax.f32 %v114_v22, 0.0  ;;  %v101_v33 = vadd.f32 %v181_v14, %v100_v29  ;;  %v117_v34 = vadd.f32 %v181_v14, %v116_v30 }
  0xe2   :  { %v198_v35 = vpack.c.bf16 %v130_v25, %v130_v25  ;;  %v202_v36 = vpack.c.bf16 %v134_v26, %v134_v26  ;;  %v131_v37 = vmax.f32 %v109_v27, 0.0  ;;  %v135_v38 = vmax.f32 %v125_v28, 0.0 }
  0xe3   :  { %v196_v39 = vpack.c.bf16 %v128_v31, %v128_v31  ;;  %v200_v40 = vpack.c.bf16 %v132_v32, %v132_v32  ;;  %v129_v41 = vmax.f32 %v101_v33, 0.0  ;;  %v133_v42 = vmax.f32 %v117_v34, 0.0 }
  0xe4   :  { %171 = vst.msk [vmem:[%s320_s3 + $0x8] sm:$0xf] %vm168_vm1, %v198_v35  ;;  %175 = vst.msk [vmem:[%s320_s3 + $0x18] sm:$0xf] %vm168_vm1, %v202_v36  ;;  %v199_v43 = vpack.c.bf16 %v131_v37, %v131_v37  ;;  %v203_v44 = vpack.c.bf16 %v135_v38, %v135_v38 }
  0xe5   :  { %169 = vst.msk [vmem:[%s320_s3] sm:$0xf] %vm168_vm1, %v196_v39  ;;  %173 = vst.msk [vmem:[%s320_s3 + $0x10] sm:$0xf] %vm168_vm1, %v200_v40  ;;  %v197_v45 = vpack.c.bf16 %v129_v41, %v129_v41  ;;  %v201_v46 = vpack.c.bf16 %v133_v42, %v133_v42 }
  0xe6   :  { %172 = vst.msk [vmem:[%s320_s3 + $0xc] sm:$0xf] %vm168_vm1, %v199_v43  ;;  %176 = vst.msk [vmem:[%s320_s3 + $0x1c] sm:$0xf] %vm168_vm1, %v203_v44 }
  0xe7   :  { %170 = vst.msk [vmem:[%s320_s3 + $0x4] sm:$0xf] %vm168_vm1, %v197_v45  ;;  %174 = vst.msk [vmem:[%s320_s3 + $0x14] sm:$0xf] %vm168_vm1, %v201_v46 }

// kernel: _lambda_.52
= control target key start
LH: loop header
LB: loop body
LE: loop exit
PB: predicated region body
PF: predicated region fallthrough
CT: control target
= control target key end

     0   :  { %vm66_vm0 = vcmask 261120   ;;  %vm255_vm1 = vcmask 257024   ;;  %s418_s1 = inlined_call_operand.vmem [shape: bf16[32,32], index: 1, kind: input, shape index: {}]   ;;  %s419_s0 = inlined_call_operand.vmem [shape: bf16[64,32], index: 0, kind: input, shape index: {}]   ;;  %s420_s2 = inlined_call_operand.vmem [shape: f32[1,32], index: 2, kind: input, shape index: {}]   ;;  %s421_s3 = inlined_call_operand.vmem [shape: bf16[64,32], index: 3, kind: output, shape index: {}]  }
   0x1   :  { %v317_v0 = vld [vmem:[%s418_s1] sm:$0xff]   ;;  %v318_v1 = vld [vmem:[%s418_s1 + $0x8] sm:$0xff]   ;;  %v321_v3 = vld [vmem:[%s419_s0 + $0x10] sm:$0xff]  }
   0x2   :  { %301 = vmatprep.subr.bf16.mxu0 %v317_v0  ;;  %313 = vmatprep.subr.bf16.mxu1 %v317_v0  ;;  %v319_v2 = vld [vmem:[%s419_s0] sm:$0xff]   ;;  %v320_v4 = vld [vmem:[%s419_s0 + $0x8] sm:$0xff]   ;;  %v322_v5 = vld [vmem:[%s419_s0 + $0x18] sm:$0xff]  }
   0x3   :  { %302 = vmatpush3.bf16.msra.mxu0 %v317_v0  ;;  %315 = vmatpush3.bf16.msra.mxu1 %v317_v0  ;;  %v268_v6 = vld [vmem:[%s420_s2] ss:$0 sm:$0xff] }
   0x4   :  { %303 = vmatprep.subr.bf16.mxu0 %v318_v1  ;;  %305 = vmatprep.mubr.msk.bf16.mxu0 %vm66_vm0, %v319_v2 }
   0x5   :  { %314 = vmatprep.subr.bf16.mxu1 %v318_v1  ;;  %309 = vmatprep.mubr.msk.bf16.mxu1 %vm66_vm0, %v321_v3 }
   0x7   :  { %304 = vmatpush3.bf16.msra.mxu0 %v318_v1  ;;  %316 = vmatpush3.bf16.msra.mxu1 %v318_v1 }
   0xa   :  { %306 = vmatmul.mubr.msk.bf16.vlgmr.msra.gmra.mrb[0].mxu0 %vm66_vm0, %v320_v4  ;;  %310 = vmatmul.mubr.msk.bf16.vlgmr.msra.gmra.mrb[0].mxu1 %vm66_vm0, %v322_v5 }
  0xdd   :  { %v307_v7 = vpop.f32.mrb[0].mxu0  ;;  %v311_v8 = vpop.f32.mrb[0].mxu1 }
  0xde   :  { %v113_v9 = vpop.f32.mrb[1].mxu0  ;;  %v129_v10 = vpop.f32.mrb[1].mxu1  ;;  %v122_v16 = vadd.f32 %v307_v7, %v268_v6  ;;  %v138_v29 = vadd.f32 %v311_v8, %v268_v6 }
  0xdf   :  { %v114_v11 = vadd.f32 %v268_v6, %v113_v9  ;;  %v308_v12 = vpop.f32.mrb[2].mxu0  ;;  %v312_v13 = vpop.f32.mrb[2].mxu1  ;;  %v130_v21 = vadd.f32 %v268_v6, %v129_v10 }
  0xe0   :  { %v116_v14 = vpop.f32.mrb[3].mxu0  ;;  %v132_v15 = vpop.f32.mrb[3].mxu1  ;;  %v125_v19 = vadd.f32 %v308_v12, %v268_v6  ;;  %v147_v23 = vsel %vm66_vm0, %v122_v16, 0.0  ;;  %v141_v31 = vadd.f32 %v312_v13, %v268_v6  ;;  %v155_v34 = vsel %vm66_vm0, %v138_v29, 0.0 }
  0xe1   :  { %v117_v17 = vadd.f32 %v268_v6, %v116_v14  ;;  %v144_v18 = vsel %vm66_vm0, %v114_v11, 0.0  ;;  %v151_v26 = vsel %vm66_vm0, %v130_v21, 0.0  ;;  %v133_v27 = vadd.f32 %v268_v6, %v132_v15 }
  0xe2   :  { %v149_v25 = vsel %vm66_vm0, %v125_v19, 0.0  ;;  %v157_v36 = vsel %vm66_vm0, %v141_v31, 0.0 }
  0xe3   :  { %v145_v20 = vsel %vm66_vm0, %v117_v17, 0.0  ;;  %v153_v32 = vsel %vm66_vm0, %v133_v27, 0.0 }
  0xe4   :  { %v146_v22 = vadd.f32 %v145_v20, %v144_v18 }
  0xe6   :  { %v148_v24 = vadd.f32 %v147_v23, %v146_v22 }
  0xe8   :  { %v150_v28 = vadd.f32 %v149_v25, %v148_v24 }
  0xea   :  { %v152_v30 = vadd.f32 %v151_v26, %v150_v28 }
  0xec   :  { %v154_v33 = vadd.f32 %v153_v32, %v152_v30 }
  0xee   :  { %v156_v35 = vadd.f32 %v155_v34, %v154_v33 }
  0xf0   :  { %v158_v37 = vadd.f32 %v157_v36, %v156_v35 }
  0xf2   :  { %v159_v38 = vrot.slane %v158_v37, 4 }
  0xf4   :  { %v160_v39 = vadd.f32 %v159_v38, %v158_v37 }
  0xf6   :  { %v161_v40 = vrot.slane %v160_v39, 2 }
  0xf8   :  { %v162_v41 = vadd.f32 %v161_v40, %v160_v39 }
  0xfa   :  { %v163_v42 = vrot.slane %v162_v41, 1 }
  0xfc   :  { %v164_v43 = vadd.f32 %v163_v42, %v162_v41 }
  0xfe   :  { %v166_v44 = vmul.f32 0.015625, %v164_v43 }
 0x100   :  { %v167_v45 = vsub.f32 %v114_v11, %v166_v44  ;;  %v168_v46 = vsub.f32 %v117_v17, %v166_v44  ;;  %v169_v47 = vsub.f32 %v122_v16, %v166_v44  ;;  %v170_v48 = vsub.f32 %v125_v19, %v166_v44 }
 0x101   :  { %v171_v49 = vsub.f32 %v130_v21, %v166_v44  ;;  %v172_v50 = vsub.f32 %v133_v27, %v166_v44  ;;  %v173_v51 = vsub.f32 %v138_v29, %v166_v44  ;;  %v174_v52 = vsub.f32 %v141_v31, %v166_v44 }
 0x102   :  { %v175_v53 = vmul.f32 %v167_v45, %v167_v45  ;;  %v176_v54 = vmul.f32 %v168_v46, %v168_v46  ;;  %v177_v55 = vmul.f32 %v169_v47, %v169_v47  ;;  %v178_v56 = vmul.f32 %v170_v48, %v170_v48 }
 0x103   :  { %v179_v60 = vmul.f32 %v171_v49, %v171_v49  ;;  %v180_v63 = vmul.f32 %v172_v50, %v172_v50  ;;  %v181_v2 = vmul.f32 %v173_v51, %v173_v51  ;;  %v182_v5 = vmul.f32 %v174_v52, %v174_v52 }
 0x104   :  { %v183_v57 = vsel %vm66_vm0, %v175_v53, 0.0  ;;  %v184_v58 = vsel %vm66_vm0, %v176_v54, 0.0  ;;  %v186_v61 = vsel %vm66_vm0, %v177_v55, 0.0  ;;  %v188_v0 = vsel %vm66_vm0, %v178_v56, 0.0 }
 0x105   :  { %v185_v59 = vadd.f32 %v184_v58, %v183_v57  ;;  %v190_v3 = vsel %vm66_vm0, %v179_v60, 0.0  ;;  %v192_v6 = vsel %vm66_vm0, %v180_v63, 0.0  ;;  %v194_v8 = vsel %vm66_vm0, %v181_v2, 0.0 }
 0x106   :  { %v196_v10 = vsel %vm66_vm0, %v182_v5, 0.0 }
 0x107   :  { %v187_v62 = vadd.f32 %v186_v61, %v185_v59 }
 0x109   :  { %v189_v1 = vadd.f32 %v188_v0, %v187_v62 }
 0x10b   :  { %v191_v4 = vadd.f32 %v190_v3, %v189_v1 }
 0x10d   :  { %v193_v7 = vadd.f32 %v192_v6, %v191_v4 }
 0x10f   :  { %v195_v9 = vadd.f32 %v194_v8, %v193_v7 }
 0x111   :  { %v197_v11 = vadd.f32 %v196_v10, %v195_v9 }
 0x113   :  { %v198_v12 = vrot.slane %v197_v11, 4 }
 0x115   :  { %v199_v13 = vadd.f32 %v198_v12, %v197_v11 }
 0x117   :  { %v200_v14 = vrot.slane %v199_v13, 2 }
 0x119   :  { %v201_v15 = vadd.f32 %v200_v14, %v199_v13 }
 0x11b   :  { %v202_v16 = vrot.slane %v201_v15, 1 }
 0x11d   :  { %v203_v17 = vadd.f32 %v202_v16, %v201_v15 }
 0x11f   :  { %v204_v18 = vmul.f32 0.015625, %v203_v17 }
 0x121   :  { %v205_v19 = vadd.f32 1e-05, %v204_v18 }
 0x123   :  { %323 = vrsqrt.f32 %v205_v19 }
 0x12d   :  { %v324_v20 = vpop.eup %323 }
 0x12e   :  { %v207_v21 = vmul.f32 %v324_v20, %v167_v45  ;;  %v208_v22 = vmul.f32 %v324_v20, %v168_v46  ;;  %v209_v23 = vmul.f32 %v324_v20, %v169_v47  ;;  %v210_v24 = vmul.f32 %v324_v20, %v170_v48 }
 0x12f   :  { %v211_v25 = vmul.f32 %v324_v20, %v171_v49  ;;  %v212_v26 = vmul.f32 %v324_v20, %v172_v50  ;;  %v213_v27 = vmul.f32 %v324_v20, %v173_v51  ;;  %v214_v28 = vmul.f32 %v324_v20, %v174_v52 }
 0x130   :  { %v215_v29 = vmax.f32 %v207_v21, 0.0  ;;  %v216_v30 = vmax.f32 %v208_v22, 0.0  ;;  %v217_v31 = vmax.f32 %v209_v23, 0.0  ;;  %v218_v32 = vmax.f32 %v210_v24, 0.0 }
 0x131   :  { %v219_v33 = vmax.f32 %v211_v25, 0.0  ;;  %v220_v34 = vmax.f32 %v212_v26, 0.0  ;;  %v221_v35 = vmax.f32 %v213_v27, 0.0  ;;  %v222_v36 = vmax.f32 %v214_v28, 0.0 }
 0x132   :  { %v287_v37 = vpack.c.bf16 %v215_v29, %v215_v29  ;;  %v288_v38 = vpack.c.bf16 %v216_v30, %v216_v30  ;;  %v289_v39 = vpack.c.bf16 %v217_v31, %v217_v31  ;;  %v290_v40 = vpack.c.bf16 %v218_v32, %v218_v32 }
 0x133   :  { %v291_v41 = vpack.c.bf16 %v219_v33, %v219_v33  ;;  %v292_v42 = vpack.c.bf16 %v220_v34, %v220_v34  ;;  %v293_v43 = vpack.c.bf16 %v221_v35, %v221_v35  ;;  %v294_v44 = vpack.c.bf16 %v222_v36, %v222_v36 }
 0x134   :  { %256 = vst.msk [vmem:[%s421_s3] sm:$0xf] %vm255_vm1, %v287_v37  ;;  %257 = vst.msk [vmem:[%s421_s3 + $0x4] sm:$0xf] %vm255_vm1, %v288_v38 }
 0x135   :  { %258 = vst.msk [vmem:[%s421_s3 + $0x8] sm:$0xf] %vm255_vm1, %v289_v39  ;;  %259 = vst.msk [vmem:[%s421_s3 + $0xc] sm:$0xf] %vm255_vm1, %v290_v40 }
 0x136   :  { %260 = vst.msk [vmem:[%s421_s3 + $0x10] sm:$0xf] %vm255_vm1, %v291_v41  ;;  %261 = vst.msk [vmem:[%s421_s3 + $0x14] sm:$0xf] %vm255_vm1, %v292_v42 }
 0x137   :  { %262 = vst.msk [vmem:[%s421_s3 + $0x18] sm:$0xf] %vm255_vm1, %v293_v43  ;;  %263 = vst.msk [vmem:[%s421_s3 + $0x1c] sm:$0xf] %vm255_vm1, %v294_v44 }

// kernel: _lambda_.57
= control target key start
LH: loop header
LB: loop body
LE: loop exit
PB: predicated region body
PF: predicated region fallthrough
CT: control target
= control target key end

     0   :  { %vm84_vm0 = vcmask 261120   ;;  %s992_s1 = inlined_call_operand.vmem [shape: bf16[32,128], index: 1, kind: input, shape index: {}]   ;;  %s993_s0 = inlined_call_operand.vmem [shape: bf16[64,32], index: 0, kind: input, shape index: {}]   ;;  %s994_s3 = inlined_call_operand.vmem [shape: bf16[128,128], index: 3, kind: input, shape index: {}]   ;;  %s995_s5 = inlined_call_operand.vmem [shape: bf16[128,128], index: 5, kind: input, shape index: {}]   ;;  %s996_s2 = inlined_call_operand.vmem [shape: f32[1,128], index: 2, kind: input, shape index: {}]   ;;  %s997_s7 = inlined_call_operand.vmem [shape: bf16[128,128], index: 7, kind: input, shape index: {}]   ;;  %s998_s4 = inlined_call_operand.vmem [shape: f32[1,128], index: 4, kind: input, shape index: {}]   ;;  %s999_s6 = inlined_call_operand.vmem [shape: f32[1,128], index: 6, kind: input, shape index: {}]   ;;  %s1000_s8 = inlined_call_operand.vmem [shape: f32[1,128], index: 8, kind: input, shape index: {}]   ;;  %s1001_s9 = inlined_call_operand.vmem [shape: f32[64,128], index: 9, kind: output, shape index: {}]  }
   0x1   :  { %v782_v0 = vld [vmem:[%s992_s1] sm:$0xff]   ;;  %v783_v1 = vld [vmem:[%s992_s1 + $0x8] sm:$0xff]   ;;  %v786_v4 = vld [vmem:[%s993_s0 + $0x10] sm:$0xff]  }
   0x2   :  { %698 = vmatprep.subr.bf16.mxu0 %v782_v0  ;;  %v784_v2 = vld [vmem:[%s993_s0] sm:$0xff]   ;;  %v785_v3 = vld [vmem:[%s993_s0 + $0x8] sm:$0xff]   ;;  %v790_v7 = vld [vmem:[%s994_s3 + $0x10] sm:$0xff]  }
   0x3   :  { %699 = vmatpush3.bf16.msra.mxu0 %v782_v0  ;;  %702 = vmatprep.mubr.msk.bf16.mxu0 %vm84_vm0, %v784_v2  ;;  %v788_v5 = vld [vmem:[%s994_s3] sm:$0xff]   ;;  %v789_v6 = vld [vmem:[%s994_s3 + $0x8] sm:$0xff]   ;;  %v787_v8 = vld [vmem:[%s993_s0 + $0x18] sm:$0xff]  }
   0x4   :  { %700 = vmatprep.subr.bf16.mxu0 %v783_v1  ;;  %710 = vmatprep.subr.bf16.mxu1 %v788_v5  ;;  %v791_v9 = vld [vmem:[%s994_s3 + $0x18] sm:$0xff]   ;;  %v792_v10 = vld [vmem:[%s994_s3 + $0x20] sm:$0xff]   ;;  %v793_v11 = vld [vmem:[%s994_s3 + $0x28] sm:$0xff]  }
   0x5   :  { %711 = vmatpush3.bf16.msra.mxu1 %v788_v5  ;;  %v794_v12 = vld [vmem:[%s994_s3 + $0x30] sm:$0xff]   ;;  %v795_v13 = vld [vmem:[%s994_s3 + $0x38] sm:$0xff]   ;;  %v796_v14 = vld [vmem:[%s995_s5] sm:$0xff]  }
   0x6   :  { %712 = vmatprep.subr.bf16.mxu1 %v789_v6  ;;  %v797_v15 = vld [vmem:[%s995_s5 + $0x8] sm:$0xff]   ;;  %v798_v16 = vld [vmem:[%s995_s5 + $0x10] sm:$0xff]   ;;  %v799_v17 = vld [vmem:[%s995_s5 + $0x18] sm:$0xff]  }
   0x7   :  { %701 = vmatpush3.bf16.msra.mxu0 %v783_v1  ;;  %v800_v18 = vld [vmem:[%s995_s5 + $0x20] sm:$0xff]   ;;  %v801_v19 = vld [vmem:[%s995_s5 + $0x28] sm:$0xff]   ;;  %v802_v49 = vld [vmem:[%s995_s5 + $0x30] sm:$0xff]  }
   0x8   :  { %734 = vmatprep.subr.bf16.mxu0 %v796_v14  ;;  %v618_v20 = vld [vmem:[%s996_s2] ss:$0 sm:$0xff]  ;;  %v803_v50 = vld [vmem:[%s995_s5 + $0x38] sm:$0xff]   ;;  %v805_v52 = vld [vmem:[%s997_s7 + $0x8] sm:$0xff]  }
   0x9   :  { %713 = vmatpush3.bf16.msra.mxu1 %v789_v6  ;;  %v804_v51 = vld [vmem:[%s997_s7] sm:$0xff]   ;;  %v806_v53 = vld [vmem:[%s997_s7 + $0x10] sm:$0xff]   ;;  %v807_v54 = vld [vmem:[%s997_s7 + $0x18] sm:$0xff]  }
   0xa   :  { %703 = vmatmul.mubr.msk.bf16.vlgmr.msra.gmra.mrb[0].mxu0 %vm84_vm0, %v785_v3  ;;  %714 = vmatprep.subr.bf16.mxu1 %v790_v7  ;;  %v808_v55 = vld [vmem:[%s997_s7 + $0x20] sm:$0xff]   ;;  %v809_v56 = vld [vmem:[%s997_s7 + $0x28] sm:$0xff]  }
   0xb   :  { %706 = vmatprep.mubr.msk.bf16.mxu0 %vm84_vm0, %v786_v4  ;;  %735 = vmatpush3.bf16.msra.mxu0 %v796_v14  ;;  %v629_v57 = vld [vmem:[%s998_s4] ss:$0 sm:$0xff] }
   0xc   :  { %736 = vmatprep.subr.bf16.mxu0 %v797_v15 }
   0xd   :  { %715 = vmatpush3.bf16.msra.mxu1 %v790_v7 }
   0xe   :  { %716 = vmatprep.subr.bf16.mxu1 %v791_v9 }
   0xf   :  { %737 = vmatpush3.bf16.msra.mxu0 %v797_v15 }
  0x10   :  { %738 = vmatprep.subr.bf16.mxu0 %v798_v16 }
  0x11   :  { %717 = vmatpush3.bf16.msra.mxu1 %v791_v9 }
  0x12   :  { %707 = vmatmul.mubr.msk.bf16.gmra.mrb[4].mxu0 %vm84_vm0, %v787_v8  ;;  %718 = vmatprep.subr.bf16.mxu1 %v792_v10 }
  0x13   :  { %739 = vmatpush3.bf16.msra.mxu0 %v798_v16 }
  0x14   :  { %740 = vmatprep.subr.bf16.mxu0 %v799_v17 }
  0x15   :  { %719 = vmatpush3.bf16.msra.mxu1 %v792_v10 }
  0x16   :  { %720 = vmatprep.subr.bf16.mxu1 %v793_v11 }
  0x17   :  { %741 = vmatpush3.bf16.msra.mxu0 %v799_v17 }
  0x18   :  { %742 = vmatprep.subr.bf16.mxu0 %v800_v18 }
  0x19   :  { %721 = vmatpush3.bf16.msra.mxu1 %v793_v11 }
  0x1a   :  { %722 = vmatprep.subr.bf16.mxu1 %v794_v12 }
  0x1b   :  { %743 = vmatpush3.bf16.msra.mxu0 %v800_v18 }
  0x1c   :  { %744 = vmatprep.subr.bf16.mxu0 %v801_v19 }
  0x1d   :  { %723 = vmatpush3.bf16.msra.mxu1 %v794_v12 }
  0x1e   :  { %724 = vmatprep.subr.bf16.mxu1 %v795_v13 }
  0x1f   :  { %745 = vmatpush3.bf16.msra.mxu0 %v801_v19 }
  0x20   :  { %746 = vmatprep.subr.bf16.mxu0 %v802_v49 }
  0x21   :  { %725 = vmatpush3.bf16.msra.mxu1 %v795_v13 }
  0x22   :  { %758 = vmatprep.subr.bf16.mxu1 %v804_v51 }
  0x23   :  { %747 = vmatpush3.bf16.msra.mxu0 %v802_v49 }
  0x24   :  { %748 = vmatprep.subr.bf16.mxu0 %v803_v50 }
  0x27   :  { %749 = vmatpush3.bf16.msra.mxu0 %v803_v50 }
  0xdd   :  { %v704_v21 = vpop.f32.mrb[0].mxu0 }
  0xde   :  { %v140_v22 = vadd.f32 %v704_v21, %v618_v20  ;;  %v131_v23 = vpop.f32.mrb[1].mxu0 }
  0xdf   :  { %v132_v24 = vadd.f32 %v618_v20, %v131_v23  ;;  %v705_v25 = vpop.f32.mrb[2].mxu0  ;;  %v811_v23 = vld [vmem:[%s997_s7 + $0x38] sm:$0xff]  }
  0xe0   :  { %v143_v26 = vadd.f32 %v705_v25, %v618_v20  ;;  %v134_v27 = vpop.f32.mrb[3].mxu0  ;;  %v164_v29 = vmax.f32 %v140_v22, 0.0  ;;  %v810_v22 = vld [vmem:[%s997_s7 + $0x30] sm:$0xff]  }
  0xe1   :  { %v135_v28 = vadd.f32 %v618_v20, %v134_v27  ;;  %v162_v31 = vmax.f32 %v132_v24, 0.0  ;;  %v638_v24 = vld [vmem:[%s999_s6] ss:$0 sm:$0xff] }
  0xe2   :  { %v165_v30 = vmax.f32 %v143_v26, 0.0 }
  0xe3   :  { %v163_v32 = vmax.f32 %v135_v28, 0.0 }
  0xe4   :  { %v171_v33 = vpack.c.bf16 %v165_v30, %v164_v29 }
  0xe5   :  { %v708_v34 = vpop.f32.mrb[4].mxu0  ;;  %v170_v35 = vpack.c.bf16 %v163_v32, %v162_v31 }
  0xe6   :  { %v156_v36 = vadd.f32 %v708_v34, %v618_v20  ;;  %v147_v37 = vpop.f32.mrb[5].mxu0 }
  0xe7   :  { %v148_v38 = vadd.f32 %v618_v20, %v147_v37  ;;  %v709_v39 = vpop.f32.mrb[6].mxu0  ;;  %726 = vmatprep.mubr.bf16.mxu1 %v170_v35 }
  0xe8   :  { %v159_v40 = vadd.f32 %v709_v39, %v618_v20  ;;  %v150_v41 = vpop.f32.mrb[7].mxu0  ;;  %727 = vmatmul.mubr.bf16.vlgmr.msra.gmra.mrb[0].mxu1 %v171_v33  ;;  %v168_v43 = vmax.f32 %v156_v36, 0.0 }
  0xe9   :  { %v151_v42 = vadd.f32 %v618_v20, %v150_v41  ;;  %v166_v45 = vmax.f32 %v148_v38, 0.0  ;;  %759 = vmatpush3.bf16.msra.mxu1 %v804_v51 }
  0xea   :  { %v169_v44 = vmax.f32 %v159_v40, 0.0  ;;  %760 = vmatprep.subr.bf16.mxu1 %v805_v52 }
  0xeb   :  { %v167_v46 = vmax.f32 %v151_v42, 0.0 }
  0xec   :  { %v173_v47 = vpack.c.bf16 %v169_v44, %v168_v43 }
  0xed   :  { %v172_v48 = vpack.c.bf16 %v167_v46, %v166_v45  ;;  %761 = vmatpush3.bf16.msra.mxu1 %v805_v52 }
  0xee   :  { %762 = vmatprep.subr.bf16.mxu1 %v806_v53 }
  0xef   :  { %730 = vmatprep.mubr.bf16.mxu1 %v172_v48 }
  0xf0   :  { %731 = vmatmul.mubr.bf16.gmra.mrb[4].mxu1 %v173_v47 }
  0xf1   :  { %763 = vmatpush3.bf16.msra.mxu1 %v806_v53  ;;  %v647_v53 = vld [vmem:[%s1000_s8] ss:$0 sm:$0xff] }
  0xf2   :  { %764 = vmatprep.subr.bf16.mxu1 %v807_v54 }
  0xf5   :  { %765 = vmatpush3.bf16.msra.mxu1 %v807_v54 }
  0xf6   :  { %766 = vmatprep.subr.bf16.mxu1 %v808_v55 }
  0xf9   :  { %767 = vmatpush3.bf16.msra.mxu1 %v808_v55 }
  0xfa   :  { %768 = vmatprep.subr.bf16.mxu1 %v809_v56 }
  0xfd   :  { %769 = vmatpush3.bf16.msra.mxu1 %v809_v56 }
  0xfe   :  { %770 = vmatprep.subr.bf16.mxu1 %v810_v22 }
 0x101   :  { %771 = vmatpush3.bf16.msra.mxu1 %v810_v22 }
 0x102   :  { %772 = vmatprep.subr.bf16.mxu1 %v811_v23 }
 0x105   :  { %773 = vmatpush3.bf16.msra.mxu1 %v811_v23 }
 0x1bb   :  { %v728_v58 = vpop.f32.mrb[0].mxu1 }
 0x1bc   :  { %v288_v59 = vadd.f32 %v728_v58, %v629_v57  ;;  %v279_v60 = vpop.f32.mrb[1].mxu1 }
 0x1bd   :  { %v280_v61 = vadd.f32 %v629_v57, %v279_v60  ;;  %v729_v62 = vpop.f32.mrb[2].mxu1 }
 0x1be   :  { %v291_v63 = vadd.f32 %v729_v62, %v629_v57  ;;  %v282_v0 = vpop.f32.mrb[3].mxu1  ;;  %v312_v2 = vmax.f32 %v288_v59, 0.0 }
 0x1bf   :  { %v283_v1 = vadd.f32 %v629_v57, %v282_v0  ;;  %v310_v4 = vmax.f32 %v280_v61, 0.0 }
 0x1c0   :  { %v313_v3 = vmax.f32 %v291_v63, 0.0 }
 0x1c1   :  { %v311_v5 = vmax.f32 %v283_v1, 0.0 }
 0x1c2   :  { %v319_v6 = vpack.c.bf16 %v313_v3, %v312_v2 }
 0x1c3   :  { %v318_v7 = vpack.c.bf16 %v311_v5, %v310_v4  ;;  %v732_v8 = vpop.f32.mrb[4].mxu1 }
 0x1c4   :  { %v304_v9 = vadd.f32 %v732_v8, %v629_v57  ;;  %v295_v10 = vpop.f32.mrb[5].mxu1 }
 0x1c5   :  { %v296_v11 = vadd.f32 %v629_v57, %v295_v10  ;;  %v733_v12 = vpop.f32.mrb[6].mxu1  ;;  %750 = vmatprep.mubr.bf16.mxu0 %v318_v7 }
 0x1c6   :  { %v307_v13 = vadd.f32 %v733_v12, %v629_v57  ;;  %v298_v14 = vpop.f32.mrb[7].mxu1  ;;  %751 = vmatmul.mubr.bf16.vlgmr.msra.gmra.mrb[8].mxu0 %v319_v6  ;;  %v316_v16 = vmax.f32 %v304_v9, 0.0 }
 0x1c7   :  { %v299_v15 = vadd.f32 %v629_v57, %v298_v14  ;;  %v314_v18 = vmax.f32 %v296_v11, 0.0 }
 0x1c8   :  { %v317_v17 = vmax.f32 %v307_v13, 0.0 }
 0x1c9   :  { %v315_v19 = vmax.f32 %v299_v15, 0.0 }
 0x1ca   :  { %v321_v20 = vpack.c.bf16 %v317_v17, %v316_v16 }
 0x1cb   :  { %v320_v21 = vpack.c.bf16 %v315_v19, %v314_v18 }
 0x1cd   :  { %754 = vmatprep.mubr.bf16.mxu0 %v320_v21 }
 0x1ce   :  { %755 = vmatmul.mubr.bf16.gmra.mrb[12].mxu0 %v321_v20 }
 0x299   :  { %v752_v25 = vpop.f32.mrb[8].mxu0 }
 0x29a   :  { %v436_v26 = vadd.f32 %v752_v25, %v638_v24  ;;  %v427_v27 = vpop.f32.mrb[9].mxu0 }
 0x29b   :  { %v428_v28 = vadd.f32 %v638_v24, %v427_v27  ;;  %v753_v29 = vpop.f32.mrb[10].mxu0 }
 0x29c   :  { %v439_v30 = vadd.f32 %v753_v29, %v638_v24  ;;  %v430_v31 = vpop.f32.mrb[11].mxu0  ;;  %v460_v33 = vmax.f32 %v436_v26, 0.0 }
 0x29d   :  { %v431_v32 = vadd.f32 %v638_v24, %v430_v31  ;;  %v458_v35 = vmax.f32 %v428_v28, 0.0 }
 0x29e   :  { %v461_v34 = vmax.f32 %v439_v30, 0.0 }
 0x29f   :  { %v459_v36 = vmax.f32 %v431_v32, 0.0 }
 0x2a0   :  { %v467_v37 = vpack.c.bf16 %v461_v34, %v460_v33 }
 0x2a1   :  { %v466_v38 = vpack.c.bf16 %v459_v36, %v458_v35  ;;  %v756_v39 = vpop.f32.mrb[12].mxu0 }
 0x2a2   :  { %v452_v40 = vadd.f32 %v756_v39, %v638_v24  ;;  %v443_v41 = vpop.f32.mrb[13].mxu0 }
 0x2a3   :  { %v444_v42 = vadd.f32 %v638_v24, %v443_v41  ;;  %v757_v43 = vpop.f32.mrb[14].mxu0  ;;  %774 = vmatprep.mubr.bf16.mxu1 %v466_v38 }
 0x2a4   :  { %v455_v44 = vadd.f32 %v757_v43, %v638_v24  ;;  %v446_v45 = vpop.f32.mrb[15].mxu0  ;;  %775 = vmatmul.mubr.bf16.vlgmr.msra.gmra.mrb[8].mxu1 %v467_v37  ;;  %v464_v47 = vmax.f32 %v452_v40, 0.0 }
 0x2a5   :  { %v447_v46 = vadd.f32 %v638_v24, %v446_v45  ;;  %v462_v49 = vmax.f32 %v444_v42, 0.0 }
 0x2a6   :  { %v465_v48 = vmax.f32 %v455_v44, 0.0 }
 0x2a7   :  { %v463_v50 = vmax.f32 %v447_v46, 0.0 }
 0x2a8   :  { %v469_v51 = vpack.c.bf16 %v465_v48, %v464_v47 }
 0x2a9   :  { %v468_v52 = vpack.c.bf16 %v463_v50, %v462_v49 }
 0x2ab   :  { %778 = vmatprep.mubr.bf16.mxu1 %v468_v52 }
 0x2ac   :  { %779 = vmatmul.mubr.bf16.gmra.mrb[12].mxu1 %v469_v51 }
 0x377   :  { %v776_v54 = vpop.f32.mrb[8].mxu1 }
 0x378   :  { %v584_v55 = vadd.f32 %v776_v54, %v647_v53  ;;  %v575_v56 = vpop.f32.mrb[9].mxu1 }
 0x379   :  { %v576_v57 = vadd.f32 %v647_v53, %v575_v56  ;;  %v777_v58 = vpop.f32.mrb[10].mxu1 }
 0x37a   :  { %608 = vst [vmem:[%s1001_s9 + $0x10] sm:$0xff] %v584_v55  ;;  %v587_v59 = vadd.f32 %v777_v58, %v647_v53  ;;  %v578_v60 = vpop.f32.mrb[11].mxu1 }
 0x37b   :  { %606 = vst [vmem:[%s1001_s9] sm:$0xff] %v576_v57  ;;  %v579_v61 = vadd.f32 %v647_v53, %v578_v60 }
 0x37c   :  { %609 = vst [vmem:[%s1001_s9 + $0x18] sm:$0xff] %v587_v59 }
 0x37d   :  { %607 = vst [vmem:[%s1001_s9 + $0x8] sm:$0xff] %v579_v61 }
 0x37f   :  { %v780_v62 = vpop.f32.mrb[12].mxu1 }
 0x380   :  { %v600_v63 = vadd.f32 %v780_v62, %v647_v53  ;;  %v591_v0 = vpop.f32.mrb[13].mxu1 }
 0x381   :  { %v592_v1 = vadd.f32 %v647_v53, %v591_v0  ;;  %v781_v2 = vpop.f32.mrb[14].mxu1 }
 0x382   :  { %612 = vst [vmem:[%s1001_s9 + $0x30] sm:$0xff] %v600_v63  ;;  %v603_v3 = vadd.f32 %v781_v2, %v647_v53  ;;  %v594_v4 = vpop.f32.mrb[15].mxu1 }
 0x383   :  { %610 = vst [vmem:[%s1001_s9 + $0x20] sm:$0xff] %v592_v1  ;;  %v595_v5 = vadd.f32 %v647_v53, %v594_v4 }
 0x384   :  { %613 = vst [vmem:[%s1001_s9 + $0x38] sm:$0xff] %v603_v3 }
 0x385   :  { %611 = vst [vmem:[%s1001_s9 + $0x28] sm:$0xff] %v595_v5 }

</bundles_post_ra>
